<compile_context>
chip_gen: v7x
topology: tpu7x:2x2x1
jax: 0.10.0
libtpu: 0.0.40
codegen_flags: <defaults>
</compile_context>

<pallas_src>
import functools
import math

import jax
import jax.numpy as jnp
from jax.experimental import pallas as pl
from jax.experimental.pallas import tpu as pltpu


_HIDDEN = (1280, 1024, 896, 768, 512, 384, 256, 256, 128, 64, 32)
_MAX_SINGLE_K = 2048  # single K step as long as K fits comfortably in VMEM


def _round_up(x, m):
    return ((x + m - 1) // m) * m


def _pick_tile(dim, candidates):
    for c in candidates:
        if dim % c == 0:
            return c
    return dim


# ----------------------------------------------------------------------------
# Pallas kernel: out = prelu(A @ W + b, alpha)   (alpha = 1.0 -> identity)
# ----------------------------------------------------------------------------
def _linear_prelu_kernel(a_ref, w_ref, b_ref, alpha_ref, o_ref, acc_ref):
    k = pl.program_id(2)

    @pl.when(k == 0)
    def _():
        acc_ref[...] = jnp.zeros_like(acc_ref)

    # bf16 x bf16 -> f32 accumulate on the MXU.
    acc_ref[...] += jnp.dot(a_ref[...], w_ref[...],
                            preferred_element_type=jnp.float32)

    @pl.when(k == pl.num_programs(2) - 1)
    def _():
        out = acc_ref[...] + b_ref[...]          # (tm, tn) + (1, tn) broadcast
        alpha = alpha_ref[0, 0]                  # scalar from SMEM
        out = jnp.where(out > 0.0, out, alpha * out)
        o_ref[...] = out.astype(o_ref.dtype)


def _pallas_linear_prelu(h, w_p, b_p, alpha, *, tm, out_dtype):
    """h: (Mp, Kp) bf16, w_p: (Kp, Np) bf16, b_p: (1, Np) f32, alpha: (1,1) f32."""
    Mp, Kp = h.shape
    Kp_w, Np = w_p.shape
    assert Kp == Kp_w, (Kp, Kp_w)
    assert Mp % tm == 0

    tn = _pick_tile(Np, (512, 256, 128))
    tk = Kp if Kp <= _MAX_SINGLE_K else _pick_tile(Kp, (512, 256, 128))
    grid = (Mp // tm, Np // tn, Kp // tk)

    out_bytes = jnp.dtype(out_dtype).itemsize
    cost = pl.CostEstimate(
        flops=2 * Mp * Kp * Np,
        transcendentals=0,
        bytes_accessed=(Mp * Kp * 2 + Kp * Np * 2 + Np * 4 + Mp * Np * out_bytes),
    )

    return pl.pallas_call(
        _linear_prelu_kernel,
        out_shape=jax.ShapeDtypeStruct((Mp, Np), out_dtype),
        grid_spec=pltpu.PrefetchScalarGridSpec(
            num_scalar_prefetch=0,
            grid=grid,
            in_specs=[
                pl.BlockSpec((tm, tk), lambda i, j, k: (i, k)),
                pl.BlockSpec((tk, tn), lambda i, j, k: (k, j)),
                pl.BlockSpec((1, tn), lambda i, j, k: (0, j)),
                pl.BlockSpec(memory_space=pltpu.MemorySpace.SMEM),  # alpha scalar
            ],
            out_specs=pl.BlockSpec((tm, tn), lambda i, j, k: (i, j)),
            scratch_shapes=[pltpu.VMEM((tm, tn), jnp.float32)],
        ),
        compiler_params=pltpu.CompilerParams(
            dimension_semantics=("parallel", "parallel", "arbitrary"),
            vmem_limit_bytes=48 * 1024 * 1024),
        cost_estimate=cost,
    )(h, w_p, b_p, alpha)


# ----------------------------------------------------------------------------
# Parameters (PyTorch-style init), pre-packed for the kernel at init time.
# ----------------------------------------------------------------------------
def init_params(key, input_size, output_size):
    dims = [input_size] + list(_HIDDEN) + [output_size]
    layers = []
    n_layers = len(dims) - 1
    for i in range(n_layers):
        k_in, n_out = dims[i], dims[i + 1]
        key, kw, kb = jax.random.split(key, 3)
        bound = 1.0 / math.sqrt(k_in)
        w = jax.random.uniform(kw, (n_out, k_in), jnp.float32, -bound, bound)
        b = jax.random.uniform(kb, (n_out,), jnp.float32, -bound, bound)

        kp, np_ = _round_up(k_in, 128), _round_up(n_out, 128)
        # Pre-transpose to (K, N), pad to lane-aligned (Kp, Np), cast bf16 once.
        w_p = (jnp.zeros((kp, np_), jnp.float32)
               .at[:k_in, :n_out].set(w.T).astype(jnp.bfloat16))
        b_p = jnp.zeros((1, np_), jnp.float32).at[0, :n_out].set(b)

        has_prelu = i < n_layers - 1           # PReLU after every linear but the last
        alpha0 = 0.25 if has_prelu else 1.0    # alpha = 1.0  => identity activation
        alpha = jnp.full((1, 1), alpha0, jnp.float32)
        layers.append((w_p, b_p, alpha))
    return tuple(layers)


# ----------------------------------------------------------------------------
# Forward pass (Dropout = identity, inference mode).
# ----------------------------------------------------------------------------
@functools.partial(jax.jit, static_argnames=("output_size",))
def mlp_forward(layers, x, *, output_size):
    M, K = x.shape
    tm = min(512, _round_up(M, 8))
    Mp = _round_up(M, tm)
    Kp0 = layers[0][0].shape[0]

    # Pad batch/feature dims once and cast to bf16; stays padded bf16 between layers.
    h = jnp.zeros((Mp, Kp0), jnp.bfloat16).at[:M, :K].set(x.astype(jnp.bfloat16))

    n = len(layers)
    for i, (w_p, b_p, alpha) in enumerate(layers):
        out_dtype = jnp.float32 if i == n - 1 else jnp.bfloat16
        h = _pallas_linear_prelu(h, w_p, b_p, alpha, tm=tm, out_dtype=out_dtype)

    return h[:M, :output_size]


def _reference_forward(layers, x, output_size):
    """Pure-JAX reference with the same bf16 operand numerics as the kernel."""
    M, K = x.shape
    Kp0 = layers[0][0].shape[0]
    h = jnp.zeros((M, Kp0), jnp.float32).at[:, :K].set(x).astype(jnp.bfloat16)
    for i, (w_p, b_p, alpha) in enumerate(layers):
        out = jnp.dot(h, w_p, preferred_element_type=jnp.float32) + b_p
        out = jnp.where(out > 0.0, out, alpha[0, 0] * out)
        h = out if i == len(layers) - 1 else out.astype(jnp.bfloat16)
    return h[:, :output_size]


if __name__ == "__main__":
    key = jax.random.PRNGKey(0)
    kparam, kdata = jax.random.split(key)

    INPUT_SIZE = 32
    OUTPUT_SIZE = 2
    BATCH = 2

    layers = init_params(kparam, INPUT_SIZE, OUTPUT_SIZE)
    x = jax.random.uniform(kdata, (BATCH, INPUT_SIZE), jnp.float32, -1.0, 1.0)

    y = mlp_forward(layers, x, output_size=OUTPUT_SIZE)
    y = jax.block_until_ready(y)

    assert y.shape == (BATCH, OUTPUT_SIZE), y.shape
    assert bool(jnp.all(jnp.isfinite(y)))

    y_ref = _reference_forward(layers, x, OUTPUT_SIZE)
    err = float(jnp.max(jnp.abs(y - y_ref)))
    scale = float(jnp.max(jnp.abs(y_ref))) + 1e-6
    assert err <= 1e-2 * scale + 1e-3, (err, scale)

    print("KERNEL_OK")
</pallas_src>

<mosaic_0001>
module attributes {stable_mosaic.version = 11 : i64} {
  func.func @_linear_prelu_kernel(%arg0: i32, %arg1: i32, %arg2: i32, %arg3: memref<8x128xbf16, #tpu.memory_space<vmem>>, %arg4: memref<128x256xbf16, #tpu.memory_space<vmem>>, %arg5: memref<1x256xf32, #tpu.memory_space<vmem>>, %arg6: memref<1x1xf32, #tpu.memory_space<smem>>, %arg7: memref<8x256xbf16, #tpu.memory_space<vmem>>, %arg8: memref<8x256xf32, #tpu.memory_space<vmem>>) attributes {dimension_semantics = [#tpu.dimension_semantics<parallel>, #tpu.dimension_semantics<parallel>, #tpu.dimension_semantics<arbitrary>], iteration_bounds = array<i64: 1, 5, 1>, scalar_prefetch = 0 : i64, scratch_operands = 1 : i64, tpu.core_type = #tpu.core_type<tc>, window_params = [{transform_indices = @transform_0, window_bounds = array<i64: 8, 128>}, {transform_indices = @transform_1, window_bounds = array<i64: 128, 256>}, {transform_indices = @transform_2, window_bounds = array<i64: 1, 256>}, {transform_indices = @transform_3, window_bounds = array<i64: 1, 1>}, {transform_indices = @transform_4, window_bounds = array<i64: 8, 256>}]} {
    %c0_i32 = arith.constant 0 : i32
    %0 = arith.cmpi eq, %arg2, %c0_i32 : i32
    %1 = arith.extui %0 : i1 to i32
    %c0_i32_0 = arith.constant 0 : i32
    %2 = arith.cmpi ne, %1, %c0_i32_0 : i32
    scf.if %2 {
      %cst_10 = arith.constant 0.000000e+00 : f32
      %12 = vector.broadcast %cst_10 : f32 to vector<8x256xf32>
      %c0_11 = arith.constant 0 : index
      %c0_12 = arith.constant 0 : index
      %13 = vector.load %arg8[%c0_11, %c0_12] : memref<8x256xf32, #tpu.memory_space<vmem>>, vector<8x256xf32>
      tpu.vector_store %arg8[%c0_11, %c0_12], %12 {strides = array<i32>} : memref<8x256xf32, #tpu.memory_space<vmem>>, vector<8x256xf32>,
    } else {
    }
    %c0 = arith.constant 0 : index
    %c0_1 = arith.constant 0 : index
    %3 = vector.load %arg8[%c0, %c0_1] : memref<8x256xf32, #tpu.memory_space<vmem>>, vector<8x256xf32>
    %c0_2 = arith.constant 0 : index
    %c0_3 = arith.constant 0 : index
    %4 = vector.load %arg3[%c0_2, %c0_3] : memref<8x128xbf16, #tpu.memory_space<vmem>>, vector<8x128xbf16>
    %c0_4 = arith.constant 0 : index
    %c0_5 = arith.constant 0 : index
    %5 = vector.load %arg4[%c0_4, %c0_5] : memref<128x256xbf16, #tpu.memory_space<vmem>>, vector<128x256xbf16>
    %cst = arith.constant dense<0.000000e+00> : vector<8x256xf32>
    %6 = tpu.matmul %4, %5, %cst {dimension_numbers = #tpu.dot_dimension_numbers<[1], [0], [0], [1], [0, 0, 1, 1], [], []>} : vector<8x128xbf16>, vector<128x256xbf16>, vector<8x256xf32> -> vector<8x256xf32>
    %7 = arith.addf %3, %6 : vector<8x256xf32>
    %c0_6 = arith.constant 0 : index
    %c0_7 = arith.constant 0 : index
    %8 = vector.load %arg8[%c0_6, %c0_7] : memref<8x256xf32, #tpu.memory_space<vmem>>, vector<8x256xf32>
    tpu.vector_store %arg8[%c0_6, %c0_7], %7 {strides = array<i32>} : memref<8x256xf32, #tpu.memory_space<vmem>>, vector<8x256xf32>,
    %c0_i32_8 = arith.constant 0 : i32
    %9 = arith.cmpi eq, %arg2, %c0_i32_8 : i32
    %10 = arith.extui %9 : i1 to i32
    %c0_i32_9 = arith.constant 0 : i32
    %11 = arith.cmpi ne, %10, %c0_i32_9 : i32
    scf.if %11 {
      %c0_10 = arith.constant 0 : index
      %c0_11 = arith.constant 0 : index
      %12 = vector.load %arg8[%c0_10, %c0_11] : memref<8x256xf32, #tpu.memory_space<vmem>>, vector<8x256xf32>
      %c0_12 = arith.constant 0 : index
      %c0_13 = arith.constant 0 : index
      %13 = vector.load %arg5[%c0_12, %c0_13] : memref<1x256xf32, #tpu.memory_space<vmem>>, vector<1x256xf32>
      %14 = vector.broadcast %13 : vector<1x256xf32> to vector<8x256xf32>
      %15 = arith.addf %12, %14 : vector<8x256xf32>
      %c0_14 = arith.constant 0 : index
      %c0_15 = arith.constant 0 : index
      %16 = memref.load %arg6[%c0_14, %c0_15] : memref<1x1xf32, #tpu.memory_space<smem>>
      %cst_16 = arith.constant 0.000000e+00 : f32
      %17 = vector.broadcast %cst_16 : f32 to vector<8x256xf32>
      %18 = arith.cmpf ogt, %15, %17 : vector<8x256xf32>
      %19 = vector.broadcast %16 : f32 to vector<8x256xf32>
      %20 = arith.mulf %19, %15 : vector<8x256xf32>
      %21 = arith.select %18, %15, %20 : vector<8x256xi1>, vector<8x256xf32>
      %22 = arith.truncf %21 : vector<8x256xf32> to vector<8x256xbf16>
      %c0_17 = arith.constant 0 : index
      %c0_18 = arith.constant 0 : index
      %23 = vector.load %arg7[%c0_17, %c0_18] : memref<8x256xbf16, #tpu.memory_space<vmem>>, vector<8x256xbf16>
      tpu.vector_store %arg7[%c0_17, %c0_18], %22 {strides = array<i32>} : memref<8x256xbf16, #tpu.memory_space<vmem>>, vector<8x256xbf16>,
    } else {
    }
    return
  }
  func.func @transform_0(%arg0: i32, %arg1: i32, %arg2: i32) -> (i32, i32) {
    %c0_i32 = arith.constant 0 : i32
    return %arg0, %arg2 : i32, i32
  }
  func.func @transform_1(%arg0: i32, %arg1: i32, %arg2: i32) -> (i32, i32) {
    %c0_i32 = arith.constant 0 : i32
    return %arg2, %arg1 : i32, i32
  }
  func.func @transform_2(%arg0: i32, %arg1: i32, %arg2: i32) -> (i32, i32) {
    %c0_i32 = arith.constant 0 : i32
    %c0_i32_0 = arith.constant 0 : i32
    return %c0_i32, %arg1 : i32, i32
  }
  func.func @transform_3(%arg0: i32, %arg1: i32, %arg2: i32) -> (i32, i32) {
    %c0_i32 = arith.constant 0 : i32
    %c0_i32_0 = arith.constant 0 : i32
    %c0_i32_1 = arith.constant 0 : i32
    return %c0_i32, %c0_i32_0 : i32, i32
  }
  func.func @transform_4(%arg0: i32, %arg1: i32, %arg2: i32) -> (i32, i32) {
    %c0_i32 = arith.constant 0 : i32
    return %arg0, %arg1 : i32, i32
  }
}

module attributes {stable_mosaic.version = 11 : i64} {
  func.func @_linear_prelu_kernel(%arg0: i32, %arg1: i32, %arg2: i32, %arg3: memref<8x1280xbf16, #tpu.memory_space<vmem>>, %arg4: memref<1280x512xbf16, #tpu.memory_space<vmem>>, %arg5: memref<1x512xf32, #tpu.memory_space<vmem>>, %arg6: memref<1x1xf32, #tpu.memory_space<smem>>, %arg7: memref<8x512xbf16, #tpu.memory_space<vmem>>, %arg8: memref<8x512xf32, #tpu.memory_space<vmem>>) attributes {dimension_semantics = [#tpu.dimension_semantics<parallel>, #tpu.dimension_semantics<parallel>, #tpu.dimension_semantics<arbitrary>], iteration_bounds = array<i64: 1, 2, 1>, scalar_prefetch = 0 : i64, scratch_operands = 1 : i64, tpu.core_type = #tpu.core_type<tc>, window_params = [{transform_indices = @transform_0, window_bounds = array<i64: 8, 1280>}, {transform_indices = @transform_1, window_bounds = array<i64: 1280, 512>}, {transform_indices = @transform_2, window_bounds = array<i64: 1, 512>}, {transform_indices = @transform_3, window_bounds = array<i64: 1, 1>}, {transform_indices = @transform_4, window_bounds = array<i64: 8, 512>}]} {
    %c0_i32 = arith.constant 0 : i32
    %0 = arith.cmpi eq, %arg2, %c0_i32 : i32
    %1 = arith.extui %0 : i1 to i32
    %c0_i32_0 = arith.constant 0 : i32
    %2 = arith.cmpi ne, %1, %c0_i32_0 : i32
    scf.if %2 {
      %cst_10 = arith.constant 0.000000e+00 : f32
      %12 = vector.broadcast %cst_10 : f32 to vector<8x512xf32>
      %c0_11 = arith.constant 0 : index
      %c0_12 = arith.constant 0 : index
      %13 = vector.load %arg8[%c0_11, %c0_12] : memref<8x512xf32, #tpu.memory_space<vmem>>, vector<8x512xf32>
      tpu.vector_store %arg8[%c0_11, %c0_12], %12 {strides = array<i32>} : memref<8x512xf32, #tpu.memory_space<vmem>>, vector<8x512xf32>,
    } else {
    }
    %c0 = arith.constant 0 : index
    %c0_1 = arith.constant 0 : index
    %3 = vector.load %arg8[%c0, %c0_1] : memref<8x512xf32, #tpu.memory_space<vmem>>, vector<8x512xf32>
    %c0_2 = arith.constant 0 : index
    %c0_3 = arith.constant 0 : index
    %4 = vector.load %arg3[%c0_2, %c0_3] : memref<8x1280xbf16, #tpu.memory_space<vmem>>, vector<8x1280xbf16>
    %c0_4 = arith.constant 0 : index
    %c0_5 = arith.constant 0 : index
    %5 = vector.load %arg4[%c0_4, %c0_5] : memref<1280x512xbf16, #tpu.memory_space<vmem>>, vector<1280x512xbf16>
    %cst = arith.constant dense<0.000000e+00> : vector<8x512xf32>
    %6 = tpu.matmul %4, %5, %cst {dimension_numbers = #tpu.dot_dimension_numbers<[1], [0], [0], [1], [0, 0, 1, 1], [], []>} : vector<8x1280xbf16>, vector<1280x512xbf16>, vector<8x512xf32> -> vector<8x512xf32>
    %7 = arith.addf %3, %6 : vector<8x512xf32>
    %c0_6 = arith.constant 0 : index
    %c0_7 = arith.constant 0 : index
    %8 = vector.load %arg8[%c0_6, %c0_7] : memref<8x512xf32, #tpu.memory_space<vmem>>, vector<8x512xf32>
    tpu.vector_store %arg8[%c0_6, %c0_7], %7 {strides = array<i32>} : memref<8x512xf32, #tpu.memory_space<vmem>>, vector<8x512xf32>,
    %c0_i32_8 = arith.constant 0 : i32
    %9 = arith.cmpi eq, %arg2, %c0_i32_8 : i32
    %10 = arith.extui %9 : i1 to i32
    %c0_i32_9 = arith.constant 0 : i32
    %11 = arith.cmpi ne, %10, %c0_i32_9 : i32
    scf.if %11 {
      %c0_10 = arith.constant 0 : index
      %c0_11 = arith.constant 0 : index
      %12 = vector.load %arg8[%c0_10, %c0_11] : memref<8x512xf32, #tpu.memory_space<vmem>>, vector<8x512xf32>
      %c0_12 = arith.constant 0 : index
      %c0_13 = arith.constant 0 : index
      %13 = vector.load %arg5[%c0_12, %c0_13] : memref<1x512xf32, #tpu.memory_space<vmem>>, vector<1x512xf32>
      %14 = vector.broadcast %13 : vector<1x512xf32> to vector<8x512xf32>
      %15 = arith.addf %12, %14 : vector<8x512xf32>
      %c0_14 = arith.constant 0 : index
      %c0_15 = arith.constant 0 : index
      %16 = memref.load %arg6[%c0_14, %c0_15] : memref<1x1xf32, #tpu.memory_space<smem>>
      %cst_16 = arith.constant 0.000000e+00 : f32
      %17 = vector.broadcast %cst_16 : f32 to vector<8x512xf32>
      %18 = arith.cmpf ogt, %15, %17 : vector<8x512xf32>
      %19 = vector.broadcast %16 : f32 to vector<8x512xf32>
      %20 = arith.mulf %19, %15 : vector<8x512xf32>
      %21 = arith.select %18, %15, %20 : vector<8x512xi1>, vector<8x512xf32>
      %22 = arith.truncf %21 : vector<8x512xf32> to vector<8x512xbf16>
      %c0_17 = arith.constant 0 : index
      %c0_18 = arith.constant 0 : index
      %23 = vector.load %arg7[%c0_17, %c0_18] : memref<8x512xbf16, #tpu.memory_space<vmem>>, vector<8x512xbf16>
      tpu.vector_store %arg7[%c0_17, %c0_18], %22 {strides = array<i32>} : memref<8x512xbf16, #tpu.memory_space<vmem>>, vector<8x512xbf16>,
    } else {
    }
    return
  }
  func.func @transform_0(%arg0: i32, %arg1: i32, %arg2: i32) -> (i32, i32) {
    %c0_i32 = arith.constant 0 : i32
    return %arg0, %arg2 : i32, i32
  }
  func.func @transform_1(%arg0: i32, %arg1: i32, %arg2: i32) -> (i32, i32) {
    %c0_i32 = arith.constant 0 : i32
    return %arg2, %arg1 : i32, i32
  }
  func.func @transform_2(%arg0: i32, %arg1: i32, %arg2: i32) -> (i32, i32) {
    %c0_i32 = arith.constant 0 : i32
    %c0_i32_0 = arith.constant 0 : i32
    return %c0_i32, %arg1 : i32, i32
  }
  func.func @transform_3(%arg0: i32, %arg1: i32, %arg2: i32) -> (i32, i32) {
    %c0_i32 = arith.constant 0 : i32
    %c0_i32_0 = arith.constant 0 : i32
    %c0_i32_1 = arith.constant 0 : i32
    return %c0_i32, %c0_i32_0 : i32, i32
  }
  func.func @transform_4(%arg0: i32, %arg1: i32, %arg2: i32) -> (i32, i32) {
    %c0_i32 = arith.constant 0 : i32
    return %arg0, %arg1 : i32, i32
  }
}

module attributes {stable_mosaic.version = 11 : i64} {
  func.func @_linear_prelu_kernel(%arg0: i32, %arg1: i32, %arg2: i32, %arg3: memref<8x896xbf16, #tpu.memory_space<vmem>>, %arg4: memref<896x256xbf16, #tpu.memory_space<vmem>>, %arg5: memref<1x256xf32, #tpu.memory_space<vmem>>, %arg6: memref<1x1xf32, #tpu.memory_space<smem>>, %arg7: memref<8x256xbf16, #tpu.memory_space<vmem>>, %arg8: memref<8x256xf32, #tpu.memory_space<vmem>>) attributes {dimension_semantics = [#tpu.dimension_semantics<parallel>, #tpu.dimension_semantics<parallel>, #tpu.dimension_semantics<arbitrary>], iteration_bounds = array<i64: 1, 3, 1>, scalar_prefetch = 0 : i64, scratch_operands = 1 : i64, tpu.core_type = #tpu.core_type<tc>, window_params = [{transform_indices = @transform_0, window_bounds = array<i64: 8, 896>}, {transform_indices = @transform_1, window_bounds = array<i64: 896, 256>}, {transform_indices = @transform_2, window_bounds = array<i64: 1, 256>}, {transform_indices = @transform_3, window_bounds = array<i64: 1, 1>}, {transform_indices = @transform_4, window_bounds = array<i64: 8, 256>}]} {
    %c0_i32 = arith.constant 0 : i32
    %0 = arith.cmpi eq, %arg2, %c0_i32 : i32
    %1 = arith.extui %0 : i1 to i32
    %c0_i32_0 = arith.constant 0 : i32
    %2 = arith.cmpi ne, %1, %c0_i32_0 : i32
    scf.if %2 {
      %cst_10 = arith.constant 0.000000e+00 : f32
      %12 = vector.broadcast %cst_10 : f32 to vector<8x256xf32>
      %c0_11 = arith.constant 0 : index
      %c0_12 = arith.constant 0 : index
      %13 = vector.load %arg8[%c0_11, %c0_12] : memref<8x256xf32, #tpu.memory_space<vmem>>, vector<8x256xf32>
      tpu.vector_store %arg8[%c0_11, %c0_12], %12 {strides = array<i32>} : memref<8x256xf32, #tpu.memory_space<vmem>>, vector<8x256xf32>,
    } else {
    }
    %c0 = arith.constant 0 : index
    %c0_1 = arith.constant 0 : index
    %3 = vector.load %arg8[%c0, %c0_1] : memref<8x256xf32, #tpu.memory_space<vmem>>, vector<8x256xf32>
    %c0_2 = arith.constant 0 : index
    %c0_3 = arith.constant 0 : index
    %4 = vector.load %arg3[%c0_2, %c0_3] : memref<8x896xbf16, #tpu.memory_space<vmem>>, vector<8x896xbf16>
    %c0_4 = arith.constant 0 : index
    %c0_5 = arith.constant 0 : index
    %5 = vector.load %arg4[%c0_4, %c0_5] : memref<896x256xbf16, #tpu.memory_space<vmem>>, vector<896x256xbf16>
    %cst = arith.constant dense<0.000000e+00> : vector<8x256xf32>
    %6 = tpu.matmul %4, %5, %cst {dimension_numbers = #tpu.dot_dimension_numbers<[1], [0], [0], [1], [0, 0, 1, 1], [], []>} : vector<8x896xbf16>, vector<896x256xbf16>, vector<8x256xf32> -> vector<8x256xf32>
    %7 = arith.addf %3, %6 : vector<8x256xf32>
    %c0_6 = arith.constant 0 : index
    %c0_7 = arith.constant 0 : index
    %8 = vector.load %arg8[%c0_6, %c0_7] : memref<8x256xf32, #tpu.memory_space<vmem>>, vector<8x256xf32>
    tpu.vector_store %arg8[%c0_6, %c0_7], %7 {strides = array<i32>} : memref<8x256xf32, #tpu.memory_space<vmem>>, vector<8x256xf32>,
    %c0_i32_8 = arith.constant 0 : i32
    %9 = arith.cmpi eq, %arg2, %c0_i32_8 : i32
    %10 = arith.extui %9 : i1 to i32
    %c0_i32_9 = arith.constant 0 : i32
    %11 = arith.cmpi ne, %10, %c0_i32_9 : i32
    scf.if %11 {
      %c0_10 = arith.constant 0 : index
      %c0_11 = arith.constant 0 : index
      %12 = vector.load %arg8[%c0_10, %c0_11] : memref<8x256xf32, #tpu.memory_space<vmem>>, vector<8x256xf32>
      %c0_12 = arith.constant 0 : index
      %c0_13 = arith.constant 0 : index
      %13 = vector.load %arg5[%c0_12, %c0_13] : memref<1x256xf32, #tpu.memory_space<vmem>>, vector<1x256xf32>
      %14 = vector.broadcast %13 : vector<1x256xf32> to vector<8x256xf32>
      %15 = arith.addf %12, %14 : vector<8x256xf32>
      %c0_14 = arith.constant 0 : index
      %c0_15 = arith.constant 0 : index
      %16 = memref.load %arg6[%c0_14, %c0_15] : memref<1x1xf32, #tpu.memory_space<smem>>
      %cst_16 = arith.constant 0.000000e+00 : f32
      %17 = vector.broadcast %cst_16 : f32 to vector<8x256xf32>
      %18 = arith.cmpf ogt, %15, %17 : vector<8x256xf32>
      %19 = vector.broadcast %16 : f32 to vector<8x256xf32>
      %20 = arith.mulf %19, %15 : vector<8x256xf32>
      %21 = arith.select %18, %15, %20 : vector<8x256xi1>, vector<8x256xf32>
      %22 = arith.truncf %21 : vector<8x256xf32> to vector<8x256xbf16>
      %c0_17 = arith.constant 0 : index
      %c0_18 = arith.constant 0 : index
      %23 = vector.load %arg7[%c0_17, %c0_18] : memref<8x256xbf16, #tpu.memory_space<vmem>>, vector<8x256xbf16>
      tpu.vector_store %arg7[%c0_17, %c0_18], %22 {strides = array<i32>} : memref<8x256xbf16, #tpu.memory_space<vmem>>, vector<8x256xbf16>,
    } else {
    }
    return
  }
  func.func @transform_0(%arg0: i32, %arg1: i32, %arg2: i32) -> (i32, i32) {
    %c0_i32 = arith.constant 0 : i32
    return %arg0, %arg2 : i32, i32
  }
  func.func @transform_1(%arg0: i32, %arg1: i32, %arg2: i32) -> (i32, i32) {
    %c0_i32 = arith.constant 0 : i32
    return %arg2, %arg1 : i32, i32
  }
  func.func @transform_2(%arg0: i32, %arg1: i32, %arg2: i32) -> (i32, i32) {
    %c0_i32 = arith.constant 0 : i32
    %c0_i32_0 = arith.constant 0 : i32
    return %c0_i32, %arg1 : i32, i32
  }
  func.func @transform_3(%arg0: i32, %arg1: i32, %arg2: i32) -> (i32, i32) {
    %c0_i32 = arith.constant 0 : i32
    %c0_i32_0 = arith.constant 0 : i32
    %c0_i32_1 = arith.constant 0 : i32
    return %c0_i32, %c0_i32_0 : i32, i32
  }
  func.func @transform_4(%arg0: i32, %arg1: i32, %arg2: i32) -> (i32, i32) {
    %c0_i32 = arith.constant 0 : i32
    return %arg0, %arg1 : i32, i32
  }
}

module attributes {stable_mosaic.version = 11 : i64} {
  func.func @_linear_prelu_kernel(%arg0: i32, %arg1: i32, %arg2: i32, %arg3: memref<8x1024xbf16, #tpu.memory_space<vmem>>, %arg4: memref<1024x128xbf16, #tpu.memory_space<vmem>>, %arg5: memref<1x128xf32, #tpu.memory_space<vmem>>, %arg6: memref<1x1xf32, #tpu.memory_space<smem>>, %arg7: memref<8x128xbf16, #tpu.memory_space<vmem>>, %arg8: memref<8x128xf32, #tpu.memory_space<vmem>>) attributes {dimension_semantics = [#tpu.dimension_semantics<parallel>, #tpu.dimension_semantics<parallel>, #tpu.dimension_semantics<arbitrary>], iteration_bounds = array<i64: 1, 7, 1>, scalar_prefetch = 0 : i64, scratch_operands = 1 : i64, tpu.core_type = #tpu.core_type<tc>, window_params = [{transform_indices = @transform_0, window_bounds = array<i64: 8, 1024>}, {transform_indices = @transform_1, window_bounds = array<i64: 1024, 128>}, {transform_indices = @transform_2, window_bounds = array<i64: 1, 128>}, {transform_indices = @transform_3, window_bounds = array<i64: 1, 1>}, {transform_indices = @transform_4, window_bounds = array<i64: 8, 128>}]} {
    %c0_i32 = arith.constant 0 : i32
    %0 = arith.cmpi eq, %arg2, %c0_i32 : i32
    %1 = arith.extui %0 : i1 to i32
    %c0_i32_0 = arith.constant 0 : i32
    %2 = arith.cmpi ne, %1, %c0_i32_0 : i32
    scf.if %2 {
      %cst_10 = arith.constant 0.000000e+00 : f32
      %12 = vector.broadcast %cst_10 : f32 to vector<8x128xf32>
      %c0_11 = arith.constant 0 : index
      %c0_12 = arith.constant 0 : index
      %13 = vector.load %arg8[%c0_11, %c0_12] : memref<8x128xf32, #tpu.memory_space<vmem>>, vector<8x128xf32>
      tpu.vector_store %arg8[%c0_11, %c0_12], %12 {strides = array<i32>} : memref<8x128xf32, #tpu.memory_space<vmem>>, vector<8x128xf32>,
    } else {
    }
    %c0 = arith.constant 0 : index
    %c0_1 = arith.constant 0 : index
    %3 = vector.load %arg8[%c0, %c0_1] : memref<8x128xf32, #tpu.memory_space<vmem>>, vector<8x128xf32>
    %c0_2 = arith.constant 0 : index
    %c0_3 = arith.constant 0 : index
    %4 = vector.load %arg3[%c0_2, %c0_3] : memref<8x1024xbf16, #tpu.memory_space<vmem>>, vector<8x1024xbf16>
    %c0_4 = arith.constant 0 : index
    %c0_5 = arith.constant 0 : index
    %5 = vector.load %arg4[%c0_4, %c0_5] : memref<1024x128xbf16, #tpu.memory_space<vmem>>, vector<1024x128xbf16>
    %cst = arith.constant dense<0.000000e+00> : vector<8x128xf32>
    %6 = tpu.matmul %4, %5, %cst {dimension_numbers = #tpu.dot_dimension_numbers<[1], [0], [0], [1], [0, 0, 1, 1], [], []>} : vector<8x1024xbf16>, vector<1024x128xbf16>, vector<8x128xf32> -> vector<8x128xf32>
    %7 = arith.addf %3, %6 : vector<8x128xf32>
    %c0_6 = arith.constant 0 : index
    %c0_7 = arith.constant 0 : index
    %8 = vector.load %arg8[%c0_6, %c0_7] : memref<8x128xf32, #tpu.memory_space<vmem>>, vector<8x128xf32>
    tpu.vector_store %arg8[%c0_6, %c0_7], %7 {strides = array<i32>} : memref<8x128xf32, #tpu.memory_space<vmem>>, vector<8x128xf32>,
    %c0_i32_8 = arith.constant 0 : i32
    %9 = arith.cmpi eq, %arg2, %c0_i32_8 : i32
    %10 = arith.extui %9 : i1 to i32
    %c0_i32_9 = arith.constant 0 : i32
    %11 = arith.cmpi ne, %10, %c0_i32_9 : i32
    scf.if %11 {
      %c0_10 = arith.constant 0 : index
      %c0_11 = arith.constant 0 : index
      %12 = vector.load %arg8[%c0_10, %c0_11] : memref<8x128xf32, #tpu.memory_space<vmem>>, vector<8x128xf32>
      %c0_12 = arith.constant 0 : index
      %c0_13 = arith.constant 0 : index
      %13 = vector.load %arg5[%c0_12, %c0_13] : memref<1x128xf32, #tpu.memory_space<vmem>>, vector<1x128xf32>
      %14 = vector.broadcast %13 : vector<1x128xf32> to vector<8x128xf32>
      %15 = arith.addf %12, %14 : vector<8x128xf32>
      %c0_14 = arith.constant 0 : index
      %c0_15 = arith.constant 0 : index
      %16 = memref.load %arg6[%c0_14, %c0_15] : memref<1x1xf32, #tpu.memory_space<smem>>
      %cst_16 = arith.constant 0.000000e+00 : f32
      %17 = vector.broadcast %cst_16 : f32 to vector<8x128xf32>
      %18 = arith.cmpf ogt, %15, %17 : vector<8x128xf32>
      %19 = vector.broadcast %16 : f32 to vector<8x128xf32>
      %20 = arith.mulf %19, %15 : vector<8x128xf32>
      %21 = arith.select %18, %15, %20 : vector<8x128xi1>, vector<8x128xf32>
      %22 = arith.truncf %21 : vector<8x128xf32> to vector<8x128xbf16>
      %c0_17 = arith.constant 0 : index
      %c0_18 = arith.constant 0 : index
      %23 = vector.load %arg7[%c0_17, %c0_18] : memref<8x128xbf16, #tpu.memory_space<vmem>>, vector<8x128xbf16>
      tpu.vector_store %arg7[%c0_17, %c0_18], %22 {strides = array<i32>} : memref<8x128xbf16, #tpu.memory_space<vmem>>, vector<8x128xbf16>,
    } else {
    }
    return
  }
  func.func @transform_0(%arg0: i32, %arg1: i32, %arg2: i32) -> (i32, i32) {
    %c0_i32 = arith.constant 0 : i32
    return %arg0, %arg2 : i32, i32
  }
  func.func @transform_1(%arg0: i32, %arg1: i32, %arg2: i32) -> (i32, i32) {
    %c0_i32 = arith.constant 0 : i32
    return %arg2, %arg1 : i32, i32
  }
  func.func @transform_2(%arg0: i32, %arg1: i32, %arg2: i32) -> (i32, i32) {
    %c0_i32 = arith.constant 0 : i32
    %c0_i32_0 = arith.constant 0 : i32
    return %c0_i32, %arg1 : i32, i32
  }
  func.func @transform_3(%arg0: i32, %arg1: i32, %arg2: i32) -> (i32, i32) {
    %c0_i32 = arith.constant 0 : i32
    %c0_i32_0 = arith.constant 0 : i32
    %c0_i32_1 = arith.constant 0 : i32
    return %c0_i32, %c0_i32_0 : i32, i32
  }
  func.func @transform_4(%arg0: i32, %arg1: i32, %arg2: i32) -> (i32, i32) {
    %c0_i32 = arith.constant 0 : i32
    return %arg0, %arg1 : i32, i32
  }
}

module attributes {stable_mosaic.version = 11 : i64} {
  func.func @_linear_prelu_kernel(%arg0: i32, %arg1: i32, %arg2: i32, %arg3: memref<8x768xbf16, #tpu.memory_space<vmem>>, %arg4: memref<768x512xbf16, #tpu.memory_space<vmem>>, %arg5: memref<1x512xf32, #tpu.memory_space<vmem>>, %arg6: memref<1x1xf32, #tpu.memory_space<smem>>, %arg7: memref<8x512xbf16, #tpu.memory_space<vmem>>, %arg8: memref<8x512xf32, #tpu.memory_space<vmem>>) attributes {dimension_semantics = [#tpu.dimension_semantics<parallel>, #tpu.dimension_semantics<parallel>, #tpu.dimension_semantics<arbitrary>], iteration_bounds = array<i64: 1, 1, 1>, scalar_prefetch = 0 : i64, scratch_operands = 1 : i64, tpu.core_type = #tpu.core_type<tc>, window_params = [{transform_indices = @transform_0, window_bounds = array<i64: 8, 768>}, {transform_indices = @transform_1, window_bounds = array<i64: 768, 512>}, {transform_indices = @transform_2, window_bounds = array<i64: 1, 512>}, {transform_indices = @transform_3, window_bounds = array<i64: 1, 1>}, {transform_indices = @transform_4, window_bounds = array<i64: 8, 512>}]} {
    %c0_i32 = arith.constant 0 : i32
    %0 = arith.cmpi eq, %arg2, %c0_i32 : i32
    %1 = arith.extui %0 : i1 to i32
    %c0_i32_0 = arith.constant 0 : i32
    %2 = arith.cmpi ne, %1, %c0_i32_0 : i32
    scf.if %2 {
      %cst_10 = arith.constant 0.000000e+00 : f32
      %12 = vector.broadcast %cst_10 : f32 to vector<8x512xf32>
      %c0_11 = arith.constant 0 : index
      %c0_12 = arith.constant 0 : index
      %13 = vector.load %arg8[%c0_11, %c0_12] : memref<8x512xf32, #tpu.memory_space<vmem>>, vector<8x512xf32>
      tpu.vector_store %arg8[%c0_11, %c0_12], %12 {strides = array<i32>} : memref<8x512xf32, #tpu.memory_space<vmem>>, vector<8x512xf32>,
    } else {
    }
    %c0 = arith.constant 0 : index
    %c0_1 = arith.constant 0 : index
    %3 = vector.load %arg8[%c0, %c0_1] : memref<8x512xf32, #tpu.memory_space<vmem>>, vector<8x512xf32>
    %c0_2 = arith.constant 0 : index
    %c0_3 = arith.constant 0 : index
    %4 = vector.load %arg3[%c0_2, %c0_3] : memref<8x768xbf16, #tpu.memory_space<vmem>>, vector<8x768xbf16>
    %c0_4 = arith.constant 0 : index
    %c0_5 = arith.constant 0 : index
    %5 = vector.load %arg4[%c0_4, %c0_5] : memref<768x512xbf16, #tpu.memory_space<vmem>>, vector<768x512xbf16>
    %cst = arith.constant dense<0.000000e+00> : vector<8x512xf32>
    %6 = tpu.matmul %4, %5, %cst {dimension_numbers = #tpu.dot_dimension_numbers<[1], [0], [0], [1], [0, 0, 1, 1], [], []>} : vector<8x768xbf16>, vector<768x512xbf16>, vector<8x512xf32> -> vector<8x512xf32>
    %7 = arith.addf %3, %6 : vector<8x512xf32>
    %c0_6 = arith.constant 0 : index
    %c0_7 = arith.constant 0 : index
    %8 = vector.load %arg8[%c0_6, %c0_7] : memref<8x512xf32, #tpu.memory_space<vmem>>, vector<8x512xf32>
    tpu.vector_store %arg8[%c0_6, %c0_7], %7 {strides = array<i32>} : memref<8x512xf32, #tpu.memory_space<vmem>>, vector<8x512xf32>,
    %c0_i32_8 = arith.constant 0 : i32
    %9 = arith.cmpi eq, %arg2, %c0_i32_8 : i32
    %10 = arith.extui %9 : i1 to i32
    %c0_i32_9 = arith.constant 0 : i32
    %11 = arith.cmpi ne, %10, %c0_i32_9 : i32
    scf.if %11 {
      %c0_10 = arith.constant 0 : index
      %c0_11 = arith.constant 0 : index
      %12 = vector.load %arg8[%c0_10, %c0_11] : memref<8x512xf32, #tpu.memory_space<vmem>>, vector<8x512xf32>
      %c0_12 = arith.constant 0 : index
      %c0_13 = arith.constant 0 : index
      %13 = vector.load %arg5[%c0_12, %c0_13] : memref<1x512xf32, #tpu.memory_space<vmem>>, vector<1x512xf32>
      %14 = vector.broadcast %13 : vector<1x512xf32> to vector<8x512xf32>
      %15 = arith.addf %12, %14 : vector<8x512xf32>
      %c0_14 = arith.constant 0 : index
      %c0_15 = arith.constant 0 : index
      %16 = memref.load %arg6[%c0_14, %c0_15] : memref<1x1xf32, #tpu.memory_space<smem>>
      %cst_16 = arith.constant 0.000000e+00 : f32
      %17 = vector.broadcast %cst_16 : f32 to vector<8x512xf32>
      %18 = arith.cmpf ogt, %15, %17 : vector<8x512xf32>
      %19 = vector.broadcast %16 : f32 to vector<8x512xf32>
      %20 = arith.mulf %19, %15 : vector<8x512xf32>
      %21 = arith.select %18, %15, %20 : vector<8x512xi1>, vector<8x512xf32>
      %22 = arith.truncf %21 : vector<8x512xf32> to vector<8x512xbf16>
      %c0_17 = arith.constant 0 : index
      %c0_18 = arith.constant 0 : index
      %23 = vector.load %arg7[%c0_17, %c0_18] : memref<8x512xbf16, #tpu.memory_space<vmem>>, vector<8x512xbf16>
      tpu.vector_store %arg7[%c0_17, %c0_18], %22 {strides = array<i32>} : memref<8x512xbf16, #tpu.memory_space<vmem>>, vector<8x512xbf16>,
    } else {
    }
    return
  }
  func.func @transform_0(%arg0: i32, %arg1: i32, %arg2: i32) -> (i32, i32) {
    %c0_i32 = arith.constant 0 : i32
    return %arg0, %arg2 : i32, i32
  }
  func.func @transform_1(%arg0: i32, %arg1: i32, %arg2: i32) -> (i32, i32) {
    %c0_i32 = arith.constant 0 : i32
    return %arg2, %arg1 : i32, i32
  }
  func.func @transform_2(%arg0: i32, %arg1: i32, %arg2: i32) -> (i32, i32) {
    %c0_i32 = arith.constant 0 : i32
    %c0_i32_0 = arith.constant 0 : i32
    return %c0_i32, %arg1 : i32, i32
  }
  func.func @transform_3(%arg0: i32, %arg1: i32, %arg2: i32) -> (i32, i32) {
    %c0_i32 = arith.constant 0 : i32
    %c0_i32_0 = arith.constant 0 : i32
    %c0_i32_1 = arith.constant 0 : i32
    return %c0_i32, %c0_i32_0 : i32, i32
  }
  func.func @transform_4(%arg0: i32, %arg1: i32, %arg2: i32) -> (i32, i32) {
    %c0_i32 = arith.constant 0 : i32
    return %arg0, %arg1 : i32, i32
  }
}

module attributes {stable_mosaic.version = 11 : i64} {
  func.func @_linear_prelu_kernel(%arg0: i32, %arg1: i32, %arg2: i32, %arg3: memref<8x512xbf16, #tpu.memory_space<vmem>>, %arg4: memref<512x128xbf16, #tpu.memory_space<vmem>>, %arg5: memref<1x128xf32, #tpu.memory_space<vmem>>, %arg6: memref<1x1xf32, #tpu.memory_space<smem>>, %arg7: memref<8x128xbf16, #tpu.memory_space<vmem>>, %arg8: memref<8x128xf32, #tpu.memory_space<vmem>>) attributes {dimension_semantics = [#tpu.dimension_semantics<parallel>, #tpu.dimension_semantics<parallel>, #tpu.dimension_semantics<arbitrary>], iteration_bounds = array<i64: 1, 3, 1>, scalar_prefetch = 0 : i64, scratch_operands = 1 : i64, tpu.core_type = #tpu.core_type<tc>, window_params = [{transform_indices = @transform_0, window_bounds = array<i64: 8, 512>}, {transform_indices = @transform_1, window_bounds = array<i64: 512, 128>}, {transform_indices = @transform_2, window_bounds = array<i64: 1, 128>}, {transform_indices = @transform_3, window_bounds = array<i64: 1, 1>}, {transform_indices = @transform_4, window_bounds = array<i64: 8, 128>}]} {
    %c0_i32 = arith.constant 0 : i32
    %0 = arith.cmpi eq, %arg2, %c0_i32 : i32
    %1 = arith.extui %0 : i1 to i32
    %c0_i32_0 = arith.constant 0 : i32
    %2 = arith.cmpi ne, %1, %c0_i32_0 : i32
    scf.if %2 {
      %cst_10 = arith.constant 0.000000e+00 : f32
      %12 = vector.broadcast %cst_10 : f32 to vector<8x128xf32>
      %c0_11 = arith.constant 0 : index
      %c0_12 = arith.constant 0 : index
      %13 = vector.load %arg8[%c0_11, %c0_12] : memref<8x128xf32, #tpu.memory_space<vmem>>, vector<8x128xf32>
      tpu.vector_store %arg8[%c0_11, %c0_12], %12 {strides = array<i32>} : memref<8x128xf32, #tpu.memory_space<vmem>>, vector<8x128xf32>,
    } else {
    }
    %c0 = arith.constant 0 : index
    %c0_1 = arith.constant 0 : index
    %3 = vector.load %arg8[%c0, %c0_1] : memref<8x128xf32, #tpu.memory_space<vmem>>, vector<8x128xf32>
    %c0_2 = arith.constant 0 : index
    %c0_3 = arith.constant 0 : index
    %4 = vector.load %arg3[%c0_2, %c0_3] : memref<8x512xbf16, #tpu.memory_space<vmem>>, vector<8x512xbf16>
    %c0_4 = arith.constant 0 : index
    %c0_5 = arith.constant 0 : index
    %5 = vector.load %arg4[%c0_4, %c0_5] : memref<512x128xbf16, #tpu.memory_space<vmem>>, vector<512x128xbf16>
    %cst = arith.constant dense<0.000000e+00> : vector<8x128xf32>
    %6 = tpu.matmul %4, %5, %cst {dimension_numbers = #tpu.dot_dimension_numbers<[1], [0], [0], [1], [0, 0, 1, 1], [], []>} : vector<8x512xbf16>, vector<512x128xbf16>, vector<8x128xf32> -> vector<8x128xf32>
    %7 = arith.addf %3, %6 : vector<8x128xf32>
    %c0_6 = arith.constant 0 : index
    %c0_7 = arith.constant 0 : index
    %8 = vector.load %arg8[%c0_6, %c0_7] : memref<8x128xf32, #tpu.memory_space<vmem>>, vector<8x128xf32>
    tpu.vector_store %arg8[%c0_6, %c0_7], %7 {strides = array<i32>} : memref<8x128xf32, #tpu.memory_space<vmem>>, vector<8x128xf32>,
    %c0_i32_8 = arith.constant 0 : i32
    %9 = arith.cmpi eq, %arg2, %c0_i32_8 : i32
    %10 = arith.extui %9 : i1 to i32
    %c0_i32_9 = arith.constant 0 : i32
    %11 = arith.cmpi ne, %10, %c0_i32_9 : i32
    scf.if %11 {
      %c0_10 = arith.constant 0 : index
      %c0_11 = arith.constant 0 : index
      %12 = vector.load %arg8[%c0_10, %c0_11] : memref<8x128xf32, #tpu.memory_space<vmem>>, vector<8x128xf32>
      %c0_12 = arith.constant 0 : index
      %c0_13 = arith.constant 0 : index
      %13 = vector.load %arg5[%c0_12, %c0_13] : memref<1x128xf32, #tpu.memory_space<vmem>>, vector<1x128xf32>
      %14 = vector.broadcast %13 : vector<1x128xf32> to vector<8x128xf32>
      %15 = arith.addf %12, %14 : vector<8x128xf32>
      %c0_14 = arith.constant 0 : index
      %c0_15 = arith.constant 0 : index
      %16 = memref.load %arg6[%c0_14, %c0_15] : memref<1x1xf32, #tpu.memory_space<smem>>
      %cst_16 = arith.constant 0.000000e+00 : f32
      %17 = vector.broadcast %cst_16 : f32 to vector<8x128xf32>
      %18 = arith.cmpf ogt, %15, %17 : vector<8x128xf32>
      %19 = vector.broadcast %16 : f32 to vector<8x128xf32>
      %20 = arith.mulf %19, %15 : vector<8x128xf32>
      %21 = arith.select %18, %15, %20 : vector<8x128xi1>, vector<8x128xf32>
      %22 = arith.truncf %21 : vector<8x128xf32> to vector<8x128xbf16>
      %c0_17 = arith.constant 0 : index
      %c0_18 = arith.constant 0 : index
      %23 = vector.load %arg7[%c0_17, %c0_18] : memref<8x128xbf16, #tpu.memory_space<vmem>>, vector<8x128xbf16>
      tpu.vector_store %arg7[%c0_17, %c0_18], %22 {strides = array<i32>} : memref<8x128xbf16, #tpu.memory_space<vmem>>, vector<8x128xbf16>,
    } else {
    }
    return
  }
  func.func @transform_0(%arg0: i32, %arg1: i32, %arg2: i32) -> (i32, i32) {
    %c0_i32 = arith.constant 0 : i32
    return %arg0, %arg2 : i32, i32
  }
  func.func @transform_1(%arg0: i32, %arg1: i32, %arg2: i32) -> (i32, i32) {
    %c0_i32 = arith.constant 0 : i32
    return %arg2, %arg1 : i32, i32
  }
  func.func @transform_2(%arg0: i32, %arg1: i32, %arg2: i32) -> (i32, i32) {
    %c0_i32 = arith.constant 0 : i32
    %c0_i32_0 = arith.constant 0 : i32
    return %c0_i32, %arg1 : i32, i32
  }
  func.func @transform_3(%arg0: i32, %arg1: i32, %arg2: i32) -> (i32, i32) {
    %c0_i32 = arith.constant 0 : i32
    %c0_i32_0 = arith.constant 0 : i32
    %c0_i32_1 = arith.constant 0 : i32
    return %c0_i32, %c0_i32_0 : i32, i32
  }
  func.func @transform_4(%arg0: i32, %arg1: i32, %arg2: i32) -> (i32, i32) {
    %c0_i32 = arith.constant 0 : i32
    return %arg0, %arg1 : i32, i32
  }
}

module attributes {stable_mosaic.version = 11 : i64} {
  func.func @_linear_prelu_kernel(%arg0: i32, %arg1: i32, %arg2: i32, %arg3: memref<8x384xbf16, #tpu.memory_space<vmem>>, %arg4: memref<384x256xbf16, #tpu.memory_space<vmem>>, %arg5: memref<1x256xf32, #tpu.memory_space<vmem>>, %arg6: memref<1x1xf32, #tpu.memory_space<smem>>, %arg7: memref<8x256xbf16, #tpu.memory_space<vmem>>, %arg8: memref<8x256xf32, #tpu.memory_space<vmem>>) attributes {dimension_semantics = [#tpu.dimension_semantics<parallel>, #tpu.dimension_semantics<parallel>, #tpu.dimension_semantics<arbitrary>], iteration_bounds = array<i64: 1, 1, 1>, scalar_prefetch = 0 : i64, scratch_operands = 1 : i64, tpu.core_type = #tpu.core_type<tc>, window_params = [{transform_indices = @transform_0, window_bounds = array<i64: 8, 384>}, {transform_indices = @transform_1, window_bounds = array<i64: 384, 256>}, {transform_indices = @transform_2, window_bounds = array<i64: 1, 256>}, {transform_indices = @transform_3, window_bounds = array<i64: 1, 1>}, {transform_indices = @transform_4, window_bounds = array<i64: 8, 256>}]} {
    %c0_i32 = arith.constant 0 : i32
    %0 = arith.cmpi eq, %arg2, %c0_i32 : i32
    %1 = arith.extui %0 : i1 to i32
    %c0_i32_0 = arith.constant 0 : i32
    %2 = arith.cmpi ne, %1, %c0_i32_0 : i32
    scf.if %2 {
      %cst_10 = arith.constant 0.000000e+00 : f32
      %12 = vector.broadcast %cst_10 : f32 to vector<8x256xf32>
      %c0_11 = arith.constant 0 : index
      %c0_12 = arith.constant 0 : index
      %13 = vector.load %arg8[%c0_11, %c0_12] : memref<8x256xf32, #tpu.memory_space<vmem>>, vector<8x256xf32>
      tpu.vector_store %arg8[%c0_11, %c0_12], %12 {strides = array<i32>} : memref<8x256xf32, #tpu.memory_space<vmem>>, vector<8x256xf32>,
    } else {
    }
    %c0 = arith.constant 0 : index
    %c0_1 = arith.constant 0 : index
    %3 = vector.load %arg8[%c0, %c0_1] : memref<8x256xf32, #tpu.memory_space<vmem>>, vector<8x256xf32>
    %c0_2 = arith.constant 0 : index
    %c0_3 = arith.constant 0 : index
    %4 = vector.load %arg3[%c0_2, %c0_3] : memref<8x384xbf16, #tpu.memory_space<vmem>>, vector<8x384xbf16>
    %c0_4 = arith.constant 0 : index
    %c0_5 = arith.constant 0 : index
    %5 = vector.load %arg4[%c0_4, %c0_5] : memref<384x256xbf16, #tpu.memory_space<vmem>>, vector<384x256xbf16>
    %cst = arith.constant dense<0.000000e+00> : vector<8x256xf32>
    %6 = tpu.matmul %4, %5, %cst {dimension_numbers = #tpu.dot_dimension_numbers<[1], [0], [0], [1], [0, 0, 1, 1], [], []>} : vector<8x384xbf16>, vector<384x256xbf16>, vector<8x256xf32> -> vector<8x256xf32>
    %7 = arith.addf %3, %6 : vector<8x256xf32>
    %c0_6 = arith.constant 0 : index
    %c0_7 = arith.constant 0 : index
    %8 = vector.load %arg8[%c0_6, %c0_7] : memref<8x256xf32, #tpu.memory_space<vmem>>, vector<8x256xf32>
    tpu.vector_store %arg8[%c0_6, %c0_7], %7 {strides = array<i32>} : memref<8x256xf32, #tpu.memory_space<vmem>>, vector<8x256xf32>,
    %c0_i32_8 = arith.constant 0 : i32
    %9 = arith.cmpi eq, %arg2, %c0_i32_8 : i32
    %10 = arith.extui %9 : i1 to i32
    %c0_i32_9 = arith.constant 0 : i32
    %11 = arith.cmpi ne, %10, %c0_i32_9 : i32
    scf.if %11 {
      %c0_10 = arith.constant 0 : index
      %c0_11 = arith.constant 0 : index
      %12 = vector.load %arg8[%c0_10, %c0_11] : memref<8x256xf32, #tpu.memory_space<vmem>>, vector<8x256xf32>
      %c0_12 = arith.constant 0 : index
      %c0_13 = arith.constant 0 : index
      %13 = vector.load %arg5[%c0_12, %c0_13] : memref<1x256xf32, #tpu.memory_space<vmem>>, vector<1x256xf32>
      %14 = vector.broadcast %13 : vector<1x256xf32> to vector<8x256xf32>
      %15 = arith.addf %12, %14 : vector<8x256xf32>
      %c0_14 = arith.constant 0 : index
      %c0_15 = arith.constant 0 : index
      %16 = memref.load %arg6[%c0_14, %c0_15] : memref<1x1xf32, #tpu.memory_space<smem>>
      %cst_16 = arith.constant 0.000000e+00 : f32
      %17 = vector.broadcast %cst_16 : f32 to vector<8x256xf32>
      %18 = arith.cmpf ogt, %15, %17 : vector<8x256xf32>
      %19 = vector.broadcast %16 : f32 to vector<8x256xf32>
      %20 = arith.mulf %19, %15 : vector<8x256xf32>
      %21 = arith.select %18, %15, %20 : vector<8x256xi1>, vector<8x256xf32>
      %22 = arith.truncf %21 : vector<8x256xf32> to vector<8x256xbf16>
      %c0_17 = arith.constant 0 : index
      %c0_18 = arith.constant 0 : index
      %23 = vector.load %arg7[%c0_17, %c0_18] : memref<8x256xbf16, #tpu.memory_space<vmem>>, vector<8x256xbf16>
      tpu.vector_store %arg7[%c0_17, %c0_18], %22 {strides = array<i32>} : memref<8x256xbf16, #tpu.memory_space<vmem>>, vector<8x256xbf16>,
    } else {
    }
    return
  }
  func.func @transform_0(%arg0: i32, %arg1: i32, %arg2: i32) -> (i32, i32) {
    %c0_i32 = arith.constant 0 : i32
    return %arg0, %arg2 : i32, i32
  }
  func.func @transform_1(%arg0: i32, %arg1: i32, %arg2: i32) -> (i32, i32) {
    %c0_i32 = arith.constant 0 : i32
    return %arg2, %arg1 : i32, i32
  }
  func.func @transform_2(%arg0: i32, %arg1: i32, %arg2: i32) -> (i32, i32) {
    %c0_i32 = arith.constant 0 : i32
    %c0_i32_0 = arith.constant 0 : i32
    return %c0_i32, %arg1 : i32, i32
  }
  func.func @transform_3(%arg0: i32, %arg1: i32, %arg2: i32) -> (i32, i32) {
    %c0_i32 = arith.constant 0 : i32
    %c0_i32_0 = arith.constant 0 : i32
    %c0_i32_1 = arith.constant 0 : i32
    return %c0_i32, %c0_i32_0 : i32, i32
  }
  func.func @transform_4(%arg0: i32, %arg1: i32, %arg2: i32) -> (i32, i32) {
    %c0_i32 = arith.constant 0 : i32
    return %arg0, %arg1 : i32, i32
  }
}

module attributes {stable_mosaic.version = 11 : i64} {
  func.func @_linear_prelu_kernel(%arg0: i32, %arg1: i32, %arg2: i32, %arg3: memref<8x256xbf16, #tpu.memory_space<vmem>>, %arg4: memref<256x256xbf16, #tpu.memory_space<vmem>>, %arg5: memref<1x256xf32, #tpu.memory_space<vmem>>, %arg6: memref<1x1xf32, #tpu.memory_space<smem>>, %arg7: memref<8x256xbf16, #tpu.memory_space<vmem>>, %arg8: memref<8x256xf32, #tpu.memory_space<vmem>>) attributes {dimension_semantics = [#tpu.dimension_semantics<parallel>, #tpu.dimension_semantics<parallel>, #tpu.dimension_semantics<arbitrary>], iteration_bounds = array<i64: 1, 1, 1>, scalar_prefetch = 0 : i64, scratch_operands = 1 : i64, tpu.core_type = #tpu.core_type<tc>, window_params = [{transform_indices = @transform_0, window_bounds = array<i64: 8, 256>}, {transform_indices = @transform_1, window_bounds = array<i64: 256, 256>}, {transform_indices = @transform_2, window_bounds = array<i64: 1, 256>}, {transform_indices = @transform_3, window_bounds = array<i64: 1, 1>}, {transform_indices = @transform_4, window_bounds = array<i64: 8, 256>}]} {
    %c0_i32 = arith.constant 0 : i32
    %0 = arith.cmpi eq, %arg2, %c0_i32 : i32
    %1 = arith.extui %0 : i1 to i32
    %c0_i32_0 = arith.constant 0 : i32
    %2 = arith.cmpi ne, %1, %c0_i32_0 : i32
    scf.if %2 {
      %cst_10 = arith.constant 0.000000e+00 : f32
      %12 = vector.broadcast %cst_10 : f32 to vector<8x256xf32>
      %c0_11 = arith.constant 0 : index
      %c0_12 = arith.constant 0 : index
      %13 = vector.load %arg8[%c0_11, %c0_12] : memref<8x256xf32, #tpu.memory_space<vmem>>, vector<8x256xf32>
      tpu.vector_store %arg8[%c0_11, %c0_12], %12 {strides = array<i32>} : memref<8x256xf32, #tpu.memory_space<vmem>>, vector<8x256xf32>,
    } else {
    }
    %c0 = arith.constant 0 : index
    %c0_1 = arith.constant 0 : index
    %3 = vector.load %arg8[%c0, %c0_1] : memref<8x256xf32, #tpu.memory_space<vmem>>, vector<8x256xf32>
    %c0_2 = arith.constant 0 : index
    %c0_3 = arith.constant 0 : index
    %4 = vector.load %arg3[%c0_2, %c0_3] : memref<8x256xbf16, #tpu.memory_space<vmem>>, vector<8x256xbf16>
    %c0_4 = arith.constant 0 : index
    %c0_5 = arith.constant 0 : index
    %5 = vector.load %arg4[%c0_4, %c0_5] : memref<256x256xbf16, #tpu.memory_space<vmem>>, vector<256x256xbf16>
    %cst = arith.constant dense<0.000000e+00> : vector<8x256xf32>
    %6 = tpu.matmul %4, %5, %cst {dimension_numbers = #tpu.dot_dimension_numbers<[1], [0], [0], [1], [0, 0, 1, 1], [], []>} : vector<8x256xbf16>, vector<256x256xbf16>, vector<8x256xf32> -> vector<8x256xf32>
    %7 = arith.addf %3, %6 : vector<8x256xf32>
    %c0_6 = arith.constant 0 : index
    %c0_7 = arith.constant 0 : index
    %8 = vector.load %arg8[%c0_6, %c0_7] : memref<8x256xf32, #tpu.memory_space<vmem>>, vector<8x256xf32>
    tpu.vector_store %arg8[%c0_6, %c0_7], %7 {strides = array<i32>} : memref<8x256xf32, #tpu.memory_space<vmem>>, vector<8x256xf32>,
    %c0_i32_8 = arith.constant 0 : i32
    %9 = arith.cmpi eq, %arg2, %c0_i32_8 : i32
    %10 = arith.extui %9 : i1 to i32
    %c0_i32_9 = arith.constant 0 : i32
    %11 = arith.cmpi ne, %10, %c0_i32_9 : i32
    scf.if %11 {
      %c0_10 = arith.constant 0 : index
      %c0_11 = arith.constant 0 : index
      %12 = vector.load %arg8[%c0_10, %c0_11] : memref<8x256xf32, #tpu.memory_space<vmem>>, vector<8x256xf32>
      %c0_12 = arith.constant 0 : index
      %c0_13 = arith.constant 0 : index
      %13 = vector.load %arg5[%c0_12, %c0_13] : memref<1x256xf32, #tpu.memory_space<vmem>>, vector<1x256xf32>
      %14 = vector.broadcast %13 : vector<1x256xf32> to vector<8x256xf32>
      %15 = arith.addf %12, %14 : vector<8x256xf32>
      %c0_14 = arith.constant 0 : index
      %c0_15 = arith.constant 0 : index
      %16 = memref.load %arg6[%c0_14, %c0_15] : memref<1x1xf32, #tpu.memory_space<smem>>
      %cst_16 = arith.constant 0.000000e+00 : f32
      %17 = vector.broadcast %cst_16 : f32 to vector<8x256xf32>
      %18 = arith.cmpf ogt, %15, %17 : vector<8x256xf32>
      %19 = vector.broadcast %16 : f32 to vector<8x256xf32>
      %20 = arith.mulf %19, %15 : vector<8x256xf32>
      %21 = arith.select %18, %15, %20 : vector<8x256xi1>, vector<8x256xf32>
      %22 = arith.truncf %21 : vector<8x256xf32> to vector<8x256xbf16>
      %c0_17 = arith.constant 0 : index
      %c0_18 = arith.constant 0 : index
      %23 = vector.load %arg7[%c0_17, %c0_18] : memref<8x256xbf16, #tpu.memory_space<vmem>>, vector<8x256xbf16>
      tpu.vector_store %arg7[%c0_17, %c0_18], %22 {strides = array<i32>} : memref<8x256xbf16, #tpu.memory_space<vmem>>, vector<8x256xbf16>,
    } else {
    }
    return
  }
  func.func @transform_0(%arg0: i32, %arg1: i32, %arg2: i32) -> (i32, i32) {
    %c0_i32 = arith.constant 0 : i32
    return %arg0, %arg2 : i32, i32
  }
  func.func @transform_1(%arg0: i32, %arg1: i32, %arg2: i32) -> (i32, i32) {
    %c0_i32 = arith.constant 0 : i32
    return %arg2, %arg1 : i32, i32
  }
  func.func @transform_2(%arg0: i32, %arg1: i32, %arg2: i32) -> (i32, i32) {
    %c0_i32 = arith.constant 0 : i32
    %c0_i32_0 = arith.constant 0 : i32
    return %c0_i32, %arg1 : i32, i32
  }
  func.func @transform_3(%arg0: i32, %arg1: i32, %arg2: i32) -> (i32, i32) {
    %c0_i32 = arith.constant 0 : i32
    %c0_i32_0 = arith.constant 0 : i32
    %c0_i32_1 = arith.constant 0 : i32
    return %c0_i32, %c0_i32_0 : i32, i32
  }
  func.func @transform_4(%arg0: i32, %arg1: i32, %arg2: i32) -> (i32, i32) {
    %c0_i32 = arith.constant 0 : i32
    return %arg0, %arg1 : i32, i32
  }
}

module attributes {stable_mosaic.version = 11 : i64} {
  func.func @_linear_prelu_kernel(%arg0: i32, %arg1: i32, %arg2: i32, %arg3: memref<8x256xbf16, #tpu.memory_space<vmem>>, %arg4: memref<256x128xbf16, #tpu.memory_space<vmem>>, %arg5: memref<1x128xf32, #tpu.memory_space<vmem>>, %arg6: memref<1x1xf32, #tpu.memory_space<smem>>, %arg7: memref<8x128xbf16, #tpu.memory_space<vmem>>, %arg8: memref<8x128xf32, #tpu.memory_space<vmem>>) attributes {dimension_semantics = [#tpu.dimension_semantics<parallel>, #tpu.dimension_semantics<parallel>, #tpu.dimension_semantics<arbitrary>], iteration_bounds = array<i64: 1, 1, 1>, scalar_prefetch = 0 : i64, scratch_operands = 1 : i64, tpu.core_type = #tpu.core_type<tc>, window_params = [{transform_indices = @transform_0, window_bounds = array<i64: 8, 256>}, {transform_indices = @transform_1, window_bounds = array<i64: 256, 128>}, {transform_indices = @transform_2, window_bounds = array<i64: 1, 128>}, {transform_indices = @transform_3, window_bounds = array<i64: 1, 1>}, {transform_indices = @transform_4, window_bounds = array<i64: 8, 128>}]} {
    %c0_i32 = arith.constant 0 : i32
    %0 = arith.cmpi eq, %arg2, %c0_i32 : i32
    %1 = arith.extui %0 : i1 to i32
    %c0_i32_0 = arith.constant 0 : i32
    %2 = arith.cmpi ne, %1, %c0_i32_0 : i32
    scf.if %2 {
      %cst_10 = arith.constant 0.000000e+00 : f32
      %12 = vector.broadcast %cst_10 : f32 to vector<8x128xf32>
      %c0_11 = arith.constant 0 : index
      %c0_12 = arith.constant 0 : index
      %13 = vector.load %arg8[%c0_11, %c0_12] : memref<8x128xf32, #tpu.memory_space<vmem>>, vector<8x128xf32>
      tpu.vector_store %arg8[%c0_11, %c0_12], %12 {strides = array<i32>} : memref<8x128xf32, #tpu.memory_space<vmem>>, vector<8x128xf32>,
    } else {
    }
    %c0 = arith.constant 0 : index
    %c0_1 = arith.constant 0 : index
    %3 = vector.load %arg8[%c0, %c0_1] : memref<8x128xf32, #tpu.memory_space<vmem>>, vector<8x128xf32>
    %c0_2 = arith.constant 0 : index
    %c0_3 = arith.constant 0 : index
    %4 = vector.load %arg3[%c0_2, %c0_3] : memref<8x256xbf16, #tpu.memory_space<vmem>>, vector<8x256xbf16>
    %c0_4 = arith.constant 0 : index
    %c0_5 = arith.constant 0 : index
    %5 = vector.load %arg4[%c0_4, %c0_5] : memref<256x128xbf16, #tpu.memory_space<vmem>>, vector<256x128xbf16>
    %cst = arith.constant dense<0.000000e+00> : vector<8x128xf32>
    %6 = tpu.matmul %4, %5, %cst {dimension_numbers = #tpu.dot_dimension_numbers<[1], [0], [0], [1], [0, 0, 1, 1], [], []>} : vector<8x256xbf16>, vector<256x128xbf16>, vector<8x128xf32> -> vector<8x128xf32>
    %7 = arith.addf %3, %6 : vector<8x128xf32>
    %c0_6 = arith.constant 0 : index
    %c0_7 = arith.constant 0 : index
    %8 = vector.load %arg8[%c0_6, %c0_7] : memref<8x128xf32, #tpu.memory_space<vmem>>, vector<8x128xf32>
    tpu.vector_store %arg8[%c0_6, %c0_7], %7 {strides = array<i32>} : memref<8x128xf32, #tpu.memory_space<vmem>>, vector<8x128xf32>,
    %c0_i32_8 = arith.constant 0 : i32
    %9 = arith.cmpi eq, %arg2, %c0_i32_8 : i32
    %10 = arith.extui %9 : i1 to i32
    %c0_i32_9 = arith.constant 0 : i32
    %11 = arith.cmpi ne, %10, %c0_i32_9 : i32
    scf.if %11 {
      %c0_10 = arith.constant 0 : index
      %c0_11 = arith.constant 0 : index
      %12 = vector.load %arg8[%c0_10, %c0_11] : memref<8x128xf32, #tpu.memory_space<vmem>>, vector<8x128xf32>
      %c0_12 = arith.constant 0 : index
      %c0_13 = arith.constant 0 : index
      %13 = vector.load %arg5[%c0_12, %c0_13] : memref<1x128xf32, #tpu.memory_space<vmem>>, vector<1x128xf32>
      %14 = vector.broadcast %13 : vector<1x128xf32> to vector<8x128xf32>
      %15 = arith.addf %12, %14 : vector<8x128xf32>
      %c0_14 = arith.constant 0 : index
      %c0_15 = arith.constant 0 : index
      %16 = memref.load %arg6[%c0_14, %c0_15] : memref<1x1xf32, #tpu.memory_space<smem>>
      %cst_16 = arith.constant 0.000000e+00 : f32
      %17 = vector.broadcast %cst_16 : f32 to vector<8x128xf32>
      %18 = arith.cmpf ogt, %15, %17 : vector<8x128xf32>
      %19 = vector.broadcast %16 : f32 to vector<8x128xf32>
      %20 = arith.mulf %19, %15 : vector<8x128xf32>
      %21 = arith.select %18, %15, %20 : vector<8x128xi1>, vector<8x128xf32>
      %22 = arith.truncf %21 : vector<8x128xf32> to vector<8x128xbf16>
      %c0_17 = arith.constant 0 : index
      %c0_18 = arith.constant 0 : index
      %23 = vector.load %arg7[%c0_17, %c0_18] : memref<8x128xbf16, #tpu.memory_space<vmem>>, vector<8x128xbf16>
      tpu.vector_store %arg7[%c0_17, %c0_18], %22 {strides = array<i32>} : memref<8x128xbf16, #tpu.memory_space<vmem>>, vector<8x128xbf16>,
    } else {
    }
    return
  }
  func.func @transform_0(%arg0: i32, %arg1: i32, %arg2: i32) -> (i32, i32) {
    %c0_i32 = arith.constant 0 : i32
    return %arg0, %arg2 : i32, i32
  }
  func.func @transform_1(%arg0: i32, %arg1: i32, %arg2: i32) -> (i32, i32) {
    %c0_i32 = arith.constant 0 : i32
    return %arg2, %arg1 : i32, i32
  }
  func.func @transform_2(%arg0: i32, %arg1: i32, %arg2: i32) -> (i32, i32) {
    %c0_i32 = arith.constant 0 : i32
    %c0_i32_0 = arith.constant 0 : i32
    return %c0_i32, %arg1 : i32, i32
  }
  func.func @transform_3(%arg0: i32, %arg1: i32, %arg2: i32) -> (i32, i32) {
    %c0_i32 = arith.constant 0 : i32
    %c0_i32_0 = arith.constant 0 : i32
    %c0_i32_1 = arith.constant 0 : i32
    return %c0_i32, %c0_i32_0 : i32, i32
  }
  func.func @transform_4(%arg0: i32, %arg1: i32, %arg2: i32) -> (i32, i32) {
    %c0_i32 = arith.constant 0 : i32
    return %arg0, %arg1 : i32, i32
  }
}

module attributes {stable_mosaic.version = 11 : i64} {
  func.func @_linear_prelu_kernel(%arg0: i32, %arg1: i32, %arg2: i32, %arg3: memref<8x128xbf16, #tpu.memory_space<vmem>>, %arg4: memref<128x128xbf16, #tpu.memory_space<vmem>>, %arg5: memref<1x128xf32, #tpu.memory_space<vmem>>, %arg6: memref<1x1xf32, #tpu.memory_space<smem>>, %arg7: memref<8x128xbf16, #tpu.memory_space<vmem>>, %arg8: memref<8x128xf32, #tpu.memory_space<vmem>>) attributes {dimension_semantics = [#tpu.dimension_semantics<parallel>, #tpu.dimension_semantics<parallel>, #tpu.dimension_semantics<arbitrary>], iteration_bounds = array<i64: 1, 1, 1>, scalar_prefetch = 0 : i64, scratch_operands = 1 : i64, tpu.core_type = #tpu.core_type<tc>, window_params = [{transform_indices = @transform_0, window_bounds = array<i64: 8, 128>}, {transform_indices = @transform_1, window_bounds = array<i64: 128, 128>}, {transform_indices = @transform_2, window_bounds = array<i64: 1, 128>}, {transform_indices = @transform_3, window_bounds = array<i64: 1, 1>}, {transform_indices = @transform_4, window_bounds = array<i64: 8, 128>}]} {
    %c0_i32 = arith.constant 0 : i32
    %0 = arith.cmpi eq, %arg2, %c0_i32 : i32
    %1 = arith.extui %0 : i1 to i32
    %c0_i32_0 = arith.constant 0 : i32
    %2 = arith.cmpi ne, %1, %c0_i32_0 : i32
    scf.if %2 {
      %cst_10 = arith.constant 0.000000e+00 : f32
      %12 = vector.broadcast %cst_10 : f32 to vector<8x128xf32>
      %c0_11 = arith.constant 0 : index
      %c0_12 = arith.constant 0 : index
      %13 = vector.load %arg8[%c0_11, %c0_12] : memref<8x128xf32, #tpu.memory_space<vmem>>, vector<8x128xf32>
      tpu.vector_store %arg8[%c0_11, %c0_12], %12 {strides = array<i32>} : memref<8x128xf32, #tpu.memory_space<vmem>>, vector<8x128xf32>,
    } else {
    }
    %c0 = arith.constant 0 : index
    %c0_1 = arith.constant 0 : index
    %3 = vector.load %arg8[%c0, %c0_1] : memref<8x128xf32, #tpu.memory_space<vmem>>, vector<8x128xf32>
    %c0_2 = arith.constant 0 : index
    %c0_3 = arith.constant 0 : index
    %4 = vector.load %arg3[%c0_2, %c0_3] : memref<8x128xbf16, #tpu.memory_space<vmem>>, vector<8x128xbf16>
    %c0_4 = arith.constant 0 : index
    %c0_5 = arith.constant 0 : index
    %5 = vector.load %arg4[%c0_4, %c0_5] : memref<128x128xbf16, #tpu.memory_space<vmem>>, vector<128x128xbf16>
    %cst = arith.constant dense<0.000000e+00> : vector<8x128xf32>
    %6 = tpu.matmul %4, %5, %cst {dimension_numbers = #tpu.dot_dimension_numbers<[1], [0], [0], [1], [0, 0, 1, 1], [], []>} : vector<8x128xbf16>, vector<128x128xbf16>, vector<8x128xf32> -> vector<8x128xf32>
    %7 = arith.addf %3, %6 : vector<8x128xf32>
    %c0_6 = arith.constant 0 : index
    %c0_7 = arith.constant 0 : index
    %8 = vector.load %arg8[%c0_6, %c0_7] : memref<8x128xf32, #tpu.memory_space<vmem>>, vector<8x128xf32>
    tpu.vector_store %arg8[%c0_6, %c0_7], %7 {strides = array<i32>} : memref<8x128xf32, #tpu.memory_space<vmem>>, vector<8x128xf32>,
    %c0_i32_8 = arith.constant 0 : i32
    %9 = arith.cmpi eq, %arg2, %c0_i32_8 : i32
    %10 = arith.extui %9 : i1 to i32
    %c0_i32_9 = arith.constant 0 : i32
    %11 = arith.cmpi ne, %10, %c0_i32_9 : i32
    scf.if %11 {
      %c0_10 = arith.constant 0 : index
      %c0_11 = arith.constant 0 : index
      %12 = vector.load %arg8[%c0_10, %c0_11] : memref<8x128xf32, #tpu.memory_space<vmem>>, vector<8x128xf32>
      %c0_12 = arith.constant 0 : index
      %c0_13 = arith.constant 0 : index
      %13 = vector.load %arg5[%c0_12, %c0_13] : memref<1x128xf32, #tpu.memory_space<vmem>>, vector<1x128xf32>
      %14 = vector.broadcast %13 : vector<1x128xf32> to vector<8x128xf32>
      %15 = arith.addf %12, %14 : vector<8x128xf32>
      %c0_14 = arith.constant 0 : index
      %c0_15 = arith.constant 0 : index
      %16 = memref.load %arg6[%c0_14, %c0_15] : memref<1x1xf32, #tpu.memory_space<smem>>
      %cst_16 = arith.constant 0.000000e+00 : f32
      %17 = vector.broadcast %cst_16 : f32 to vector<8x128xf32>
      %18 = arith.cmpf ogt, %15, %17 : vector<8x128xf32>
      %19 = vector.broadcast %16 : f32 to vector<8x128xf32>
      %20 = arith.mulf %19, %15 : vector<8x128xf32>
      %21 = arith.select %18, %15, %20 : vector<8x128xi1>, vector<8x128xf32>
      %22 = arith.truncf %21 : vector<8x128xf32> to vector<8x128xbf16>
      %c0_17 = arith.constant 0 : index
      %c0_18 = arith.constant 0 : index
      %23 = vector.load %arg7[%c0_17, %c0_18] : memref<8x128xbf16, #tpu.memory_space<vmem>>, vector<8x128xbf16>
      tpu.vector_store %arg7[%c0_17, %c0_18], %22 {strides = array<i32>} : memref<8x128xbf16, #tpu.memory_space<vmem>>, vector<8x128xbf16>,
    } else {
    }
    return
  }
  func.func @transform_0(%arg0: i32, %arg1: i32, %arg2: i32) -> (i32, i32) {
    %c0_i32 = arith.constant 0 : i32
    return %arg0, %arg2 : i32, i32
  }
  func.func @transform_1(%arg0: i32, %arg1: i32, %arg2: i32) -> (i32, i32) {
    %c0_i32 = arith.constant 0 : i32
    return %arg2, %arg1 : i32, i32
  }
  func.func @transform_2(%arg0: i32, %arg1: i32, %arg2: i32) -> (i32, i32) {
    %c0_i32 = arith.constant 0 : i32
    %c0_i32_0 = arith.constant 0 : i32
    return %c0_i32, %arg1 : i32, i32
  }
  func.func @transform_3(%arg0: i32, %arg1: i32, %arg2: i32) -> (i32, i32) {
    %c0_i32 = arith.constant 0 : i32
    %c0_i32_0 = arith.constant 0 : i32
    %c0_i32_1 = arith.constant 0 : i32
    return %c0_i32, %c0_i32_0 : i32, i32
  }
  func.func @transform_4(%arg0: i32, %arg1: i32, %arg2: i32) -> (i32, i32) {
    %c0_i32 = arith.constant 0 : i32
    return %arg0, %arg1 : i32, i32
  }
}

module attributes {stable_mosaic.version = 11 : i64} {
  func.func @_linear_prelu_kernel(%arg0: i32, %arg1: i32, %arg2: i32, %arg3: memref<8x128xbf16, #tpu.memory_space<vmem>>, %arg4: memref<128x128xbf16, #tpu.memory_space<vmem>>, %arg5: memref<1x128xf32, #tpu.memory_space<vmem>>, %arg6: memref<1x1xf32, #tpu.memory_space<smem>>, %arg7: memref<8x128xf32, #tpu.memory_space<vmem>>, %arg8: memref<8x128xf32, #tpu.memory_space<vmem>>) attributes {dimension_semantics = [#tpu.dimension_semantics<parallel>, #tpu.dimension_semantics<parallel>, #tpu.dimension_semantics<arbitrary>], iteration_bounds = array<i64: 1, 1, 1>, scalar_prefetch = 0 : i64, scratch_operands = 1 : i64, tpu.core_type = #tpu.core_type<tc>, window_params = [{transform_indices = @transform_0, window_bounds = array<i64: 8, 128>}, {transform_indices = @transform_1, window_bounds = array<i64: 128, 128>}, {transform_indices = @transform_2, window_bounds = array<i64: 1, 128>}, {transform_indices = @transform_3, window_bounds = array<i64: 1, 1>}, {transform_indices = @transform_4, window_bounds = array<i64: 8, 128>}]} {
    %c0_i32 = arith.constant 0 : i32
    %0 = arith.cmpi eq, %arg2, %c0_i32 : i32
    %1 = arith.extui %0 : i1 to i32
    %c0_i32_0 = arith.constant 0 : i32
    %2 = arith.cmpi ne, %1, %c0_i32_0 : i32
    scf.if %2 {
      %cst_10 = arith.constant 0.000000e+00 : f32
      %12 = vector.broadcast %cst_10 : f32 to vector<8x128xf32>
      %c0_11 = arith.constant 0 : index
      %c0_12 = arith.constant 0 : index
      %13 = vector.load %arg8[%c0_11, %c0_12] : memref<8x128xf32, #tpu.memory_space<vmem>>, vector<8x128xf32>
      tpu.vector_store %arg8[%c0_11, %c0_12], %12 {strides = array<i32>} : memref<8x128xf32, #tpu.memory_space<vmem>>, vector<8x128xf32>,
    } else {
    }
    %c0 = arith.constant 0 : index
    %c0_1 = arith.constant 0 : index
    %3 = vector.load %arg8[%c0, %c0_1] : memref<8x128xf32, #tpu.memory_space<vmem>>, vector<8x128xf32>
    %c0_2 = arith.constant 0 : index
    %c0_3 = arith.constant 0 : index
    %4 = vector.load %arg3[%c0_2, %c0_3] : memref<8x128xbf16, #tpu.memory_space<vmem>>, vector<8x128xbf16>
    %c0_4 = arith.constant 0 : index
    %c0_5 = arith.constant 0 : index
    %5 = vector.load %arg4[%c0_4, %c0_5] : memref<128x128xbf16, #tpu.memory_space<vmem>>, vector<128x128xbf16>
    %cst = arith.constant dense<0.000000e+00> : vector<8x128xf32>
    %6 = tpu.matmul %4, %5, %cst {dimension_numbers = #tpu.dot_dimension_numbers<[1], [0], [0], [1], [0, 0, 1, 1], [], []>} : vector<8x128xbf16>, vector<128x128xbf16>, vector<8x128xf32> -> vector<8x128xf32>
    %7 = arith.addf %3, %6 : vector<8x128xf32>
    %c0_6 = arith.constant 0 : index
    %c0_7 = arith.constant 0 : index
    %8 = vector.load %arg8[%c0_6, %c0_7] : memref<8x128xf32, #tpu.memory_space<vmem>>, vector<8x128xf32>
    tpu.vector_store %arg8[%c0_6, %c0_7], %7 {strides = array<i32>} : memref<8x128xf32, #tpu.memory_space<vmem>>, vector<8x128xf32>,
    %c0_i32_8 = arith.constant 0 : i32
    %9 = arith.cmpi eq, %arg2, %c0_i32_8 : i32
    %10 = arith.extui %9 : i1 to i32
    %c0_i32_9 = arith.constant 0 : i32
    %11 = arith.cmpi ne, %10, %c0_i32_9 : i32
    scf.if %11 {
      %c0_10 = arith.constant 0 : index
      %c0_11 = arith.constant 0 : index
      %12 = vector.load %arg8[%c0_10, %c0_11] : memref<8x128xf32, #tpu.memory_space<vmem>>, vector<8x128xf32>
      %c0_12 = arith.constant 0 : index
      %c0_13 = arith.constant 0 : index
      %13 = vector.load %arg5[%c0_12, %c0_13] : memref<1x128xf32, #tpu.memory_space<vmem>>, vector<1x128xf32>
      %14 = vector.broadcast %13 : vector<1x128xf32> to vector<8x128xf32>
      %15 = arith.addf %12, %14 : vector<8x128xf32>
      %c0_14 = arith.constant 0 : index
      %c0_15 = arith.constant 0 : index
      %16 = memref.load %arg6[%c0_14, %c0_15] : memref<1x1xf32, #tpu.memory_space<smem>>
      %cst_16 = arith.constant 0.000000e+00 : f32
      %17 = vector.broadcast %cst_16 : f32 to vector<8x128xf32>
      %18 = arith.cmpf ogt, %15, %17 : vector<8x128xf32>
      %19 = vector.broadcast %16 : f32 to vector<8x128xf32>
      %20 = arith.mulf %19, %15 : vector<8x128xf32>
      %21 = arith.select %18, %15, %20 : vector<8x128xi1>, vector<8x128xf32>
      %c0_17 = arith.constant 0 : index
      %c0_18 = arith.constant 0 : index
      %22 = vector.load %arg7[%c0_17, %c0_18] : memref<8x128xf32, #tpu.memory_space<vmem>>, vector<8x128xf32>
      tpu.vector_store %arg7[%c0_17, %c0_18], %21 {strides = array<i32>} : memref<8x128xf32, #tpu.memory_space<vmem>>, vector<8x128xf32>,
    } else {
    }
    return
  }
  func.func @transform_0(%arg0: i32, %arg1: i32, %arg2: i32) -> (i32, i32) {
    %c0_i32 = arith.constant 0 : i32
    return %arg0, %arg2 : i32, i32
  }
  func.func @transform_1(%arg0: i32, %arg1: i32, %arg2: i32) -> (i32, i32) {
    %c0_i32 = arith.constant 0 : i32
    return %arg2, %arg1 : i32, i32
  }
  func.func @transform_2(%arg0: i32, %arg1: i32, %arg2: i32) -> (i32, i32) {
    %c0_i32 = arith.constant 0 : i32
    %c0_i32_0 = arith.constant 0 : i32
    return %c0_i32, %arg1 : i32, i32
  }
  func.func @transform_3(%arg0: i32, %arg1: i32, %arg2: i32) -> (i32, i32) {
    %c0_i32 = arith.constant 0 : i32
    %c0_i32_0 = arith.constant 0 : i32
    %c0_i32_1 = arith.constant 0 : i32
    return %c0_i32, %c0_i32_0 : i32, i32
  }
  func.func @transform_4(%arg0: i32, %arg1: i32, %arg2: i32) -> (i32, i32) {
    %c0_i32 = arith.constant 0 : i32
    return %arg0, %arg1 : i32, i32
  }
}

</mosaic_0001>

<bundles_post_ra>
// kernel: mlp_forward.12
= control target key start
LH: loop header
LB: loop body
LE: loop exit
PB: predicated region body
PF: predicated region fallthrough
CT: control target
= control target key end

     0   :  { %s1114_s0 = inlined_call_operand.vmem [shape: bf16[8,128], index: 0, kind: input, shape index: {}]   ;;  %s1115_s1 = inlined_call_operand.hbm [shape: bf16[128,1280], index: 1, kind: input, shape index: {}]   ;;  %s1116_s2 = inlined_call_operand.hbm [shape: f32[1,1280], index: 2, kind: input, shape index: {}]   ;;  %s1117_s3 = inlined_call_operand.<no memory space> [shape: f32[1,1], index: 3, kind: input, shape index: {}]   ;;  %s1118_s4 = inlined_call_operand.vmem [shape: bf16[8,1280], index: 4, kind: output, shape index: {}]  }
   0x1   :  { %9 = sst [smem:[#allocation3]] %s1117_s3 }
   0x2   :  { %10 = vsyncpa [#allocation5], 0 }
   0x3   :  { %12 = vsyncpa [#allocation5 + $0x1], 0 }
   0x4   :  { %13 = vsyncpa [#allocation7], 0 }
   0x5   :  { %15 = vsyncpa [#allocation7 + $0x1], 0  ;;  %s925_s17 = smov 0   ;;  %s927_s18 = smov 0  }
   0x6   :  { %s929_s19 = smov 0   ;;  %s931_s20 = smov 0  }
   0x7   :  { %s933_s21 = smov 0   ;;  %s935_s22 = smov 0  }
   0x8 LB: > { %s649_s3 = sadd.s32 4294967295, %s889_s22   ;;  %s36_s23 = sadd.s32 1, %s885_s21  ;;  %s889_s22 = sphi %s935_s22, %s21_s22   ;;  %s885_s21 = sphi %s933_s21, %s1131_s21   ;;  %s881_s20 = sphi %s931_s20, %s1130_s20   ;;  %s877_s19 = sphi %s929_s19, %s1129_s19   ;;  %s873_s18 = sphi %s927_s18, %s1128_s18   ;;  %s869_s17 = sphi %s925_s17, %s1127_s17  }
   0x9   : > { %p38_p0 = scmp.ge.s32.totalorder %s36_s23, 5  ;;  %s77_s24 = sadd.s32 1, %s877_s19 }
   0xa   : > { %p84_p1 = scmp.ne.s32.totalorder %s877_s19, %s873_s18  ;;  %p85_p2 = scmp.eq.s32.totalorder %s889_s22, 0 }
   0xb   : > { %s1133_s23 = smov (%p38_p0, %s36_s23), 0  ;;  %p90_p4 = scmp.ne.s32.totalorder %s873_s18, %s869_s17 }
   0xc   : > { %p961_p3 = por %p85_p2, %p84_p1  ;;  %s73_s26 = ssub.s32 %s885_s21, %s1133_s23 }
   0xd   : > { %p91_p5 = scmp.eq.s32.totalorder %s649_s3, 0  ;;  %p75_p6 = scmp.eq.s32.totalorder %s73_s26, 0 }
   0xe   : > { %p698_p8 = scmp.lt.s32.totalorder %s889_s22, 5  ;;  %s977_s29 = sand.u32 1, %s877_s19  }
   0xf   : > { %p968_p7 = por %p91_p5, %p90_p4  ;;  %s684_s30 = sshll.u32 %s885_s21, 7 }
  0x10   : > { %s974_s28 = scalar_select %p75_p6, %s877_s19, %s77_s24  }
  0x11   : > { %s1121_s27 = scalar_select %p968_p7, 1, 0 }
  0x12   : > { %s654_s5 = sshll.u32 %s977_s29, 7  ;;  %s984_s8 = scalar_lea.hbm %s1115_s1, %s684_s30 }
  0x13   : > { %s206_s9 = scalar_lea.vmem [#allocation4], %s654_s5  ;;  %p988_p9 = pnand %p698_p8, %p961_p3 }
  0x14   : > { %s216_s10 = sshll.u32 %s206_s9, 4  ;;  %s203_s12 = scalar_lea.sflag [#allocation5], %s977_s29  ;;  %s992_s10 = int_to_ptr.vmem [resolvable:$true] %s216_s10 }
  0x15   : > { %s775_s13 = scalar_lea.hbm %s984_s8, 2048  ;;  %p777_p12 = pneg %p988_p9 }
  0x16   : > { %p776_p11 = scmp.ne.s32.totalorder %s984_s8, %s775_s13  ;;  %s780_s16 = scalar_lea.hbm %s1115_s1, 10240 }
  0x17   : > { %p781_p1 = scmp.lt.u32.totalorder %s984_s8, %s1115_s1  ;;  %p782_p2 = scmp.lt.u32.totalorder %s780_s16, %s775_s13 }
  0x18   : > { %p778_p13 = pnand %p777_p12, %p776_p11  ;;  %p784_p4 = scmp.lt.u32.totalorder %s775_s13, %s984_s8 }
  0x19   : > { %p783_p3 = por %p782_p2, %p781_p1 }
  0x1a   : > { %p779_p0 = pneg %p778_p13 }
  0x1b   : > { %p785_p5 = por %p784_p4, %p783_p3 }
  0x1d   : > { %p786_p6 = pnand %p785_p5, %p779_p0 }
  0x1f   : > { %789 = shalt.err (!%p786_p6)
}
  0x20   : > { %s790_s24 = scalar_lea.vmem %s992_s10, 2048  ;;  %s891_s25 = smov [#allocation4]  }
  0x21   : > { %p791_p8 = scmp.ne.s32.totalorder %s992_s10, %s790_s24  ;;  %s795_s26 = sshll.u32 %s891_s25, 4  ;;  %s796_s26 = int_to_ptr.vmem [resolvable:$false] %s795_s26 }
  0x22   : > { %s797_s30 = scalar_lea.vmem %s796_s26, 4096  ;;  %p798_p10 = scmp.lt.s32.totalorder %s992_s10, %s796_s26 }
  0x23   : > { %p793_p11 = pnand %p791_p8, %p777_p12  ;;  %p799_p1 = scmp.lt.s32.totalorder %s797_s30, %s790_s24 }
  0x25   : > { %p794_p13 = pneg %p793_p11  ;;  %p800_p2 = por %p799_p1, %p798_p10 }
  0x27   : > { %p801_p3 = pnand %p800_p2, %p794_p13 }
  0x29   : > { %804 = shalt.err (!%p801_p3)
}
  0x2a   : > { %s892_s5 = smov 640   ;;  %s893_s6 = smov 128  }
  0x2b   : > { %s894_s7 = smov 8   ;;  %p243_p0 = scmp.lt.s32.totalorder %s889_s22, 6 }
  0x2c   : > { %694 = dma.hbm_to_vmem [thread:$0]  (!%p988_p9), %s984_s8, 2048, %s992_s10, %s203_s12, %s892_s5, %s893_s6, %s894_s7  }
  0x2d   : > { %s657_s9 = sshll.u32 %s977_s29, 1  ;;  %s685_s13 = sshll.u32 %s885_s21, 5 }
  0x2e   : > { %p1123_p10 = scmp.ge.s32.totalorder %s889_s22, 1  ;;  %s1035_s17 = scalar_lea.hbm %s1116_s2, %s685_s13 }
  0x2f   : > { %s230_s3 = scalar_lea.vmem [#allocation6], %s657_s9  ;;  %s227_s8 = scalar_lea.sflag [#allocation7], %s977_s29 }
  0x30   : > { %p1028_p4 = pnand %p1123_p10, %p243_p0  ;;  %s238_s24 = sshll.u32 %s230_s3, 4  ;;  %s239_s24 = int_to_ptr.vmem [resolvable:$true] %s238_s24 }
  0x31   : > { %s805_s10 = scalar_lea.hbm %s1035_s17, 32  ;;  %s810_s26 = scalar_lea.hbm %s1116_s2, 160 }
  0x32   : > { %s1124_s14 = scalar_select %p1028_p4, 1, 0 }
  0x33   : > { %p806_p5 = scmp.ne.s32.totalorder %s1035_s17, %s805_s10  ;;  %p811_p11 = scmp.lt.u32.totalorder %s1035_s17, %s1116_s2 }
  0x34   : > { %p812_p13 = scmp.lt.u32.totalorder %s810_s26, %s805_s10  ;;  %p814_p2 = scmp.lt.u32.totalorder %s805_s10, %s1035_s17 }
  0x35   : > { %p808_p6 = pnand %p806_p5, %p777_p12 }
  0x36   : > { %p813_p1 = por %p812_p13, %p811_p11 }
  0x37   : > { %p809_p8 = pneg %p808_p6 }
  0x38   : > { %p815_p3 = por %p814_p2, %p813_p1 }
  0x3a   : > { %p816_p0 = pnand %p815_p3, %p809_p8 }
  0x3c   : > { %819 = shalt.err (!%p816_p0)
}
  0x3d   : > { %s820_s29 = scalar_lea.vmem %s239_s24, 32  ;;  %s895_s6 = smov [#allocation6]  }
  0x3e   : > { %p821_p10 = scmp.ne.s32.totalorder %s239_s24, %s820_s29  ;;  %s825_s7 = sshll.u32 %s895_s6, 4  ;;  %s826_s7 = int_to_ptr.vmem [resolvable:$false] %s825_s7 }
  0x3f   : > { %s827_s9 = scalar_lea.vmem %s826_s7, 64  ;;  %p828_p7 = scmp.lt.s32.totalorder %s239_s24, %s826_s7 }
  0x40   : > { %p823_p5 = pnand %p821_p10, %p777_p12  ;;  %p829_p4 = scmp.lt.s32.totalorder %s827_s9, %s820_s29 }
  0x42   : > { %p824_p6 = pneg %p823_p5  ;;  %p830_p11 = por %p829_p4, %p828_p7 }
  0x44   : > { %p831_p13 = pnand %p830_p11, %p824_p6 }
  0x46   : > { %834 = shalt.err (!%p831_p13)
}
  0x47   : > { %697 = dma.hbm_to_vmem [thread:$0]  (!%p988_p9), %s1035_s17, 32, %s239_s24, %s227_s8  }
  0x48   : > { %p1125_p8 = scmp.ne.s32.totalorder %s1124_s14, 0 }
  0x49   : > { %s249_s13 = sand.u32 (!%p1125_p8), 1, %s873_s18   ;;  %p1126_p12 = scmp.ne.s32.totalorder (!%p1125_p8), %s1121_s27, 0 }
  0x4a   : > { %247 = sbr.rel (%p1125_p8) target bundleno = 339 (0x153), region = 36  ;;  %s661_s15 = sshll.u32 (!%p1125_p8), %s249_s13, 7 }
  0x4b   : > { %s250_s16 = scalar_lea.sflag (!%p1125_p8), [#allocation5], %s249_s13  ;;  %s1060_s3 = scalar_lea.vmem (!%p1125_p8), [#allocation4], %s661_s15 }
  0x51   : > { %860 = dma.done.wait (%p1126_p12), %s250_s16, 2048  }
  0x52   : > { %862 = vsyncadd (%p1126_p12), %s250_s16, 4294965248  ;;  %s662_s10 = sshll.u32 %s249_s13, 1  ;;  %s259_s11 = scalar_lea.sflag [#allocation7], %s249_s13 }
  0x53   : > { %s1066_s12 = scalar_lea.vmem [#allocation6], %s662_s10 }
  0x54   : > { %864 = dma.done.wait (%p1126_p12), %s259_s11, 32  }
  0x55   : > { %866 = vsyncadd (%p1126_p12), %s259_s11, 4294967264  ;;  %v896_v0 = vmov 0   ;;  %v751_v1 = vld [vmem:[%s1060_s3 + $0x4] ss:$8 sps:$4 sm:$0xff]   ;;  %v753_v2 = vld [vmem:[%s1060_s3] ss:$8 sps:$4 sm:$0xff]   ;;  %v481_v18 = vlaneseq }
  0x56   : > { %461 = vmatprep.mubr.bf16.mxu0 %v896_v0  ;;  %429 = vmatprep.subr.bf16.mxu0 %v751_v1  ;;  %v754_v3 = vld [vmem:[%s1060_s3 + $0x14] ss:$8 sps:$4 sm:$0xff]   ;;  %v756_v4 = vld [vmem:[%s1060_s3 + $0x10] ss:$8 sps:$4 sm:$0xff]   ;;  %v757_v5 = vld [vmem:[%s1060_s3 + $0x24] ss:$8 sps:$4 sm:$0xff]  }
  0x57   : > { %430 = vmatpush1.bf16.msra.mxu0 %v753_v2  ;;  %v759_v6 = vld [vmem:[%s1060_s3 + $0x20] ss:$8 sps:$4 sm:$0xff]   ;;  %v760_v7 = vld [vmem:[%s1060_s3 + $0x34] ss:$8 sps:$4 sm:$0xff]   ;;  %v762_v8 = vld [vmem:[%s1060_s3 + $0x30] ss:$8 sps:$4 sm:$0xff]  }
  0x58   : > { %431 = vmatprep.subr.bf16.mxu0 %v754_v3  ;;  %v763_v9 = vld [vmem:[%s1060_s3 + $0x44] ss:$8 sps:$4 sm:$0xff]   ;;  %v765_v10 = vld [vmem:[%s1060_s3 + $0x40] ss:$8 sps:$4 sm:$0xff]   ;;  %v766_v11 = vld [vmem:[%s1060_s3 + $0x54] ss:$8 sps:$4 sm:$0xff]  }
  0x59   : > { %v768_v12 = vld [vmem:[%s1060_s3 + $0x50] ss:$8 sps:$4 sm:$0xff]   ;;  %v769_v13 = vld [vmem:[%s1060_s3 + $0x64] ss:$8 sps:$4 sm:$0xff]   ;;  %v771_v14 = vld [vmem:[%s1060_s3 + $0x60] ss:$8 sps:$4 sm:$0xff]  }
  0x5a   : > { %v772_v15 = vld [vmem:[%s1060_s3 + $0x74] ss:$8 sps:$4 sm:$0xff]   ;;  %v774_v16 = vld [vmem:[%s1060_s3 + $0x70] ss:$8 sps:$4 sm:$0xff]   ;;  %v332_v17 = vld [vmem:[%s1114_s0] sm:$0xf] }
  0x5b   : > { %432 = vmatpush1.bf16.msra.mxu0 %v756_v4  ;;  %v482_v19 = vshrl.u32 %v481_v18, 7  ;;  %s493_s17 = sld [smem:[#allocation3]]  ;;  %s663_s24 = sshll.u32 %s881_s20, 1  ;;  %v479_v21 = vld [vmem:[%s1066_s12] sm:$0x3] }
  0x5c   : > { %433 = vmatprep.subr.bf16.mxu0 %v757_v5  ;;  %p316_p7 = scmp.lt.s32.totalorder %s663_s24, 9 }
  0x5d   : > { %v483_v20 = vsub.s32 0, %v482_v19  ;;  %v487_v22 = vsub.s32 1, %v482_v19 }
  0x5e   : > { %s1135_s24 = smov (!%p316_p7, %s663_s24), 9 }
  0x5f   : > { %434 = vmatpush1.bf16.msra.mxu0 %v759_v6  ;;  %v484_v23 = vrot.slane %v479_v21, %v483_v20  ;;  %v488_v24 = vrot.slane %v479_v21, %v487_v22  ;;  %s664_s8 = sshll.u32 %s1135_s24, 2 }
  0x60   : > { %435 = vmatprep.subr.bf16.mxu0 %v760_v7  ;;  %s321_s26 = scalar_lea.vmem %s1118_s4, %s664_s8 }
  0x61   : > { %v496_v26 = vstv %s493_s17 }
  0x63   : > { %436 = vmatpush1.bf16.msra.mxu0 %v762_v8 }
  0x64   : > { %437 = vmatprep.subr.bf16.mxu0 %v763_v9 }
  0x67   : > { %438 = vmatpush1.bf16.msra.mxu0 %v765_v10 }
  0x68   : > { %439 = vmatprep.subr.bf16.mxu0 %v766_v11 }
  0x6b   : > { %440 = vmatpush1.bf16.msra.mxu0 %v768_v12 }
  0x6c   : > { %441 = vmatprep.subr.bf16.mxu0 %v769_v13 }
  0x6f   : > { %442 = vmatpush1.bf16.msra.mxu0 %v771_v14 }
  0x70   : > { %443 = vmatprep.subr.bf16.mxu0 %v772_v15 }
  0x73   : > { %444 = vmatpush1.bf16.msra.mxu0 %v774_v16 }
  0x76   : > { %462 = vmatmul.mubr.bf16.vlgmr.msra.gmra.mrb[0].mxu0 %v332_v17 }
 0x149   : > { %v463_v25 = vpop.f32.mrb[0].mxu0 }
 0x14a   : > { %v491_v27 = vadd.f32 %v484_v23, %v463_v25  ;;  %v465_v28 = vpop.f32.mrb[1].mxu0 }
 0x14b   : > { %v492_v29 = vadd.f32 %v488_v24, %v465_v28  ;;  %v467_v30 = vpop.f32.mrb[2].mxu0 }
 0x14c   : > { %vm494_vm0 = vcmp.gt.f32.partialorder %v491_v27, 0.0  ;;  %v497_v31 = vmul.f32 %v496_v26, %v491_v27  ;;  %v468_v32 = vpop.f32.mrb[3].mxu0 }
 0x14d   : > { %vm495_vm1 = vcmp.gt.f32.partialorder %v492_v29, 0.0  ;;  %v498_v33 = vmul.f32 %v496_v26, %v492_v29 }
 0x14e   : > { %v499_v34 = vsel %vm494_vm0, %v491_v27, %v497_v31 }
 0x14f   : > { %v500_v35 = vsel %vm495_vm1, %v492_v29, %v498_v33 }
 0x150   : > { %v686_v36 = vpack.c.bf16 %v500_v35, %v499_v34 }
 0x152   : > { %509 = vst [vmem:[%s321_s26] sm:$0xff] %v686_v36 }
 0x153 PF: > { %s21_s22 = sadd.s32 1, %s889_s22   ;;  %s1127_s17 = smov %s873_s18 }
 0x154   : > { %p18_p9 = scmp.ge.s32.totalorder %s21_s22, 7   ;;  %s1128_s18 = smov %s877_s19 }
 0x155   : > { %s1129_s19 = smov %s974_s28  ;;  %s1130_s20 = smov %s885_s21 }
 0x156   : > { %s1131_s21 = smov %s1133_s23  ;;  %20 = sbr.rel (!%p18_p9) target bundleno = 8 (0x8), region = 100 }
 0x15d   :  { %540 = vsyncpa [#allocation5], 1 }
 0x15e   :  { %542 = vsyncpa [#allocation5 + $0x1], 1 }
 0x15f   :  { %543 = vsyncpa [#allocation7], 1 }
 0x160   :  { %545 = vsyncpa [#allocation7 + $0x1], 1 }

// kernel: mlp_forward.14
= control target key start
LH: loop header
LB: loop body
LE: loop exit
PB: predicated region body
PF: predicated region fallthrough
CT: control target
= control target key end

     0   :  { %s2466_s0 = inlined_call_operand.vmem [shape: bf16[8,1024], index: 0, kind: input, shape index: {}]   ;;  %s2467_s1 = inlined_call_operand.vmem [shape: bf16[1024,896], index: 1, kind: input, shape index: {}]   ;;  %s2468_s2 = inlined_call_operand.vmem [shape: f32[1,896], index: 2, kind: input, shape index: {}]   ;;  %s2469_s3 = inlined_call_operand.<no memory space> [shape: f32[1,1], index: 3, kind: input, shape index: {}]   ;;  %s2470_s4 = inlined_call_operand.vmem [shape: bf16[8,896], index: 4, kind: output, shape index: {}]  }
   0x1   :  { %9 = sst [smem:[#allocation3]] %s2469_s3 }
   0x2   :  { %s2035_s17 = smov 0   ;;  %s2037_s18 = smov 0  }
   0x3   :  { %s2039_s19 = smov 0   ;;  %s2041_s20 = smov 0  }
   0x4   :  { %s2043_s21 = smov 0  }
   0x5 LB: > { %s30_s3 = sadd.s32 1, %s2001_s20  ;;  %p78_p1 = scmp.ne.s32.totalorder %s1993_s18, %s1989_s17  ;;  %s2005_s21 = sphi %s2043_s21, %s15_s21   ;;  %s2001_s20 = sphi %s2041_s20, %s2474_s20   ;;  %s1997_s19 = sphi %s2039_s19, %s2473_s19   ;;  %s1993_s18 = sphi %s2037_s18, %s2472_s18   ;;  %s1989_s17 = sphi %s2035_s17, %s2471_s17  }
   0x6   : > { %p32_p0 = scmp.ge.s32.totalorder %s30_s3, 7  ;;  %p79_p2 = scmp.eq.s32.totalorder %s2005_s21, 0 }
   0x7   : > { %s71_s23 = sadd.s32 1, %s1993_s18  ;;  %p1686_p5 = scmp.ge.s32.totalorder %s2005_s21, 7 }
   0x8   : > { %s2476_s3 = smov (%p32_p0, %s30_s3), 0  ;;  %p80_p3 = por %p79_p2, %p78_p1 }
   0x9   : > { %s67_s22 = ssub.s32 %s2001_s20, %s2476_s3  ;;  %195 = sbr.rel (%p1686_p5) target bundleno = 105 (0x69), region = 24 }
   0xa   : > { %p69_p4 = scmp.eq.s32.totalorder %s67_s22, 0 }
   0xc   : > { %s2070_s24 = scalar_select %p69_p4, %s1993_s18, %s71_s23  }
  0x10   : > { %198 = sbr.rel (!%p80_p3) target bundleno = 105 (0x69), region = 28  ;;  %s200_s25 = sand.u32 (%p80_p3), 1, %s1993_s18  }
  0x11   : > { %s1688_s26 = sshll.u32 (%p80_p3), %s2001_s20, 2  ;;  %s1687_s27 = sshll.u32 (%p80_p3), %s200_s25, 9 }
  0x12   : > { %s2078_s30 = scalar_lea.vmem (%p80_p3), %s2467_s1, %s1688_s26  ;;  %s2082_s5 = scalar_lea.vmem (%p80_p3), [#allocation4], %s1687_s27 }
  0x13   : > { %v223_v0 = vld [vmem:[%s2078_s30] sm:$0xf] (%p80_p3)  ;;  %v225_v1 = vld [vmem:[%s2078_s30 + $0x1c] sm:$0xf] (%p80_p3)  ;;  %v227_v2 = vld [vmem:[%s2078_s30 + $0x38] sm:$0xf] (%p80_p3) }
  0x14   : > { %224 = vst [vmem:[%s2082_s5] sm:$0xf] (%p80_p3), %v223_v0  ;;  %226 = vst [vmem:[%s2082_s5 + $0x4] sm:$0xf] (%p80_p3), %v225_v1  ;;  %v229_v3 = vld [vmem:[%s2078_s30 + $0x54] sm:$0xf] (%p80_p3) }
  0x15   : > { %v231_v4 = vld [vmem:[%s2078_s30 + $0x70] sm:$0xf] (%p80_p3)  ;;  %228 = vst [vmem:[%s2082_s5 + $0x8] sm:$0xf] (%p80_p3), %v227_v2  ;;  %230 = vst [vmem:[%s2082_s5 + $0xc] sm:$0xf] (%p80_p3), %v229_v3 }
  0x16   : > { %232 = vst [vmem:[%s2082_s5 + $0x10] sm:$0xf] (%p80_p3), %v231_v4  ;;  %v233_v5 = vld [vmem:[%s2078_s30 + $0x8c] sm:$0xf] (%p80_p3)  ;;  %v235_v6 = vld [vmem:[%s2078_s30 + $0xa8] sm:$0xf] (%p80_p3) }
  0x17   : > { %v237_v7 = vld [vmem:[%s2078_s30 + $0xc4] sm:$0xf]  ;;  %234 = vst [vmem:[%s2082_s5 + $0x14] sm:$0xf] %v233_v5  ;;  %236 = vst [vmem:[%s2082_s5 + $0x18] sm:$0xf] %v235_v6 }
  0x18   : > { %238 = vst [vmem:[%s2082_s5 + $0x1c] sm:$0xf] %v237_v7  ;;  %v239_v8 = vld [vmem:[%s2078_s30 + $0xe0] sm:$0xf]  ;;  %v241_v9 = vld [vmem:[%s2078_s30 + $0xfc] sm:$0xf] }
  0x19   : > { %v243_v10 = vld [vmem:[%s2078_s30 + $0x118] sm:$0xf]  ;;  %240 = vst [vmem:[%s2082_s5 + $0x20] sm:$0xf] %v239_v8  ;;  %242 = vst [vmem:[%s2082_s5 + $0x24] sm:$0xf] %v241_v9 }
  0x1a   : > { %244 = vst [vmem:[%s2082_s5 + $0x28] sm:$0xf] %v243_v10  ;;  %v245_v11 = vld [vmem:[%s2078_s30 + $0x134] sm:$0xf]  ;;  %v247_v12 = vld [vmem:[%s2078_s30 + $0x150] sm:$0xf] }
  0x1b   : > { %v249_v13 = vld [vmem:[%s2078_s30 + $0x16c] sm:$0xf]  ;;  %246 = vst [vmem:[%s2082_s5 + $0x2c] sm:$0xf] %v245_v11  ;;  %248 = vst [vmem:[%s2082_s5 + $0x30] sm:$0xf] %v247_v12 }
  0x1c   : > { %250 = vst [vmem:[%s2082_s5 + $0x34] sm:$0xf] %v249_v13  ;;  %v251_v14 = vld [vmem:[%s2078_s30 + $0x188] sm:$0xf]  ;;  %v253_v15 = vld [vmem:[%s2078_s30 + $0x1a4] sm:$0xf] }
  0x1d   : > { %v255_v16 = vld [vmem:[%s2078_s30 + $0x1c0] sm:$0xf]  ;;  %252 = vst [vmem:[%s2082_s5 + $0x38] sm:$0xf] %v251_v14  ;;  %254 = vst [vmem:[%s2082_s5 + $0x3c] sm:$0xf] %v253_v15 }
  0x1e   : > { %256 = vst [vmem:[%s2082_s5 + $0x40] sm:$0xf] %v255_v16  ;;  %v257_v17 = vld [vmem:[%s2078_s30 + $0x1dc] sm:$0xf]  ;;  %v259_v18 = vld [vmem:[%s2078_s30 + $0x1f8] sm:$0xf] }
  0x1f   : > { %v261_v19 = vld [vmem:[%s2078_s30 + $0x214] sm:$0xf]  ;;  %258 = vst [vmem:[%s2082_s5 + $0x44] sm:$0xf] %v257_v17  ;;  %260 = vst [vmem:[%s2082_s5 + $0x48] sm:$0xf] %v259_v18 }
  0x20   : > { %262 = vst [vmem:[%s2082_s5 + $0x4c] sm:$0xf] %v261_v19  ;;  %v263_v20 = vld [vmem:[%s2078_s30 + $0x230] sm:$0xf]  ;;  %v265_v21 = vld [vmem:[%s2078_s30 + $0x24c] sm:$0xf] }
  0x21   : > { %v267_v22 = vld [vmem:[%s2078_s30 + $0x268] sm:$0xf]  ;;  %264 = vst [vmem:[%s2082_s5 + $0x50] sm:$0xf] %v263_v20  ;;  %266 = vst [vmem:[%s2082_s5 + $0x54] sm:$0xf] %v265_v21 }
  0x22   : > { %268 = vst [vmem:[%s2082_s5 + $0x58] sm:$0xf] %v267_v22  ;;  %v269_v23 = vld [vmem:[%s2078_s30 + $0x284] sm:$0xf]  ;;  %v271_v24 = vld [vmem:[%s2078_s30 + $0x2a0] sm:$0xf] }
  0x23   : > { %v273_v25 = vld [vmem:[%s2078_s30 + $0x2bc] sm:$0xf]  ;;  %270 = vst [vmem:[%s2082_s5 + $0x5c] sm:$0xf] %v269_v23  ;;  %272 = vst [vmem:[%s2082_s5 + $0x60] sm:$0xf] %v271_v24 }
  0x24   : > { %274 = vst [vmem:[%s2082_s5 + $0x64] sm:$0xf] %v273_v25  ;;  %v275_v26 = vld [vmem:[%s2078_s30 + $0x2d8] sm:$0xf]  ;;  %v277_v27 = vld [vmem:[%s2078_s30 + $0x2f4] sm:$0xf] }
  0x25   : > { %v279_v28 = vld [vmem:[%s2078_s30 + $0x310] sm:$0xf]  ;;  %276 = vst [vmem:[%s2082_s5 + $0x68] sm:$0xf] %v275_v26  ;;  %278 = vst [vmem:[%s2082_s5 + $0x6c] sm:$0xf] %v277_v27 }
  0x26   : > { %280 = vst [vmem:[%s2082_s5 + $0x70] sm:$0xf] %v279_v28  ;;  %v281_v29 = vld [vmem:[%s2078_s30 + $0x32c] sm:$0xf]  ;;  %v283_v30 = vld [vmem:[%s2078_s30 + $0x348] sm:$0xf] }
  0x27   : > { %v285_v31 = vld [vmem:[%s2078_s30 + $0x364] sm:$0xf]  ;;  %282 = vst [vmem:[%s2082_s5 + $0x74] sm:$0xf] %v281_v29  ;;  %284 = vst [vmem:[%s2082_s5 + $0x78] sm:$0xf] %v283_v30 }
  0x28   : > { %286 = vst [vmem:[%s2082_s5 + $0x7c] sm:$0xf] %v285_v31  ;;  %v287_v32 = vld [vmem:[%s2078_s30 + $0x380] sm:$0xf]  ;;  %v289_v33 = vld [vmem:[%s2078_s30 + $0x39c] sm:$0xf] }
  0x29   : > { %v291_v34 = vld [vmem:[%s2078_s30 + $0x3b8] sm:$0xf]  ;;  %288 = vst [vmem:[%s2082_s5 + $0x80] sm:$0xf] %v287_v32  ;;  %290 = vst [vmem:[%s2082_s5 + $0x84] sm:$0xf] %v289_v33 }
  0x2a   : > { %292 = vst [vmem:[%s2082_s5 + $0x88] sm:$0xf] %v291_v34  ;;  %v293_v35 = vld [vmem:[%s2078_s30 + $0x3d4] sm:$0xf]  ;;  %v295_v36 = vld [vmem:[%s2078_s30 + $0x3f0] sm:$0xf] }
  0x2b   : > { %v297_v37 = vld [vmem:[%s2078_s30 + $0x40c] sm:$0xf]  ;;  %294 = vst [vmem:[%s2082_s5 + $0x8c] sm:$0xf] %v293_v35  ;;  %296 = vst [vmem:[%s2082_s5 + $0x90] sm:$0xf] %v295_v36 }
  0x2c   : > { %298 = vst [vmem:[%s2082_s5 + $0x94] sm:$0xf] %v297_v37  ;;  %v299_v38 = vld [vmem:[%s2078_s30 + $0x428] sm:$0xf]  ;;  %v301_v39 = vld [vmem:[%s2078_s30 + $0x444] sm:$0xf] }
  0x2d   : > { %v303_v40 = vld [vmem:[%s2078_s30 + $0x460] sm:$0xf]  ;;  %300 = vst [vmem:[%s2082_s5 + $0x98] sm:$0xf] %v299_v38  ;;  %302 = vst [vmem:[%s2082_s5 + $0x9c] sm:$0xf] %v301_v39 }
  0x2e   : > { %304 = vst [vmem:[%s2082_s5 + $0xa0] sm:$0xf] %v303_v40  ;;  %v305_v41 = vld [vmem:[%s2078_s30 + $0x47c] sm:$0xf]  ;;  %v307_v42 = vld [vmem:[%s2078_s30 + $0x498] sm:$0xf] }
  0x2f   : > { %v309_v43 = vld [vmem:[%s2078_s30 + $0x4b4] sm:$0xf]  ;;  %306 = vst [vmem:[%s2082_s5 + $0xa4] sm:$0xf] %v305_v41  ;;  %308 = vst [vmem:[%s2082_s5 + $0xa8] sm:$0xf] %v307_v42 }
  0x30   : > { %310 = vst [vmem:[%s2082_s5 + $0xac] sm:$0xf] %v309_v43  ;;  %v311_v44 = vld [vmem:[%s2078_s30 + $0x4d0] sm:$0xf]  ;;  %v313_v45 = vld [vmem:[%s2078_s30 + $0x4ec] sm:$0xf] }
  0x31   : > { %v315_v46 = vld [vmem:[%s2078_s30 + $0x508] sm:$0xf]  ;;  %312 = vst [vmem:[%s2082_s5 + $0xb0] sm:$0xf] %v311_v44  ;;  %314 = vst [vmem:[%s2082_s5 + $0xb4] sm:$0xf] %v313_v45 }
  0x32   : > { %316 = vst [vmem:[%s2082_s5 + $0xb8] sm:$0xf] %v315_v46  ;;  %v317_v47 = vld [vmem:[%s2078_s30 + $0x524] sm:$0xf]  ;;  %v319_v48 = vld [vmem:[%s2078_s30 + $0x540] sm:$0xf] }
  0x33   : > { %v321_v49 = vld [vmem:[%s2078_s30 + $0x55c] sm:$0xf]  ;;  %318 = vst [vmem:[%s2082_s5 + $0xbc] sm:$0xf] %v317_v47  ;;  %320 = vst [vmem:[%s2082_s5 + $0xc0] sm:$0xf] %v319_v48 }
  0x34   : > { %322 = vst [vmem:[%s2082_s5 + $0xc4] sm:$0xf] %v321_v49  ;;  %v323_v50 = vld [vmem:[%s2078_s30 + $0x578] sm:$0xf]  ;;  %v325_v51 = vld [vmem:[%s2078_s30 + $0x594] sm:$0xf] }
  0x35   : > { %v327_v52 = vld [vmem:[%s2078_s30 + $0x5b0] sm:$0xf]  ;;  %324 = vst [vmem:[%s2082_s5 + $0xc8] sm:$0xf] %v323_v50  ;;  %326 = vst [vmem:[%s2082_s5 + $0xcc] sm:$0xf] %v325_v51 }
  0x36   : > { %328 = vst [vmem:[%s2082_s5 + $0xd0] sm:$0xf] %v327_v52  ;;  %v329_v53 = vld [vmem:[%s2078_s30 + $0x5cc] sm:$0xf]  ;;  %v331_v54 = vld [vmem:[%s2078_s30 + $0x5e8] sm:$0xf] }
  0x37   : > { %v333_v55 = vld [vmem:[%s2078_s30 + $0x604] sm:$0xf]  ;;  %330 = vst [vmem:[%s2082_s5 + $0xd4] sm:$0xf] %v329_v53  ;;  %332 = vst [vmem:[%s2082_s5 + $0xd8] sm:$0xf] %v331_v54 }
  0x38   : > { %334 = vst [vmem:[%s2082_s5 + $0xdc] sm:$0xf] %v333_v55  ;;  %v335_v56 = vld [vmem:[%s2078_s30 + $0x620] sm:$0xf]  ;;  %v337_v57 = vld [vmem:[%s2078_s30 + $0x63c] sm:$0xf] }
  0x39   : > { %v339_v58 = vld [vmem:[%s2078_s30 + $0x658] sm:$0xf]  ;;  %336 = vst [vmem:[%s2082_s5 + $0xe0] sm:$0xf] %v335_v56  ;;  %338 = vst [vmem:[%s2082_s5 + $0xe4] sm:$0xf] %v337_v57 }
  0x3a   : > { %340 = vst [vmem:[%s2082_s5 + $0xe8] sm:$0xf] %v339_v58  ;;  %v341_v59 = vld [vmem:[%s2078_s30 + $0x674] sm:$0xf]  ;;  %v343_v60 = vld [vmem:[%s2078_s30 + $0x690] sm:$0xf] }
  0x3b   : > { %v345_v61 = vld [vmem:[%s2078_s30 + $0x6ac] sm:$0xf]  ;;  %342 = vst [vmem:[%s2082_s5 + $0xec] sm:$0xf] %v341_v59  ;;  %344 = vst [vmem:[%s2082_s5 + $0xf0] sm:$0xf] %v343_v60 }
  0x3c   : > { %346 = vst [vmem:[%s2082_s5 + $0xf4] sm:$0xf] %v345_v61  ;;  %v347_v62 = vld [vmem:[%s2078_s30 + $0x6c8] sm:$0xf]  ;;  %v349_v63 = vld [vmem:[%s2078_s30 + $0x6e4] sm:$0xf] }
  0x3d   : > { %v351_v0 = vld [vmem:[%s2078_s30 + $0x700] sm:$0xf]  ;;  %348 = vst [vmem:[%s2082_s5 + $0xf8] sm:$0xf] %v347_v62  ;;  %350 = vst [vmem:[%s2082_s5 + $0xfc] sm:$0xf] %v349_v63 }
  0x3e   : > { %352 = vst [vmem:[%s2082_s5 + $0x100] sm:$0xf] %v351_v0  ;;  %v353_v1 = vld [vmem:[%s2078_s30 + $0x71c] sm:$0xf]  ;;  %v355_v2 = vld [vmem:[%s2078_s30 + $0x738] sm:$0xf] }
  0x3f   : > { %v357_v3 = vld [vmem:[%s2078_s30 + $0x754] sm:$0xf]  ;;  %354 = vst [vmem:[%s2082_s5 + $0x104] sm:$0xf] %v353_v1  ;;  %356 = vst [vmem:[%s2082_s5 + $0x108] sm:$0xf] %v355_v2 }
  0x40   : > { %358 = vst [vmem:[%s2082_s5 + $0x10c] sm:$0xf] %v357_v3  ;;  %v359_v4 = vld [vmem:[%s2078_s30 + $0x770] sm:$0xf]  ;;  %v361_v5 = vld [vmem:[%s2078_s30 + $0x78c] sm:$0xf] }
  0x41   : > { %v363_v6 = vld [vmem:[%s2078_s30 + $0x7a8] sm:$0xf]  ;;  %360 = vst [vmem:[%s2082_s5 + $0x110] sm:$0xf] %v359_v4  ;;  %362 = vst [vmem:[%s2082_s5 + $0x114] sm:$0xf] %v361_v5 }
  0x42   : > { %364 = vst [vmem:[%s2082_s5 + $0x118] sm:$0xf] %v363_v6  ;;  %v365_v7 = vld [vmem:[%s2078_s30 + $0x7c4] sm:$0xf]  ;;  %v367_v8 = vld [vmem:[%s2078_s30 + $0x7e0] sm:$0xf] }
  0x43   : > { %v369_v9 = vld [vmem:[%s2078_s30 + $0x7fc] sm:$0xf]  ;;  %366 = vst [vmem:[%s2082_s5 + $0x11c] sm:$0xf] %v365_v7  ;;  %368 = vst [vmem:[%s2082_s5 + $0x120] sm:$0xf] %v367_v8 }
  0x44   : > { %370 = vst [vmem:[%s2082_s5 + $0x124] sm:$0xf] %v369_v9  ;;  %v371_v10 = vld [vmem:[%s2078_s30 + $0x818] sm:$0xf]  ;;  %v373_v11 = vld [vmem:[%s2078_s30 + $0x834] sm:$0xf] }
  0x45   : > { %v375_v12 = vld [vmem:[%s2078_s30 + $0x850] sm:$0xf]  ;;  %372 = vst [vmem:[%s2082_s5 + $0x128] sm:$0xf] %v371_v10  ;;  %374 = vst [vmem:[%s2082_s5 + $0x12c] sm:$0xf] %v373_v11 }
  0x46   : > { %376 = vst [vmem:[%s2082_s5 + $0x130] sm:$0xf] %v375_v12  ;;  %v377_v13 = vld [vmem:[%s2078_s30 + $0x86c] sm:$0xf]  ;;  %v379_v14 = vld [vmem:[%s2078_s30 + $0x888] sm:$0xf] }
  0x47   : > { %v381_v15 = vld [vmem:[%s2078_s30 + $0x8a4] sm:$0xf]  ;;  %378 = vst [vmem:[%s2082_s5 + $0x134] sm:$0xf] %v377_v13  ;;  %380 = vst [vmem:[%s2082_s5 + $0x138] sm:$0xf] %v379_v14 }
  0x48   : > { %382 = vst [vmem:[%s2082_s5 + $0x13c] sm:$0xf] %v381_v15  ;;  %v383_v16 = vld [vmem:[%s2078_s30 + $0x8c0] sm:$0xf]  ;;  %v385_v17 = vld [vmem:[%s2078_s30 + $0x8dc] sm:$0xf] }
  0x49   : > { %v387_v18 = vld [vmem:[%s2078_s30 + $0x8f8] sm:$0xf]  ;;  %384 = vst [vmem:[%s2082_s5 + $0x140] sm:$0xf] %v383_v16  ;;  %386 = vst [vmem:[%s2082_s5 + $0x144] sm:$0xf] %v385_v17 }
  0x4a   : > { %388 = vst [vmem:[%s2082_s5 + $0x148] sm:$0xf] %v387_v18  ;;  %v389_v19 = vld [vmem:[%s2078_s30 + $0x914] sm:$0xf]  ;;  %v391_v20 = vld [vmem:[%s2078_s30 + $0x930] sm:$0xf] }
  0x4b   : > { %v393_v21 = vld [vmem:[%s2078_s30 + $0x94c] sm:$0xf]  ;;  %390 = vst [vmem:[%s2082_s5 + $0x14c] sm:$0xf] %v389_v19  ;;  %392 = vst [vmem:[%s2082_s5 + $0x150] sm:$0xf] %v391_v20 }
  0x4c   : > { %394 = vst [vmem:[%s2082_s5 + $0x154] sm:$0xf] %v393_v21  ;;  %v395_v22 = vld [vmem:[%s2078_s30 + $0x968] sm:$0xf]  ;;  %v397_v23 = vld [vmem:[%s2078_s30 + $0x984] sm:$0xf] }
  0x4d   : > { %v399_v24 = vld [vmem:[%s2078_s30 + $0x9a0] sm:$0xf]  ;;  %396 = vst [vmem:[%s2082_s5 + $0x158] sm:$0xf] %v395_v22  ;;  %398 = vst [vmem:[%s2082_s5 + $0x15c] sm:$0xf] %v397_v23 }
  0x4e   : > { %400 = vst [vmem:[%s2082_s5 + $0x160] sm:$0xf] %v399_v24  ;;  %v401_v25 = vld [vmem:[%s2078_s30 + $0x9bc] sm:$0xf]  ;;  %v403_v26 = vld [vmem:[%s2078_s30 + $0x9d8] sm:$0xf] }
  0x4f   : > { %v405_v27 = vld [vmem:[%s2078_s30 + $0x9f4] sm:$0xf]  ;;  %402 = vst [vmem:[%s2082_s5 + $0x164] sm:$0xf] %v401_v25  ;;  %404 = vst [vmem:[%s2082_s5 + $0x168] sm:$0xf] %v403_v26 }
  0x50   : > { %406 = vst [vmem:[%s2082_s5 + $0x16c] sm:$0xf] %v405_v27  ;;  %v407_v28 = vld [vmem:[%s2078_s30 + $0xa10] sm:$0xf]  ;;  %v409_v29 = vld [vmem:[%s2078_s30 + $0xa2c] sm:$0xf] }
  0x51   : > { %v411_v30 = vld [vmem:[%s2078_s30 + $0xa48] sm:$0xf]  ;;  %408 = vst [vmem:[%s2082_s5 + $0x170] sm:$0xf] %v407_v28  ;;  %410 = vst [vmem:[%s2082_s5 + $0x174] sm:$0xf] %v409_v29 }
  0x52   : > { %412 = vst [vmem:[%s2082_s5 + $0x178] sm:$0xf] %v411_v30  ;;  %v413_v31 = vld [vmem:[%s2078_s30 + $0xa64] sm:$0xf]  ;;  %v415_v32 = vld [vmem:[%s2078_s30 + $0xa80] sm:$0xf] }
  0x53   : > { %v417_v33 = vld [vmem:[%s2078_s30 + $0xa9c] sm:$0xf]  ;;  %414 = vst [vmem:[%s2082_s5 + $0x17c] sm:$0xf] %v413_v31  ;;  %416 = vst [vmem:[%s2082_s5 + $0x180] sm:$0xf] %v415_v32 }
  0x54   : > { %418 = vst [vmem:[%s2082_s5 + $0x184] sm:$0xf] %v417_v33  ;;  %v419_v34 = vld [vmem:[%s2078_s30 + $0xab8] sm:$0xf]  ;;  %v421_v35 = vld [vmem:[%s2078_s30 + $0xad4] sm:$0xf] }
  0x55   : > { %v423_v36 = vld [vmem:[%s2078_s30 + $0xaf0] sm:$0xf]  ;;  %420 = vst [vmem:[%s2082_s5 + $0x188] sm:$0xf] %v419_v34  ;;  %422 = vst [vmem:[%s2082_s5 + $0x18c] sm:$0xf] %v421_v35 }
  0x56   : > { %424 = vst [vmem:[%s2082_s5 + $0x190] sm:$0xf] %v423_v36  ;;  %v425_v37 = vld [vmem:[%s2078_s30 + $0xb0c] sm:$0xf]  ;;  %v427_v38 = vld [vmem:[%s2078_s30 + $0xb28] sm:$0xf] }
  0x57   : > { %v429_v39 = vld [vmem:[%s2078_s30 + $0xb44] sm:$0xf]  ;;  %426 = vst [vmem:[%s2082_s5 + $0x194] sm:$0xf] %v425_v37  ;;  %428 = vst [vmem:[%s2082_s5 + $0x198] sm:$0xf] %v427_v38 }
  0x58   : > { %430 = vst [vmem:[%s2082_s5 + $0x19c] sm:$0xf] %v429_v39  ;;  %v431_v40 = vld [vmem:[%s2078_s30 + $0xb60] sm:$0xf]  ;;  %v433_v41 = vld [vmem:[%s2078_s30 + $0xb7c] sm:$0xf] }
  0x59   : > { %v435_v42 = vld [vmem:[%s2078_s30 + $0xb98] sm:$0xf]  ;;  %432 = vst [vmem:[%s2082_s5 + $0x1a0] sm:$0xf] %v431_v40  ;;  %434 = vst [vmem:[%s2082_s5 + $0x1a4] sm:$0xf] %v433_v41 }
  0x5a   : > { %436 = vst [vmem:[%s2082_s5 + $0x1a8] sm:$0xf] %v435_v42  ;;  %v437_v43 = vld [vmem:[%s2078_s30 + $0xbb4] sm:$0xf]  ;;  %v439_v44 = vld [vmem:[%s2078_s30 + $0xbd0] sm:$0xf] }
  0x5b   : > { %v441_v45 = vld [vmem:[%s2078_s30 + $0xbec] sm:$0xf]  ;;  %438 = vst [vmem:[%s2082_s5 + $0x1ac] sm:$0xf] %v437_v43  ;;  %440 = vst [vmem:[%s2082_s5 + $0x1b0] sm:$0xf] %v439_v44 }
  0x5c   : > { %442 = vst [vmem:[%s2082_s5 + $0x1b4] sm:$0xf] %v441_v45  ;;  %v443_v46 = vld [vmem:[%s2078_s30 + $0xc08] sm:$0xf]  ;;  %v445_v47 = vld [vmem:[%s2078_s30 + $0xc24] sm:$0xf] }
  0x5d   : > { %v447_v48 = vld [vmem:[%s2078_s30 + $0xc40] sm:$0xf]  ;;  %444 = vst [vmem:[%s2082_s5 + $0x1b8] sm:$0xf] %v443_v46  ;;  %446 = vst [vmem:[%s2082_s5 + $0x1bc] sm:$0xf] %v445_v47 }
  0x5e   : > { %448 = vst [vmem:[%s2082_s5 + $0x1c0] sm:$0xf] %v447_v48  ;;  %v449_v49 = vld [vmem:[%s2078_s30 + $0xc5c] sm:$0xf]  ;;  %v451_v50 = vld [vmem:[%s2078_s30 + $0xc78] sm:$0xf] }
  0x5f   : > { %v453_v51 = vld [vmem:[%s2078_s30 + $0xc94] sm:$0xf]  ;;  %450 = vst [vmem:[%s2082_s5 + $0x1c4] sm:$0xf] %v449_v49  ;;  %452 = vst [vmem:[%s2082_s5 + $0x1c8] sm:$0xf] %v451_v50 }
  0x60   : > { %454 = vst [vmem:[%s2082_s5 + $0x1cc] sm:$0xf] %v453_v51  ;;  %v455_v52 = vld [vmem:[%s2078_s30 + $0xcb0] sm:$0xf]  ;;  %v457_v53 = vld [vmem:[%s2078_s30 + $0xccc] sm:$0xf] }
  0x61   : > { %v459_v54 = vld [vmem:[%s2078_s30 + $0xce8] sm:$0xf]  ;;  %456 = vst [vmem:[%s2082_s5 + $0x1d0] sm:$0xf] %v455_v52  ;;  %458 = vst [vmem:[%s2082_s5 + $0x1d4] sm:$0xf] %v457_v53 }
  0x62   : > { %460 = vst [vmem:[%s2082_s5 + $0x1d8] sm:$0xf] %v459_v54  ;;  %v461_v55 = vld [vmem:[%s2078_s30 + $0xd04] sm:$0xf]  ;;  %v463_v56 = vld [vmem:[%s2078_s30 + $0xd20] sm:$0xf] }
  0x63   : > { %v465_v57 = vld [vmem:[%s2078_s30 + $0xd3c] sm:$0xf]  ;;  %462 = vst [vmem:[%s2082_s5 + $0x1dc] sm:$0xf] %v461_v55  ;;  %464 = vst [vmem:[%s2082_s5 + $0x1e0] sm:$0xf] %v463_v56 }
  0x64   : > { %466 = vst [vmem:[%s2082_s5 + $0x1e4] sm:$0xf] %v465_v57  ;;  %v467_v58 = vld [vmem:[%s2078_s30 + $0xd58] sm:$0xf]  ;;  %v469_v59 = vld [vmem:[%s2078_s30 + $0xd74] sm:$0xf] }
  0x65   : > { %v471_v60 = vld [vmem:[%s2078_s30 + $0xd90] sm:$0xf]  ;;  %468 = vst [vmem:[%s2082_s5 + $0x1e8] sm:$0xf] %v467_v58  ;;  %470 = vst [vmem:[%s2082_s5 + $0x1ec] sm:$0xf] %v469_v59 }
  0x66   : > { %472 = vst [vmem:[%s2082_s5 + $0x1f0] sm:$0xf] %v471_v60  ;;  %v473_v61 = vld [vmem:[%s2078_s30 + $0xdac] sm:$0xf]  ;;  %v475_v62 = vld [vmem:[%s2078_s30 + $0xdc8] sm:$0xf] }
  0x67   : > { %v477_v63 = vld [vmem:[%s2078_s30 + $0xde4] sm:$0xf]  ;;  %474 = vst [vmem:[%s2082_s5 + $0x1f4] sm:$0xf] %v473_v61  ;;  %476 = vst [vmem:[%s2082_s5 + $0x1f8] sm:$0xf] %v475_v62 }
  0x68   : > { %478 = vst [vmem:[%s2082_s5 + $0x1fc] sm:$0xf] %v477_v63 }
  0x69 PF: > { %p1689_p6 = scmp.ge.s32.totalorder %s2005_s21, 1  ;;  %p762_p7 = scmp.lt.s32.totalorder %s2005_s21, 8 }
  0x6b   : > { %p763_p8 = pnand %p1689_p6, %p762_p7 }
  0x6c   : > { %s769_s6 = sand.u32 (!%p763_p8), 1, %s1989_s17   ;;  %v2344_v0 = vld [vmem:[%s2466_s0] sm:$0xff] (!%p763_p8)  ;;  %v2349_v1 = vld [vmem:[%s2466_s0 + $0x8] sm:$0xff] (!%p763_p8)  ;;  %v2389_v33 = vld [vmem:[%s2466_s0 + $0x10] sm:$0xff] (!%p763_p8)  ;;  %p820_p9 = scmp.lt.s32.totalorder (!%p763_p8), %s1997_s19, 6 }
  0x6d   : > { %766 = sbr.rel (%p763_p8) target bundleno = 404 (0x194), region = 73  ;;  %s1690_s11 = sshll.u32 (!%p763_p8), %s769_s6, 9  ;;  %v1693_v2 = vcombine.high (!%p763_p8), %v2344_v0, %v2344_v0  ;;  %v1695_v3 = vcombine.high (!%p763_p8), %v2349_v1, %v2349_v1  ;;  %v2395_v35 = vld [vmem:[%s2466_s0 + $0x18] sm:$0xff] (!%p763_p8)  ;;  %v1692_v38 = vcombine.low (!%p763_p8), %v2344_v0, %v2344_v0  ;;  %v1694_v39 = vcombine.low (!%p763_p8), %v2349_v1, %v2349_v1 }
  0x6e   : > { %s2355_s12 = scalar_lea.vmem (!%p763_p8), [#allocation4], %s1690_s11  ;;  %v1697_v42 = vcombine.high (!%p763_p8), %v2389_v33, %v2389_v33  ;;  %v1699_v44 = vcombine.high (!%p763_p8), %v2395_v35, %v2395_v35  ;;  %s1556_s17 = sld [smem:[#allocation3]] (!%p763_p8) }
  0x6f   : > { %v1895_v4 = vld [vmem:[%s2355_s12 + $0x40] sm:$0xff] (!%p763_p8)   ;;  %1414 = vmatprep.mubr.bf16.mxu0 (!%p763_p8), %v1693_v2  ;;  %1454 = vmatprep.mubr.bf16.mxu1 (!%p763_p8), %v1695_v3  ;;  %v1899_v8 = vld [vmem:[%s2355_s12 + $0x48] sm:$0xff] (!%p763_p8)   ;;  %v1903_v12 = vld [vmem:[%s2355_s12 + $0x50] sm:$0xff] (!%p763_p8)  }
  0x70   : > { %v1896_v5 = vld [vmem:[%s2355_s12 + $0xc0] sm:$0xff] (!%p763_p8)   ;;  %1767 = vmatprep.subr.bf16.mxu0 (!%p763_p8), %v1895_v4  ;;  %v1900_v9 = vld [vmem:[%s2355_s12 + $0xc8] sm:$0xff] (!%p763_p8)   ;;  %v1904_v13 = vld [vmem:[%s2355_s12 + $0xd0] sm:$0xff] (!%p763_p8)  }
  0x71   : > { %v1897_v6 = vld [vmem:[%s2355_s12] sm:$0xff] (!%p763_p8)   ;;  %1789 = vmatprep.subr.bf16.mxu1 (!%p763_p8), %v1896_v5  ;;  %v1901_v10 = vld [vmem:[%s2355_s12 + $0x8] sm:$0xff] (!%p763_p8)   ;;  %v1905_v14 = vld [vmem:[%s2355_s12 + $0x10] sm:$0xff] (!%p763_p8)  }
  0x72   : > { %v1898_v7 = vld [vmem:[%s2355_s12 + $0x80] sm:$0xff] (!%p763_p8)   ;;  %1768 = vmatpush3.bf16.msra.mxu0 (!%p763_p8), %v1897_v6  ;;  %v1902_v11 = vld [vmem:[%s2355_s12 + $0x88] sm:$0xff] (!%p763_p8)   ;;  %v1906_v15 = vld [vmem:[%s2355_s12 + $0x90] sm:$0xff] (!%p763_p8)  }
  0x73   : > { %1790 = vmatpush3.bf16.msra.mxu1 (!%p763_p8), %v1898_v7  ;;  %1769 = vmatprep.subr.bf16.mxu0 (!%p763_p8), %v1899_v8  ;;  %v1907_v16 = vld [vmem:[%s2355_s12 + $0x58] sm:$0xff] (!%p763_p8)   ;;  %v1911_v20 = vld [vmem:[%s2355_s12 + $0x60] sm:$0xff] (!%p763_p8)   ;;  %v1915_v24 = vld [vmem:[%s2355_s12 + $0x68] sm:$0xff] (!%p763_p8)  }
  0x74   : > { %1791 = vmatprep.subr.bf16.mxu1 %v1900_v9  ;;  %v1908_v17 = vld [vmem:[%s2355_s12 + $0xd8] sm:$0xff]   ;;  %v1912_v21 = vld [vmem:[%s2355_s12 + $0xe0] sm:$0xff]   ;;  %v1916_v25 = vld [vmem:[%s2355_s12 + $0xe8] sm:$0xff]   ;;  %s2478_s19 = smov (!%p820_p9, %s1997_s19), 6 }
  0x75   : > { %v1909_v18 = vld [vmem:[%s2355_s12 + $0x18] sm:$0xff]   ;;  %v1913_v22 = vld [vmem:[%s2355_s12 + $0x20] sm:$0xff]   ;;  %v1917_v26 = vld [vmem:[%s2355_s12 + $0x28] sm:$0xff]   ;;  %s822_s25 = scalar_lea.vmem %s2468_s2, %s2478_s19  ;;  %s1691_s26 = sshll.u32 %s2478_s19, 2 }
  0x76   : > { %1770 = vmatpush3.bf16.msra.mxu0 %v1901_v10  ;;  %v1910_v19 = vld [vmem:[%s2355_s12 + $0x98] sm:$0xff]   ;;  %v1914_v23 = vld [vmem:[%s2355_s12 + $0xa0] sm:$0xff]   ;;  %v1918_v27 = vld [vmem:[%s2355_s12 + $0xa8] sm:$0xff]   ;;  %v1696_v10 = vcombine.low %v2389_v33, %v2389_v33  ;;  %s830_s29 = scalar_lea.vmem %s2470_s4, %s1691_s26 }
  0x77   : > { %1792 = vmatpush3.bf16.msra.mxu1 %v1902_v11  ;;  %1771 = vmatprep.subr.bf16.mxu0 %v1903_v12  ;;  %v1919_v28 = vld [vmem:[%s2355_s12 + $0x70] sm:$0xff]   ;;  %v1923_v32 = vld [vmem:[%s2355_s12 + $0x78] sm:$0xff]   ;;  %v1931_v40 = vld [vmem:[%s2355_s12 + $0x140] sm:$0xff]   ;;  %v1698_v11 = vcombine.low %v2395_v35, %v2395_v35 }
  0x78   : > { %1793 = vmatprep.subr.bf16.mxu1 %v1904_v13  ;;  %v1920_v29 = vld [vmem:[%s2355_s12 + $0xf0] sm:$0xff]   ;;  %v1924_v34 = vld [vmem:[%s2355_s12 + $0xf8] sm:$0xff]   ;;  %v1932_v41 = vld [vmem:[%s2355_s12 + $0x1c0] sm:$0xff]  }
  0x79   : > { %v1921_v30 = vld [vmem:[%s2355_s12 + $0x30] sm:$0xff]   ;;  %v1925_v36 = vld [vmem:[%s2355_s12 + $0x38] sm:$0xff]   ;;  %v1933_v43 = vld [vmem:[%s2355_s12 + $0x100] sm:$0xff]  }
  0x7a   : > { %1772 = vmatpush3.bf16.msra.mxu0 %v1905_v14  ;;  %v1922_v31 = vld [vmem:[%s2355_s12 + $0xb0] sm:$0xff]   ;;  %v1926_v37 = vld [vmem:[%s2355_s12 + $0xb8] sm:$0xff]   ;;  %v1934_v45 = vld [vmem:[%s2355_s12 + $0x180] sm:$0xff]  }
  0x7b   : > { %1794 = vmatpush3.bf16.msra.mxu1 %v1906_v15  ;;  %1773 = vmatprep.subr.bf16.mxu0 %v1907_v16  ;;  %v1935_v46 = vld [vmem:[%s2355_s12 + $0x148] sm:$0xff]   ;;  %v1939_v50 = vld [vmem:[%s2355_s12 + $0x150] sm:$0xff]   ;;  %v1943_v54 = vld [vmem:[%s2355_s12 + $0x158] sm:$0xff]  }
  0x7c   : > { %1795 = vmatprep.subr.bf16.mxu1 %v1908_v17  ;;  %v1936_v47 = vld [vmem:[%s2355_s12 + $0x1c8] sm:$0xff]   ;;  %v1940_v51 = vld [vmem:[%s2355_s12 + $0x1d0] sm:$0xff]   ;;  %v1944_v55 = vld [vmem:[%s2355_s12 + $0x1d8] sm:$0xff]  }
  0x7d   : > { %v1937_v48 = vld [vmem:[%s2355_s12 + $0x108] sm:$0xff]   ;;  %v1941_v52 = vld [vmem:[%s2355_s12 + $0x110] sm:$0xff]   ;;  %v1945_v56 = vld [vmem:[%s2355_s12 + $0x118] sm:$0xff]  }
  0x7e   : > { %1774 = vmatpush3.bf16.msra.mxu0 %v1909_v18  ;;  %v1938_v49 = vld [vmem:[%s2355_s12 + $0x188] sm:$0xff]   ;;  %v1942_v53 = vld [vmem:[%s2355_s12 + $0x190] sm:$0xff]   ;;  %v1946_v57 = vld [vmem:[%s2355_s12 + $0x198] sm:$0xff]  }
  0x7f   : > { %1796 = vmatpush3.bf16.msra.mxu1 %v1910_v19  ;;  %1775 = vmatprep.subr.bf16.mxu0 %v1911_v20  ;;  %v1947_v58 = vld [vmem:[%s2355_s12 + $0x160] sm:$0xff]   ;;  %v1951_v62 = vld [vmem:[%s2355_s12 + $0x168] sm:$0xff]   ;;  %v1955_v2 = vld [vmem:[%s2355_s12 + $0x170] sm:$0xff]  }
  0x80   : > { %1797 = vmatprep.subr.bf16.mxu1 %v1912_v21  ;;  %v1948_v59 = vld [vmem:[%s2355_s12 + $0x1e0] sm:$0xff]   ;;  %v1952_v63 = vld [vmem:[%s2355_s12 + $0x1e8] sm:$0xff]   ;;  %v1956_v3 = vld [vmem:[%s2355_s12 + $0x1f0] sm:$0xff]  }
  0x81   : > { %v1949_v60 = vld [vmem:[%s2355_s12 + $0x120] sm:$0xff]   ;;  %v1953_v0 = vld [vmem:[%s2355_s12 + $0x128] sm:$0xff]   ;;  %v1957_v4 = vld [vmem:[%s2355_s12 + $0x130] sm:$0xff]  }
  0x82   : > { %1776 = vmatpush3.bf16.msra.mxu0 %v1913_v22  ;;  %v1950_v61 = vld [vmem:[%s2355_s12 + $0x1a0] sm:$0xff]   ;;  %v1954_v1 = vld [vmem:[%s2355_s12 + $0x1a8] sm:$0xff]   ;;  %v1958_v5 = vld [vmem:[%s2355_s12 + $0x1b0] sm:$0xff]  }
  0x83   : > { %1798 = vmatpush3.bf16.msra.mxu1 %v1914_v23  ;;  %1777 = vmatprep.subr.bf16.mxu0 %v1915_v24  ;;  %v1959_v6 = vld [vmem:[%s2355_s12 + $0x178] sm:$0xff]  }
  0x84   : > { %1799 = vmatprep.subr.bf16.mxu1 %v1916_v25  ;;  %v1960_v7 = vld [vmem:[%s2355_s12 + $0x1f8] sm:$0xff]  }
  0x85   : > { %v1961_v8 = vld [vmem:[%s2355_s12 + $0x138] sm:$0xff]  }
  0x86   : > { %1778 = vmatpush3.bf16.msra.mxu0 %v1917_v26  ;;  %v1962_v9 = vld [vmem:[%s2355_s12 + $0x1b8] sm:$0xff]  }
  0x87   : > { %1800 = vmatpush3.bf16.msra.mxu1 %v1918_v27  ;;  %1779 = vmatprep.subr.bf16.mxu0 %v1919_v28 }
  0x88   : > { %1801 = vmatprep.subr.bf16.mxu1 %v1920_v29 }
  0x8a   : > { %1780 = vmatpush3.bf16.msra.mxu0 %v1921_v30 }
  0x8b   : > { %1802 = vmatpush3.bf16.msra.mxu1 %v1922_v31  ;;  %1781 = vmatprep.subr.bf16.mxu0 %v1923_v32 }
  0x8c   : > { %1803 = vmatprep.subr.bf16.mxu1 %v1924_v34  ;;  %v1764_v34 = vld [vmem:[%s822_s25] ss:$0 sm:$0xff] }
  0x8e   : > { %1782 = vmatpush3.bf16.msra.mxu0 %v1925_v36  ;;  %v1558_v36 = vstv %s1556_s17 }
  0x8f   : > { %1804 = vmatpush3.bf16.msra.mxu1 %v1926_v37  ;;  %1811 = vmatprep.subr.bf16.mxu0 %v1931_v40 }
  0x90   : > { %1833 = vmatprep.subr.bf16.mxu1 %v1932_v41 }
  0x91   : > { %1415 = vmatmul.mubr.bf16.vlgmr.msra.gmra.mrb[0].mxu0 %v1692_v38 }
  0x92   : > { %1455 = vmatmul.mubr.bf16.vlgmr.msra.gmra.mrb[0].mxu1 %v1694_v39  ;;  %1812 = vmatpush3.bf16.msra.mxu0 %v1933_v43 }
  0x93   : > { %1834 = vmatpush3.bf16.msra.mxu1 %v1934_v45  ;;  %1494 = vmatprep.mubr.bf16.mxu0 %v1697_v42 }
  0x94   : > { %1813 = vmatprep.subr.bf16.mxu0 %v1935_v46  ;;  %1534 = vmatprep.mubr.bf16.mxu1 %v1699_v44 }
  0x95   : > { %1835 = vmatprep.subr.bf16.mxu1 %v1936_v47 }
  0x96   : > { %1814 = vmatpush3.bf16.msra.mxu0 %v1937_v48 }
  0x97   : > { %1836 = vmatpush3.bf16.msra.mxu1 %v1938_v49  ;;  %1815 = vmatprep.subr.bf16.mxu0 %v1939_v50 }
  0x98   : > { %1837 = vmatprep.subr.bf16.mxu1 %v1940_v51 }
  0x9a   : > { %1816 = vmatpush3.bf16.msra.mxu0 %v1941_v52 }
  0x9b   : > { %1838 = vmatpush3.bf16.msra.mxu1 %v1942_v53  ;;  %1817 = vmatprep.subr.bf16.mxu0 %v1943_v54 }
  0x9c   : > { %1839 = vmatprep.subr.bf16.mxu1 %v1944_v55 }
  0x9e   : > { %1818 = vmatpush3.bf16.msra.mxu0 %v1945_v56 }
  0x9f   : > { %1840 = vmatpush3.bf16.msra.mxu1 %v1946_v57  ;;  %1819 = vmatprep.subr.bf16.mxu0 %v1947_v58 }
  0xa0   : > { %1841 = vmatprep.subr.bf16.mxu1 %v1948_v59 }
  0xa2   : > { %1820 = vmatpush3.bf16.msra.mxu0 %v1949_v60 }
  0xa3   : > { %1842 = vmatpush3.bf16.msra.mxu1 %v1950_v61  ;;  %1821 = vmatprep.subr.bf16.mxu0 %v1951_v62 }
  0xa4   : > { %1843 = vmatprep.subr.bf16.mxu1 %v1952_v63 }
  0xa6   : > { %1822 = vmatpush3.bf16.msra.mxu0 %v1953_v0 }
  0xa7   : > { %1844 = vmatpush3.bf16.msra.mxu1 %v1954_v1  ;;  %1823 = vmatprep.subr.bf16.mxu0 %v1955_v2 }
  0xa8   : > { %1845 = vmatprep.subr.bf16.mxu1 %v1956_v3 }
  0xaa   : > { %1824 = vmatpush3.bf16.msra.mxu0 %v1957_v4 }
  0xab   : > { %1846 = vmatpush3.bf16.msra.mxu1 %v1958_v5  ;;  %1825 = vmatprep.subr.bf16.mxu0 %v1959_v6 }
  0xac   : > { %1847 = vmatprep.subr.bf16.mxu1 %v1960_v7 }
  0xae   : > { %1826 = vmatpush3.bf16.msra.mxu0 %v1961_v8 }
  0xaf   : > { %1848 = vmatpush3.bf16.msra.mxu1 %v1962_v9 }
  0xb1   : > { %1495 = vmatmul.mubr.bf16.vlgmr.msra.gmra.mrb[4].mxu0 %v1696_v10 }
  0xb2   : > { %1535 = vmatmul.mubr.bf16.vlgmr.msra.gmra.mrb[4].mxu1 %v1698_v11 }
 0x164   : > { %v1783_v12 = vpop.f32.mrb[0].mxu0 }
 0x165   : > { %v1805_v13 = vpop.f32.mrb[0].mxu1  ;;  %v1784_v14 = vpop.f32.mrb[1].mxu0 }
 0x166   : > { %v1785_v15 = vadd.f32 %v1784_v14, %v1783_v12  ;;  %v1806_v16 = vpop.f32.mrb[1].mxu1  ;;  %v1786_v17 = vpop.f32.mrb[2].mxu0 }
 0x167   : > { %v1807_v18 = vadd.f32 %v1806_v16, %v1805_v13  ;;  %v1808_v19 = vpop.f32.mrb[2].mxu1  ;;  %v1787_v20 = vpop.f32.mrb[3].mxu0 }
 0x168   : > { %v1809_v21 = vpop.f32.mrb[3].mxu1 }
 0x169   : > { %v1457_v22 = vadd.f32 %v1807_v18, %v1785_v15 }
 0x184   : > { %v1827_v23 = vpop.f32.mrb[4].mxu0 }
 0x185   : > { %v1849_v24 = vpop.f32.mrb[4].mxu1  ;;  %v1828_v25 = vpop.f32.mrb[5].mxu0 }
 0x186   : > { %v1829_v26 = vadd.f32 %v1828_v25, %v1827_v23  ;;  %v1850_v27 = vpop.f32.mrb[5].mxu1  ;;  %v1830_v28 = vpop.f32.mrb[6].mxu0 }
 0x187   : > { %v1851_v29 = vadd.f32 %v1850_v27, %v1849_v24  ;;  %v1852_v30 = vpop.f32.mrb[6].mxu1  ;;  %v1831_v31 = vpop.f32.mrb[7].mxu0 }
 0x188   : > { %v1497_v32 = vadd.f32 %v1829_v26, %v1457_v22  ;;  %v1853_v33 = vpop.f32.mrb[7].mxu1 }
 0x18a   : > { %v1537_v35 = vadd.f32 %v1851_v29, %v1497_v32 }
 0x18c   : > { %v1555_v37 = vadd.f32 %v1764_v34, %v1537_v35 }
 0x18e   : > { %vm1557_vm0 = vcmp.gt.f32.partialorder %v1555_v37, 0.0  ;;  %v1559_v38 = vmul.f32 %v1558_v36, %v1555_v37 }
 0x190   : > { %v1560_v39 = vsel %vm1557_vm0, %v1555_v37, %v1559_v38 }
 0x191   : > { %v1561_v40 = vpack.c.bf16 %v1560_v39, %v1560_v39 }
 0x193   : > { %1562 = vst [vmem:[%s830_s29] sm:$0xf] %v1561_v40 }
 0x194 PF: > { %s15_s21 = sadd.s32 1, %s2005_s21   ;;  %s2471_s17 = smov %s1993_s18 }
 0x195   : > { %p12_p10 = scmp.ge.s32.totalorder %s15_s21, 9   ;;  %s2472_s18 = smov %s2070_s24 }
 0x196   : > { %s2473_s19 = smov %s2001_s20  ;;  %s2474_s20 = smov %s2476_s3 }
 0x197   :  { %14 = sbr.rel (!%p12_p10) target bundleno = 5 (0x5), region = 126 }

// kernel: mlp_forward.15
= control target key start
LH: loop header
LB: loop body
LE: loop exit
PB: predicated region body
PF: predicated region fallthrough
CT: control target
= control target key end

     0   :  { %s2669_s0 = inlined_call_operand.vmem [shape: bf16[8,896], index: 0, kind: input, shape index: {}]   ;;  %s2670_s1 = inlined_call_operand.vmem [shape: bf16[896,768], index: 1, kind: input, shape index: {}]   ;;  %s2671_s2 = inlined_call_operand.vmem [shape: f32[1,768], index: 2, kind: input, shape index: {}]   ;;  %s2672_s3 = inlined_call_operand.<no memory space> [shape: f32[1,1], index: 3, kind: input, shape index: {}]   ;;  %s2673_s4 = inlined_call_operand.vmem [shape: bf16[8,768], index: 4, kind: output, shape index: {}]  }
   0x1   :  { %9 = sst [smem:[#allocation3]] %s2672_s3 }
   0x2   :  { %s2229_s17 = smov 0   ;;  %s2231_s18 = smov 0  }
   0x3   :  { %s2233_s19 = smov 0   ;;  %s2235_s20 = smov 0  }
   0x4   :  { %s2237_s21 = smov 0  }
   0x5 LB: > { %s30_s3 = sadd.s32 1, %s2194_s20  ;;  %p78_p1 = scmp.ne.s32.totalorder %s2186_s18, %s2182_s17  ;;  %s2198_s21 = sphi %s2237_s21, %s15_s21   ;;  %s2194_s20 = sphi %s2235_s20, %s2677_s20   ;;  %s2190_s19 = sphi %s2233_s19, %s2676_s19   ;;  %s2186_s18 = sphi %s2231_s18, %s2675_s18   ;;  %s2182_s17 = sphi %s2229_s17, %s2674_s17  }
   0x6   : > { %p32_p0 = scmp.ge.s32.totalorder %s30_s3, 3  ;;  %p79_p2 = scmp.eq.s32.totalorder %s2198_s21, 0 }
   0x7   : > { %s71_s23 = sadd.s32 1, %s2186_s18  ;;  %p1811_p5 = scmp.ge.s32.totalorder %s2198_s21, 3 }
   0x8   : > { %s2679_s3 = smov (%p32_p0, %s30_s3), 0  ;;  %p80_p3 = por %p79_p2, %p78_p1 }
   0x9   : > { %s67_s22 = ssub.s32 %s2194_s20, %s2679_s3  ;;  %195 = sbr.rel (%p1811_p5) target bundleno = 77 (0x4d), region = 24 }
   0xa   : > { %p69_p4 = scmp.eq.s32.totalorder %s67_s22, 0 }
   0xc   : > { %s2264_s24 = scalar_select %p69_p4, %s2186_s18, %s71_s23  }
  0x10   : > { %198 = sbr.rel (!%p80_p3) target bundleno = 77 (0x4d), region = 28  ;;  %s200_s25 = sand.u32 (%p80_p3), 1, %s2186_s18  }
  0x11   : > { %s1940_s26 = sshll.u32 (%p80_p3), %s2194_s20, 3  ;;  %s1942_s27 = smul.u32 (%p80_p3), 896, %s200_s25 }
  0x12   : > { %s2272_s30 = scalar_lea.vmem (%p80_p3), %s2670_s1, %s1940_s26 }
  0x13   : > { %v458_v0 = vld [vmem:[%s2272_s30] sm:$0xff] (%p80_p3)  ;;  %v460_v1 = vld [vmem:[%s2272_s30 + $0x18] sm:$0xff] (%p80_p3)  ;;  %v462_v2 = vld [vmem:[%s2272_s30 + $0x30] sm:$0xff] (%p80_p3)  ;;  %s2280_s5 = scalar_lea.vmem (%p80_p3), [#allocation4], %s1942_s27 }
  0x14   : > { %v464_v3 = vld [vmem:[%s2272_s30 + $0x48] sm:$0xff] (%p80_p3)  ;;  %v466_v4 = vld [vmem:[%s2272_s30 + $0x60] sm:$0xff] (%p80_p3)  ;;  %v468_v5 = vld [vmem:[%s2272_s30 + $0x78] sm:$0xff] (%p80_p3)  ;;  %459 = vst [vmem:[%s2280_s5] sm:$0xff] (%p80_p3), %v458_v0 }
  0x15   : > { %461 = vst [vmem:[%s2280_s5 + $0x8] sm:$0xff] (%p80_p3), %v460_v1  ;;  %463 = vst [vmem:[%s2280_s5 + $0x10] sm:$0xff] (%p80_p3), %v462_v2  ;;  %v470_v6 = vld [vmem:[%s2272_s30 + $0x90] sm:$0xff] (%p80_p3)  ;;  %v472_v7 = vld [vmem:[%s2272_s30 + $0xa8] sm:$0xff] (%p80_p3) }
  0x16   : > { %465 = vst [vmem:[%s2280_s5 + $0x18] sm:$0xff] (%p80_p3), %v464_v3  ;;  %467 = vst [vmem:[%s2280_s5 + $0x20] sm:$0xff] (%p80_p3), %v466_v4  ;;  %v474_v8 = vld [vmem:[%s2272_s30 + $0xc0] sm:$0xff] (%p80_p3)  ;;  %v476_v9 = vld [vmem:[%s2272_s30 + $0xd8] sm:$0xff] (%p80_p3) }
  0x17   : > { %469 = vst [vmem:[%s2280_s5 + $0x28] sm:$0xff] %v468_v5  ;;  %471 = vst [vmem:[%s2280_s5 + $0x30] sm:$0xff] %v470_v6  ;;  %v478_v10 = vld [vmem:[%s2272_s30 + $0xf0] sm:$0xff]  ;;  %v480_v11 = vld [vmem:[%s2272_s30 + $0x108] sm:$0xff] }
  0x18   : > { %473 = vst [vmem:[%s2280_s5 + $0x38] sm:$0xff] %v472_v7  ;;  %475 = vst [vmem:[%s2280_s5 + $0x40] sm:$0xff] %v474_v8  ;;  %v482_v12 = vld [vmem:[%s2272_s30 + $0x120] sm:$0xff]  ;;  %v484_v13 = vld [vmem:[%s2272_s30 + $0x138] sm:$0xff] }
  0x19   : > { %477 = vst [vmem:[%s2280_s5 + $0x48] sm:$0xff] %v476_v9  ;;  %479 = vst [vmem:[%s2280_s5 + $0x50] sm:$0xff] %v478_v10  ;;  %v486_v14 = vld [vmem:[%s2272_s30 + $0x150] sm:$0xff]  ;;  %v488_v15 = vld [vmem:[%s2272_s30 + $0x168] sm:$0xff] }
  0x1a   : > { %481 = vst [vmem:[%s2280_s5 + $0x58] sm:$0xff] %v480_v11  ;;  %483 = vst [vmem:[%s2280_s5 + $0x60] sm:$0xff] %v482_v12  ;;  %v490_v16 = vld [vmem:[%s2272_s30 + $0x180] sm:$0xff]  ;;  %v492_v17 = vld [vmem:[%s2272_s30 + $0x198] sm:$0xff] }
  0x1b   : > { %485 = vst [vmem:[%s2280_s5 + $0x68] sm:$0xff] %v484_v13  ;;  %487 = vst [vmem:[%s2280_s5 + $0x70] sm:$0xff] %v486_v14  ;;  %v494_v18 = vld [vmem:[%s2272_s30 + $0x1b0] sm:$0xff]  ;;  %v496_v19 = vld [vmem:[%s2272_s30 + $0x1c8] sm:$0xff] }
  0x1c   : > { %489 = vst [vmem:[%s2280_s5 + $0x78] sm:$0xff] %v488_v15  ;;  %491 = vst [vmem:[%s2280_s5 + $0x80] sm:$0xff] %v490_v16  ;;  %v498_v20 = vld [vmem:[%s2272_s30 + $0x1e0] sm:$0xff]  ;;  %v500_v21 = vld [vmem:[%s2272_s30 + $0x1f8] sm:$0xff] }
  0x1d   : > { %493 = vst [vmem:[%s2280_s5 + $0x88] sm:$0xff] %v492_v17  ;;  %495 = vst [vmem:[%s2280_s5 + $0x90] sm:$0xff] %v494_v18  ;;  %v502_v22 = vld [vmem:[%s2272_s30 + $0x210] sm:$0xff]  ;;  %v504_v23 = vld [vmem:[%s2272_s30 + $0x228] sm:$0xff] }
  0x1e   : > { %497 = vst [vmem:[%s2280_s5 + $0x98] sm:$0xff] %v496_v19  ;;  %499 = vst [vmem:[%s2280_s5 + $0xa0] sm:$0xff] %v498_v20  ;;  %v506_v24 = vld [vmem:[%s2272_s30 + $0x240] sm:$0xff]  ;;  %v508_v25 = vld [vmem:[%s2272_s30 + $0x258] sm:$0xff] }
  0x1f   : > { %501 = vst [vmem:[%s2280_s5 + $0xa8] sm:$0xff] %v500_v21  ;;  %503 = vst [vmem:[%s2280_s5 + $0xb0] sm:$0xff] %v502_v22  ;;  %v510_v26 = vld [vmem:[%s2272_s30 + $0x270] sm:$0xff]  ;;  %v512_v27 = vld [vmem:[%s2272_s30 + $0x288] sm:$0xff] }
  0x20   : > { %505 = vst [vmem:[%s2280_s5 + $0xb8] sm:$0xff] %v504_v23  ;;  %507 = vst [vmem:[%s2280_s5 + $0xc0] sm:$0xff] %v506_v24  ;;  %v514_v28 = vld [vmem:[%s2272_s30 + $0x2a0] sm:$0xff]  ;;  %v516_v29 = vld [vmem:[%s2272_s30 + $0x2b8] sm:$0xff] }
  0x21   : > { %509 = vst [vmem:[%s2280_s5 + $0xc8] sm:$0xff] %v508_v25  ;;  %511 = vst [vmem:[%s2280_s5 + $0xd0] sm:$0xff] %v510_v26  ;;  %v518_v30 = vld [vmem:[%s2272_s30 + $0x2d0] sm:$0xff]  ;;  %v520_v31 = vld [vmem:[%s2272_s30 + $0x2e8] sm:$0xff] }
  0x22   : > { %513 = vst [vmem:[%s2280_s5 + $0xd8] sm:$0xff] %v512_v27  ;;  %515 = vst [vmem:[%s2280_s5 + $0xe0] sm:$0xff] %v514_v28  ;;  %v522_v32 = vld [vmem:[%s2272_s30 + $0x300] sm:$0xff]  ;;  %v524_v33 = vld [vmem:[%s2272_s30 + $0x318] sm:$0xff] }
  0x23   : > { %517 = vst [vmem:[%s2280_s5 + $0xe8] sm:$0xff] %v516_v29  ;;  %519 = vst [vmem:[%s2280_s5 + $0xf0] sm:$0xff] %v518_v30  ;;  %v526_v34 = vld [vmem:[%s2272_s30 + $0x330] sm:$0xff]  ;;  %v528_v35 = vld [vmem:[%s2272_s30 + $0x348] sm:$0xff] }
  0x24   : > { %521 = vst [vmem:[%s2280_s5 + $0xf8] sm:$0xff] %v520_v31  ;;  %523 = vst [vmem:[%s2280_s5 + $0x100] sm:$0xff] %v522_v32  ;;  %v530_v36 = vld [vmem:[%s2272_s30 + $0x360] sm:$0xff]  ;;  %v532_v37 = vld [vmem:[%s2272_s30 + $0x378] sm:$0xff] }
  0x25   : > { %525 = vst [vmem:[%s2280_s5 + $0x108] sm:$0xff] %v524_v33  ;;  %527 = vst [vmem:[%s2280_s5 + $0x110] sm:$0xff] %v526_v34  ;;  %v534_v38 = vld [vmem:[%s2272_s30 + $0x390] sm:$0xff]  ;;  %v536_v39 = vld [vmem:[%s2272_s30 + $0x3a8] sm:$0xff] }
  0x26   : > { %529 = vst [vmem:[%s2280_s5 + $0x118] sm:$0xff] %v528_v35  ;;  %531 = vst [vmem:[%s2280_s5 + $0x120] sm:$0xff] %v530_v36  ;;  %v538_v40 = vld [vmem:[%s2272_s30 + $0x3c0] sm:$0xff]  ;;  %v540_v41 = vld [vmem:[%s2272_s30 + $0x3d8] sm:$0xff] }
  0x27   : > { %533 = vst [vmem:[%s2280_s5 + $0x128] sm:$0xff] %v532_v37  ;;  %535 = vst [vmem:[%s2280_s5 + $0x130] sm:$0xff] %v534_v38  ;;  %v542_v42 = vld [vmem:[%s2272_s30 + $0x3f0] sm:$0xff]  ;;  %v544_v43 = vld [vmem:[%s2272_s30 + $0x408] sm:$0xff] }
  0x28   : > { %537 = vst [vmem:[%s2280_s5 + $0x138] sm:$0xff] %v536_v39  ;;  %539 = vst [vmem:[%s2280_s5 + $0x140] sm:$0xff] %v538_v40  ;;  %v546_v44 = vld [vmem:[%s2272_s30 + $0x420] sm:$0xff]  ;;  %v548_v45 = vld [vmem:[%s2272_s30 + $0x438] sm:$0xff] }
  0x29   : > { %541 = vst [vmem:[%s2280_s5 + $0x148] sm:$0xff] %v540_v41  ;;  %543 = vst [vmem:[%s2280_s5 + $0x150] sm:$0xff] %v542_v42  ;;  %v550_v46 = vld [vmem:[%s2272_s30 + $0x450] sm:$0xff]  ;;  %v552_v47 = vld [vmem:[%s2272_s30 + $0x468] sm:$0xff] }
  0x2a   : > { %545 = vst [vmem:[%s2280_s5 + $0x158] sm:$0xff] %v544_v43  ;;  %547 = vst [vmem:[%s2280_s5 + $0x160] sm:$0xff] %v546_v44  ;;  %v554_v48 = vld [vmem:[%s2272_s30 + $0x480] sm:$0xff]  ;;  %v556_v49 = vld [vmem:[%s2272_s30 + $0x498] sm:$0xff] }
  0x2b   : > { %549 = vst [vmem:[%s2280_s5 + $0x168] sm:$0xff] %v548_v45  ;;  %551 = vst [vmem:[%s2280_s5 + $0x170] sm:$0xff] %v550_v46  ;;  %v558_v50 = vld [vmem:[%s2272_s30 + $0x4b0] sm:$0xff]  ;;  %v560_v51 = vld [vmem:[%s2272_s30 + $0x4c8] sm:$0xff] }
  0x2c   : > { %553 = vst [vmem:[%s2280_s5 + $0x178] sm:$0xff] %v552_v47  ;;  %555 = vst [vmem:[%s2280_s5 + $0x180] sm:$0xff] %v554_v48  ;;  %v562_v52 = vld [vmem:[%s2272_s30 + $0x4e0] sm:$0xff]  ;;  %v564_v53 = vld [vmem:[%s2272_s30 + $0x4f8] sm:$0xff] }
  0x2d   : > { %557 = vst [vmem:[%s2280_s5 + $0x188] sm:$0xff] %v556_v49  ;;  %559 = vst [vmem:[%s2280_s5 + $0x190] sm:$0xff] %v558_v50  ;;  %v566_v54 = vld [vmem:[%s2272_s30 + $0x510] sm:$0xff]  ;;  %v568_v55 = vld [vmem:[%s2272_s30 + $0x528] sm:$0xff] }
  0x2e   : > { %561 = vst [vmem:[%s2280_s5 + $0x198] sm:$0xff] %v560_v51  ;;  %563 = vst [vmem:[%s2280_s5 + $0x1a0] sm:$0xff] %v562_v52  ;;  %v570_v56 = vld [vmem:[%s2272_s30 + $0x540] sm:$0xff]  ;;  %v572_v57 = vld [vmem:[%s2272_s30 + $0x558] sm:$0xff] }
  0x2f   : > { %565 = vst [vmem:[%s2280_s5 + $0x1a8] sm:$0xff] %v564_v53  ;;  %567 = vst [vmem:[%s2280_s5 + $0x1b0] sm:$0xff] %v566_v54  ;;  %v574_v58 = vld [vmem:[%s2272_s30 + $0x570] sm:$0xff]  ;;  %v576_v59 = vld [vmem:[%s2272_s30 + $0x588] sm:$0xff] }
  0x30   : > { %569 = vst [vmem:[%s2280_s5 + $0x1b8] sm:$0xff] %v568_v55  ;;  %571 = vst [vmem:[%s2280_s5 + $0x1c0] sm:$0xff] %v570_v56  ;;  %v578_v60 = vld [vmem:[%s2272_s30 + $0x5a0] sm:$0xff]  ;;  %v580_v61 = vld [vmem:[%s2272_s30 + $0x5b8] sm:$0xff] }
  0x31   : > { %573 = vst [vmem:[%s2280_s5 + $0x1c8] sm:$0xff] %v572_v57  ;;  %575 = vst [vmem:[%s2280_s5 + $0x1d0] sm:$0xff] %v574_v58  ;;  %v582_v62 = vld [vmem:[%s2272_s30 + $0x5d0] sm:$0xff]  ;;  %v584_v63 = vld [vmem:[%s2272_s30 + $0x5e8] sm:$0xff] }
  0x32   : > { %577 = vst [vmem:[%s2280_s5 + $0x1d8] sm:$0xff] %v576_v59  ;;  %579 = vst [vmem:[%s2280_s5 + $0x1e0] sm:$0xff] %v578_v60  ;;  %v586_v0 = vld [vmem:[%s2272_s30 + $0x600] sm:$0xff]  ;;  %v588_v1 = vld [vmem:[%s2272_s30 + $0x618] sm:$0xff] }
  0x33   : > { %581 = vst [vmem:[%s2280_s5 + $0x1e8] sm:$0xff] %v580_v61  ;;  %583 = vst [vmem:[%s2280_s5 + $0x1f0] sm:$0xff] %v582_v62  ;;  %v590_v2 = vld [vmem:[%s2272_s30 + $0x630] sm:$0xff]  ;;  %v592_v3 = vld [vmem:[%s2272_s30 + $0x648] sm:$0xff] }
  0x34   : > { %585 = vst [vmem:[%s2280_s5 + $0x1f8] sm:$0xff] %v584_v63  ;;  %587 = vst [vmem:[%s2280_s5 + $0x200] sm:$0xff] %v586_v0  ;;  %v594_v4 = vld [vmem:[%s2272_s30 + $0x660] sm:$0xff]  ;;  %v596_v5 = vld [vmem:[%s2272_s30 + $0x678] sm:$0xff] }
  0x35   : > { %589 = vst [vmem:[%s2280_s5 + $0x208] sm:$0xff] %v588_v1  ;;  %591 = vst [vmem:[%s2280_s5 + $0x210] sm:$0xff] %v590_v2  ;;  %v598_v6 = vld [vmem:[%s2272_s30 + $0x690] sm:$0xff]  ;;  %v600_v7 = vld [vmem:[%s2272_s30 + $0x6a8] sm:$0xff] }
  0x36   : > { %593 = vst [vmem:[%s2280_s5 + $0x218] sm:$0xff] %v592_v3  ;;  %595 = vst [vmem:[%s2280_s5 + $0x220] sm:$0xff] %v594_v4  ;;  %v602_v8 = vld [vmem:[%s2272_s30 + $0x6c0] sm:$0xff]  ;;  %v604_v9 = vld [vmem:[%s2272_s30 + $0x6d8] sm:$0xff] }
  0x37   : > { %597 = vst [vmem:[%s2280_s5 + $0x228] sm:$0xff] %v596_v5  ;;  %599 = vst [vmem:[%s2280_s5 + $0x230] sm:$0xff] %v598_v6  ;;  %v606_v10 = vld [vmem:[%s2272_s30 + $0x6f0] sm:$0xff]  ;;  %v608_v11 = vld [vmem:[%s2272_s30 + $0x708] sm:$0xff] }
  0x38   : > { %601 = vst [vmem:[%s2280_s5 + $0x238] sm:$0xff] %v600_v7  ;;  %603 = vst [vmem:[%s2280_s5 + $0x240] sm:$0xff] %v602_v8  ;;  %v610_v12 = vld [vmem:[%s2272_s30 + $0x720] sm:$0xff]  ;;  %v612_v13 = vld [vmem:[%s2272_s30 + $0x738] sm:$0xff] }
  0x39   : > { %605 = vst [vmem:[%s2280_s5 + $0x248] sm:$0xff] %v604_v9  ;;  %607 = vst [vmem:[%s2280_s5 + $0x250] sm:$0xff] %v606_v10  ;;  %v614_v14 = vld [vmem:[%s2272_s30 + $0x750] sm:$0xff]  ;;  %v616_v15 = vld [vmem:[%s2272_s30 + $0x768] sm:$0xff] }
  0x3a   : > { %609 = vst [vmem:[%s2280_s5 + $0x258] sm:$0xff] %v608_v11  ;;  %611 = vst [vmem:[%s2280_s5 + $0x260] sm:$0xff] %v610_v12  ;;  %v618_v16 = vld [vmem:[%s2272_s30 + $0x780] sm:$0xff]  ;;  %v620_v17 = vld [vmem:[%s2272_s30 + $0x798] sm:$0xff] }
  0x3b   : > { %613 = vst [vmem:[%s2280_s5 + $0x268] sm:$0xff] %v612_v13  ;;  %615 = vst [vmem:[%s2280_s5 + $0x270] sm:$0xff] %v614_v14  ;;  %v622_v18 = vld [vmem:[%s2272_s30 + $0x7b0] sm:$0xff]  ;;  %v624_v19 = vld [vmem:[%s2272_s30 + $0x7c8] sm:$0xff] }
  0x3c   : > { %617 = vst [vmem:[%s2280_s5 + $0x278] sm:$0xff] %v616_v15  ;;  %619 = vst [vmem:[%s2280_s5 + $0x280] sm:$0xff] %v618_v16  ;;  %v626_v20 = vld [vmem:[%s2272_s30 + $0x7e0] sm:$0xff]  ;;  %v628_v21 = vld [vmem:[%s2272_s30 + $0x7f8] sm:$0xff] }
  0x3d   : > { %621 = vst [vmem:[%s2280_s5 + $0x288] sm:$0xff] %v620_v17  ;;  %623 = vst [vmem:[%s2280_s5 + $0x290] sm:$0xff] %v622_v18  ;;  %v630_v22 = vld [vmem:[%s2272_s30 + $0x810] sm:$0xff]  ;;  %v632_v23 = vld [vmem:[%s2272_s30 + $0x828] sm:$0xff] }
  0x3e   : > { %625 = vst [vmem:[%s2280_s5 + $0x298] sm:$0xff] %v624_v19  ;;  %627 = vst [vmem:[%s2280_s5 + $0x2a0] sm:$0xff] %v626_v20  ;;  %v634_v24 = vld [vmem:[%s2272_s30 + $0x840] sm:$0xff]  ;;  %v636_v25 = vld [vmem:[%s2272_s30 + $0x858] sm:$0xff] }
  0x3f   : > { %629 = vst [vmem:[%s2280_s5 + $0x2a8] sm:$0xff] %v628_v21  ;;  %631 = vst [vmem:[%s2280_s5 + $0x2b0] sm:$0xff] %v630_v22  ;;  %v638_v26 = vld [vmem:[%s2272_s30 + $0x870] sm:$0xff]  ;;  %v640_v27 = vld [vmem:[%s2272_s30 + $0x888] sm:$0xff] }
  0x40   : > { %633 = vst [vmem:[%s2280_s5 + $0x2b8] sm:$0xff] %v632_v23  ;;  %635 = vst [vmem:[%s2280_s5 + $0x2c0] sm:$0xff] %v634_v24  ;;  %v642_v28 = vld [vmem:[%s2272_s30 + $0x8a0] sm:$0xff]  ;;  %v644_v29 = vld [vmem:[%s2272_s30 + $0x8b8] sm:$0xff] }
  0x41   : > { %637 = vst [vmem:[%s2280_s5 + $0x2c8] sm:$0xff] %v636_v25  ;;  %639 = vst [vmem:[%s2280_s5 + $0x2d0] sm:$0xff] %v638_v26  ;;  %v646_v30 = vld [vmem:[%s2272_s30 + $0x8d0] sm:$0xff]  ;;  %v648_v31 = vld [vmem:[%s2272_s30 + $0x8e8] sm:$0xff] }
  0x42   : > { %641 = vst [vmem:[%s2280_s5 + $0x2d8] sm:$0xff] %v640_v27  ;;  %643 = vst [vmem:[%s2280_s5 + $0x2e0] sm:$0xff] %v642_v28  ;;  %v650_v32 = vld [vmem:[%s2272_s30 + $0x900] sm:$0xff]  ;;  %v652_v33 = vld [vmem:[%s2272_s30 + $0x918] sm:$0xff] }
  0x43   : > { %645 = vst [vmem:[%s2280_s5 + $0x2e8] sm:$0xff] %v644_v29  ;;  %647 = vst [vmem:[%s2280_s5 + $0x2f0] sm:$0xff] %v646_v30  ;;  %v654_v34 = vld [vmem:[%s2272_s30 + $0x930] sm:$0xff]  ;;  %v656_v35 = vld [vmem:[%s2272_s30 + $0x948] sm:$0xff] }
  0x44   : > { %649 = vst [vmem:[%s2280_s5 + $0x2f8] sm:$0xff] %v648_v31  ;;  %651 = vst [vmem:[%s2280_s5 + $0x300] sm:$0xff] %v650_v32  ;;  %v658_v36 = vld [vmem:[%s2272_s30 + $0x960] sm:$0xff]  ;;  %v660_v37 = vld [vmem:[%s2272_s30 + $0x978] sm:$0xff] }
  0x45   : > { %653 = vst [vmem:[%s2280_s5 + $0x308] sm:$0xff] %v652_v33  ;;  %655 = vst [vmem:[%s2280_s5 + $0x310] sm:$0xff] %v654_v34  ;;  %v662_v38 = vld [vmem:[%s2272_s30 + $0x990] sm:$0xff]  ;;  %v664_v39 = vld [vmem:[%s2272_s30 + $0x9a8] sm:$0xff] }
  0x46   : > { %657 = vst [vmem:[%s2280_s5 + $0x318] sm:$0xff] %v656_v35  ;;  %659 = vst [vmem:[%s2280_s5 + $0x320] sm:$0xff] %v658_v36  ;;  %v666_v40 = vld [vmem:[%s2272_s30 + $0x9c0] sm:$0xff]  ;;  %v668_v41 = vld [vmem:[%s2272_s30 + $0x9d8] sm:$0xff] }
  0x47   : > { %661 = vst [vmem:[%s2280_s5 + $0x328] sm:$0xff] %v660_v37  ;;  %663 = vst [vmem:[%s2280_s5 + $0x330] sm:$0xff] %v662_v38  ;;  %v670_v42 = vld [vmem:[%s2272_s30 + $0x9f0] sm:$0xff]  ;;  %v672_v43 = vld [vmem:[%s2272_s30 + $0xa08] sm:$0xff] }
  0x48   : > { %665 = vst [vmem:[%s2280_s5 + $0x338] sm:$0xff] %v664_v39  ;;  %667 = vst [vmem:[%s2280_s5 + $0x340] sm:$0xff] %v666_v40  ;;  %v674_v44 = vld [vmem:[%s2272_s30 + $0xa20] sm:$0xff]  ;;  %v676_v45 = vld [vmem:[%s2272_s30 + $0xa38] sm:$0xff] }
  0x49   : > { %669 = vst [vmem:[%s2280_s5 + $0x348] sm:$0xff] %v668_v41  ;;  %671 = vst [vmem:[%s2280_s5 + $0x350] sm:$0xff] %v670_v42  ;;  %v678_v46 = vld [vmem:[%s2272_s30 + $0xa50] sm:$0xff]  ;;  %v680_v47 = vld [vmem:[%s2272_s30 + $0xa68] sm:$0xff] }
  0x4a   : > { %673 = vst [vmem:[%s2280_s5 + $0x358] sm:$0xff] %v672_v43  ;;  %675 = vst [vmem:[%s2280_s5 + $0x360] sm:$0xff] %v674_v44 }
  0x4b   : > { %677 = vst [vmem:[%s2280_s5 + $0x368] sm:$0xff] %v676_v45  ;;  %679 = vst [vmem:[%s2280_s5 + $0x370] sm:$0xff] %v678_v46 }
  0x4c   : > { %681 = vst [vmem:[%s2280_s5 + $0x378] sm:$0xff] %v680_v47 }
  0x4d PF: > { %p1814_p6 = scmp.ge.s32.totalorder %s2198_s21, 1  ;;  %p694_p7 = scmp.lt.s32.totalorder %s2198_s21, 4 }
  0x4f   : > { %p695_p8 = pnand %p1814_p6, %p694_p7 }
  0x50   : > { %s701_s6 = sand.u32 (!%p695_p8), 1, %s2182_s17   ;;  %v2506_v48 = vld [vmem:[%s2669_s0] sm:$0xff] (!%p695_p8)  ;;  %v2511_v49 = vld [vmem:[%s2669_s0 + $0x8] sm:$0xff] (!%p695_p8)  ;;  %s1815_s17 = sshll.u32 (!%p695_p8), %s2190_s19, 1 }
  0x51   : > { %698 = sbr.rel (%p695_p8) target bundleno = 439 (0x1b7), region = 70  ;;  %v1819_v50 = vcombine.high (!%p695_p8), %v2506_v48, %v2506_v48  ;;  %v1821_v51 = vcombine.high (!%p695_p8), %v2511_v49, %v2511_v49  ;;  %p756_p9 = scmp.lt.s32.totalorder (!%p695_p8), %s1815_s17, 5 }
  0x52   : > { %s1943_s11 = smul.u32 (!%p695_p8), 896, %s701_s6  ;;  %s1667_s26 = sld [smem:[#allocation3]] (!%p695_p8) }
  0x53   : > { %1512 = vmatprep.mubr.bf16.mxu0 (!%p695_p8), %v1819_v50  ;;  %1553 = vmatprep.mubr.bf16.mxu1 (!%p695_p8), %v1821_v51 }
  0x54   : > { %s2517_s12 = scalar_lea.vmem (!%p695_p8), [#allocation4], %s1943_s11 }
  0x55   : > { %v1985_v52 = vld [vmem:[%s2517_s12 + $0x4] ss:$8 sps:$4 sm:$0xff] (!%p695_p8)   ;;  %v1989_v54 = vld [vmem:[%s2517_s12] ss:$8 sps:$4 sm:$0xff] (!%p695_p8)   ;;  %v1991_v56 = vld [vmem:[%s2517_s12 + $0x14] ss:$8 sps:$4 sm:$0xff] (!%p695_p8)  }
  0x56   : > { %v1987_v53 = vld [vmem:[%s2517_s12 + $0x104] ss:$8 sps:$4 sm:$0xff] (!%p695_p8)   ;;  %1480 = vmatprep.subr.bf16.mxu0 (!%p695_p8), %v1985_v52  ;;  %v1990_v55 = vld [vmem:[%s2517_s12 + $0x100] ss:$8 sps:$4 sm:$0xff] (!%p695_p8)   ;;  %v1993_v57 = vld [vmem:[%s2517_s12 + $0x114] ss:$8 sps:$4 sm:$0xff] (!%p695_p8)  }
  0x57   : > { %1521 = vmatprep.subr.bf16.mxu1 (!%p695_p8), %v1987_v53  ;;  %1481 = vmatpush1.bf16.msra.mxu0 (!%p695_p8), %v1989_v54  ;;  %v1995_v58 = vld [vmem:[%s2517_s12 + $0x10] ss:$8 sps:$4 sm:$0xff] (!%p695_p8)   ;;  %v1997_v60 = vld [vmem:[%s2517_s12 + $0x24] ss:$8 sps:$4 sm:$0xff] (!%p695_p8)   ;;  %v2001_v62 = vld [vmem:[%s2517_s12 + $0x20] ss:$8 sps:$4 sm:$0xff] (!%p695_p8)  }
  0x58   : > { %1522 = vmatpush1.bf16.msra.mxu1 %v1990_v55  ;;  %1482 = vmatprep.subr.bf16.mxu0 %v1991_v56  ;;  %v1996_v59 = vld [vmem:[%s2517_s12 + $0x110] ss:$8 sps:$4 sm:$0xff]   ;;  %v1999_v61 = vld [vmem:[%s2517_s12 + $0x124] ss:$8 sps:$4 sm:$0xff]   ;;  %v2002_v63 = vld [vmem:[%s2517_s12 + $0x120] ss:$8 sps:$4 sm:$0xff]  }
  0x59   : > { %1523 = vmatprep.subr.bf16.mxu1 %v1993_v57  ;;  %v2003_v0 = vld [vmem:[%s2517_s12 + $0x34] ss:$8 sps:$4 sm:$0xff]   ;;  %v2007_v2 = vld [vmem:[%s2517_s12 + $0x30] ss:$8 sps:$4 sm:$0xff]   ;;  %v2009_v4 = vld [vmem:[%s2517_s12 + $0x44] ss:$8 sps:$4 sm:$0xff]   ;;  %v1818_v57 = vcombine.low %v2506_v48, %v2506_v48 }
  0x5a   : > { %v2005_v1 = vld [vmem:[%s2517_s12 + $0x134] ss:$8 sps:$4 sm:$0xff]   ;;  %v2008_v3 = vld [vmem:[%s2517_s12 + $0x130] ss:$8 sps:$4 sm:$0xff]   ;;  %v2011_v5 = vld [vmem:[%s2517_s12 + $0x144] ss:$8 sps:$4 sm:$0xff]  }
  0x5b   : > { %1483 = vmatpush1.bf16.msra.mxu0 %v1995_v58  ;;  %v2013_v6 = vld [vmem:[%s2517_s12 + $0x40] ss:$8 sps:$4 sm:$0xff]   ;;  %v2015_v8 = vld [vmem:[%s2517_s12 + $0x54] ss:$8 sps:$4 sm:$0xff]   ;;  %v2019_v10 = vld [vmem:[%s2517_s12 + $0x50] ss:$8 sps:$4 sm:$0xff]   ;;  %v1820_v58 = vcombine.low %v2511_v49, %v2511_v49 }
  0x5c   : > { %1524 = vmatpush1.bf16.msra.mxu1 %v1996_v59  ;;  %1484 = vmatprep.subr.bf16.mxu0 %v1997_v60  ;;  %v2014_v7 = vld [vmem:[%s2517_s12 + $0x140] ss:$8 sps:$4 sm:$0xff]   ;;  %v2017_v9 = vld [vmem:[%s2517_s12 + $0x154] ss:$8 sps:$4 sm:$0xff]   ;;  %v2020_v11 = vld [vmem:[%s2517_s12 + $0x150] ss:$8 sps:$4 sm:$0xff]  }
  0x5d   : > { %1525 = vmatprep.subr.bf16.mxu1 %v1999_v61  ;;  %v2021_v12 = vld [vmem:[%s2517_s12 + $0x64] ss:$8 sps:$4 sm:$0xff]   ;;  %v2025_v14 = vld [vmem:[%s2517_s12 + $0x60] ss:$8 sps:$4 sm:$0xff]   ;;  %v2027_v16 = vld [vmem:[%s2517_s12 + $0x74] ss:$8 sps:$4 sm:$0xff]  }
  0x5e   : > { %v2023_v13 = vld [vmem:[%s2517_s12 + $0x164] ss:$8 sps:$4 sm:$0xff]   ;;  %v2026_v15 = vld [vmem:[%s2517_s12 + $0x160] ss:$8 sps:$4 sm:$0xff]   ;;  %v2029_v17 = vld [vmem:[%s2517_s12 + $0x174] ss:$8 sps:$4 sm:$0xff]  }
  0x5f   : > { %1485 = vmatpush1.bf16.msra.mxu0 %v2001_v62  ;;  %v2031_v18 = vld [vmem:[%s2517_s12 + $0x70] ss:$8 sps:$4 sm:$0xff]   ;;  %v2033_v20 = vld [vmem:[%s2517_s12 + $0x84] ss:$8 sps:$4 sm:$0xff]   ;;  %v2037_v22 = vld [vmem:[%s2517_s12 + $0x80] ss:$8 sps:$4 sm:$0xff]  }
  0x60   : > { %1526 = vmatpush1.bf16.msra.mxu1 %v2002_v63  ;;  %1486 = vmatprep.subr.bf16.mxu0 %v2003_v0  ;;  %v2032_v19 = vld [vmem:[%s2517_s12 + $0x170] ss:$8 sps:$4 sm:$0xff]   ;;  %v2035_v21 = vld [vmem:[%s2517_s12 + $0x184] ss:$8 sps:$4 sm:$0xff]   ;;  %v2038_v23 = vld [vmem:[%s2517_s12 + $0x180] ss:$8 sps:$4 sm:$0xff]  }
  0x61   : > { %1527 = vmatprep.subr.bf16.mxu1 %v2005_v1  ;;  %v2039_v24 = vld [vmem:[%s2517_s12 + $0x94] ss:$8 sps:$4 sm:$0xff]   ;;  %v2043_v26 = vld [vmem:[%s2517_s12 + $0x90] ss:$8 sps:$4 sm:$0xff]   ;;  %v2045_v28 = vld [vmem:[%s2517_s12 + $0xa4] ss:$8 sps:$4 sm:$0xff]  }
  0x62   : > { %v2041_v25 = vld [vmem:[%s2517_s12 + $0x194] ss:$8 sps:$4 sm:$0xff]   ;;  %v2044_v27 = vld [vmem:[%s2517_s12 + $0x190] ss:$8 sps:$4 sm:$0xff]   ;;  %v2047_v29 = vld [vmem:[%s2517_s12 + $0x1a4] ss:$8 sps:$4 sm:$0xff]  }
  0x63   : > { %1487 = vmatpush1.bf16.msra.mxu0 %v2007_v2  ;;  %v2049_v30 = vld [vmem:[%s2517_s12 + $0xa0] ss:$8 sps:$4 sm:$0xff]   ;;  %v2051_v32 = vld [vmem:[%s2517_s12 + $0xb4] ss:$8 sps:$4 sm:$0xff]   ;;  %v2055_v34 = vld [vmem:[%s2517_s12 + $0xb0] ss:$8 sps:$4 sm:$0xff]  }
  0x64   : > { %1528 = vmatpush1.bf16.msra.mxu1 %v2008_v3  ;;  %1488 = vmatprep.subr.bf16.mxu0 %v2009_v4  ;;  %v2050_v31 = vld [vmem:[%s2517_s12 + $0x1a0] ss:$8 sps:$4 sm:$0xff]   ;;  %v2053_v33 = vld [vmem:[%s2517_s12 + $0x1b4] ss:$8 sps:$4 sm:$0xff]   ;;  %v2056_v35 = vld [vmem:[%s2517_s12 + $0x1b0] ss:$8 sps:$4 sm:$0xff]  }
  0x65   : > { %1529 = vmatprep.subr.bf16.mxu1 %v2011_v5  ;;  %v2057_v36 = vld [vmem:[%s2517_s12 + $0xc4] ss:$8 sps:$4 sm:$0xff]   ;;  %v2061_v38 = vld [vmem:[%s2517_s12 + $0xc0] ss:$8 sps:$4 sm:$0xff]   ;;  %v2063_v40 = vld [vmem:[%s2517_s12 + $0xd4] ss:$8 sps:$4 sm:$0xff]  }
  0x66   : > { %v2059_v37 = vld [vmem:[%s2517_s12 + $0x1c4] ss:$8 sps:$4 sm:$0xff]   ;;  %v2062_v39 = vld [vmem:[%s2517_s12 + $0x1c0] ss:$8 sps:$4 sm:$0xff]   ;;  %v2065_v41 = vld [vmem:[%s2517_s12 + $0x1d4] ss:$8 sps:$4 sm:$0xff]  }
  0x67   : > { %1489 = vmatpush1.bf16.msra.mxu0 %v2013_v6  ;;  %v2067_v42 = vld [vmem:[%s2517_s12 + $0xd0] ss:$8 sps:$4 sm:$0xff]   ;;  %v2069_v44 = vld [vmem:[%s2517_s12 + $0xe4] ss:$8 sps:$4 sm:$0xff]   ;;  %v2073_v46 = vld [vmem:[%s2517_s12 + $0xe0] ss:$8 sps:$4 sm:$0xff]  }
  0x68   : > { %1530 = vmatpush1.bf16.msra.mxu1 %v2014_v7  ;;  %1490 = vmatprep.subr.bf16.mxu0 %v2015_v8  ;;  %v2068_v43 = vld [vmem:[%s2517_s12 + $0x1d0] ss:$8 sps:$4 sm:$0xff]   ;;  %v2071_v45 = vld [vmem:[%s2517_s12 + $0x1e4] ss:$8 sps:$4 sm:$0xff]   ;;  %v2074_v47 = vld [vmem:[%s2517_s12 + $0x1e0] ss:$8 sps:$4 sm:$0xff]  }
  0x69   : > { %1531 = vmatprep.subr.bf16.mxu1 %v2017_v9  ;;  %v2075_v50 = vld [vmem:[%s2517_s12 + $0xf4] ss:$8 sps:$4 sm:$0xff]   ;;  %v2079_v52 = vld [vmem:[%s2517_s12 + $0xf0] ss:$8 sps:$4 sm:$0xff]   ;;  %v2087_v54 = vld [vmem:[%s2517_s12 + $0x204] ss:$8 sps:$4 sm:$0xff]  }
  0x6a   : > { %v2077_v51 = vld [vmem:[%s2517_s12 + $0x1f4] ss:$8 sps:$4 sm:$0xff]   ;;  %v2080_v53 = vld [vmem:[%s2517_s12 + $0x1f0] ss:$8 sps:$4 sm:$0xff]   ;;  %v2111_v55 = vld [vmem:[%s2517_s12 + $0x304] ss:$8 sps:$4 sm:$0xff]  }
  0x6b   : > { %1491 = vmatpush1.bf16.msra.mxu0 %v2019_v10  ;;  %v2588_v56 = vld [vmem:[%s2669_s0 + $0x10] sm:$0xff]  ;;  %v2085_v59 = vld [vmem:[%s2517_s12 + $0x200] ss:$8 sps:$4 sm:$0xff]   ;;  %v2093_v49 = vld [vmem:[%s2517_s12 + $0x224] ss:$8 sps:$4 sm:$0xff]   ;;  %v2200_v2 = vmov 0  }
  0x6c   : > { %1532 = vmatpush1.bf16.msra.mxu1 %v2020_v11  ;;  %1492 = vmatprep.subr.bf16.mxu0 %v2021_v12  ;;  %v2090_v60 = vld [vmem:[%s2517_s12 + $0x214] ss:$8 sps:$4 sm:$0xff]   ;;  %v2109_v61 = vld [vmem:[%s2517_s12 + $0x300] ss:$8 sps:$4 sm:$0xff]   ;;  %v1823_v63 = vcombine.high %v2588_v56, %v2588_v56  ;;  %v2088_v48 = vld [vmem:[%s2517_s12 + $0x210] ss:$8 sps:$4 sm:$0xff]  }
  0x6d   : > { %1533 = vmatprep.subr.bf16.mxu1 %v2023_v13  ;;  %v2117_v62 = vld [vmem:[%s2517_s12 + $0x314] ss:$8 sps:$4 sm:$0xff]   ;;  %v2115_v0 = vld [vmem:[%s2517_s12 + $0x310] ss:$8 sps:$4 sm:$0xff]   ;;  %v2123_v1 = vld [vmem:[%s2517_s12 + $0x324] ss:$8 sps:$4 sm:$0xff]  }
  0x6e   : > { %v2091_v3 = vld [vmem:[%s2517_s12 + $0x220] ss:$8 sps:$4 sm:$0xff]   ;;  %v2096_v4 = vld [vmem:[%s2517_s12 + $0x234] ss:$8 sps:$4 sm:$0xff]   ;;  %v2094_v7 = vld [vmem:[%s2517_s12 + $0x230] ss:$8 sps:$4 sm:$0xff]  }
  0x6f   : > { %1493 = vmatpush1.bf16.msra.mxu0 %v2025_v14  ;;  %v2121_v5 = vld [vmem:[%s2517_s12 + $0x320] ss:$8 sps:$4 sm:$0xff]   ;;  %v2129_v6 = vld [vmem:[%s2517_s12 + $0x334] ss:$8 sps:$4 sm:$0xff]   ;;  %v2127_v8 = vld [vmem:[%s2517_s12 + $0x330] ss:$8 sps:$4 sm:$0xff]  }
  0x70   : > { %1534 = vmatpush1.bf16.msra.mxu1 %v2026_v15  ;;  %1494 = vmatprep.subr.bf16.mxu0 %v2027_v16  ;;  %v2099_v9 = vld [vmem:[%s2517_s12 + $0x244] ss:$8 sps:$4 sm:$0xff]   ;;  %v2097_v11 = vld [vmem:[%s2517_s12 + $0x240] ss:$8 sps:$4 sm:$0xff]   ;;  %v2102_v13 = vld [vmem:[%s2517_s12 + $0x254] ss:$8 sps:$4 sm:$0xff]  }
  0x71   : > { %1535 = vmatprep.subr.bf16.mxu1 %v2029_v17  ;;  %v2135_v10 = vld [vmem:[%s2517_s12 + $0x344] ss:$8 sps:$4 sm:$0xff]   ;;  %v2133_v12 = vld [vmem:[%s2517_s12 + $0x340] ss:$8 sps:$4 sm:$0xff]   ;;  %v2141_v14 = vld [vmem:[%s2517_s12 + $0x354] ss:$8 sps:$4 sm:$0xff]  }
  0x72   : > { %v2100_v15 = vld [vmem:[%s2517_s12 + $0x250] ss:$8 sps:$4 sm:$0xff]   ;;  %v2105_v17 = vld [vmem:[%s2517_s12 + $0x264] ss:$8 sps:$4 sm:$0xff]   ;;  %s2681_s17 = smov (!%p756_p9, %s1815_s17), 5 }
  0x73   : > { %1495 = vmatpush1.bf16.msra.mxu0 %v2031_v18  ;;  %v2139_v16 = vld [vmem:[%s2517_s12 + $0x350] ss:$8 sps:$4 sm:$0xff]   ;;  %v2147_v18 = vld [vmem:[%s2517_s12 + $0x364] ss:$8 sps:$4 sm:$0xff]   ;;  %s758_s25 = scalar_lea.vmem %s2671_s2, %s2681_s17  ;;  %s1817_s19 = sshll.u32 %s2681_s17, 2 }
  0x74   : > { %1536 = vmatpush1.bf16.msra.mxu1 %v2032_v19  ;;  %1496 = vmatprep.subr.bf16.mxu0 %v2033_v20  ;;  %v2103_v19 = vld [vmem:[%s2517_s12 + $0x260] ss:$8 sps:$4 sm:$0xff]   ;;  %s768_s29 = scalar_lea.vmem %s2673_s4, %s1817_s19 }
  0x75   : > { %1537 = vmatprep.subr.bf16.mxu1 %v2035_v21  ;;  %v2145_v20 = vld [vmem:[%s2517_s12 + $0x360] ss:$8 sps:$4 sm:$0xff]   ;;  %v2108_v21 = vld [vmem:[%s2517_s12 + $0x274] ss:$8 sps:$4 sm:$0xff]  }
  0x77   : > { %1497 = vmatpush1.bf16.msra.mxu0 %v2037_v22  ;;  %v2153_v22 = vld [vmem:[%s2517_s12 + $0x374] ss:$8 sps:$4 sm:$0xff]  }
  0x78   : > { %1538 = vmatpush1.bf16.msra.mxu1 %v2038_v23  ;;  %1498 = vmatprep.subr.bf16.mxu0 %v2039_v24  ;;  %v2106_v23 = vld [vmem:[%s2517_s12 + $0x270] ss:$8 sps:$4 sm:$0xff]  }
  0x79   : > { %1539 = vmatprep.subr.bf16.mxu1 %v2041_v25  ;;  %v2151_v24 = vld [vmem:[%s2517_s12 + $0x370] ss:$8 sps:$4 sm:$0xff]   ;;  %v2114_v25 = vld [vmem:[%s2517_s12 + $0x284] ss:$8 sps:$4 sm:$0xff]  }
  0x7b   : > { %1499 = vmatpush1.bf16.msra.mxu0 %v2043_v26  ;;  %v2159_v26 = vld [vmem:[%s2669_s0 + $0x18] ss:$0 sps:$4 sm:$0xff]  }
  0x7c   : > { %1540 = vmatpush1.bf16.msra.mxu1 %v2044_v27  ;;  %1500 = vmatprep.subr.bf16.mxu0 %v2045_v28  ;;  %v2112_v27 = vld [vmem:[%s2517_s12 + $0x280] ss:$8 sps:$4 sm:$0xff]   ;;  %v2120_v28 = vld [vmem:[%s2517_s12 + $0x294] ss:$8 sps:$4 sm:$0xff]  }
  0x7d   : > { %1541 = vmatprep.subr.bf16.mxu1 %v2047_v29  ;;  %v2118_v29 = vld [vmem:[%s2517_s12 + $0x290] ss:$8 sps:$4 sm:$0xff]  }
  0x7f   : > { %1501 = vmatpush1.bf16.msra.mxu0 %v2049_v30  ;;  %v2126_v30 = vld [vmem:[%s2517_s12 + $0x2a4] ss:$8 sps:$4 sm:$0xff]  }
  0x80   : > { %1542 = vmatpush1.bf16.msra.mxu1 %v2050_v31  ;;  %1502 = vmatprep.subr.bf16.mxu0 %v2051_v32  ;;  %v2124_v31 = vld [vmem:[%s2517_s12 + $0x2a0] ss:$8 sps:$4 sm:$0xff]   ;;  %v2132_v32 = vld [vmem:[%s2517_s12 + $0x2b4] ss:$8 sps:$4 sm:$0xff]  }
  0x81   : > { %1543 = vmatprep.subr.bf16.mxu1 %v2053_v33  ;;  %v2130_v33 = vld [vmem:[%s2517_s12 + $0x2b0] ss:$8 sps:$4 sm:$0xff]  }
  0x83   : > { %1503 = vmatpush1.bf16.msra.mxu0 %v2055_v34  ;;  %v2138_v34 = vld [vmem:[%s2517_s12 + $0x2c4] ss:$8 sps:$4 sm:$0xff]  }
  0x84   : > { %1544 = vmatpush1.bf16.msra.mxu1 %v2056_v35  ;;  %1504 = vmatprep.subr.bf16.mxu0 %v2057_v36  ;;  %v2136_v35 = vld [vmem:[%s2517_s12 + $0x2c0] ss:$8 sps:$4 sm:$0xff]   ;;  %v2144_v36 = vld [vmem:[%s2517_s12 + $0x2d4] ss:$8 sps:$4 sm:$0xff]  }
  0x85   : > { %1545 = vmatprep.subr.bf16.mxu1 %v2059_v37  ;;  %v2142_v37 = vld [vmem:[%s2517_s12 + $0x2d0] ss:$8 sps:$4 sm:$0xff]  }
  0x87   : > { %1505 = vmatpush1.bf16.msra.mxu0 %v2061_v38  ;;  %v2150_v38 = vld [vmem:[%s2517_s12 + $0x2e4] ss:$8 sps:$4 sm:$0xff]  }
  0x88   : > { %1546 = vmatpush1.bf16.msra.mxu1 %v2062_v39  ;;  %1506 = vmatprep.subr.bf16.mxu0 %v2063_v40  ;;  %v2148_v39 = vld [vmem:[%s2517_s12 + $0x2e0] ss:$8 sps:$4 sm:$0xff]   ;;  %v2156_v40 = vld [vmem:[%s2517_s12 + $0x2f4] ss:$8 sps:$4 sm:$0xff]  }
  0x89   : > { %1547 = vmatprep.subr.bf16.mxu1 %v2065_v41  ;;  %v2154_v41 = vld [vmem:[%s2517_s12 + $0x2f0] ss:$8 sps:$4 sm:$0xff]  }
  0x8b   : > { %1507 = vmatpush1.bf16.msra.mxu0 %v2067_v42  ;;  %v1822_v42 = vcombine.low %v2588_v56, %v2588_v56  ;;  %v1655_v56 = vlaneseq }
  0x8c   : > { %1548 = vmatpush1.bf16.msra.mxu1 %v2068_v43  ;;  %1508 = vmatprep.subr.bf16.mxu0 %v2069_v44 }
  0x8d   : > { %1549 = vmatprep.subr.bf16.mxu1 %v2071_v45 }
  0x8f   : > { %1509 = vmatpush1.bf16.msra.mxu0 %v2073_v46 }
  0x90   : > { %1550 = vmatpush1.bf16.msra.mxu1 %v2074_v47  ;;  %1510 = vmatprep.subr.bf16.mxu0 %v2075_v50 }
  0x91   : > { %1551 = vmatprep.subr.bf16.mxu1 %v2077_v51 }
  0x93   : > { %1511 = vmatpush1.bf16.msra.mxu0 %v2079_v52 }
  0x94   : > { %1552 = vmatpush1.bf16.msra.mxu1 %v2080_v53  ;;  %1562 = vmatprep.subr.bf16.mxu0 %v2087_v54 }
  0x95   : > { %1603 = vmatprep.subr.bf16.mxu1 %v2111_v55 }
  0x96   : > { %1513 = vmatmul.mubr.bf16.vlgmr.msra.gmra.mrb[0].mxu0 %v1818_v57 }
  0x97   : > { %1554 = vmatmul.mubr.bf16.vlgmr.msra.gmra.mrb[0].mxu1 %v1820_v58  ;;  %1563 = vmatpush1.bf16.msra.mxu0 %v2085_v59 }
  0x98   : > { %1604 = vmatpush1.bf16.msra.mxu1 %v2109_v61  ;;  %1564 = vmatprep.subr.bf16.mxu0 %v2090_v60  ;;  %v1656_v60 = vshrl.u32 %v1655_v56, 7 }
  0x99   : > { %1605 = vmatprep.subr.bf16.mxu1 %v2117_v62  ;;  %1635 = vmatprep.mubr.bf16.mxu1 %v2200_v2  ;;  %v1653_v62 = vld [vmem:[%s758_s25] sm:$0x3] }
  0x9a   : > { %1594 = vmatprep.mubr.bf16.mxu0 %v1823_v63  ;;  %v1657_v61 = vsub.s32 0, %v1656_v60  ;;  %v1661_v63 = vsub.s32 1, %v1656_v60 }
  0x9b   : > { %1565 = vmatpush1.bf16.msra.mxu0 %v2088_v48 }
  0x9c   : > { %1606 = vmatpush1.bf16.msra.mxu1 %v2115_v0  ;;  %1566 = vmatprep.subr.bf16.mxu0 %v2093_v49  ;;  %v1658_v0 = vrot.slane %v1653_v62, %v1657_v61 }
  0x9d   : > { %1607 = vmatprep.subr.bf16.mxu1 %v2123_v1 }
  0x9f   : > { %1567 = vmatpush1.bf16.msra.mxu0 %v2091_v3  ;;  %v1662_v3 = vrot.slane %v1653_v62, %v1661_v63 }
  0xa0   : > { %1608 = vmatpush1.bf16.msra.mxu1 %v2121_v5  ;;  %1568 = vmatprep.subr.bf16.mxu0 %v2096_v4 }
  0xa1   : > { %1609 = vmatprep.subr.bf16.mxu1 %v2129_v6 }
  0xa3   : > { %1569 = vmatpush1.bf16.msra.mxu0 %v2094_v7  ;;  %v1670_v7 = vstv %s1667_s26 }
  0xa4   : > { %1610 = vmatpush1.bf16.msra.mxu1 %v2127_v8  ;;  %1570 = vmatprep.subr.bf16.mxu0 %v2099_v9 }
  0xa5   : > { %1611 = vmatprep.subr.bf16.mxu1 %v2135_v10 }
  0xa7   : > { %1571 = vmatpush1.bf16.msra.mxu0 %v2097_v11 }
  0xa8   : > { %1612 = vmatpush1.bf16.msra.mxu1 %v2133_v12  ;;  %1572 = vmatprep.subr.bf16.mxu0 %v2102_v13 }
  0xa9   : > { %1613 = vmatprep.subr.bf16.mxu1 %v2141_v14 }
  0xab   : > { %1573 = vmatpush1.bf16.msra.mxu0 %v2100_v15 }
  0xac   : > { %1614 = vmatpush1.bf16.msra.mxu1 %v2139_v16  ;;  %1574 = vmatprep.subr.bf16.mxu0 %v2105_v17 }
  0xad   : > { %1615 = vmatprep.subr.bf16.mxu1 %v2147_v18 }
  0xaf   : > { %1575 = vmatpush1.bf16.msra.mxu0 %v2103_v19 }
  0xb0   : > { %1616 = vmatpush1.bf16.msra.mxu1 %v2145_v20  ;;  %1576 = vmatprep.subr.bf16.mxu0 %v2108_v21 }
  0xb1   : > { %1617 = vmatprep.subr.bf16.mxu1 %v2153_v22 }
  0xb3   : > { %1577 = vmatpush1.bf16.msra.mxu0 %v2106_v23 }
  0xb4   : > { %1618 = vmatpush1.bf16.msra.mxu1 %v2151_v24  ;;  %1578 = vmatprep.subr.bf16.mxu0 %v2114_v25 }
  0xb7   : > { %1636 = vmatmul.mubr.bf16.vlgmr.msra.gmra.mrb[4].mxu1 %v2159_v26  ;;  %1579 = vmatpush1.bf16.msra.mxu0 %v2112_v27 }
  0xb8   : > { %1580 = vmatprep.subr.bf16.mxu0 %v2120_v28 }
  0xbb   : > { %1581 = vmatpush1.bf16.msra.mxu0 %v2118_v29 }
  0xbc   : > { %1582 = vmatprep.subr.bf16.mxu0 %v2126_v30 }
  0xbf   : > { %1583 = vmatpush1.bf16.msra.mxu0 %v2124_v31 }
  0xc0   : > { %1584 = vmatprep.subr.bf16.mxu0 %v2132_v32 }
  0xc3   : > { %1585 = vmatpush1.bf16.msra.mxu0 %v2130_v33 }
  0xc4   : > { %1586 = vmatprep.subr.bf16.mxu0 %v2138_v34 }
  0xc7   : > { %1587 = vmatpush1.bf16.msra.mxu0 %v2136_v35 }
  0xc8   : > { %1588 = vmatprep.subr.bf16.mxu0 %v2144_v36 }
  0xcb   : > { %1589 = vmatpush1.bf16.msra.mxu0 %v2142_v37 }
  0xcc   : > { %1590 = vmatprep.subr.bf16.mxu0 %v2150_v38 }
  0xcf   : > { %1591 = vmatpush1.bf16.msra.mxu0 %v2148_v39 }
  0xd0   : > { %1592 = vmatprep.subr.bf16.mxu0 %v2156_v40 }
  0xd3   : > { %1593 = vmatpush1.bf16.msra.mxu0 %v2154_v41 }
  0xd6   : > { %1595 = vmatmul.mubr.bf16.vlgmr.msra.gmra.mrb[4].mxu0 %v1822_v42 }
 0x169   : > { %v1514_v43 = vpop.f32.mrb[0].mxu0 }
 0x16a   : > { %v1555_v44 = vpop.f32.mrb[0].mxu1  ;;  %v1516_v46 = vpop.f32.mrb[1].mxu0 }
 0x16b   : > { %v1556_v45 = vadd.f32 %v1555_v44, %v1514_v43  ;;  %v1557_v47 = vpop.f32.mrb[1].mxu1  ;;  %v1518_v51 = vpop.f32.mrb[2].mxu0 }
 0x16c   : > { %v1558_v50 = vadd.f32 %v1557_v47, %v1516_v46  ;;  %v1559_v52 = vpop.f32.mrb[2].mxu1  ;;  %v1519_v53 = vpop.f32.mrb[3].mxu0 }
 0x16d   : > { %v1560_v54 = vpop.f32.mrb[3].mxu1 }
 0x18a   : > { %v1637_v55 = vpop.f32.mrb[4].mxu1 }
 0x18b   : > { %v1639_v57 = vpop.f32.mrb[5].mxu1 }
 0x18c   : > { %v1641_v58 = vpop.f32.mrb[6].mxu1 }
 0x18d   : > { %v1642_v59 = vpop.f32.mrb[7].mxu1 }
 0x1a9   : > { %v1596_v48 = vpop.f32.mrb[4].mxu0 }
 0x1aa   : > { %v1597_v49 = vadd.f32 %v1596_v48, %v1556_v45  ;;  %v1598_v1 = vpop.f32.mrb[5].mxu0 }
 0x1ab   : > { %v1599_v2 = vadd.f32 %v1598_v1, %v1558_v50  ;;  %v1600_v4 = vpop.f32.mrb[6].mxu0 }
 0x1ac   : > { %v1638_v5 = vadd.f32 %v1637_v55, %v1597_v49  ;;  %v1601_v6 = vpop.f32.mrb[7].mxu0 }
 0x1ad   : > { %v1640_v8 = vadd.f32 %v1639_v57, %v1599_v2 }
 0x1ae   : > { %v1665_v9 = vadd.f32 %v1658_v0, %v1638_v5 }
 0x1af   : > { %v1666_v10 = vadd.f32 %v1662_v3, %v1640_v8 }
 0x1b0   : > { %vm1668_vm0 = vcmp.gt.f32.partialorder %v1665_v9, 0.0  ;;  %v1671_v11 = vmul.f32 %v1670_v7, %v1665_v9 }
 0x1b1   : > { %vm1669_vm1 = vcmp.gt.f32.partialorder %v1666_v10, 0.0  ;;  %v1672_v12 = vmul.f32 %v1670_v7, %v1666_v10 }
 0x1b2   : > { %v1673_v13 = vsel %vm1668_vm0, %v1665_v9, %v1671_v11 }
 0x1b3   : > { %v1674_v14 = vsel %vm1669_vm1, %v1666_v10, %v1672_v12 }
 0x1b4   : > { %v1941_v15 = vpack.c.bf16 %v1674_v14, %v1673_v13 }
 0x1b6   : > { %1683 = vst [vmem:[%s768_s29] sm:$0xff] %v1941_v15 }
 0x1b7 PF: > { %s15_s21 = sadd.s32 1, %s2198_s21   ;;  %s2674_s17 = smov %s2186_s18 }
 0x1b8   : > { %p12_p10 = scmp.ge.s32.totalorder %s15_s21, 5   ;;  %s2675_s18 = smov %s2264_s24 }
 0x1b9   : > { %s2676_s19 = smov %s2194_s20  ;;  %s2677_s20 = smov %s2679_s3 }
 0x1ba   :  { %14 = sbr.rel (!%p12_p10) target bundleno = 5 (0x5), region = 123 }

// kernel: mlp_forward.13
= control target key start
LH: loop header
LB: loop body
LE: loop exit
PB: predicated region body
PF: predicated region fallthrough
CT: control target
= control target key end

     0   :  { %s4551_s0 = inlined_call_operand.vmem [shape: bf16[8,1280], index: 0, kind: input, shape index: {}]   ;;  %s4552_s1 = inlined_call_operand.hbm [shape: bf16[1280,1024], index: 1, kind: input, shape index: {}]   ;;  %s4553_s2 = inlined_call_operand.hbm [shape: f32[1,1024], index: 2, kind: input, shape index: {}]   ;;  %s4554_s3 = inlined_call_operand.<no memory space> [shape: f32[1,1], index: 3, kind: input, shape index: {}]   ;;  %s4555_s4 = inlined_call_operand.vmem [shape: bf16[8,1024], index: 4, kind: output, shape index: {}]  }
   0x1   :  { %9 = sst [smem:[#allocation3]] %s4554_s3 }
   0x2   :  { %10 = vsyncpa [#allocation5], 0 }
   0x3   :  { %12 = vsyncpa [#allocation5 + $0x1], 0 }
   0x4   :  { %13 = vsyncpa [#allocation7], 0 }
   0x5   :  { %15 = vsyncpa [#allocation7 + $0x1], 0  ;;  %s3984_s17 = smov 0   ;;  %s3986_s18 = smov 0  }
   0x6   :  { %s3988_s19 = smov 0   ;;  %s3990_s20 = smov 0  }
   0x7   :  { %s3992_s21 = smov 0   ;;  %s3994_s22 = smov 0  }
   0x8 LB: > { %s2928_s3 = sadd.s32 4294967295, %s3949_s22   ;;  %s36_s23 = sadd.s32 1, %s3945_s21  ;;  %s3949_s22 = sphi %s3994_s22, %s21_s22   ;;  %s3945_s21 = sphi %s3992_s21, %s4567_s21   ;;  %s3941_s20 = sphi %s3990_s20, %s4566_s20   ;;  %s3937_s19 = sphi %s3988_s19, %s4565_s19   ;;  %s3933_s18 = sphi %s3986_s18, %s4564_s18   ;;  %s3929_s17 = sphi %s3984_s17, %s4563_s17  }
   0x9   : > { %p38_p0 = scmp.ge.s32.totalorder %s36_s23, 2  ;;  %s77_s24 = sadd.s32 1, %s3937_s19 }
   0xa   : > { %p84_p1 = scmp.ne.s32.totalorder %s3937_s19, %s3933_s18  ;;  %p85_p2 = scmp.eq.s32.totalorder %s3949_s22, 0 }
   0xb   : > { %s4569_s23 = smov (%p38_p0, %s36_s23), 0  ;;  %p90_p4 = scmp.ne.s32.totalorder %s3933_s18, %s3929_s17 }
   0xc   : > { %p86_p3 = por %p85_p2, %p84_p1  ;;  %s73_s25 = ssub.s32 %s3945_s21, %s4569_s23 }
   0xd   : > { %p91_p5 = scmp.eq.s32.totalorder %s2928_s3, 0  ;;  %p75_p6 = scmp.eq.s32.totalorder %s73_s25, 0 }
   0xe   : > { %p3293_p8 = scmp.lt.s32.totalorder %s3949_s22, 2  ;;  %s4032_s28 = sand.u32 1, %s3937_s19  }
   0xf   : > { %p4023_p7 = por %p91_p5, %p90_p4  ;;  %s3276_s29 = sshll.u32 %s3945_s21, 8 }
  0x10   : > { %s4029_s27 = scalar_select %p75_p6, %s3937_s19, %s77_s24  }
  0x11   : > { %s4557_s26 = scalar_select %p4023_p7, 1, 0 }
  0x12   : > { %s3280_s30 = smul.u32 2560, %s4032_s28  ;;  %s4039_s7 = scalar_lea.hbm %s4552_s1, %s3276_s29 }
  0x13   : > { %p4041_p9 = pnand %p3293_p8, %p86_p3  ;;  %s206_s11 = scalar_lea.sflag [#allocation5], %s4032_s28 }
  0x14   : > { %s209_s9 = scalar_lea.vmem [#allocation4], %s3280_s30  ;;  %s3835_s12 = scalar_lea.hbm %s4039_s7, 40960 }
  0x15   : > { %s219_s10 = sshll.u32 %s209_s9, 4  ;;  %p3836_p11 = scmp.ne.s32.totalorder %s4039_s7, %s3835_s12  ;;  %s4045_s10 = int_to_ptr.vmem [resolvable:$true] %s219_s10 }
  0x16   : > { %p3837_p12 = pneg %p4041_p9  ;;  %s3840_s15 = scalar_lea.hbm %s4552_s1, 81920 }
  0x17   : > { %p3841_p1 = scmp.lt.u32.totalorder %s4039_s7, %s4552_s1  ;;  %p3842_p2 = scmp.lt.u32.totalorder %s3840_s15, %s3835_s12 }
  0x18   : > { %p3838_p13 = pnand %p3837_p12, %p3836_p11  ;;  %p3844_p4 = scmp.lt.u32.totalorder %s3835_s12, %s4039_s7 }
  0x19   : > { %p3843_p3 = por %p3842_p2, %p3841_p1 }
  0x1a   : > { %p3839_p0 = pneg %p3838_p13 }
  0x1b   : > { %p3845_p5 = por %p3844_p4, %p3843_p3 }
  0x1d   : > { %p3846_p6 = pnand %p3845_p5, %p3839_p0 }
  0x1f   : > { %3849 = shalt.err (!%p3846_p6)
}
  0x20   : > { %s3850_s3 = scalar_lea.vmem %s4045_s10, 40960  ;;  %s3951_s24 = smov [#allocation4]  }
  0x21   : > { %p3851_p8 = scmp.ne.s32.totalorder %s4045_s10, %s3850_s3  ;;  %s3855_s25 = sshll.u32 %s3951_s24, 4  ;;  %s3856_s25 = int_to_ptr.vmem [resolvable:$false] %s3855_s25 }
  0x22   : > { %s3857_s29 = scalar_lea.vmem %s3856_s25, 81920  ;;  %p3858_p10 = scmp.lt.s32.totalorder %s4045_s10, %s3856_s25 }
  0x23   : > { %p3853_p11 = pnand %p3851_p8, %p3837_p12  ;;  %p3859_p1 = scmp.lt.s32.totalorder %s3857_s29, %s3850_s3 }
  0x25   : > { %p3854_p13 = pneg %p3853_p11  ;;  %p3860_p2 = por %p3859_p1, %p3858_p10 }
  0x27   : > { %p3861_p3 = pnand %p3860_p2, %p3854_p13 }
  0x29   : > { %3864 = shalt.err (!%p3861_p3)
}
  0x2a   : > { %s3952_s30 = smov 512   ;;  %s3953_s5 = smov 256  }
  0x2b   : > { %s3954_s6 = smov 16   ;;  %p246_p0 = scmp.lt.s32.totalorder %s3949_s22, 3 }
  0x2c   : > { %3289 = dma.hbm_to_vmem [thread:$0]  (!%p4041_p9), %s4039_s7, 40960, %s4045_s10, %s206_s11, %s3952_s30, %s3953_s5, %s3954_s6  }
  0x2d   : > { %s2935_s9 = sshll.u32 %s4032_s28, 2  ;;  %s3277_s12 = sshll.u32 %s3945_s21, 6 }
  0x2e   : > { %p4559_p10 = scmp.ge.s32.totalorder %s3949_s22, 1  ;;  %s4088_s16 = scalar_lea.hbm %s4553_s2, %s3277_s12 }
  0x2f   : > { %s233_s17 = scalar_lea.vmem [#allocation6], %s2935_s9  ;;  %s230_s7 = scalar_lea.sflag [#allocation7], %s4032_s28 }
  0x30   : > { %p4081_p4 = pnand %p4559_p10, %p246_p0  ;;  %s241_s3 = sshll.u32 %s233_s17, 4  ;;  %s242_s3 = int_to_ptr.vmem [resolvable:$true] %s241_s3 }
  0x31   : > { %s3865_s10 = scalar_lea.hbm %s4088_s16, 64  ;;  %s3870_s25 = scalar_lea.hbm %s4553_s2, 128 }
  0x32   : > { %s4560_s13 = scalar_select %p4081_p4, 1, 0 }
  0x33   : > { %p3866_p5 = scmp.ne.s32.totalorder %s4088_s16, %s3865_s10  ;;  %p3871_p11 = scmp.lt.u32.totalorder %s4088_s16, %s4553_s2 }
  0x34   : > { %p3872_p13 = scmp.lt.u32.totalorder %s3870_s25, %s3865_s10  ;;  %p3874_p2 = scmp.lt.u32.totalorder %s3865_s10, %s4088_s16 }
  0x35   : > { %p3868_p6 = pnand %p3866_p5, %p3837_p12 }
  0x36   : > { %p3873_p1 = por %p3872_p13, %p3871_p11 }
  0x37   : > { %p3869_p8 = pneg %p3868_p6 }
  0x38   : > { %p3875_p3 = por %p3874_p2, %p3873_p1 }
  0x3a   : > { %p3876_p0 = pnand %p3875_p3, %p3869_p8 }
  0x3c   : > { %3879 = shalt.err (!%p3876_p0)
}
  0x3d   : > { %s3880_s28 = scalar_lea.vmem %s242_s3, 64  ;;  %s3955_s5 = smov [#allocation6]  }
  0x3e   : > { %p3881_p10 = scmp.ne.s32.totalorder %s242_s3, %s3880_s28  ;;  %s3885_s6 = sshll.u32 %s3955_s5, 4  ;;  %s3886_s6 = int_to_ptr.vmem [resolvable:$false] %s3885_s6 }
  0x3f   : > { %s3887_s9 = scalar_lea.vmem %s3886_s6, 128  ;;  %p3888_p7 = scmp.lt.s32.totalorder %s242_s3, %s3886_s6 }
  0x40   : > { %p3883_p5 = pnand %p3881_p10, %p3837_p12  ;;  %p3889_p4 = scmp.lt.s32.totalorder %s3887_s9, %s3880_s28 }
  0x42   : > { %p3884_p6 = pneg %p3883_p5  ;;  %p3890_p11 = por %p3889_p4, %p3888_p7 }
  0x44   : > { %p3891_p13 = pnand %p3890_p11, %p3884_p6 }
  0x46   : > { %3894 = shalt.err (!%p3891_p13)
}
  0x47   : > { %3292 = dma.hbm_to_vmem [thread:$0]  (!%p4041_p9), %s4088_s16, 64, %s242_s3, %s230_s7  }
  0x48   : > { %p4561_p8 = scmp.ne.s32.totalorder %s4560_s13, 0 }
  0x49   : > { %s252_s12 = sand.u32 (!%p4561_p8), 1, %s3933_s18   ;;  %p4562_p12 = scmp.ne.s32.totalorder (!%p4561_p8), %s4557_s26, 0 }
  0x4a   : > { %250 = sbr.rel (%p4561_p8) target bundleno = 631 (0x277), region = 36  ;;  %s253_s15 = scalar_lea.sflag (!%p4561_p8), [#allocation5], %s252_s12 }
  0x4b   : > { %s3281_s14 = smul.u32 (!%p4561_p8), 2560, %s252_s12 }
  0x4d   : > { %s4113_s17 = scalar_lea.vmem (!%p4561_p8), [#allocation4], %s3281_s14 }
  0x51   : > { %3920 = dma.done.wait (%p4562_p12), %s253_s15, 40960  }
  0x52   : > { %3922 = vsyncadd (%p4562_p12), %s253_s15, 4294926336  ;;  %s2939_s10 = sshll.u32 %s252_s12, 2  ;;  %s262_s8 = scalar_lea.sflag [#allocation7], %s252_s12 }
  0x53   : > { %s4119_s11 = scalar_lea.vmem [#allocation6], %s2939_s10 }
  0x54   : > { %3924 = dma.done.wait (%p4562_p12), %s262_s8, 64  }
  0x55   : > { %3926 = vsyncadd (%p4562_p12), %s262_s8, 4294967232  ;;  %v3345_v0 = vld [vmem:[%s4113_s17 + $0x4] ss:$16 sps:$4 sm:$0xff]   ;;  %v3349_v2 = vld [vmem:[%s4113_s17] ss:$16 sps:$4 sm:$0xff]   ;;  %s2754_s5 = sld [smem:[#allocation3]] }
  0x56   : > { %v3347_v1 = vld [vmem:[%s4113_s17 + $0x204] ss:$16 sps:$4 sm:$0xff]   ;;  %2303 = vmatprep.subr.bf16.mxu0 %v3345_v0  ;;  %v3350_v3 = vld [vmem:[%s4113_s17 + $0x200] ss:$16 sps:$4 sm:$0xff]   ;;  %v344_v48 = vld [vmem:[%s4551_s0 + $0x8] sm:$0xff]  ;;  %s2940_s6 = sshll.u32 %s3941_s20, 2 }
  0x57   : > { %2344 = vmatprep.subr.bf16.mxu1 %v3347_v1  ;;  %v3351_v4 = vld [vmem:[%s4113_s17 + $0x24] ss:$16 sps:$4 sm:$0xff]   ;;  %2304 = vmatpush1.bf16.msra.mxu0 %v3349_v2  ;;  %v3355_v6 = vld [vmem:[%s4113_s17 + $0x20] ss:$16 sps:$4 sm:$0xff]   ;;  %v4181_v51 = vcombine.high %v344_v48, %v344_v48  ;;  %p324_p7 = scmp.lt.s32.totalorder %s2940_s6, 7 }
  0x58   : > { %2345 = vmatpush1.bf16.msra.mxu1 %v3350_v3  ;;  %v3353_v5 = vld [vmem:[%s4113_s17 + $0x224] ss:$16 sps:$4 sm:$0xff]   ;;  %2305 = vmatprep.subr.bf16.mxu0 %v3351_v4  ;;  %v3356_v7 = vld [vmem:[%s4113_s17 + $0x220] ss:$16 sps:$4 sm:$0xff]  }
  0x59   : > { %2346 = vmatprep.subr.bf16.mxu1 %v3353_v5  ;;  %v3357_v8 = vld [vmem:[%s4113_s17 + $0x44] ss:$16 sps:$4 sm:$0xff]   ;;  %v3361_v10 = vld [vmem:[%s4113_s17 + $0x40] ss:$16 sps:$4 sm:$0xff]   ;;  %2376 = vmatprep.mubr.bf16.mxu1 %v4181_v51  ;;  %s4571_s6 = smov (!%p324_p7, %s2940_s6), 7 }
  0x5a   : > { %v3359_v9 = vld [vmem:[%s4113_s17 + $0x244] ss:$16 sps:$4 sm:$0xff]   ;;  %v3362_v11 = vld [vmem:[%s4113_s17 + $0x240] ss:$16 sps:$4 sm:$0xff]   ;;  %s2941_s20 = sshll.u32 %s4571_s6, 2 }
  0x5b   : > { %2306 = vmatpush1.bf16.msra.mxu0 %v3355_v6  ;;  %v3363_v12 = vld [vmem:[%s4113_s17 + $0x64] ss:$16 sps:$4 sm:$0xff]   ;;  %v3367_v14 = vld [vmem:[%s4113_s17 + $0x60] ss:$16 sps:$4 sm:$0xff]   ;;  %s4529_s14 = scalar_lea.vmem %s4555_s4, %s2941_s20 }
  0x5c   : > { %2347 = vmatpush1.bf16.msra.mxu1 %v3356_v7  ;;  %2307 = vmatprep.subr.bf16.mxu0 %v3357_v8  ;;  %v3365_v13 = vld [vmem:[%s4113_s17 + $0x264] ss:$16 sps:$4 sm:$0xff]   ;;  %v3368_v15 = vld [vmem:[%s4113_s17 + $0x260] ss:$16 sps:$4 sm:$0xff]   ;;  %v4205_v7 = vcombine.low %v344_v48, %v344_v48 }
  0x5d   : > { %2348 = vmatprep.subr.bf16.mxu1 %v3359_v9  ;;  %v3369_v16 = vld [vmem:[%s4113_s17 + $0x84] ss:$16 sps:$4 sm:$0xff]   ;;  %v3373_v18 = vld [vmem:[%s4113_s17 + $0x80] ss:$16 sps:$4 sm:$0xff]  }
  0x5e   : > { %v3371_v17 = vld [vmem:[%s4113_s17 + $0x284] ss:$16 sps:$4 sm:$0xff]   ;;  %v3374_v19 = vld [vmem:[%s4113_s17 + $0x280] ss:$16 sps:$4 sm:$0xff]  }
  0x5f   : > { %2308 = vmatpush1.bf16.msra.mxu0 %v3361_v10  ;;  %v3375_v20 = vld [vmem:[%s4113_s17 + $0xa4] ss:$16 sps:$4 sm:$0xff]   ;;  %v3379_v22 = vld [vmem:[%s4113_s17 + $0xa0] ss:$16 sps:$4 sm:$0xff]  }
  0x60   : > { %2349 = vmatpush1.bf16.msra.mxu1 %v3362_v11  ;;  %2309 = vmatprep.subr.bf16.mxu0 %v3363_v12  ;;  %v3377_v21 = vld [vmem:[%s4113_s17 + $0x2a4] ss:$16 sps:$4 sm:$0xff]   ;;  %v3380_v23 = vld [vmem:[%s4113_s17 + $0x2a0] ss:$16 sps:$4 sm:$0xff]  }
  0x61   : > { %2350 = vmatprep.subr.bf16.mxu1 %v3365_v13  ;;  %v3381_v24 = vld [vmem:[%s4113_s17 + $0xc4] ss:$16 sps:$4 sm:$0xff]   ;;  %v3385_v26 = vld [vmem:[%s4113_s17 + $0xc0] ss:$16 sps:$4 sm:$0xff]  }
  0x62   : > { %v3383_v25 = vld [vmem:[%s4113_s17 + $0x2c4] ss:$16 sps:$4 sm:$0xff]   ;;  %v3386_v27 = vld [vmem:[%s4113_s17 + $0x2c0] ss:$16 sps:$4 sm:$0xff]  }
  0x63   : > { %2310 = vmatpush1.bf16.msra.mxu0 %v3367_v14  ;;  %v3387_v28 = vld [vmem:[%s4113_s17 + $0xe4] ss:$16 sps:$4 sm:$0xff]   ;;  %v3391_v30 = vld [vmem:[%s4113_s17 + $0xe0] ss:$16 sps:$4 sm:$0xff]  }
  0x64   : > { %2351 = vmatpush1.bf16.msra.mxu1 %v3368_v15  ;;  %2311 = vmatprep.subr.bf16.mxu0 %v3369_v16  ;;  %v3389_v29 = vld [vmem:[%s4113_s17 + $0x2e4] ss:$16 sps:$4 sm:$0xff]   ;;  %v3392_v31 = vld [vmem:[%s4113_s17 + $0x2e0] ss:$16 sps:$4 sm:$0xff]  }
  0x65   : > { %2352 = vmatprep.subr.bf16.mxu1 %v3371_v17  ;;  %v3393_v32 = vld [vmem:[%s4113_s17 + $0x104] ss:$16 sps:$4 sm:$0xff]   ;;  %v3397_v34 = vld [vmem:[%s4113_s17 + $0x100] ss:$16 sps:$4 sm:$0xff]  }
  0x66   : > { %v3395_v33 = vld [vmem:[%s4113_s17 + $0x304] ss:$16 sps:$4 sm:$0xff]   ;;  %v3398_v35 = vld [vmem:[%s4113_s17 + $0x300] ss:$16 sps:$4 sm:$0xff]  }
  0x67   : > { %2312 = vmatpush1.bf16.msra.mxu0 %v3373_v18  ;;  %v3399_v36 = vld [vmem:[%s4113_s17 + $0x124] ss:$16 sps:$4 sm:$0xff]   ;;  %v3403_v38 = vld [vmem:[%s4113_s17 + $0x120] ss:$16 sps:$4 sm:$0xff]  }
  0x68   : > { %2353 = vmatpush1.bf16.msra.mxu1 %v3374_v19  ;;  %2313 = vmatprep.subr.bf16.mxu0 %v3375_v20  ;;  %v3401_v37 = vld [vmem:[%s4113_s17 + $0x324] ss:$16 sps:$4 sm:$0xff]   ;;  %v3404_v39 = vld [vmem:[%s4113_s17 + $0x320] ss:$16 sps:$4 sm:$0xff]  }
  0x69   : > { %2354 = vmatprep.subr.bf16.mxu1 %v3377_v21  ;;  %v3405_v40 = vld [vmem:[%s4113_s17 + $0x144] ss:$16 sps:$4 sm:$0xff]   ;;  %v3409_v42 = vld [vmem:[%s4113_s17 + $0x140] ss:$16 sps:$4 sm:$0xff]  }
  0x6a   : > { %v3407_v41 = vld [vmem:[%s4113_s17 + $0x344] ss:$16 sps:$4 sm:$0xff]   ;;  %v3410_v43 = vld [vmem:[%s4113_s17 + $0x340] ss:$16 sps:$4 sm:$0xff]  }
  0x6b   : > { %2314 = vmatpush1.bf16.msra.mxu0 %v3379_v22  ;;  %v3411_v44 = vld [vmem:[%s4113_s17 + $0x164] ss:$16 sps:$4 sm:$0xff]   ;;  %v3415_v49 = vld [vmem:[%s4113_s17 + $0x160] ss:$16 sps:$4 sm:$0xff]  }
  0x6c   : > { %2355 = vmatpush1.bf16.msra.mxu1 %v3380_v23  ;;  %2315 = vmatprep.subr.bf16.mxu0 %v3381_v24  ;;  %v3413_v45 = vld [vmem:[%s4113_s17 + $0x364] ss:$16 sps:$4 sm:$0xff]   ;;  %v3416_v50 = vld [vmem:[%s4113_s17 + $0x360] ss:$16 sps:$4 sm:$0xff]  }
  0x6d   : > { %2356 = vmatprep.subr.bf16.mxu1 %v3383_v25  ;;  %v343_v46 = vld [vmem:[%s4551_s0] sm:$0xff] }
  0x6e   : > { %v4174_v47 = vcombine.high %v343_v46, %v343_v46  ;;  %v3417_v52 = vld [vmem:[%s4113_s17 + $0x184] ss:$16 sps:$4 sm:$0xff]   ;;  %v3421_v54 = vld [vmem:[%s4113_s17 + $0x180] ss:$16 sps:$4 sm:$0xff]   ;;  %v4203_v6 = vcombine.low %v343_v46, %v343_v46 }
  0x6f   : > { %2316 = vmatpush1.bf16.msra.mxu0 %v3385_v26  ;;  %v3419_v53 = vld [vmem:[%s4113_s17 + $0x384] ss:$16 sps:$4 sm:$0xff]   ;;  %v3422_v55 = vld [vmem:[%s4113_s17 + $0x380] ss:$16 sps:$4 sm:$0xff]  }
  0x70   : > { %2357 = vmatpush1.bf16.msra.mxu1 %v3386_v27  ;;  %2317 = vmatprep.subr.bf16.mxu0 %v3387_v28  ;;  %v3423_v56 = vld [vmem:[%s4113_s17 + $0x1a4] ss:$16 sps:$4 sm:$0xff]   ;;  %v3427_v58 = vld [vmem:[%s4113_s17 + $0x1a0] ss:$16 sps:$4 sm:$0xff]  }
  0x71   : > { %2358 = vmatprep.subr.bf16.mxu1 %v3389_v29  ;;  %2335 = vmatprep.mubr.bf16.mxu0 %v4174_v47  ;;  %v3425_v57 = vld [vmem:[%s4113_s17 + $0x3a4] ss:$16 sps:$4 sm:$0xff]   ;;  %v3428_v59 = vld [vmem:[%s4113_s17 + $0x3a0] ss:$16 sps:$4 sm:$0xff]  }
  0x72   : > { %v3429_v60 = vld [vmem:[%s4113_s17 + $0x1c4] ss:$16 sps:$4 sm:$0xff]   ;;  %v3433_v62 = vld [vmem:[%s4113_s17 + $0x1c0] ss:$16 sps:$4 sm:$0xff]  }
  0x73   : > { %2318 = vmatpush1.bf16.msra.mxu0 %v3391_v30  ;;  %v3431_v61 = vld [vmem:[%s4113_s17 + $0x3c4] ss:$16 sps:$4 sm:$0xff]   ;;  %v3434_v63 = vld [vmem:[%s4113_s17 + $0x3c0] ss:$16 sps:$4 sm:$0xff]  }
  0x74   : > { %2359 = vmatpush1.bf16.msra.mxu1 %v3392_v31  ;;  %2319 = vmatprep.subr.bf16.mxu0 %v3393_v32  ;;  %v3435_v0 = vld [vmem:[%s4113_s17 + $0x1e4] ss:$16 sps:$4 sm:$0xff]   ;;  %v3439_v2 = vld [vmem:[%s4113_s17 + $0x1e0] ss:$16 sps:$4 sm:$0xff]  }
  0x75   : > { %2360 = vmatprep.subr.bf16.mxu1 %v3395_v33  ;;  %v3437_v1 = vld [vmem:[%s4113_s17 + $0x3e4] ss:$16 sps:$4 sm:$0xff]   ;;  %v3440_v3 = vld [vmem:[%s4113_s17 + $0x3e0] ss:$16 sps:$4 sm:$0xff]   ;;  %v4241_v33 = vld [vmem:[%s4551_s0 + $0x18] sm:$0xff] }
  0x76   : > { %v3447_v4 = vld [vmem:[%s4113_s17 + $0x404] ss:$16 sps:$4 sm:$0xff]   ;;  %v3445_v8 = vld [vmem:[%s4113_s17 + $0x400] ss:$16 sps:$4 sm:$0xff]  }
  0x77   : > { %2320 = vmatpush1.bf16.msra.mxu0 %v3397_v34  ;;  %v3450_v5 = vld [vmem:[%s4113_s17 + $0x604] ss:$16 sps:$4 sm:$0xff]   ;;  %v3448_v9 = vld [vmem:[%s4113_s17 + $0x600] ss:$16 sps:$4 sm:$0xff]  }
  0x78   : > { %2361 = vmatpush1.bf16.msra.mxu1 %v3398_v35  ;;  %2321 = vmatprep.subr.bf16.mxu0 %v3399_v36  ;;  %v3453_v10 = vld [vmem:[%s4113_s17 + $0x424] ss:$16 sps:$4 sm:$0xff]   ;;  %v3451_v12 = vld [vmem:[%s4113_s17 + $0x420] ss:$16 sps:$4 sm:$0xff]  }
  0x79   : > { %2362 = vmatprep.subr.bf16.mxu1 %v3401_v37  ;;  %v3456_v11 = vld [vmem:[%s4113_s17 + $0x624] ss:$16 sps:$4 sm:$0xff]   ;;  %v3454_v13 = vld [vmem:[%s4113_s17 + $0x620] ss:$16 sps:$4 sm:$0xff]   ;;  %v4251_v37 = vcombine.high %v4241_v33, %v4241_v33 }
  0x7a   : > { %v3459_v14 = vld [vmem:[%s4113_s17 + $0x444] ss:$16 sps:$4 sm:$0xff]   ;;  %v3457_v16 = vld [vmem:[%s4113_s17 + $0x440] ss:$16 sps:$4 sm:$0xff]  }
  0x7b   : > { %2322 = vmatpush1.bf16.msra.mxu0 %v3403_v38  ;;  %v3462_v15 = vld [vmem:[%s4113_s17 + $0x644] ss:$16 sps:$4 sm:$0xff]   ;;  %v3460_v17 = vld [vmem:[%s4113_s17 + $0x640] ss:$16 sps:$4 sm:$0xff]  }
  0x7c   : > { %2363 = vmatpush1.bf16.msra.mxu1 %v3404_v39  ;;  %2323 = vmatprep.subr.bf16.mxu0 %v3405_v40  ;;  %v3465_v18 = vld [vmem:[%s4113_s17 + $0x464] ss:$16 sps:$4 sm:$0xff]   ;;  %v3463_v20 = vld [vmem:[%s4113_s17 + $0x460] ss:$16 sps:$4 sm:$0xff]  }
  0x7d   : > { %2364 = vmatprep.subr.bf16.mxu1 %v3407_v41  ;;  %v3468_v19 = vld [vmem:[%s4113_s17 + $0x664] ss:$16 sps:$4 sm:$0xff]   ;;  %v3466_v21 = vld [vmem:[%s4113_s17 + $0x660] ss:$16 sps:$4 sm:$0xff]  }
  0x7e   : > { %v3471_v22 = vld [vmem:[%s4113_s17 + $0x484] ss:$16 sps:$4 sm:$0xff]   ;;  %v3469_v24 = vld [vmem:[%s4113_s17 + $0x480] ss:$16 sps:$4 sm:$0xff]  }
  0x7f   : > { %2324 = vmatpush1.bf16.msra.mxu0 %v3409_v42  ;;  %v3474_v23 = vld [vmem:[%s4113_s17 + $0x684] ss:$16 sps:$4 sm:$0xff]   ;;  %v3472_v25 = vld [vmem:[%s4113_s17 + $0x680] ss:$16 sps:$4 sm:$0xff]  }
  0x80   : > { %2365 = vmatpush1.bf16.msra.mxu1 %v3410_v43  ;;  %2325 = vmatprep.subr.bf16.mxu0 %v3411_v44  ;;  %v3477_v26 = vld [vmem:[%s4113_s17 + $0x4a4] ss:$16 sps:$4 sm:$0xff]   ;;  %v3475_v28 = vld [vmem:[%s4113_s17 + $0x4a0] ss:$16 sps:$4 sm:$0xff]  }
  0x81   : > { %2366 = vmatprep.subr.bf16.mxu1 %v3413_v45  ;;  %v3480_v27 = vld [vmem:[%s4113_s17 + $0x6a4] ss:$16 sps:$4 sm:$0xff]   ;;  %v3478_v29 = vld [vmem:[%s4113_s17 + $0x6a0] ss:$16 sps:$4 sm:$0xff]  }
  0x82   : > { %v3483_v30 = vld [vmem:[%s4113_s17 + $0x4c4] ss:$16 sps:$4 sm:$0xff]   ;;  %v3481_v34 = vld [vmem:[%s4113_s17 + $0x4c0] ss:$16 sps:$4 sm:$0xff]  }
  0x83   : > { %2326 = vmatpush1.bf16.msra.mxu0 %v3415_v49  ;;  %v3486_v31 = vld [vmem:[%s4113_s17 + $0x6c4] ss:$16 sps:$4 sm:$0xff]   ;;  %v3484_v35 = vld [vmem:[%s4113_s17 + $0x6c0] ss:$16 sps:$4 sm:$0xff]  }
  0x84   : > { %2367 = vmatpush1.bf16.msra.mxu1 %v3416_v50  ;;  %2327 = vmatprep.subr.bf16.mxu0 %v3417_v52  ;;  %v4236_v32 = vld [vmem:[%s4551_s0 + $0x10] sm:$0xff] }
  0x85   : > { %2368 = vmatprep.subr.bf16.mxu1 %v3419_v53  ;;  %v4247_v36 = vcombine.high %v4236_v32, %v4236_v32  ;;  %v3489_v38 = vld [vmem:[%s4113_s17 + $0x4e4] ss:$16 sps:$4 sm:$0xff]   ;;  %v3487_v40 = vld [vmem:[%s4113_s17 + $0x4e0] ss:$16 sps:$4 sm:$0xff]  }
  0x86   : > { %v3492_v39 = vld [vmem:[%s4113_s17 + $0x6e4] ss:$16 sps:$4 sm:$0xff]   ;;  %v3490_v41 = vld [vmem:[%s4113_s17 + $0x6e0] ss:$16 sps:$4 sm:$0xff]  }
  0x87   : > { %2328 = vmatpush1.bf16.msra.mxu0 %v3421_v54  ;;  %v3495_v42 = vld [vmem:[%s4113_s17 + $0x504] ss:$16 sps:$4 sm:$0xff]   ;;  %v3493_v44 = vld [vmem:[%s4113_s17 + $0x500] ss:$16 sps:$4 sm:$0xff]  }
  0x88   : > { %2369 = vmatpush1.bf16.msra.mxu1 %v3422_v55  ;;  %2329 = vmatprep.subr.bf16.mxu0 %v3423_v56  ;;  %v3498_v43 = vld [vmem:[%s4113_s17 + $0x704] ss:$16 sps:$4 sm:$0xff]   ;;  %v3496_v45 = vld [vmem:[%s4113_s17 + $0x700] ss:$16 sps:$4 sm:$0xff]  }
  0x89   : > { %2370 = vmatprep.subr.bf16.mxu1 %v3425_v57  ;;  %v3501_v46 = vld [vmem:[%s4113_s17 + $0x524] ss:$16 sps:$4 sm:$0xff]   ;;  %v3499_v49 = vld [vmem:[%s4113_s17 + $0x520] ss:$16 sps:$4 sm:$0xff]  }
  0x8a   : > { %v3504_v48 = vld [vmem:[%s4113_s17 + $0x724] ss:$16 sps:$4 sm:$0xff]   ;;  %v3502_v50 = vld [vmem:[%s4113_s17 + $0x720] ss:$16 sps:$4 sm:$0xff]  }
  0x8b   : > { %2330 = vmatpush1.bf16.msra.mxu0 %v3427_v58  ;;  %v3507_v52 = vld [vmem:[%s4113_s17 + $0x544] ss:$16 sps:$4 sm:$0xff]   ;;  %v3505_v54 = vld [vmem:[%s4113_s17 + $0x540] ss:$16 sps:$4 sm:$0xff]  }
  0x8c   : > { %2371 = vmatpush1.bf16.msra.mxu1 %v3428_v59  ;;  %2331 = vmatprep.subr.bf16.mxu0 %v3429_v60  ;;  %v3510_v53 = vld [vmem:[%s4113_s17 + $0x744] ss:$16 sps:$4 sm:$0xff]   ;;  %v3508_v55 = vld [vmem:[%s4113_s17 + $0x740] ss:$16 sps:$4 sm:$0xff]  }
  0x8d   : > { %2372 = vmatprep.subr.bf16.mxu1 %v3431_v61  ;;  %v3513_v56 = vld [vmem:[%s4113_s17 + $0x564] ss:$16 sps:$4 sm:$0xff]   ;;  %v3511_v58 = vld [vmem:[%s4113_s17 + $0x560] ss:$16 sps:$4 sm:$0xff]  }
  0x8e   : > { %v3516_v57 = vld [vmem:[%s4113_s17 + $0x764] ss:$16 sps:$4 sm:$0xff]   ;;  %v3514_v59 = vld [vmem:[%s4113_s17 + $0x760] ss:$16 sps:$4 sm:$0xff]  }
  0x8f   : > { %2332 = vmatpush1.bf16.msra.mxu0 %v3433_v62  ;;  %v3519_v60 = vld [vmem:[%s4113_s17 + $0x584] ss:$16 sps:$4 sm:$0xff]   ;;  %v3517_v62 = vld [vmem:[%s4113_s17 + $0x580] ss:$16 sps:$4 sm:$0xff]  }
  0x90   : > { %2373 = vmatpush1.bf16.msra.mxu1 %v3434_v63  ;;  %2333 = vmatprep.subr.bf16.mxu0 %v3435_v0  ;;  %v3522_v61 = vld [vmem:[%s4113_s17 + $0x784] ss:$16 sps:$4 sm:$0xff]   ;;  %v3520_v63 = vld [vmem:[%s4113_s17 + $0x780] ss:$16 sps:$4 sm:$0xff]  }
  0x91   : > { %2374 = vmatprep.subr.bf16.mxu1 %v3437_v1  ;;  %v3525_v0 = vld [vmem:[%s4113_s17 + $0x5a4] ss:$16 sps:$4 sm:$0xff]  }
  0x92   : > { %v3528_v1 = vld [vmem:[%s4113_s17 + $0x7a4] ss:$16 sps:$4 sm:$0xff]  }
  0x93   : > { %2334 = vmatpush1.bf16.msra.mxu0 %v3439_v2  ;;  %v3523_v2 = vld [vmem:[%s4113_s17 + $0x5a0] ss:$16 sps:$4 sm:$0xff]  }
  0x94   : > { %2375 = vmatpush1.bf16.msra.mxu1 %v3440_v3  ;;  %2385 = vmatprep.subr.bf16.mxu0 %v3447_v4  ;;  %v3526_v3 = vld [vmem:[%s4113_s17 + $0x7a0] ss:$16 sps:$4 sm:$0xff]   ;;  %v3531_v4 = vld [vmem:[%s4113_s17 + $0x5c4] ss:$16 sps:$4 sm:$0xff]  }
  0x95   : > { %2426 = vmatprep.subr.bf16.mxu1 %v3450_v5  ;;  %v3534_v5 = vld [vmem:[%s4113_s17 + $0x7c4] ss:$16 sps:$4 sm:$0xff]  }
  0x96   : > { %2336 = vmatmul.mubr.bf16.vlgmr.msra.gmra.mrb[0].mxu0 %v4203_v6 }
  0x97   : > { %2377 = vmatmul.mubr.bf16.vlgmr.msra.gmra.mrb[0].mxu1 %v4205_v7  ;;  %2386 = vmatpush1.bf16.msra.mxu0 %v3445_v8  ;;  %v3529_v8 = vld [vmem:[%s4113_s17 + $0x5c0] ss:$16 sps:$4 sm:$0xff]  }
  0x98   : > { %2427 = vmatpush1.bf16.msra.mxu1 %v3448_v9  ;;  %2387 = vmatprep.subr.bf16.mxu0 %v3453_v10  ;;  %v3532_v9 = vld [vmem:[%s4113_s17 + $0x7c0] ss:$16 sps:$4 sm:$0xff]   ;;  %v3537_v10 = vld [vmem:[%s4113_s17 + $0x5e4] ss:$16 sps:$4 sm:$0xff]  }
  0x99   : > { %2428 = vmatprep.subr.bf16.mxu1 %v3456_v11  ;;  %2417 = vmatprep.mubr.bf16.mxu0 %v4247_v36  ;;  %v3540_v11 = vld [vmem:[%s4113_s17 + $0x7e4] ss:$16 sps:$4 sm:$0xff]  }
  0x9a   : > { %2458 = vmatprep.mubr.bf16.mxu1 %v4251_v37 }
  0x9b   : > { %2388 = vmatpush1.bf16.msra.mxu0 %v3451_v12  ;;  %v3535_v12 = vld [vmem:[%s4113_s17 + $0x5e0] ss:$16 sps:$4 sm:$0xff]  }
  0x9c   : > { %2429 = vmatpush1.bf16.msra.mxu1 %v3454_v13  ;;  %2389 = vmatprep.subr.bf16.mxu0 %v3459_v14  ;;  %v3538_v13 = vld [vmem:[%s4113_s17 + $0x7e0] ss:$16 sps:$4 sm:$0xff]   ;;  %v3547_v14 = vld [vmem:[%s4113_s17 + $0x804] ss:$16 sps:$4 sm:$0xff]  }
  0x9d   : > { %2430 = vmatprep.subr.bf16.mxu1 %v3462_v15  ;;  %v3550_v15 = vld [vmem:[%s4113_s17 + $0xc] ss:$16 sps:$4 sm:$0xff]  }
  0x9f   : > { %2390 = vmatpush1.bf16.msra.mxu0 %v3457_v16  ;;  %v4295_v16 = vcombine.low %v4236_v32, %v4236_v32  ;;  %v3563_v32 = vld [vmem:[%s4113_s17 + $0x860] ss:$16 sps:$4 sm:$0xff]  }
  0xa0   : > { %2431 = vmatpush1.bf16.msra.mxu1 %v3460_v17  ;;  %2391 = vmatprep.subr.bf16.mxu0 %v3465_v18  ;;  %v4299_v17 = vcombine.low %v4241_v33, %v4241_v33  ;;  %v3545_v18 = vld [vmem:[%s4113_s17 + $0x800] ss:$16 sps:$4 sm:$0xff]   ;;  %v3566_v33 = vld [vmem:[%s4113_s17 + $0x68] ss:$16 sps:$4 sm:$0xff]  }
  0xa1   : > { %2432 = vmatprep.subr.bf16.mxu1 %v3468_v19  ;;  %v3548_v19 = vld [vmem:[%s4113_s17 + $0x8] ss:$16 sps:$4 sm:$0xff]  }
  0xa3   : > { %2392 = vmatpush1.bf16.msra.mxu0 %v3463_v20  ;;  %v3553_v20 = vld [vmem:[%s4113_s17 + $0x824] ss:$16 sps:$4 sm:$0xff]  }
  0xa4   : > { %2433 = vmatpush1.bf16.msra.mxu1 %v3466_v21  ;;  %2393 = vmatprep.subr.bf16.mxu0 %v3471_v22  ;;  %v3556_v21 = vld [vmem:[%s4113_s17 + $0x2c] ss:$16 sps:$4 sm:$0xff]   ;;  %v4308_v22 = vld [vmem:[%s4551_s0 + $0x20] sm:$0xff] }
  0xa5   : > { %2434 = vmatprep.subr.bf16.mxu1 %v3474_v23  ;;  %v4312_v23 = vcombine.high %v4308_v22, %v4308_v22 }
  0xa7   : > { %2394 = vmatpush1.bf16.msra.mxu0 %v3469_v24  ;;  %v3551_v24 = vld [vmem:[%s4113_s17 + $0x820] ss:$16 sps:$4 sm:$0xff]  }
  0xa8   : > { %2435 = vmatpush1.bf16.msra.mxu1 %v3472_v25  ;;  %2395 = vmatprep.subr.bf16.mxu0 %v3477_v26  ;;  %v3554_v25 = vld [vmem:[%s4113_s17 + $0x28] ss:$16 sps:$4 sm:$0xff]   ;;  %v3559_v26 = vld [vmem:[%s4113_s17 + $0x844] ss:$16 sps:$4 sm:$0xff]  }
  0xa9   : > { %2436 = vmatprep.subr.bf16.mxu1 %v3480_v27  ;;  %v3562_v27 = vld [vmem:[%s4113_s17 + $0x4c] ss:$16 sps:$4 sm:$0xff]  }
  0xab   : > { %2396 = vmatpush1.bf16.msra.mxu0 %v3475_v28  ;;  %v3557_v28 = vld [vmem:[%s4113_s17 + $0x840] ss:$16 sps:$4 sm:$0xff]  }
  0xac   : > { %2437 = vmatpush1.bf16.msra.mxu1 %v3478_v29  ;;  %2397 = vmatprep.subr.bf16.mxu0 %v3483_v30  ;;  %v3560_v29 = vld [vmem:[%s4113_s17 + $0x48] ss:$16 sps:$4 sm:$0xff]   ;;  %v3565_v30 = vld [vmem:[%s4113_s17 + $0x864] ss:$16 sps:$4 sm:$0xff]  }
  0xad   : > { %2438 = vmatprep.subr.bf16.mxu1 %v3486_v31  ;;  %v3568_v31 = vld [vmem:[%s4113_s17 + $0x6c] ss:$16 sps:$4 sm:$0xff]  }
  0xaf   : > { %2398 = vmatpush1.bf16.msra.mxu0 %v3481_v34  ;;  %v3574_v34 = vld [vmem:[%s4113_s17 + $0x8c] ss:$16 sps:$4 sm:$0xff]  }
  0xb0   : > { %2439 = vmatpush1.bf16.msra.mxu1 %v3484_v35  ;;  %2399 = vmatprep.subr.bf16.mxu0 %v3489_v38  ;;  %v3569_v35 = vld [vmem:[%s4113_s17 + $0x880] ss:$16 sps:$4 sm:$0xff]   ;;  %v3572_v38 = vld [vmem:[%s4113_s17 + $0x88] ss:$16 sps:$4 sm:$0xff]  }
  0xb1   : > { %2440 = vmatprep.subr.bf16.mxu1 %v3492_v39  ;;  %v3577_v39 = vld [vmem:[%s4113_s17 + $0x8a4] ss:$16 sps:$4 sm:$0xff]  }
  0xb3   : > { %2400 = vmatpush1.bf16.msra.mxu0 %v3487_v40  ;;  %v3580_v40 = vld [vmem:[%s4113_s17 + $0xac] ss:$16 sps:$4 sm:$0xff]  }
  0xb4   : > { %2441 = vmatpush1.bf16.msra.mxu1 %v3490_v41  ;;  %2401 = vmatprep.subr.bf16.mxu0 %v3495_v42  ;;  %v3575_v41 = vld [vmem:[%s4113_s17 + $0x8a0] ss:$16 sps:$4 sm:$0xff]   ;;  %v3578_v42 = vld [vmem:[%s4113_s17 + $0xa8] ss:$16 sps:$4 sm:$0xff]  }
  0xb5   : > { %2442 = vmatprep.subr.bf16.mxu1 %v3498_v43  ;;  %v3583_v43 = vld [vmem:[%s4113_s17 + $0x8c4] ss:$16 sps:$4 sm:$0xff]  }
  0xb7   : > { %2402 = vmatpush1.bf16.msra.mxu0 %v3493_v44  ;;  %v3586_v44 = vld [vmem:[%s4113_s17 + $0xcc] ss:$16 sps:$4 sm:$0xff]  }
  0xb8   : > { %2443 = vmatpush1.bf16.msra.mxu1 %v3496_v45  ;;  %2403 = vmatprep.subr.bf16.mxu0 %v3501_v46  ;;  %v3581_v45 = vld [vmem:[%s4113_s17 + $0x8c0] ss:$16 sps:$4 sm:$0xff]   ;;  %v3584_v46 = vld [vmem:[%s4113_s17 + $0xc8] ss:$16 sps:$4 sm:$0xff]  }
  0xb9   : > { %2444 = vmatprep.subr.bf16.mxu1 %v3504_v48  ;;  %v3589_v48 = vld [vmem:[%s4113_s17 + $0x8e4] ss:$16 sps:$4 sm:$0xff]  }
  0xbb   : > { %2404 = vmatpush1.bf16.msra.mxu0 %v3499_v49  ;;  %v3592_v49 = vld [vmem:[%s4113_s17 + $0xec] ss:$16 sps:$4 sm:$0xff]  }
  0xbc   : > { %2445 = vmatpush1.bf16.msra.mxu1 %v3502_v50  ;;  %2405 = vmatprep.subr.bf16.mxu0 %v3507_v52  ;;  %v3587_v50 = vld [vmem:[%s4113_s17 + $0x8e0] ss:$16 sps:$4 sm:$0xff]   ;;  %v3590_v52 = vld [vmem:[%s4113_s17 + $0xe8] ss:$16 sps:$4 sm:$0xff]  }
  0xbd   : > { %2446 = vmatprep.subr.bf16.mxu1 %v3510_v53  ;;  %v3595_v53 = vld [vmem:[%s4113_s17 + $0x904] ss:$16 sps:$4 sm:$0xff]  }
  0xbf   : > { %2406 = vmatpush1.bf16.msra.mxu0 %v3505_v54  ;;  %v3598_v54 = vld [vmem:[%s4113_s17 + $0x10c] ss:$16 sps:$4 sm:$0xff]  }
  0xc0   : > { %2447 = vmatpush1.bf16.msra.mxu1 %v3508_v55  ;;  %2407 = vmatprep.subr.bf16.mxu0 %v3513_v56  ;;  %v3593_v55 = vld [vmem:[%s4113_s17 + $0x900] ss:$16 sps:$4 sm:$0xff]   ;;  %v3596_v56 = vld [vmem:[%s4113_s17 + $0x108] ss:$16 sps:$4 sm:$0xff]  }
  0xc1   : > { %2448 = vmatprep.subr.bf16.mxu1 %v3516_v57  ;;  %v3601_v57 = vld [vmem:[%s4113_s17 + $0x924] ss:$16 sps:$4 sm:$0xff]  }
  0xc3   : > { %2408 = vmatpush1.bf16.msra.mxu0 %v3511_v58  ;;  %v3604_v58 = vld [vmem:[%s4113_s17 + $0x12c] ss:$16 sps:$4 sm:$0xff]  }
  0xc4   : > { %2449 = vmatpush1.bf16.msra.mxu1 %v3514_v59  ;;  %2409 = vmatprep.subr.bf16.mxu0 %v3519_v60  ;;  %v3599_v59 = vld [vmem:[%s4113_s17 + $0x920] ss:$16 sps:$4 sm:$0xff]   ;;  %v3602_v60 = vld [vmem:[%s4113_s17 + $0x128] ss:$16 sps:$4 sm:$0xff]  }
  0xc5   : > { %2450 = vmatprep.subr.bf16.mxu1 %v3522_v61  ;;  %v3607_v61 = vld [vmem:[%s4113_s17 + $0x944] ss:$16 sps:$4 sm:$0xff]  }
  0xc7   : > { %2410 = vmatpush1.bf16.msra.mxu0 %v3517_v62  ;;  %v3610_v62 = vld [vmem:[%s4113_s17 + $0x14c] ss:$16 sps:$4 sm:$0xff]  }
  0xc8   : > { %2451 = vmatpush1.bf16.msra.mxu1 %v3520_v63  ;;  %2411 = vmatprep.subr.bf16.mxu0 %v3525_v0  ;;  %v3605_v63 = vld [vmem:[%s4113_s17 + $0x940] ss:$16 sps:$4 sm:$0xff]   ;;  %v3608_v0 = vld [vmem:[%s4113_s17 + $0x148] ss:$16 sps:$4 sm:$0xff]  }
  0xc9   : > { %2452 = vmatprep.subr.bf16.mxu1 %v3528_v1  ;;  %v3613_v1 = vld [vmem:[%s4113_s17 + $0x964] ss:$16 sps:$4 sm:$0xff]  }
  0xcb   : > { %2412 = vmatpush1.bf16.msra.mxu0 %v3523_v2  ;;  %v3616_v2 = vld [vmem:[%s4113_s17 + $0x16c] ss:$16 sps:$4 sm:$0xff]  }
  0xcc   : > { %2453 = vmatpush1.bf16.msra.mxu1 %v3526_v3  ;;  %2413 = vmatprep.subr.bf16.mxu0 %v3531_v4  ;;  %v3611_v3 = vld [vmem:[%s4113_s17 + $0x960] ss:$16 sps:$4 sm:$0xff]   ;;  %v3614_v4 = vld [vmem:[%s4113_s17 + $0x168] ss:$16 sps:$4 sm:$0xff]  }
  0xcd   : > { %2454 = vmatprep.subr.bf16.mxu1 %v3534_v5  ;;  %v3619_v5 = vld [vmem:[%s4113_s17 + $0x984] ss:$16 sps:$4 sm:$0xff]  }
  0xcf   : > { %2414 = vmatpush1.bf16.msra.mxu0 %v3529_v8  ;;  %v3622_v8 = vld [vmem:[%s4113_s17 + $0x18c] ss:$16 sps:$4 sm:$0xff]  }
  0xd0   : > { %2455 = vmatpush1.bf16.msra.mxu1 %v3532_v9  ;;  %2415 = vmatprep.subr.bf16.mxu0 %v3537_v10  ;;  %v3617_v9 = vld [vmem:[%s4113_s17 + $0x980] ss:$16 sps:$4 sm:$0xff]   ;;  %v3620_v10 = vld [vmem:[%s4113_s17 + $0x188] ss:$16 sps:$4 sm:$0xff]  }
  0xd1   : > { %2456 = vmatprep.subr.bf16.mxu1 %v3540_v11  ;;  %v3625_v11 = vld [vmem:[%s4113_s17 + $0x9a4] ss:$16 sps:$4 sm:$0xff]  }
  0xd3   : > { %2416 = vmatpush1.bf16.msra.mxu0 %v3535_v12  ;;  %v3628_v12 = vld [vmem:[%s4113_s17 + $0x1ac] ss:$16 sps:$4 sm:$0xff]  }
  0xd4   : > { %2457 = vmatpush1.bf16.msra.mxu1 %v3538_v13  ;;  %2467 = vmatprep.subr.bf16.mxu0 %v3547_v14  ;;  %v3623_v13 = vld [vmem:[%s4113_s17 + $0x9a0] ss:$16 sps:$4 sm:$0xff]   ;;  %v3626_v14 = vld [vmem:[%s4113_s17 + $0x1a8] ss:$16 sps:$4 sm:$0xff]  }
  0xd5   : > { %2508 = vmatprep.subr.bf16.mxu1 %v3550_v15  ;;  %v3631_v15 = vld [vmem:[%s4113_s17 + $0x9c4] ss:$16 sps:$4 sm:$0xff]  }
  0xd6   : > { %2418 = vmatmul.mubr.bf16.vlgmr.msra.gmra.mrb[4].mxu0 %v4295_v16 }
  0xd7   : > { %2459 = vmatmul.mubr.bf16.vlgmr.msra.gmra.mrb[4].mxu1 %v4299_v17  ;;  %2468 = vmatpush1.bf16.msra.mxu0 %v3545_v18  ;;  %v3634_v18 = vld [vmem:[%s4113_s17 + $0x1cc] ss:$16 sps:$4 sm:$0xff]  }
  0xd8   : > { %2509 = vmatpush1.bf16.msra.mxu1 %v3548_v19  ;;  %2469 = vmatprep.subr.bf16.mxu0 %v3553_v20  ;;  %v3629_v19 = vld [vmem:[%s4113_s17 + $0x9c0] ss:$16 sps:$4 sm:$0xff]   ;;  %v3632_v20 = vld [vmem:[%s4113_s17 + $0x1c8] ss:$16 sps:$4 sm:$0xff]  }
  0xd9   : > { %2510 = vmatprep.subr.bf16.mxu1 %v3556_v21  ;;  %2499 = vmatprep.mubr.bf16.mxu0 %v4312_v23  ;;  %v3637_v21 = vld [vmem:[%s4113_s17 + $0x9e4] ss:$16 sps:$4 sm:$0xff]  }
  0xda   : > { %2540 = vmatprep.mubr.bf16.mxu1 %v4174_v47  ;;  %v3571_v47 = vld [vmem:[%s4113_s17 + $0x884] ss:$16 sps:$4 sm:$0xff]  }
  0xdb   : > { %2470 = vmatpush1.bf16.msra.mxu0 %v3551_v24  ;;  %v3640_v24 = vld [vmem:[%s4113_s17 + $0x1ec] ss:$16 sps:$4 sm:$0xff]  }
  0xdc   : > { %2511 = vmatpush1.bf16.msra.mxu1 %v3554_v25  ;;  %2471 = vmatprep.subr.bf16.mxu0 %v3559_v26  ;;  %v3635_v25 = vld [vmem:[%s4113_s17 + $0x9e0] ss:$16 sps:$4 sm:$0xff]   ;;  %v3638_v26 = vld [vmem:[%s4113_s17 + $0x1e8] ss:$16 sps:$4 sm:$0xff]  }
  0xdd   : > { %2512 = vmatprep.subr.bf16.mxu1 %v3562_v27  ;;  %v3645_v27 = vld [vmem:[%s4113_s17 + $0x20c] ss:$16 sps:$4 sm:$0xff]  }
  0xdf   : > { %2472 = vmatpush1.bf16.msra.mxu0 %v3557_v28  ;;  %v3648_v28 = vld [vmem:[%s4113_s17 + $0x40c] ss:$16 sps:$4 sm:$0xff]  }
  0xe0   : > { %2513 = vmatpush1.bf16.msra.mxu1 %v3560_v29  ;;  %2473 = vmatprep.subr.bf16.mxu0 %v3565_v30  ;;  %v4380_v29 = vcombine.low %v4308_v22, %v4308_v22  ;;  %v3643_v30 = vld [vmem:[%s4113_s17 + $0x208] ss:$16 sps:$4 sm:$0xff]  }
  0xe1   : > { %2514 = vmatprep.subr.bf16.mxu1 %v3568_v31  ;;  %v3646_v31 = vld [vmem:[%s4113_s17 + $0x408] ss:$16 sps:$4 sm:$0xff]  }
  0xe2   : > { %v3652_v22 = vld [vmem:[%s4113_s17 + $0x428] ss:$16 sps:$4 sm:$0xff]  }
  0xe3   : > { %2474 = vmatpush1.bf16.msra.mxu0 %v3563_v32  ;;  %v3651_v32 = vld [vmem:[%s4113_s17 + $0x22c] ss:$16 sps:$4 sm:$0xff]  }
  0xe4   : > { %2515 = vmatpush1.bf16.msra.mxu1 %v3566_v33  ;;  %2475 = vmatprep.subr.bf16.mxu0 %v3571_v47  ;;  %v3654_v33 = vld [vmem:[%s4113_s17 + $0x42c] ss:$16 sps:$4 sm:$0xff]   ;;  %v3649_v47 = vld [vmem:[%s4113_s17 + $0x228] ss:$16 sps:$4 sm:$0xff]  }
  0xe5   : > { %2516 = vmatprep.subr.bf16.mxu1 %v3574_v34  ;;  %v3657_v34 = vld [vmem:[%s4113_s17 + $0x24c] ss:$16 sps:$4 sm:$0xff]  }
  0xe7   : > { %2476 = vmatpush1.bf16.msra.mxu0 %v3569_v35  ;;  %v3660_v35 = vld [vmem:[%s4113_s17 + $0x44c] ss:$16 sps:$4 sm:$0xff]  }
  0xe8   : > { %2517 = vmatpush1.bf16.msra.mxu1 %v3572_v38  ;;  %2477 = vmatprep.subr.bf16.mxu0 %v3577_v39  ;;  %v3655_v38 = vld [vmem:[%s4113_s17 + $0x248] ss:$16 sps:$4 sm:$0xff]   ;;  %v3663_v39 = vld [vmem:[%s4113_s17 + $0x26c] ss:$16 sps:$4 sm:$0xff]  }
  0xe9   : > { %2518 = vmatprep.subr.bf16.mxu1 %v3580_v40  ;;  %v3666_v40 = vld [vmem:[%s4113_s17 + $0x46c] ss:$16 sps:$4 sm:$0xff]  }
  0xeb   : > { %2478 = vmatpush1.bf16.msra.mxu0 %v3575_v41  ;;  %v3661_v41 = vld [vmem:[%s4113_s17 + $0x268] ss:$16 sps:$4 sm:$0xff]  }
  0xec   : > { %2519 = vmatpush1.bf16.msra.mxu1 %v3578_v42  ;;  %2479 = vmatprep.subr.bf16.mxu0 %v3583_v43  ;;  %v3672_v42 = vld [vmem:[%s4113_s17 + $0x48c] ss:$16 sps:$4 sm:$0xff]   ;;  %v3667_v43 = vld [vmem:[%s4113_s17 + $0x288] ss:$16 sps:$4 sm:$0xff]  }
  0xed   : > { %2520 = vmatprep.subr.bf16.mxu1 %v3586_v44  ;;  %v3670_v44 = vld [vmem:[%s4113_s17 + $0x488] ss:$16 sps:$4 sm:$0xff]  }
  0xef   : > { %2480 = vmatpush1.bf16.msra.mxu0 %v3581_v45  ;;  %v3675_v45 = vld [vmem:[%s4113_s17 + $0x2ac] ss:$16 sps:$4 sm:$0xff]  }
  0xf0   : > { %2521 = vmatpush1.bf16.msra.mxu1 %v3584_v46  ;;  %2481 = vmatprep.subr.bf16.mxu0 %v3589_v48  ;;  %v3678_v46 = vld [vmem:[%s4113_s17 + $0x4ac] ss:$16 sps:$4 sm:$0xff]   ;;  %v3673_v48 = vld [vmem:[%s4113_s17 + $0x2a8] ss:$16 sps:$4 sm:$0xff]  }
  0xf1   : > { %2522 = vmatprep.subr.bf16.mxu1 %v3592_v49  ;;  %v3676_v49 = vld [vmem:[%s4113_s17 + $0x4a8] ss:$16 sps:$4 sm:$0xff]  }
  0xf3   : > { %2482 = vmatpush1.bf16.msra.mxu0 %v3587_v50  ;;  %v3681_v50 = vld [vmem:[%s4113_s17 + $0x2cc] ss:$16 sps:$4 sm:$0xff]  }
  0xf4   : > { %2523 = vmatpush1.bf16.msra.mxu1 %v3590_v52  ;;  %2483 = vmatprep.subr.bf16.mxu0 %v3595_v53  ;;  %v3684_v52 = vld [vmem:[%s4113_s17 + $0x4cc] ss:$16 sps:$4 sm:$0xff]   ;;  %v3679_v53 = vld [vmem:[%s4113_s17 + $0x2c8] ss:$16 sps:$4 sm:$0xff]  }
  0xf5   : > { %2524 = vmatprep.subr.bf16.mxu1 %v3598_v54  ;;  %v3682_v54 = vld [vmem:[%s4113_s17 + $0x4c8] ss:$16 sps:$4 sm:$0xff]  }
  0xf7   : > { %2484 = vmatpush1.bf16.msra.mxu0 %v3593_v55  ;;  %v3687_v55 = vld [vmem:[%s4113_s17 + $0x2ec] ss:$16 sps:$4 sm:$0xff]  }
  0xf8   : > { %2525 = vmatpush1.bf16.msra.mxu1 %v3596_v56  ;;  %2485 = vmatprep.subr.bf16.mxu0 %v3601_v57  ;;  %v3690_v56 = vld [vmem:[%s4113_s17 + $0x4ec] ss:$16 sps:$4 sm:$0xff]   ;;  %v3685_v57 = vld [vmem:[%s4113_s17 + $0x2e8] ss:$16 sps:$4 sm:$0xff]  }
  0xf9   : > { %2526 = vmatprep.subr.bf16.mxu1 %v3604_v58  ;;  %v3688_v58 = vld [vmem:[%s4113_s17 + $0x4e8] ss:$16 sps:$4 sm:$0xff]  }
  0xfb   : > { %2486 = vmatpush1.bf16.msra.mxu0 %v3599_v59  ;;  %v3693_v59 = vld [vmem:[%s4113_s17 + $0x30c] ss:$16 sps:$4 sm:$0xff]  }
  0xfc   : > { %2527 = vmatpush1.bf16.msra.mxu1 %v3602_v60  ;;  %2487 = vmatprep.subr.bf16.mxu0 %v3607_v61  ;;  %v3696_v60 = vld [vmem:[%s4113_s17 + $0x50c] ss:$16 sps:$4 sm:$0xff]   ;;  %v3691_v61 = vld [vmem:[%s4113_s17 + $0x308] ss:$16 sps:$4 sm:$0xff]  }
  0xfd   : > { %2528 = vmatprep.subr.bf16.mxu1 %v3610_v62  ;;  %v3694_v62 = vld [vmem:[%s4113_s17 + $0x508] ss:$16 sps:$4 sm:$0xff]  }
  0xff   : > { %2488 = vmatpush1.bf16.msra.mxu0 %v3605_v63  ;;  %v3699_v63 = vld [vmem:[%s4113_s17 + $0x32c] ss:$16 sps:$4 sm:$0xff]  }
 0x100   : > { %2529 = vmatpush1.bf16.msra.mxu1 %v3608_v0  ;;  %2489 = vmatprep.subr.bf16.mxu0 %v3613_v1  ;;  %v3702_v0 = vld [vmem:[%s4113_s17 + $0x52c] ss:$16 sps:$4 sm:$0xff]   ;;  %v3697_v1 = vld [vmem:[%s4113_s17 + $0x328] ss:$16 sps:$4 sm:$0xff]  }
 0x101   : > { %2530 = vmatprep.subr.bf16.mxu1 %v3616_v2  ;;  %v3700_v2 = vld [vmem:[%s4113_s17 + $0x528] ss:$16 sps:$4 sm:$0xff]  }
 0x103   : > { %2490 = vmatpush1.bf16.msra.mxu0 %v3611_v3  ;;  %v3705_v3 = vld [vmem:[%s4113_s17 + $0x34c] ss:$16 sps:$4 sm:$0xff]  }
 0x104   : > { %2531 = vmatpush1.bf16.msra.mxu1 %v3614_v4  ;;  %2491 = vmatprep.subr.bf16.mxu0 %v3619_v5  ;;  %v3708_v4 = vld [vmem:[%s4113_s17 + $0x54c] ss:$16 sps:$4 sm:$0xff]   ;;  %v3703_v5 = vld [vmem:[%s4113_s17 + $0x348] ss:$16 sps:$4 sm:$0xff]  }
 0x105   : > { %2532 = vmatprep.subr.bf16.mxu1 %v3622_v8  ;;  %v3706_v8 = vld [vmem:[%s4113_s17 + $0x548] ss:$16 sps:$4 sm:$0xff]  }
 0x107   : > { %2492 = vmatpush1.bf16.msra.mxu0 %v3617_v9  ;;  %v3711_v9 = vld [vmem:[%s4113_s17 + $0x36c] ss:$16 sps:$4 sm:$0xff]  }
 0x108   : > { %2533 = vmatpush1.bf16.msra.mxu1 %v3620_v10  ;;  %2493 = vmatprep.subr.bf16.mxu0 %v3625_v11  ;;  %v3714_v10 = vld [vmem:[%s4113_s17 + $0x56c] ss:$16 sps:$4 sm:$0xff]   ;;  %v3709_v11 = vld [vmem:[%s4113_s17 + $0x368] ss:$16 sps:$4 sm:$0xff]  }
 0x109   : > { %2534 = vmatprep.subr.bf16.mxu1 %v3628_v12  ;;  %v3712_v12 = vld [vmem:[%s4113_s17 + $0x568] ss:$16 sps:$4 sm:$0xff]  }
 0x10b   : > { %2494 = vmatpush1.bf16.msra.mxu0 %v3623_v13  ;;  %v3717_v13 = vld [vmem:[%s4113_s17 + $0x38c] ss:$16 sps:$4 sm:$0xff]  }
 0x10c   : > { %2535 = vmatpush1.bf16.msra.mxu1 %v3626_v14  ;;  %2495 = vmatprep.subr.bf16.mxu0 %v3631_v15  ;;  %v3720_v14 = vld [vmem:[%s4113_s17 + $0x58c] ss:$16 sps:$4 sm:$0xff]   ;;  %v3715_v15 = vld [vmem:[%s4113_s17 + $0x388] ss:$16 sps:$4 sm:$0xff]  }
 0x10d   : > { %2536 = vmatprep.subr.bf16.mxu1 %v3634_v18  ;;  %v3718_v18 = vld [vmem:[%s4113_s17 + $0x588] ss:$16 sps:$4 sm:$0xff]  }
 0x10f   : > { %2496 = vmatpush1.bf16.msra.mxu0 %v3629_v19  ;;  %v3723_v19 = vld [vmem:[%s4113_s17 + $0x3ac] ss:$16 sps:$4 sm:$0xff]  }
 0x110   : > { %2537 = vmatpush1.bf16.msra.mxu1 %v3632_v20  ;;  %2497 = vmatprep.subr.bf16.mxu0 %v3637_v21  ;;  %v3726_v20 = vld [vmem:[%s4113_s17 + $0x5ac] ss:$16 sps:$4 sm:$0xff]   ;;  %v3721_v21 = vld [vmem:[%s4113_s17 + $0x3a8] ss:$16 sps:$4 sm:$0xff]  }
 0x111   : > { %2538 = vmatprep.subr.bf16.mxu1 %v3640_v24  ;;  %v3724_v24 = vld [vmem:[%s4113_s17 + $0x5a8] ss:$16 sps:$4 sm:$0xff]  }
 0x113   : > { %2498 = vmatpush1.bf16.msra.mxu0 %v3635_v25  ;;  %v3729_v25 = vld [vmem:[%s4113_s17 + $0x3cc] ss:$16 sps:$4 sm:$0xff]  }
 0x114   : > { %2539 = vmatpush1.bf16.msra.mxu1 %v3638_v26  ;;  %2549 = vmatprep.subr.bf16.mxu0 %v3645_v27  ;;  %v3732_v26 = vld [vmem:[%s4113_s17 + $0x5cc] ss:$16 sps:$4 sm:$0xff]   ;;  %v3727_v27 = vld [vmem:[%s4113_s17 + $0x3c8] ss:$16 sps:$4 sm:$0xff]  }
 0x115   : > { %2590 = vmatprep.subr.bf16.mxu1 %v3648_v28  ;;  %v3730_v28 = vld [vmem:[%s4113_s17 + $0x5c8] ss:$16 sps:$4 sm:$0xff]  }
 0x116   : > { %2500 = vmatmul.mubr.bf16.vlgmr.msra.gmra.mrb[8].mxu0 %v4380_v29 }
 0x117   : > { %2541 = vmatmul.mubr.bf16.vlgmr.msra.gmra.mrb[8].mxu1 %v4203_v6  ;;  %2550 = vmatpush1.bf16.msra.mxu0 %v3643_v30  ;;  %v3658_v6 = vld [vmem:[%s4113_s17 + $0x448] ss:$16 sps:$4 sm:$0xff]   ;;  %v3735_v30 = vld [vmem:[%s4113_s17 + $0x3ec] ss:$16 sps:$4 sm:$0xff]  }
 0x118   : > { %2591 = vmatpush1.bf16.msra.mxu1 %v3646_v31  ;;  %2551 = vmatprep.subr.bf16.mxu0 %v3651_v32  ;;  %v3738_v31 = vld [vmem:[%s4113_s17 + $0x5ec] ss:$16 sps:$4 sm:$0xff]   ;;  %v3733_v32 = vld [vmem:[%s4113_s17 + $0x3e8] ss:$16 sps:$4 sm:$0xff]  }
 0x119   : > { %2592 = vmatprep.subr.bf16.mxu1 %v3654_v33  ;;  %2581 = vmatprep.mubr.bf16.mxu0 %v4181_v51  ;;  %v3664_v51 = vld [vmem:[%s4113_s17 + $0x468] ss:$16 sps:$4 sm:$0xff]  }
 0x11a   : > { %2622 = vmatprep.mubr.bf16.mxu1 %v4247_v36  ;;  %v3669_v36 = vld [vmem:[%s4113_s17 + $0x28c] ss:$16 sps:$4 sm:$0xff]   ;;  %v3736_v33 = vld [vmem:[%s4113_s17 + $0x5e8] ss:$16 sps:$4 sm:$0xff]  }
 0x11b   : > { %2552 = vmatpush1.bf16.msra.mxu0 %v3649_v47  ;;  %v3741_v47 = vld [vmem:[%s4113_s17 + $0x60c] ss:$16 sps:$4 sm:$0xff]  }
 0x11c   : > { %2593 = vmatpush1.bf16.msra.mxu1 %v3652_v22  ;;  %2553 = vmatprep.subr.bf16.mxu0 %v3657_v34  ;;  %v3744_v22 = vld [vmem:[%s4113_s17 + $0x80c] ss:$16 sps:$4 sm:$0xff]   ;;  %v3739_v34 = vld [vmem:[%s4113_s17 + $0x608] ss:$16 sps:$4 sm:$0xff]  }
 0x11d   : > { %2594 = vmatprep.subr.bf16.mxu1 %v3660_v35  ;;  %v3742_v35 = vld [vmem:[%s4113_s17 + $0x808] ss:$16 sps:$4 sm:$0xff]  }
 0x11f   : > { %2554 = vmatpush1.bf16.msra.mxu0 %v3655_v38  ;;  %v3747_v38 = vld [vmem:[%s4113_s17 + $0x62c] ss:$16 sps:$4 sm:$0xff]  }
 0x120   : > { %2595 = vmatpush1.bf16.msra.mxu1 %v3658_v6  ;;  %2555 = vmatprep.subr.bf16.mxu0 %v3663_v39  ;;  %v3750_v6 = vld [vmem:[%s4113_s17 + $0x82c] ss:$16 sps:$4 sm:$0xff]   ;;  %v3745_v39 = vld [vmem:[%s4113_s17 + $0x628] ss:$16 sps:$4 sm:$0xff]  }
 0x121   : > { %2596 = vmatprep.subr.bf16.mxu1 %v3666_v40  ;;  %v3748_v40 = vld [vmem:[%s4113_s17 + $0x828] ss:$16 sps:$4 sm:$0xff]  }
 0x123   : > { %2556 = vmatpush1.bf16.msra.mxu0 %v3661_v41  ;;  %v3753_v41 = vld [vmem:[%s4113_s17 + $0x64c] ss:$16 sps:$4 sm:$0xff]  }
 0x124   : > { %2597 = vmatpush1.bf16.msra.mxu1 %v3664_v51  ;;  %2557 = vmatprep.subr.bf16.mxu0 %v3669_v36  ;;  %v3756_v51 = vld [vmem:[%s4113_s17 + $0x84c] ss:$16 sps:$4 sm:$0xff]  }
 0x125   : > { %2598 = vmatprep.subr.bf16.mxu1 %v3672_v42  ;;  %v3759_v36 = vld [vmem:[%s4113_s17 + $0x66c] ss:$16 sps:$4 sm:$0xff]  }
 0x126   : > { %v3762_v42 = vld [vmem:[%s4113_s17 + $0x86c] ss:$16 sps:$4 sm:$0xff]  }
 0x127   : > { %2558 = vmatpush1.bf16.msra.mxu0 %v3667_v43  ;;  %v3757_v43 = vld [vmem:[%s4113_s17 + $0x668] ss:$16 sps:$4 sm:$0xff]  }
 0x128   : > { %2599 = vmatpush1.bf16.msra.mxu1 %v3670_v44  ;;  %2559 = vmatprep.subr.bf16.mxu0 %v3675_v45  ;;  %v3768_v44 = vld [vmem:[%s4113_s17 + $0x88c] ss:$16 sps:$4 sm:$0xff]   ;;  %v3763_v45 = vld [vmem:[%s4113_s17 + $0x688] ss:$16 sps:$4 sm:$0xff]  }
 0x129   : > { %2600 = vmatprep.subr.bf16.mxu1 %v3678_v46  ;;  %v3766_v46 = vld [vmem:[%s4113_s17 + $0x888] ss:$16 sps:$4 sm:$0xff]  }
 0x12b   : > { %2560 = vmatpush1.bf16.msra.mxu0 %v3673_v48  ;;  %v3771_v48 = vld [vmem:[%s4113_s17 + $0x6ac] ss:$16 sps:$4 sm:$0xff]  }
 0x12c   : > { %2601 = vmatpush1.bf16.msra.mxu1 %v3676_v49  ;;  %2561 = vmatprep.subr.bf16.mxu0 %v3681_v50  ;;  %v3774_v49 = vld [vmem:[%s4113_s17 + $0x8ac] ss:$16 sps:$4 sm:$0xff]   ;;  %v3769_v50 = vld [vmem:[%s4113_s17 + $0x6a8] ss:$16 sps:$4 sm:$0xff]  }
 0x12d   : > { %2602 = vmatprep.subr.bf16.mxu1 %v3684_v52  ;;  %v3772_v52 = vld [vmem:[%s4113_s17 + $0x8a8] ss:$16 sps:$4 sm:$0xff]  }
 0x12f   : > { %2562 = vmatpush1.bf16.msra.mxu0 %v3679_v53  ;;  %v3777_v53 = vld [vmem:[%s4113_s17 + $0x6cc] ss:$16 sps:$4 sm:$0xff]  }
 0x130   : > { %2603 = vmatpush1.bf16.msra.mxu1 %v3682_v54  ;;  %2563 = vmatprep.subr.bf16.mxu0 %v3687_v55  ;;  %v3780_v54 = vld [vmem:[%s4113_s17 + $0x8cc] ss:$16 sps:$4 sm:$0xff]  }
 0x131   : > { %2604 = vmatprep.subr.bf16.mxu1 %v3690_v56 }
 0x133   : > { %2564 = vmatpush1.bf16.msra.mxu0 %v3685_v57 }
 0x134   : > { %2605 = vmatpush1.bf16.msra.mxu1 %v3688_v58  ;;  %2565 = vmatprep.subr.bf16.mxu0 %v3693_v59 }
 0x135   : > { %2606 = vmatprep.subr.bf16.mxu1 %v3696_v60 }
 0x137   : > { %2566 = vmatpush1.bf16.msra.mxu0 %v3691_v61 }
 0x138   : > { %2607 = vmatpush1.bf16.msra.mxu1 %v3694_v62  ;;  %2567 = vmatprep.subr.bf16.mxu0 %v3699_v63  ;;  %v3775_v63 = vld [vmem:[%s4113_s17 + $0x6c8] ss:$16 sps:$4 sm:$0xff]  }
 0x139   : > { %2608 = vmatprep.subr.bf16.mxu1 %v3702_v0  ;;  %v3778_v0 = vld [vmem:[%s4113_s17 + $0x8c8] ss:$16 sps:$4 sm:$0xff]  }
 0x13b   : > { %2568 = vmatpush1.bf16.msra.mxu0 %v3697_v1 }
 0x13c   : > { %2609 = vmatpush1.bf16.msra.mxu1 %v3700_v2  ;;  %2569 = vmatprep.subr.bf16.mxu0 %v3705_v3  ;;  %v3783_v3 = vld [vmem:[%s4113_s17 + $0x6ec] ss:$16 sps:$4 sm:$0xff]  }
 0x13d   : > { %2610 = vmatprep.subr.bf16.mxu1 %v3708_v4  ;;  %v3786_v4 = vld [vmem:[%s4113_s17 + $0x8ec] ss:$16 sps:$4 sm:$0xff]  }
 0x13f   : > { %2570 = vmatpush1.bf16.msra.mxu0 %v3703_v5  ;;  %v3781_v5 = vld [vmem:[%s4113_s17 + $0x6e8] ss:$16 sps:$4 sm:$0xff]  }
 0x140   : > { %2611 = vmatpush1.bf16.msra.mxu1 %v3706_v8  ;;  %2571 = vmatprep.subr.bf16.mxu0 %v3711_v9  ;;  %v3784_v8 = vld [vmem:[%s4113_s17 + $0x8e8] ss:$16 sps:$4 sm:$0xff]   ;;  %v3789_v9 = vld [vmem:[%s4113_s17 + $0x70c] ss:$16 sps:$4 sm:$0xff]  }
 0x141   : > { %2612 = vmatprep.subr.bf16.mxu1 %v3714_v10  ;;  %v3792_v10 = vld [vmem:[%s4113_s17 + $0x90c] ss:$16 sps:$4 sm:$0xff]  }
 0x143   : > { %2572 = vmatpush1.bf16.msra.mxu0 %v3709_v11  ;;  %v3787_v11 = vld [vmem:[%s4113_s17 + $0x708] ss:$16 sps:$4 sm:$0xff]  }
 0x144   : > { %2613 = vmatpush1.bf16.msra.mxu1 %v3712_v12  ;;  %2573 = vmatprep.subr.bf16.mxu0 %v3717_v13  ;;  %v3790_v12 = vld [vmem:[%s4113_s17 + $0x908] ss:$16 sps:$4 sm:$0xff]   ;;  %v3795_v13 = vld [vmem:[%s4113_s17 + $0x72c] ss:$16 sps:$4 sm:$0xff]  }
 0x145   : > { %2614 = vmatprep.subr.bf16.mxu1 %v3720_v14  ;;  %v3798_v14 = vld [vmem:[%s4113_s17 + $0x92c] ss:$16 sps:$4 sm:$0xff]  }
 0x147   : > { %2574 = vmatpush1.bf16.msra.mxu0 %v3715_v15  ;;  %v3793_v15 = vld [vmem:[%s4113_s17 + $0x728] ss:$16 sps:$4 sm:$0xff]  }
 0x148   : > { %2615 = vmatpush1.bf16.msra.mxu1 %v3718_v18  ;;  %2575 = vmatprep.subr.bf16.mxu0 %v3723_v19  ;;  %v3796_v18 = vld [vmem:[%s4113_s17 + $0x928] ss:$16 sps:$4 sm:$0xff]   ;;  %v3801_v19 = vld [vmem:[%s4113_s17 + $0x74c] ss:$16 sps:$4 sm:$0xff]  }
 0x149   : > { %2616 = vmatprep.subr.bf16.mxu1 %v3726_v20  ;;  %v3804_v20 = vld [vmem:[%s4113_s17 + $0x94c] ss:$16 sps:$4 sm:$0xff]  }
 0x14b   : > { %2576 = vmatpush1.bf16.msra.mxu0 %v3721_v21  ;;  %v3799_v21 = vld [vmem:[%s4113_s17 + $0x748] ss:$16 sps:$4 sm:$0xff]  }
 0x14c   : > { %2617 = vmatpush1.bf16.msra.mxu1 %v3724_v24  ;;  %2577 = vmatprep.subr.bf16.mxu0 %v3729_v25  ;;  %v3802_v24 = vld [vmem:[%s4113_s17 + $0x948] ss:$16 sps:$4 sm:$0xff]   ;;  %v3807_v25 = vld [vmem:[%s4113_s17 + $0x76c] ss:$16 sps:$4 sm:$0xff]  }
 0x14d   : > { %2618 = vmatprep.subr.bf16.mxu1 %v3732_v26  ;;  %v3810_v26 = vld [vmem:[%s4113_s17 + $0x96c] ss:$16 sps:$4 sm:$0xff]  }
 0x14f   : > { %2578 = vmatpush1.bf16.msra.mxu0 %v3727_v27  ;;  %v3805_v27 = vld [vmem:[%s4113_s17 + $0x768] ss:$16 sps:$4 sm:$0xff]  }
 0x150   : > { %2619 = vmatpush1.bf16.msra.mxu1 %v3730_v28  ;;  %2579 = vmatprep.subr.bf16.mxu0 %v3735_v30  ;;  %v3808_v28 = vld [vmem:[%s4113_s17 + $0x968] ss:$16 sps:$4 sm:$0xff]   ;;  %v3813_v30 = vld [vmem:[%s4113_s17 + $0x78c] ss:$16 sps:$4 sm:$0xff]  }
 0x151   : > { %2620 = vmatprep.subr.bf16.mxu1 %v3738_v31  ;;  %v3816_v31 = vld [vmem:[%s4113_s17 + $0x98c] ss:$16 sps:$4 sm:$0xff]  }
 0x153   : > { %2580 = vmatpush1.bf16.msra.mxu0 %v3733_v32  ;;  %v3811_v32 = vld [vmem:[%s4113_s17 + $0x788] ss:$16 sps:$4 sm:$0xff]  }
 0x154   : > { %2621 = vmatpush1.bf16.msra.mxu1 %v3736_v33  ;;  %2631 = vmatprep.subr.bf16.mxu0 %v3741_v47  ;;  %v3814_v33 = vld [vmem:[%s4113_s17 + $0x988] ss:$16 sps:$4 sm:$0xff]   ;;  %v3819_v47 = vld [vmem:[%s4113_s17 + $0x7ac] ss:$16 sps:$4 sm:$0xff]  }
 0x155   : > { %2672 = vmatprep.subr.bf16.mxu1 %v3744_v22  ;;  %v3822_v22 = vld [vmem:[%s4113_s17 + $0x9ac] ss:$16 sps:$4 sm:$0xff]  }
 0x156   : > { %2582 = vmatmul.mubr.bf16.vlgmr.msra.gmra.mrb[12].mxu0 %v4205_v7  ;;  %v3751_v7 = vld [vmem:[%s4113_s17 + $0x648] ss:$16 sps:$4 sm:$0xff]  }
 0x157   : > { %2623 = vmatmul.mubr.bf16.vlgmr.msra.gmra.mrb[12].mxu1 %v4295_v16  ;;  %2632 = vmatpush1.bf16.msra.mxu0 %v3739_v34  ;;  %v3754_v16 = vld [vmem:[%s4113_s17 + $0x848] ss:$16 sps:$4 sm:$0xff]  }
 0x158   : > { %2673 = vmatpush1.bf16.msra.mxu1 %v3742_v35  ;;  %2633 = vmatprep.subr.bf16.mxu0 %v3747_v38  ;;  %v3817_v34 = vld [vmem:[%s4113_s17 + $0x7a8] ss:$16 sps:$4 sm:$0xff]   ;;  %v3825_v38 = vld [vmem:[%s4113_s17 + $0x7cc] ss:$16 sps:$4 sm:$0xff]  }
 0x159   : > { %2674 = vmatprep.subr.bf16.mxu1 %v3750_v6  ;;  %2663 = vmatprep.mubr.bf16.mxu0 %v4251_v37  ;;  %v3760_v37 = vld [vmem:[%s4113_s17 + $0x868] ss:$16 sps:$4 sm:$0xff]   ;;  %v3828_v6 = vld [vmem:[%s4113_s17 + $0x9cc] ss:$16 sps:$4 sm:$0xff]  }
 0x15a   : > { %2704 = vmatprep.mubr.bf16.mxu1 %v4312_v23  ;;  %v3765_v23 = vld [vmem:[%s4113_s17 + $0x68c] ss:$16 sps:$4 sm:$0xff]   ;;  %v3820_v35 = vld [vmem:[%s4113_s17 + $0x9a8] ss:$16 sps:$4 sm:$0xff]  }
 0x15b   : > { %2634 = vmatpush1.bf16.msra.mxu0 %v3745_v39  ;;  %v3823_v39 = vld [vmem:[%s4113_s17 + $0x7c8] ss:$16 sps:$4 sm:$0xff]  }
 0x15c   : > { %2675 = vmatpush1.bf16.msra.mxu1 %v3748_v40  ;;  %2635 = vmatprep.subr.bf16.mxu0 %v3753_v41  ;;  %v3826_v40 = vld [vmem:[%s4113_s17 + $0x9c8] ss:$16 sps:$4 sm:$0xff]   ;;  %v3831_v41 = vld [vmem:[%s4113_s17 + $0x7ec] ss:$16 sps:$4 sm:$0xff]  }
 0x15d   : > { %2676 = vmatprep.subr.bf16.mxu1 %v3756_v51  ;;  %v3834_v51 = vld [vmem:[%s4113_s17 + $0x9ec] ss:$16 sps:$4 sm:$0xff]  }
 0x15f   : > { %2636 = vmatpush1.bf16.msra.mxu0 %v3751_v7  ;;  %v3829_v7 = vld [vmem:[%s4113_s17 + $0x7e8] ss:$16 sps:$4 sm:$0xff]  }
 0x160   : > { %2677 = vmatpush1.bf16.msra.mxu1 %v3754_v16  ;;  %2637 = vmatprep.subr.bf16.mxu0 %v3759_v36  ;;  %v3832_v16 = vld [vmem:[%s4113_s17 + $0x9e8] ss:$16 sps:$4 sm:$0xff]  }
 0x161   : > { %2678 = vmatprep.subr.bf16.mxu1 %v3762_v42 }
 0x163   : > { %2638 = vmatpush1.bf16.msra.mxu0 %v3757_v43 }
 0x164   : > { %2679 = vmatpush1.bf16.msra.mxu1 %v3760_v37  ;;  %2639 = vmatprep.subr.bf16.mxu0 %v3765_v23 }
 0x165   : > { %2680 = vmatprep.subr.bf16.mxu1 %v3768_v44 }
 0x167   : > { %2640 = vmatpush1.bf16.msra.mxu0 %v3763_v45 }
 0x168   : > { %2681 = vmatpush1.bf16.msra.mxu1 %v3766_v46  ;;  %2641 = vmatprep.subr.bf16.mxu0 %v3771_v48 }
 0x169   : > { %2682 = vmatprep.subr.bf16.mxu1 %v3774_v49  ;;  %v2337_v55 = vpop.f32.mrb[0].mxu0 }
 0x16a   : > { %v2378_v56 = vpop.f32.mrb[0].mxu1  ;;  %v2339_v58 = vpop.f32.mrb[1].mxu0 }
 0x16b   : > { %v4478_v57 = vadd.f32 %v2378_v56, %v2337_v55  ;;  %v2380_v59 = vpop.f32.mrb[1].mxu1  ;;  %v2341_v61 = vpop.f32.mrb[2].mxu0  ;;  %2642 = vmatpush1.bf16.msra.mxu0 %v3769_v50 }
 0x16c   : > { %v4480_v60 = vadd.f32 %v2380_v59, %v2339_v58  ;;  %v2382_v62 = vpop.f32.mrb[2].mxu1  ;;  %2683 = vmatpush1.bf16.msra.mxu1 %v3772_v52  ;;  %v2342_v1 = vpop.f32.mrb[3].mxu0  ;;  %2643 = vmatprep.subr.bf16.mxu0 %v3777_v53  ;;  %v2730_v53 = vlaneseq }
 0x16d   : > { %v2383_v2 = vpop.f32.mrb[3].mxu1  ;;  %2684 = vmatprep.subr.bf16.mxu1 %v3780_v54  ;;  %v2728_v54 = vld [vmem:[%s4119_s11] sm:$0xf] }
 0x16f   : > { %2644 = vmatpush1.bf16.msra.mxu0 %v3775_v63  ;;  %v2759_v63 = vstv %s2754_s5 }
 0x170   : > { %2685 = vmatpush1.bf16.msra.mxu1 %v3778_v0  ;;  %2645 = vmatprep.subr.bf16.mxu0 %v3783_v3 }
 0x171   : > { %2686 = vmatprep.subr.bf16.mxu1 %v3786_v4 }
 0x173   : > { %2646 = vmatpush1.bf16.msra.mxu0 %v3781_v5 }
 0x174   : > { %2687 = vmatpush1.bf16.msra.mxu1 %v3784_v8  ;;  %2647 = vmatprep.subr.bf16.mxu0 %v3789_v9 }
 0x175   : > { %2688 = vmatprep.subr.bf16.mxu1 %v3792_v10 }
 0x177   : > { %2648 = vmatpush1.bf16.msra.mxu0 %v3787_v11 }
 0x178   : > { %2689 = vmatpush1.bf16.msra.mxu1 %v3790_v12  ;;  %2649 = vmatprep.subr.bf16.mxu0 %v3795_v13 }
 0x179   : > { %2690 = vmatprep.subr.bf16.mxu1 %v3798_v14 }
 0x17b   : > { %2650 = vmatpush1.bf16.msra.mxu0 %v3793_v15 }
 0x17c   : > { %2691 = vmatpush1.bf16.msra.mxu1 %v3796_v18  ;;  %2651 = vmatprep.subr.bf16.mxu0 %v3801_v19 }
 0x17d   : > { %2692 = vmatprep.subr.bf16.mxu1 %v3804_v20 }
 0x17f   : > { %2652 = vmatpush1.bf16.msra.mxu0 %v3799_v21 }
 0x180   : > { %2693 = vmatpush1.bf16.msra.mxu1 %v3802_v24  ;;  %2653 = vmatprep.subr.bf16.mxu0 %v3807_v25 }
 0x181   : > { %2694 = vmatprep.subr.bf16.mxu1 %v3810_v26 }
 0x183   : > { %2654 = vmatpush1.bf16.msra.mxu0 %v3805_v27 }
 0x184   : > { %2695 = vmatpush1.bf16.msra.mxu1 %v3808_v28  ;;  %2655 = vmatprep.subr.bf16.mxu0 %v3813_v30 }
 0x185   : > { %2696 = vmatprep.subr.bf16.mxu1 %v3816_v31 }
 0x187   : > { %2656 = vmatpush1.bf16.msra.mxu0 %v3811_v32 }
 0x188   : > { %2697 = vmatpush1.bf16.msra.mxu1 %v3814_v33  ;;  %2657 = vmatprep.subr.bf16.mxu0 %v3819_v47 }
 0x189   : > { %2698 = vmatprep.subr.bf16.mxu1 %v3822_v22 }
 0x18b   : > { %2658 = vmatpush1.bf16.msra.mxu0 %v3817_v34 }
 0x18c   : > { %2699 = vmatpush1.bf16.msra.mxu1 %v3820_v35  ;;  %2659 = vmatprep.subr.bf16.mxu0 %v3825_v38 }
 0x18d   : > { %2700 = vmatprep.subr.bf16.mxu1 %v3828_v6 }
 0x18f   : > { %2660 = vmatpush1.bf16.msra.mxu0 %v3823_v39 }
 0x190   : > { %2701 = vmatpush1.bf16.msra.mxu1 %v3826_v40  ;;  %2661 = vmatprep.subr.bf16.mxu0 %v3831_v41 }
 0x191   : > { %2702 = vmatprep.subr.bf16.mxu1 %v3834_v51 }
 0x193   : > { %2662 = vmatpush1.bf16.msra.mxu0 %v3829_v7 }
 0x194   : > { %2703 = vmatpush1.bf16.msra.mxu1 %v3832_v16 }
 0x196   : > { %2664 = vmatmul.mubr.bf16.vlgmr.msra.gmra.mrb[16].mxu0 %v4299_v17  ;;  %v2731_v17 = vshrl.u32 %v2730_v53, 7 }
 0x197   : > { %2705 = vmatmul.mubr.bf16.vlgmr.msra.gmra.mrb[16].mxu1 %v4380_v29 }
 0x198   : > { %v2732_v29 = vsub.s32 0, %v2731_v17  ;;  %v2736_v55 = vsub.s32 1, %v2731_v17  ;;  %v2740_v31 = vsub.s32 2, %v2731_v17  ;;  %v2744_v32 = vsub.s32 3, %v2731_v17 }
 0x19a   : > { %v2733_v56 = vrot.slane %v2728_v54, %v2732_v29  ;;  %v2737_v59 = vrot.slane %v2728_v54, %v2736_v55  ;;  %v2741_v34 = vrot.slane %v2728_v54, %v2740_v31  ;;  %v2745_v39 = vrot.slane %v2728_v54, %v2744_v32 }
 0x1a9   : > { %v2419_v36 = vpop.f32.mrb[4].mxu0 }
 0x1aa   : > { %v2460_v42 = vpop.f32.mrb[4].mxu1  ;;  %v2420_v43 = vadd.f32 %v2419_v36, %v4478_v57  ;;  %v2421_v37 = vpop.f32.mrb[5].mxu0 }
 0x1ab   : > { %v2462_v23 = vpop.f32.mrb[5].mxu1  ;;  %v2422_v44 = vadd.f32 %v2421_v37, %v4480_v60  ;;  %v2423_v45 = vpop.f32.mrb[6].mxu0 }
 0x1ac   : > { %v2464_v46 = vpop.f32.mrb[6].mxu1  ;;  %v2461_v48 = vadd.f32 %v2460_v42, %v2420_v43  ;;  %v2424_v49 = vpop.f32.mrb[7].mxu0 }
 0x1ad   : > { %v2465_v50 = vpop.f32.mrb[7].mxu1  ;;  %v2463_v52 = vadd.f32 %v2462_v23, %v2422_v44 }
 0x1e9   : > { %v2501_v57 = vpop.f32.mrb[8].mxu0 }
 0x1ea   : > { %v2542_v58 = vpop.f32.mrb[8].mxu1  ;;  %v2502_v61 = vadd.f32 %v2501_v57, %v2461_v48  ;;  %v2503_v60 = vpop.f32.mrb[9].mxu0 }
 0x1eb   : > { %v2544_v62 = vpop.f32.mrb[9].mxu1  ;;  %v2504_v0 = vadd.f32 %v2503_v60, %v2463_v52  ;;  %v2505_v1 = vpop.f32.mrb[10].mxu0 }
 0x1ec   : > { %v2546_v2 = vpop.f32.mrb[10].mxu1  ;;  %v2750_v3 = vadd.f32 %v2733_v56, %v2502_v61  ;;  %v2506_v4 = vpop.f32.mrb[11].mxu0 }
 0x1ed   : > { %v2547_v5 = vpop.f32.mrb[11].mxu1  ;;  %v2751_v8 = vadd.f32 %v2737_v59, %v2504_v0 }
 0x1ee   : > { %vm2755_vm0 = vcmp.gt.f32.partialorder %v2750_v3, 0.0  ;;  %v2760_v9 = vmul.f32 %v2759_v63, %v2750_v3 }
 0x1ef   : > { %vm2756_vm1 = vcmp.gt.f32.partialorder %v2751_v8, 0.0  ;;  %v2761_v10 = vmul.f32 %v2759_v63, %v2751_v8 }
 0x1f0   : > { %v2764_v11 = vsel %vm2755_vm0, %v2750_v3, %v2760_v9 }
 0x1f1   : > { %v2765_v12 = vsel %vm2756_vm1, %v2751_v8, %v2761_v10 }
 0x1f2   : > { %v3278_v13 = vpack.c.bf16 %v2765_v12, %v2764_v11 }
 0x1f4   : > { %2784 = vst [vmem:[%s4529_s14] sm:$0xff] %v3278_v13 }
 0x229   : > { %v2583_v14 = vpop.f32.mrb[12].mxu0 }
 0x22a   : > { %v2624_v15 = vpop.f32.mrb[12].mxu1  ;;  %v2584_v18 = vadd.f32 %v2583_v14, %v2542_v58  ;;  %v2585_v19 = vpop.f32.mrb[13].mxu0 }
 0x22b   : > { %v2626_v20 = vpop.f32.mrb[13].mxu1  ;;  %v2586_v21 = vadd.f32 %v2585_v19, %v2544_v62  ;;  %v2587_v24 = vpop.f32.mrb[14].mxu0 }
 0x22c   : > { %v2628_v25 = vpop.f32.mrb[14].mxu1  ;;  %v2625_v26 = vadd.f32 %v2624_v15, %v2584_v18  ;;  %v2588_v27 = vpop.f32.mrb[15].mxu0 }
 0x22d   : > { %v2629_v28 = vpop.f32.mrb[15].mxu1  ;;  %v2627_v30 = vadd.f32 %v2626_v20, %v2586_v21 }
 0x269   : > { %v2665_v33 = vpop.f32.mrb[16].mxu0 }
 0x26a   : > { %v2706_v47 = vpop.f32.mrb[16].mxu1  ;;  %v2666_v22 = vadd.f32 %v2665_v33, %v2625_v26  ;;  %v2667_v35 = vpop.f32.mrb[17].mxu0 }
 0x26b   : > { %v2708_v38 = vpop.f32.mrb[17].mxu1  ;;  %v2668_v6 = vadd.f32 %v2667_v35, %v2627_v30  ;;  %v2669_v40 = vpop.f32.mrb[18].mxu0 }
 0x26c   : > { %v2710_v41 = vpop.f32.mrb[18].mxu1  ;;  %v2707_v51 = vadd.f32 %v2706_v47, %v2666_v22  ;;  %v2670_v7 = vpop.f32.mrb[19].mxu0 }
 0x26d   : > { %v2711_v16 = vpop.f32.mrb[19].mxu1  ;;  %v2709_v36 = vadd.f32 %v2708_v38, %v2668_v6 }
 0x26e   : > { %v2752_v42 = vadd.f32 %v2741_v34, %v2707_v51 }
 0x26f   : > { %v2753_v43 = vadd.f32 %v2745_v39, %v2709_v36 }
 0x270   : > { %vm2757_vm2 = vcmp.gt.f32.partialorder %v2752_v42, 0.0  ;;  %v2762_v37 = vmul.f32 %v2759_v63, %v2752_v42 }
 0x271   : > { %vm2758_vm3 = vcmp.gt.f32.partialorder %v2753_v43, 0.0  ;;  %v2763_v23 = vmul.f32 %v2759_v63, %v2753_v43 }
 0x272   : > { %v2766_v44 = vsel %vm2757_vm2, %v2752_v42, %v2762_v37 }
 0x273   : > { %v2767_v45 = vsel %vm2758_vm3, %v2753_v43, %v2763_v23 }
 0x274   : > { %v3279_v46 = vpack.c.bf16 %v2767_v45, %v2766_v44 }
 0x276   : > { %2785 = vst [vmem:[%s4529_s14 + $0x8] sm:$0xff] %v3279_v46 }
 0x277 PF: > { %s21_s22 = sadd.s32 1, %s3949_s22   ;;  %s4563_s17 = smov %s3933_s18 }
 0x278   : > { %p18_p9 = scmp.ge.s32.totalorder %s21_s22, 4   ;;  %s4564_s18 = smov %s3937_s19 }
 0x279   : > { %s4565_s19 = smov %s4029_s27  ;;  %s4566_s20 = smov %s3945_s21 }
 0x27a   : > { %s4567_s21 = smov %s4569_s23  ;;  %20 = sbr.rel (!%p18_p9) target bundleno = 8 (0x8), region = 100 }
 0x281   :  { %2816 = vsyncpa [#allocation5], 1 }
 0x282   :  { %2818 = vsyncpa [#allocation5 + $0x1], 1 }
 0x283   :  { %2819 = vsyncpa [#allocation7], 1 }
 0x284   :  { %2821 = vsyncpa [#allocation7 + $0x1], 1 }

// kernel: mlp_forward.17
= control target key start
LH: loop header
LB: loop body
LE: loop exit
PB: predicated region body
PF: predicated region fallthrough
CT: control target
= control target key end

     0   :  { %s1564_s0 = inlined_call_operand.vmem [shape: bf16[8,512], index: 0, kind: input, shape index: {}]   ;;  %s1565_s1 = inlined_call_operand.vmem [shape: bf16[512,384], index: 1, kind: input, shape index: {}]   ;;  %s1566_s2 = inlined_call_operand.vmem [shape: f32[1,384], index: 2, kind: input, shape index: {}]   ;;  %s1567_s3 = inlined_call_operand.<no memory space> [shape: f32[1,1], index: 3, kind: input, shape index: {}]   ;;  %s1568_s4 = inlined_call_operand.vmem [shape: bf16[8,384], index: 4, kind: output, shape index: {}]  }
   0x1   :  { %9 = sst [smem:[#allocation3]] %s1567_s3 }
   0x2   :  { %s1311_s17 = smov 0   ;;  %s1313_s18 = smov 0  }
   0x3   :  { %s1315_s19 = smov 0   ;;  %s1317_s20 = smov 0  }
   0x4   :  { %s1319_s21 = smov 0  }
   0x5 LB: > { %s30_s3 = sadd.s32 1, %s1277_s20  ;;  %p78_p1 = scmp.ne.s32.totalorder %s1269_s18, %s1265_s17  ;;  %s1281_s21 = sphi %s1319_s21, %s15_s21   ;;  %s1277_s20 = sphi %s1317_s20, %s1572_s20   ;;  %s1273_s19 = sphi %s1315_s19, %s1571_s19   ;;  %s1269_s18 = sphi %s1313_s18, %s1570_s18   ;;  %s1265_s17 = sphi %s1311_s17, %s1569_s17  }
   0x6   : > { %p32_p0 = scmp.ge.s32.totalorder %s30_s3, 3  ;;  %p79_p2 = scmp.eq.s32.totalorder %s1281_s21, 0 }
   0x7   : > { %s71_s23 = sadd.s32 1, %s1269_s18  ;;  %p1078_p5 = scmp.ge.s32.totalorder %s1281_s21, 3 }
   0x8   : > { %s1574_s3 = smov (%p32_p0, %s30_s3), 0  ;;  %p80_p3 = por %p79_p2, %p78_p1 }
   0x9   : > { %s67_s22 = ssub.s32 %s1277_s20, %s1574_s3  ;;  %195 = sbr.rel (%p1078_p5) target bundleno = 62 (0x3e), region = 24 }
   0xa   : > { %p69_p4 = scmp.eq.s32.totalorder %s67_s22, 0 }
   0xc   : > { %s1346_s24 = scalar_select %p69_p4, %s1269_s18, %s71_s23  }
  0x10   : > { %198 = sbr.rel (!%p80_p3) target bundleno = 62 (0x3e), region = 28  ;;  %s200_s25 = sand.u32 (%p80_p3), 1, %s1269_s18  }
  0x11   : > { %s1080_s26 = sshll.u32 (%p80_p3), %s1277_s20, 2  ;;  %s1079_s27 = sshll.u32 (%p80_p3), %s200_s25, 8 }
  0x12   : > { %s1354_s30 = scalar_lea.vmem (%p80_p3), %s1565_s1, %s1080_s26  ;;  %s1358_s5 = scalar_lea.vmem (%p80_p3), [#allocation4], %s1079_s27 }
  0x13   : > { %v223_v0 = vld [vmem:[%s1354_s30] sm:$0xf] (%p80_p3)  ;;  %v225_v1 = vld [vmem:[%s1354_s30 + $0xc] sm:$0xf] (%p80_p3)  ;;  %v227_v2 = vld [vmem:[%s1354_s30 + $0x18] sm:$0xf] (%p80_p3) }
  0x14   : > { %224 = vst [vmem:[%s1358_s5] sm:$0xf] (%p80_p3), %v223_v0  ;;  %226 = vst [vmem:[%s1358_s5 + $0x4] sm:$0xf] (%p80_p3), %v225_v1  ;;  %v229_v3 = vld [vmem:[%s1354_s30 + $0x24] sm:$0xf] (%p80_p3) }
  0x15   : > { %v231_v4 = vld [vmem:[%s1354_s30 + $0x30] sm:$0xf] (%p80_p3)  ;;  %228 = vst [vmem:[%s1358_s5 + $0x8] sm:$0xf] (%p80_p3), %v227_v2  ;;  %230 = vst [vmem:[%s1358_s5 + $0xc] sm:$0xf] (%p80_p3), %v229_v3 }
  0x16   : > { %232 = vst [vmem:[%s1358_s5 + $0x10] sm:$0xf] (%p80_p3), %v231_v4  ;;  %v233_v5 = vld [vmem:[%s1354_s30 + $0x3c] sm:$0xf] (%p80_p3)  ;;  %v235_v6 = vld [vmem:[%s1354_s30 + $0x48] sm:$0xf] (%p80_p3) }
  0x17   : > { %v237_v7 = vld [vmem:[%s1354_s30 + $0x54] sm:$0xf]  ;;  %234 = vst [vmem:[%s1358_s5 + $0x14] sm:$0xf] %v233_v5  ;;  %236 = vst [vmem:[%s1358_s5 + $0x18] sm:$0xf] %v235_v6 }
  0x18   : > { %238 = vst [vmem:[%s1358_s5 + $0x1c] sm:$0xf] %v237_v7  ;;  %v239_v8 = vld [vmem:[%s1354_s30 + $0x60] sm:$0xf]  ;;  %v241_v9 = vld [vmem:[%s1354_s30 + $0x6c] sm:$0xf] }
  0x19   : > { %v243_v10 = vld [vmem:[%s1354_s30 + $0x78] sm:$0xf]  ;;  %240 = vst [vmem:[%s1358_s5 + $0x20] sm:$0xf] %v239_v8  ;;  %242 = vst [vmem:[%s1358_s5 + $0x24] sm:$0xf] %v241_v9 }
  0x1a   : > { %244 = vst [vmem:[%s1358_s5 + $0x28] sm:$0xf] %v243_v10  ;;  %v245_v11 = vld [vmem:[%s1354_s30 + $0x84] sm:$0xf]  ;;  %v247_v12 = vld [vmem:[%s1354_s30 + $0x90] sm:$0xf] }
  0x1b   : > { %v249_v13 = vld [vmem:[%s1354_s30 + $0x9c] sm:$0xf]  ;;  %246 = vst [vmem:[%s1358_s5 + $0x2c] sm:$0xf] %v245_v11  ;;  %248 = vst [vmem:[%s1358_s5 + $0x30] sm:$0xf] %v247_v12 }
  0x1c   : > { %250 = vst [vmem:[%s1358_s5 + $0x34] sm:$0xf] %v249_v13  ;;  %v251_v14 = vld [vmem:[%s1354_s30 + $0xa8] sm:$0xf]  ;;  %v253_v15 = vld [vmem:[%s1354_s30 + $0xb4] sm:$0xf] }
  0x1d   : > { %v255_v16 = vld [vmem:[%s1354_s30 + $0xc0] sm:$0xf]  ;;  %252 = vst [vmem:[%s1358_s5 + $0x38] sm:$0xf] %v251_v14  ;;  %254 = vst [vmem:[%s1358_s5 + $0x3c] sm:$0xf] %v253_v15 }
  0x1e   : > { %256 = vst [vmem:[%s1358_s5 + $0x40] sm:$0xf] %v255_v16  ;;  %v257_v17 = vld [vmem:[%s1354_s30 + $0xcc] sm:$0xf]  ;;  %v259_v18 = vld [vmem:[%s1354_s30 + $0xd8] sm:$0xf] }
  0x1f   : > { %v261_v19 = vld [vmem:[%s1354_s30 + $0xe4] sm:$0xf]  ;;  %258 = vst [vmem:[%s1358_s5 + $0x44] sm:$0xf] %v257_v17  ;;  %260 = vst [vmem:[%s1358_s5 + $0x48] sm:$0xf] %v259_v18 }
  0x20   : > { %262 = vst [vmem:[%s1358_s5 + $0x4c] sm:$0xf] %v261_v19  ;;  %v263_v20 = vld [vmem:[%s1354_s30 + $0xf0] sm:$0xf]  ;;  %v265_v21 = vld [vmem:[%s1354_s30 + $0xfc] sm:$0xf] }
  0x21   : > { %v267_v22 = vld [vmem:[%s1354_s30 + $0x108] sm:$0xf]  ;;  %264 = vst [vmem:[%s1358_s5 + $0x50] sm:$0xf] %v263_v20  ;;  %266 = vst [vmem:[%s1358_s5 + $0x54] sm:$0xf] %v265_v21 }
  0x22   : > { %268 = vst [vmem:[%s1358_s5 + $0x58] sm:$0xf] %v267_v22  ;;  %v269_v23 = vld [vmem:[%s1354_s30 + $0x114] sm:$0xf]  ;;  %v271_v24 = vld [vmem:[%s1354_s30 + $0x120] sm:$0xf] }
  0x23   : > { %v273_v25 = vld [vmem:[%s1354_s30 + $0x12c] sm:$0xf]  ;;  %270 = vst [vmem:[%s1358_s5 + $0x5c] sm:$0xf] %v269_v23  ;;  %272 = vst [vmem:[%s1358_s5 + $0x60] sm:$0xf] %v271_v24 }
  0x24   : > { %274 = vst [vmem:[%s1358_s5 + $0x64] sm:$0xf] %v273_v25  ;;  %v275_v26 = vld [vmem:[%s1354_s30 + $0x138] sm:$0xf]  ;;  %v277_v27 = vld [vmem:[%s1354_s30 + $0x144] sm:$0xf] }
  0x25   : > { %v279_v28 = vld [vmem:[%s1354_s30 + $0x150] sm:$0xf]  ;;  %276 = vst [vmem:[%s1358_s5 + $0x68] sm:$0xf] %v275_v26  ;;  %278 = vst [vmem:[%s1358_s5 + $0x6c] sm:$0xf] %v277_v27 }
  0x26   : > { %280 = vst [vmem:[%s1358_s5 + $0x70] sm:$0xf] %v279_v28  ;;  %v281_v29 = vld [vmem:[%s1354_s30 + $0x15c] sm:$0xf]  ;;  %v283_v30 = vld [vmem:[%s1354_s30 + $0x168] sm:$0xf] }
  0x27   : > { %v285_v31 = vld [vmem:[%s1354_s30 + $0x174] sm:$0xf]  ;;  %282 = vst [vmem:[%s1358_s5 + $0x74] sm:$0xf] %v281_v29  ;;  %284 = vst [vmem:[%s1358_s5 + $0x78] sm:$0xf] %v283_v30 }
  0x28   : > { %286 = vst [vmem:[%s1358_s5 + $0x7c] sm:$0xf] %v285_v31  ;;  %v287_v32 = vld [vmem:[%s1354_s30 + $0x180] sm:$0xf]  ;;  %v289_v33 = vld [vmem:[%s1354_s30 + $0x18c] sm:$0xf] }
  0x29   : > { %v291_v34 = vld [vmem:[%s1354_s30 + $0x198] sm:$0xf]  ;;  %288 = vst [vmem:[%s1358_s5 + $0x80] sm:$0xf] %v287_v32  ;;  %290 = vst [vmem:[%s1358_s5 + $0x84] sm:$0xf] %v289_v33 }
  0x2a   : > { %292 = vst [vmem:[%s1358_s5 + $0x88] sm:$0xf] %v291_v34  ;;  %v293_v35 = vld [vmem:[%s1354_s30 + $0x1a4] sm:$0xf]  ;;  %v295_v36 = vld [vmem:[%s1354_s30 + $0x1b0] sm:$0xf] }
  0x2b   : > { %v297_v37 = vld [vmem:[%s1354_s30 + $0x1bc] sm:$0xf]  ;;  %294 = vst [vmem:[%s1358_s5 + $0x8c] sm:$0xf] %v293_v35  ;;  %296 = vst [vmem:[%s1358_s5 + $0x90] sm:$0xf] %v295_v36 }
  0x2c   : > { %298 = vst [vmem:[%s1358_s5 + $0x94] sm:$0xf] %v297_v37  ;;  %v299_v38 = vld [vmem:[%s1354_s30 + $0x1c8] sm:$0xf]  ;;  %v301_v39 = vld [vmem:[%s1354_s30 + $0x1d4] sm:$0xf] }
  0x2d   : > { %v303_v40 = vld [vmem:[%s1354_s30 + $0x1e0] sm:$0xf]  ;;  %300 = vst [vmem:[%s1358_s5 + $0x98] sm:$0xf] %v299_v38  ;;  %302 = vst [vmem:[%s1358_s5 + $0x9c] sm:$0xf] %v301_v39 }
  0x2e   : > { %304 = vst [vmem:[%s1358_s5 + $0xa0] sm:$0xf] %v303_v40  ;;  %v305_v41 = vld [vmem:[%s1354_s30 + $0x1ec] sm:$0xf]  ;;  %v307_v42 = vld [vmem:[%s1354_s30 + $0x1f8] sm:$0xf] }
  0x2f   : > { %v309_v43 = vld [vmem:[%s1354_s30 + $0x204] sm:$0xf]  ;;  %306 = vst [vmem:[%s1358_s5 + $0xa4] sm:$0xf] %v305_v41  ;;  %308 = vst [vmem:[%s1358_s5 + $0xa8] sm:$0xf] %v307_v42 }
  0x30   : > { %310 = vst [vmem:[%s1358_s5 + $0xac] sm:$0xf] %v309_v43  ;;  %v311_v44 = vld [vmem:[%s1354_s30 + $0x210] sm:$0xf]  ;;  %v313_v45 = vld [vmem:[%s1354_s30 + $0x21c] sm:$0xf] }
  0x31   : > { %v315_v46 = vld [vmem:[%s1354_s30 + $0x228] sm:$0xf]  ;;  %312 = vst [vmem:[%s1358_s5 + $0xb0] sm:$0xf] %v311_v44  ;;  %314 = vst [vmem:[%s1358_s5 + $0xb4] sm:$0xf] %v313_v45 }
  0x32   : > { %316 = vst [vmem:[%s1358_s5 + $0xb8] sm:$0xf] %v315_v46  ;;  %v317_v47 = vld [vmem:[%s1354_s30 + $0x234] sm:$0xf]  ;;  %v319_v48 = vld [vmem:[%s1354_s30 + $0x240] sm:$0xf] }
  0x33   : > { %v321_v49 = vld [vmem:[%s1354_s30 + $0x24c] sm:$0xf]  ;;  %318 = vst [vmem:[%s1358_s5 + $0xbc] sm:$0xf] %v317_v47  ;;  %320 = vst [vmem:[%s1358_s5 + $0xc0] sm:$0xf] %v319_v48 }
  0x34   : > { %322 = vst [vmem:[%s1358_s5 + $0xc4] sm:$0xf] %v321_v49  ;;  %v323_v50 = vld [vmem:[%s1354_s30 + $0x258] sm:$0xf]  ;;  %v325_v51 = vld [vmem:[%s1354_s30 + $0x264] sm:$0xf] }
  0x35   : > { %v327_v52 = vld [vmem:[%s1354_s30 + $0x270] sm:$0xf]  ;;  %324 = vst [vmem:[%s1358_s5 + $0xc8] sm:$0xf] %v323_v50  ;;  %326 = vst [vmem:[%s1358_s5 + $0xcc] sm:$0xf] %v325_v51 }
  0x36   : > { %328 = vst [vmem:[%s1358_s5 + $0xd0] sm:$0xf] %v327_v52  ;;  %v329_v53 = vld [vmem:[%s1354_s30 + $0x27c] sm:$0xf]  ;;  %v331_v54 = vld [vmem:[%s1354_s30 + $0x288] sm:$0xf] }
  0x37   : > { %v333_v55 = vld [vmem:[%s1354_s30 + $0x294] sm:$0xf]  ;;  %330 = vst [vmem:[%s1358_s5 + $0xd4] sm:$0xf] %v329_v53  ;;  %332 = vst [vmem:[%s1358_s5 + $0xd8] sm:$0xf] %v331_v54 }
  0x38   : > { %334 = vst [vmem:[%s1358_s5 + $0xdc] sm:$0xf] %v333_v55  ;;  %v335_v56 = vld [vmem:[%s1354_s30 + $0x2a0] sm:$0xf]  ;;  %v337_v57 = vld [vmem:[%s1354_s30 + $0x2ac] sm:$0xf] }
  0x39   : > { %v339_v58 = vld [vmem:[%s1354_s30 + $0x2b8] sm:$0xf]  ;;  %336 = vst [vmem:[%s1358_s5 + $0xe0] sm:$0xf] %v335_v56  ;;  %338 = vst [vmem:[%s1358_s5 + $0xe4] sm:$0xf] %v337_v57 }
  0x3a   : > { %340 = vst [vmem:[%s1358_s5 + $0xe8] sm:$0xf] %v339_v58  ;;  %v341_v59 = vld [vmem:[%s1354_s30 + $0x2c4] sm:$0xf]  ;;  %v343_v60 = vld [vmem:[%s1354_s30 + $0x2d0] sm:$0xf] }
  0x3b   : > { %v345_v61 = vld [vmem:[%s1354_s30 + $0x2dc] sm:$0xf]  ;;  %342 = vst [vmem:[%s1358_s5 + $0xec] sm:$0xf] %v341_v59  ;;  %344 = vst [vmem:[%s1358_s5 + $0xf0] sm:$0xf] %v343_v60 }
  0x3c   : > { %346 = vst [vmem:[%s1358_s5 + $0xf4] sm:$0xf] %v345_v61  ;;  %v347_v62 = vld [vmem:[%s1354_s30 + $0x2e8] sm:$0xf]  ;;  %v349_v63 = vld [vmem:[%s1354_s30 + $0x2f4] sm:$0xf] }
  0x3d   : > { %348 = vst [vmem:[%s1358_s5 + $0xf8] sm:$0xf] %v347_v62  ;;  %350 = vst [vmem:[%s1358_s5 + $0xfc] sm:$0xf] %v349_v63 }
  0x3e PF: > { %p1081_p6 = scmp.ge.s32.totalorder %s1281_s21, 1  ;;  %p506_p7 = scmp.lt.s32.totalorder %s1281_s21, 4 }
  0x40   : > { %p507_p8 = pnand %p1081_p6, %p506_p7 }
  0x41   : > { %s513_s6 = sand.u32 (!%p507_p8), 1, %s1265_s17   ;;  %v1492_v0 = vld [vmem:[%s1564_s0] sm:$0xff] (!%p507_p8)  ;;  %v1497_v1 = vld [vmem:[%s1564_s0 + $0x8] sm:$0xff] (!%p507_p8)  ;;  %p564_p9 = scmp.lt.s32.totalorder (!%p507_p8), %s1273_s19, 2 }
  0x42   : > { %510 = sbr.rel (%p507_p8) target bundleno = 328 (0x148), region = 73  ;;  %s1082_s11 = sshll.u32 (!%p507_p8), %s513_s6, 8  ;;  %v1085_v2 = vcombine.high (!%p507_p8), %v1492_v0, %v1492_v0  ;;  %v1087_v3 = vcombine.high (!%p507_p8), %v1497_v1, %v1497_v1  ;;  %v1084_v36 = vcombine.low (!%p507_p8), %v1492_v0, %v1492_v0  ;;  %v1086_v37 = vcombine.low (!%p507_p8), %v1497_v1, %v1497_v1 }
  0x43   : > { %s1503_s12 = scalar_lea.vmem (!%p507_p8), [#allocation4], %s1082_s11  ;;  %s948_s13 = sld [smem:[#allocation3]] (!%p507_p8) }
  0x44   : > { %v1207_v4 = vld [vmem:[%s1503_s12 + $0x40] sm:$0xff] (!%p507_p8)   ;;  %886 = vmatprep.mubr.bf16.mxu0 (!%p507_p8), %v1085_v2  ;;  %926 = vmatprep.mubr.bf16.mxu1 (!%p507_p8), %v1087_v3  ;;  %v1211_v8 = vld [vmem:[%s1503_s12 + $0x48] sm:$0xff] (!%p507_p8)   ;;  %v1215_v12 = vld [vmem:[%s1503_s12 + $0x50] sm:$0xff] (!%p507_p8)  }
  0x45   : > { %v1208_v5 = vld [vmem:[%s1503_s12 + $0xc0] sm:$0xff] (!%p507_p8)   ;;  %1123 = vmatprep.subr.bf16.mxu0 (!%p507_p8), %v1207_v4  ;;  %v1212_v9 = vld [vmem:[%s1503_s12 + $0xc8] sm:$0xff] (!%p507_p8)   ;;  %v1216_v13 = vld [vmem:[%s1503_s12 + $0xd0] sm:$0xff] (!%p507_p8)  }
  0x46   : > { %v1209_v6 = vld [vmem:[%s1503_s12] sm:$0xff] (!%p507_p8)   ;;  %1145 = vmatprep.subr.bf16.mxu1 (!%p507_p8), %v1208_v5  ;;  %v1213_v10 = vld [vmem:[%s1503_s12 + $0x8] sm:$0xff] (!%p507_p8)   ;;  %v1217_v14 = vld [vmem:[%s1503_s12 + $0x10] sm:$0xff] (!%p507_p8)  }
  0x47   : > { %v1210_v7 = vld [vmem:[%s1503_s12 + $0x80] sm:$0xff] (!%p507_p8)   ;;  %1124 = vmatpush3.bf16.msra.mxu0 (!%p507_p8), %v1209_v6  ;;  %v1214_v11 = vld [vmem:[%s1503_s12 + $0x88] sm:$0xff] (!%p507_p8)   ;;  %v1218_v15 = vld [vmem:[%s1503_s12 + $0x90] sm:$0xff] (!%p507_p8)  }
  0x48   : > { %1146 = vmatpush3.bf16.msra.mxu1 (!%p507_p8), %v1210_v7  ;;  %1125 = vmatprep.subr.bf16.mxu0 (!%p507_p8), %v1211_v8  ;;  %v1219_v16 = vld [vmem:[%s1503_s12 + $0x58] sm:$0xff] (!%p507_p8)   ;;  %v1223_v20 = vld [vmem:[%s1503_s12 + $0x60] sm:$0xff] (!%p507_p8)   ;;  %v1227_v24 = vld [vmem:[%s1503_s12 + $0x68] sm:$0xff] (!%p507_p8)  }
  0x49   : > { %1147 = vmatprep.subr.bf16.mxu1 %v1212_v9  ;;  %v1220_v17 = vld [vmem:[%s1503_s12 + $0xd8] sm:$0xff]   ;;  %v1224_v21 = vld [vmem:[%s1503_s12 + $0xe0] sm:$0xff]   ;;  %v1228_v25 = vld [vmem:[%s1503_s12 + $0xe8] sm:$0xff]   ;;  %s1576_s19 = smov (!%p564_p9, %s1273_s19), 2  ;;  %v950_v50 = vstv %s948_s13 }
  0x4a   : > { %v1221_v18 = vld [vmem:[%s1503_s12 + $0x18] sm:$0xff]   ;;  %v1225_v22 = vld [vmem:[%s1503_s12 + $0x20] sm:$0xff]   ;;  %v1229_v26 = vld [vmem:[%s1503_s12 + $0x28] sm:$0xff]   ;;  %s566_s16 = scalar_lea.vmem %s1566_s2, %s1576_s19  ;;  %s1083_s17 = sshll.u32 %s1576_s19, 2 }
  0x4b   : > { %1126 = vmatpush3.bf16.msra.mxu0 %v1213_v10  ;;  %v1222_v19 = vld [vmem:[%s1503_s12 + $0x98] sm:$0xff]   ;;  %v1226_v23 = vld [vmem:[%s1503_s12 + $0xa0] sm:$0xff]   ;;  %v1230_v27 = vld [vmem:[%s1503_s12 + $0xa8] sm:$0xff]   ;;  %s574_s25 = scalar_lea.vmem %s1568_s4, %s1083_s17 }
  0x4c   : > { %1148 = vmatpush3.bf16.msra.mxu1 %v1214_v11  ;;  %1127 = vmatprep.subr.bf16.mxu0 %v1215_v12  ;;  %v1231_v28 = vld [vmem:[%s1503_s12 + $0x70] sm:$0xff]   ;;  %v1235_v32 = vld [vmem:[%s1503_s12 + $0x78] sm:$0xff]   ;;  %v1120_v47 = vld [vmem:[%s566_s16] ss:$0 sm:$0xff] }
  0x4d   : > { %1149 = vmatprep.subr.bf16.mxu1 %v1216_v13  ;;  %v1232_v29 = vld [vmem:[%s1503_s12 + $0xf0] sm:$0xff]   ;;  %v1236_v33 = vld [vmem:[%s1503_s12 + $0xf8] sm:$0xff]  }
  0x4e   : > { %v1233_v30 = vld [vmem:[%s1503_s12 + $0x30] sm:$0xff]   ;;  %v1237_v34 = vld [vmem:[%s1503_s12 + $0x38] sm:$0xff]  }
  0x4f   : > { %1128 = vmatpush3.bf16.msra.mxu0 %v1217_v14  ;;  %v1234_v31 = vld [vmem:[%s1503_s12 + $0xb0] sm:$0xff]   ;;  %v1238_v35 = vld [vmem:[%s1503_s12 + $0xb8] sm:$0xff]  }
  0x50   : > { %1150 = vmatpush3.bf16.msra.mxu1 %v1218_v15  ;;  %1129 = vmatprep.subr.bf16.mxu0 %v1219_v16 }
  0x51   : > { %1151 = vmatprep.subr.bf16.mxu1 %v1220_v17 }
  0x53   : > { %1130 = vmatpush3.bf16.msra.mxu0 %v1221_v18 }
  0x54   : > { %1152 = vmatpush3.bf16.msra.mxu1 %v1222_v19  ;;  %1131 = vmatprep.subr.bf16.mxu0 %v1223_v20 }
  0x55   : > { %1153 = vmatprep.subr.bf16.mxu1 %v1224_v21 }
  0x57   : > { %1132 = vmatpush3.bf16.msra.mxu0 %v1225_v22 }
  0x58   : > { %1154 = vmatpush3.bf16.msra.mxu1 %v1226_v23  ;;  %1133 = vmatprep.subr.bf16.mxu0 %v1227_v24 }
  0x59   : > { %1155 = vmatprep.subr.bf16.mxu1 %v1228_v25 }
  0x5b   : > { %1134 = vmatpush3.bf16.msra.mxu0 %v1229_v26 }
  0x5c   : > { %1156 = vmatpush3.bf16.msra.mxu1 %v1230_v27  ;;  %1135 = vmatprep.subr.bf16.mxu0 %v1231_v28 }
  0x5d   : > { %1157 = vmatprep.subr.bf16.mxu1 %v1232_v29 }
  0x5f   : > { %1136 = vmatpush3.bf16.msra.mxu0 %v1233_v30 }
  0x60   : > { %1158 = vmatpush3.bf16.msra.mxu1 %v1234_v31  ;;  %1137 = vmatprep.subr.bf16.mxu0 %v1235_v32 }
  0x61   : > { %1159 = vmatprep.subr.bf16.mxu1 %v1236_v33 }
  0x63   : > { %1138 = vmatpush3.bf16.msra.mxu0 %v1237_v34 }
  0x64   : > { %1160 = vmatpush3.bf16.msra.mxu1 %v1238_v35 }
  0x66   : > { %887 = vmatmul.mubr.bf16.vlgmr.msra.gmra.mrb[0].mxu0 %v1084_v36 }
  0x67   : > { %927 = vmatmul.mubr.bf16.vlgmr.msra.gmra.mrb[0].mxu1 %v1086_v37 }
 0x139   : > { %v1139_v38 = vpop.f32.mrb[0].mxu0 }
 0x13a   : > { %v1161_v39 = vpop.f32.mrb[0].mxu1  ;;  %v1140_v40 = vpop.f32.mrb[1].mxu0 }
 0x13b   : > { %v1141_v41 = vadd.f32 %v1140_v40, %v1139_v38  ;;  %v1162_v42 = vpop.f32.mrb[1].mxu1  ;;  %v1142_v43 = vpop.f32.mrb[2].mxu0 }
 0x13c   : > { %v1163_v44 = vadd.f32 %v1162_v42, %v1161_v39  ;;  %v1164_v45 = vpop.f32.mrb[2].mxu1  ;;  %v1143_v46 = vpop.f32.mrb[3].mxu0 }
 0x13d   : > { %v1165_v48 = vpop.f32.mrb[3].mxu1 }
 0x13e   : > { %v929_v49 = vadd.f32 %v1163_v44, %v1141_v41 }
 0x140   : > { %v947_v51 = vadd.f32 %v1120_v47, %v929_v49 }
 0x142   : > { %vm949_vm0 = vcmp.gt.f32.partialorder %v947_v51, 0.0  ;;  %v951_v52 = vmul.f32 %v950_v50, %v947_v51 }
 0x144   : > { %v952_v53 = vsel %vm949_vm0, %v947_v51, %v951_v52 }
 0x145   : > { %v953_v54 = vpack.c.bf16 %v952_v53, %v952_v53 }
 0x147   : > { %954 = vst [vmem:[%s574_s25] sm:$0xf] %v953_v54 }
 0x148 PF: > { %s15_s21 = sadd.s32 1, %s1281_s21   ;;  %s1569_s17 = smov %s1269_s18 }
 0x149   : > { %p12_p10 = scmp.ge.s32.totalorder %s15_s21, 5   ;;  %s1570_s18 = smov %s1346_s24 }
 0x14a   : > { %s1571_s19 = smov %s1277_s20  ;;  %s1572_s20 = smov %s1574_s3 }
 0x14b   :  { %14 = sbr.rel (!%p12_p10) target bundleno = 5 (0x5), region = 126 }

// kernel: mlp_forward.16
= control target key start
LH: loop header
LB: loop body
LE: loop exit
PB: predicated region body
PF: predicated region fallthrough
CT: control target
= control target key end

     0   :  { %s2677_s1 = inlined_call_operand.vmem [shape: bf16[768,512], index: 1, kind: input, shape index: {}]   ;;  %s2678_s0 = inlined_call_operand.vmem [shape: bf16[8,768], index: 0, kind: input, shape index: {}]   ;;  %s2679_s2 = inlined_call_operand.vmem [shape: f32[1,512], index: 2, kind: input, shape index: {}]   ;;  %s2680_s3 = inlined_call_operand.<no memory space> [shape: f32[1,1], index: 3, kind: input, shape index: {}]   ;;  %s2681_s4 = inlined_call_operand.vmem [shape: bf16[8,512], index: 4, kind: output, shape index: {}]  }
   0x1   :  { %v1731_v0 = vld [vmem:[%s2677_s1 + $0x4] ss:$16 sps:$4 sm:$0xff]   ;;  %v1735_v2 = vld [vmem:[%s2677_s1] ss:$16 sps:$4 sm:$0xff]   ;;  %v31_v48 = vld [vmem:[%s2678_s0 + $0x8] sm:$0xff] }
   0x2   :  { %v1733_v1 = vld [vmem:[%s2677_s1 + $0x204] ss:$16 sps:$4 sm:$0xff]   ;;  %1206 = vmatprep.subr.bf16.mxu0 %v1731_v0  ;;  %v1736_v3 = vld [vmem:[%s2677_s1 + $0x200] ss:$16 sps:$4 sm:$0xff]   ;;  %v2202_v51 = vcombine.high %v31_v48, %v31_v48 }
   0x3   :  { %1247 = vmatprep.subr.bf16.mxu1 %v1733_v1  ;;  %v1737_v4 = vld [vmem:[%s2677_s1 + $0x24] ss:$16 sps:$4 sm:$0xff]   ;;  %1207 = vmatpush1.bf16.msra.mxu0 %v1735_v2  ;;  %v1741_v6 = vld [vmem:[%s2677_s1 + $0x20] ss:$16 sps:$4 sm:$0xff]  }
   0x4   :  { %1248 = vmatpush1.bf16.msra.mxu1 %v1736_v3  ;;  %v1739_v5 = vld [vmem:[%s2677_s1 + $0x224] ss:$16 sps:$4 sm:$0xff]   ;;  %1208 = vmatprep.subr.bf16.mxu0 %v1737_v4  ;;  %v1742_v7 = vld [vmem:[%s2677_s1 + $0x220] ss:$16 sps:$4 sm:$0xff]  }
   0x5   :  { %1249 = vmatprep.subr.bf16.mxu1 %v1739_v5  ;;  %v1743_v8 = vld [vmem:[%s2677_s1 + $0x44] ss:$16 sps:$4 sm:$0xff]   ;;  %v1747_v10 = vld [vmem:[%s2677_s1 + $0x40] ss:$16 sps:$4 sm:$0xff]   ;;  %1279 = vmatprep.mubr.bf16.mxu1 %v2202_v51  ;;  %v1836_v5 = vld [vmem:[%s2677_s1 + $0xc] ss:$16 sps:$4 sm:$0xff]  }
   0x6   :  { %v1745_v9 = vld [vmem:[%s2677_s1 + $0x244] ss:$16 sps:$4 sm:$0xff]   ;;  %v1748_v11 = vld [vmem:[%s2677_s1 + $0x240] ss:$16 sps:$4 sm:$0xff]  }
   0x7   :  { %1209 = vmatpush1.bf16.msra.mxu0 %v1741_v6  ;;  %v1749_v12 = vld [vmem:[%s2677_s1 + $0x64] ss:$16 sps:$4 sm:$0xff]   ;;  %v1753_v14 = vld [vmem:[%s2677_s1 + $0x60] ss:$16 sps:$4 sm:$0xff]  }
   0x8   :  { %1250 = vmatpush1.bf16.msra.mxu1 %v1742_v7  ;;  %1210 = vmatprep.subr.bf16.mxu0 %v1743_v8  ;;  %v1751_v13 = vld [vmem:[%s2677_s1 + $0x264] ss:$16 sps:$4 sm:$0xff]   ;;  %v1754_v15 = vld [vmem:[%s2677_s1 + $0x260] ss:$16 sps:$4 sm:$0xff]   ;;  %v2262_v7 = vcombine.low %v31_v48, %v31_v48 }
   0x9   :  { %1251 = vmatprep.subr.bf16.mxu1 %v1745_v9  ;;  %v1755_v16 = vld [vmem:[%s2677_s1 + $0x84] ss:$16 sps:$4 sm:$0xff]   ;;  %v1759_v18 = vld [vmem:[%s2677_s1 + $0x80] ss:$16 sps:$4 sm:$0xff]   ;;  %v1834_v9 = vld [vmem:[%s2677_s1 + $0x8] ss:$16 sps:$4 sm:$0xff]  }
   0xa   :  { %v1757_v17 = vld [vmem:[%s2677_s1 + $0x284] ss:$16 sps:$4 sm:$0xff]   ;;  %v1760_v19 = vld [vmem:[%s2677_s1 + $0x280] ss:$16 sps:$4 sm:$0xff]  }
   0xb   :  { %1211 = vmatpush1.bf16.msra.mxu0 %v1747_v10  ;;  %v1761_v20 = vld [vmem:[%s2677_s1 + $0xa4] ss:$16 sps:$4 sm:$0xff]   ;;  %v1765_v22 = vld [vmem:[%s2677_s1 + $0xa0] ss:$16 sps:$4 sm:$0xff]  }
   0xc   :  { %1252 = vmatpush1.bf16.msra.mxu1 %v1748_v11  ;;  %1212 = vmatprep.subr.bf16.mxu0 %v1749_v12  ;;  %v1763_v21 = vld [vmem:[%s2677_s1 + $0x2a4] ss:$16 sps:$4 sm:$0xff]   ;;  %v1766_v23 = vld [vmem:[%s2677_s1 + $0x2a0] ss:$16 sps:$4 sm:$0xff]   ;;  %v1842_v11 = vld [vmem:[%s2677_s1 + $0x2c] ss:$16 sps:$4 sm:$0xff]  }
   0xd   :  { %1253 = vmatprep.subr.bf16.mxu1 %v1751_v13  ;;  %v1767_v24 = vld [vmem:[%s2677_s1 + $0xc4] ss:$16 sps:$4 sm:$0xff]   ;;  %v1771_v26 = vld [vmem:[%s2677_s1 + $0xc0] ss:$16 sps:$4 sm:$0xff]   ;;  %v1840_v13 = vld [vmem:[%s2677_s1 + $0x28] ss:$16 sps:$4 sm:$0xff]  }
   0xe   :  { %v1769_v25 = vld [vmem:[%s2677_s1 + $0x2c4] ss:$16 sps:$4 sm:$0xff]   ;;  %v1772_v27 = vld [vmem:[%s2677_s1 + $0x2c0] ss:$16 sps:$4 sm:$0xff]  }
   0xf   :  { %1213 = vmatpush1.bf16.msra.mxu0 %v1753_v14  ;;  %v1773_v28 = vld [vmem:[%s2677_s1 + $0xe4] ss:$16 sps:$4 sm:$0xff]   ;;  %v1777_v30 = vld [vmem:[%s2677_s1 + $0xe0] ss:$16 sps:$4 sm:$0xff]  }
  0x10   :  { %1254 = vmatpush1.bf16.msra.mxu1 %v1754_v15  ;;  %1214 = vmatprep.subr.bf16.mxu0 %v1755_v16  ;;  %v1775_v29 = vld [vmem:[%s2677_s1 + $0x2e4] ss:$16 sps:$4 sm:$0xff]   ;;  %v1778_v31 = vld [vmem:[%s2677_s1 + $0x2e0] ss:$16 sps:$4 sm:$0xff]   ;;  %v1848_v15 = vld [vmem:[%s2677_s1 + $0x4c] ss:$16 sps:$4 sm:$0xff]  }
  0x11   :  { %1255 = vmatprep.subr.bf16.mxu1 %v1757_v17  ;;  %v1779_v32 = vld [vmem:[%s2677_s1 + $0x104] ss:$16 sps:$4 sm:$0xff]   ;;  %v1783_v34 = vld [vmem:[%s2677_s1 + $0x100] ss:$16 sps:$4 sm:$0xff]   ;;  %v1846_v17 = vld [vmem:[%s2677_s1 + $0x48] ss:$16 sps:$4 sm:$0xff]  }
  0x12   :  { %v1781_v33 = vld [vmem:[%s2677_s1 + $0x304] ss:$16 sps:$4 sm:$0xff]   ;;  %v1784_v35 = vld [vmem:[%s2677_s1 + $0x300] ss:$16 sps:$4 sm:$0xff]  }
  0x13   :  { %1215 = vmatpush1.bf16.msra.mxu0 %v1759_v18  ;;  %v1785_v36 = vld [vmem:[%s2677_s1 + $0x124] ss:$16 sps:$4 sm:$0xff]   ;;  %v1789_v38 = vld [vmem:[%s2677_s1 + $0x120] ss:$16 sps:$4 sm:$0xff]  }
  0x14   :  { %1256 = vmatpush1.bf16.msra.mxu1 %v1760_v19  ;;  %1216 = vmatprep.subr.bf16.mxu0 %v1761_v20  ;;  %v1787_v37 = vld [vmem:[%s2677_s1 + $0x324] ss:$16 sps:$4 sm:$0xff]   ;;  %v1790_v39 = vld [vmem:[%s2677_s1 + $0x320] ss:$16 sps:$4 sm:$0xff]   ;;  %v1854_v19 = vld [vmem:[%s2677_s1 + $0x6c] ss:$16 sps:$4 sm:$0xff]  }
  0x15   :  { %1257 = vmatprep.subr.bf16.mxu1 %v1763_v21  ;;  %v1791_v40 = vld [vmem:[%s2677_s1 + $0x144] ss:$16 sps:$4 sm:$0xff]   ;;  %v1795_v42 = vld [vmem:[%s2677_s1 + $0x140] ss:$16 sps:$4 sm:$0xff]   ;;  %v1852_v21 = vld [vmem:[%s2677_s1 + $0x68] ss:$16 sps:$4 sm:$0xff]  }
  0x16   :  { %v1793_v41 = vld [vmem:[%s2677_s1 + $0x344] ss:$16 sps:$4 sm:$0xff]   ;;  %v1796_v43 = vld [vmem:[%s2677_s1 + $0x340] ss:$16 sps:$4 sm:$0xff]  }
  0x17   :  { %1217 = vmatpush1.bf16.msra.mxu0 %v1765_v22  ;;  %v1797_v44 = vld [vmem:[%s2677_s1 + $0x164] ss:$16 sps:$4 sm:$0xff]   ;;  %v1801_v49 = vld [vmem:[%s2677_s1 + $0x160] ss:$16 sps:$4 sm:$0xff]  }
  0x18   :  { %1258 = vmatpush1.bf16.msra.mxu1 %v1766_v23  ;;  %1218 = vmatprep.subr.bf16.mxu0 %v1767_v24  ;;  %v1799_v45 = vld [vmem:[%s2677_s1 + $0x364] ss:$16 sps:$4 sm:$0xff]   ;;  %v1802_v50 = vld [vmem:[%s2677_s1 + $0x360] ss:$16 sps:$4 sm:$0xff]   ;;  %v1860_v23 = vld [vmem:[%s2677_s1 + $0x8c] ss:$16 sps:$4 sm:$0xff]  }
  0x19   :  { %1259 = vmatprep.subr.bf16.mxu1 %v1769_v25  ;;  %v30_v46 = vld [vmem:[%s2678_s0] sm:$0xff]  ;;  %v1858_v25 = vld [vmem:[%s2677_s1 + $0x88] ss:$16 sps:$4 sm:$0xff]  }
  0x1a   :  { %v2191_v47 = vcombine.high %v30_v46, %v30_v46  ;;  %v1803_v52 = vld [vmem:[%s2677_s1 + $0x184] ss:$16 sps:$4 sm:$0xff]   ;;  %v1807_v54 = vld [vmem:[%s2677_s1 + $0x180] ss:$16 sps:$4 sm:$0xff]   ;;  %v2260_v6 = vcombine.low %v30_v46, %v30_v46 }
  0x1b   :  { %1219 = vmatpush1.bf16.msra.mxu0 %v1771_v26  ;;  %v1805_v53 = vld [vmem:[%s2677_s1 + $0x384] ss:$16 sps:$4 sm:$0xff]   ;;  %v1808_v55 = vld [vmem:[%s2677_s1 + $0x380] ss:$16 sps:$4 sm:$0xff]  }
  0x1c   :  { %1260 = vmatpush1.bf16.msra.mxu1 %v1772_v27  ;;  %1220 = vmatprep.subr.bf16.mxu0 %v1773_v28  ;;  %v1809_v56 = vld [vmem:[%s2677_s1 + $0x1a4] ss:$16 sps:$4 sm:$0xff]   ;;  %v1813_v58 = vld [vmem:[%s2677_s1 + $0x1a0] ss:$16 sps:$4 sm:$0xff]   ;;  %v1866_v27 = vld [vmem:[%s2677_s1 + $0xac] ss:$16 sps:$4 sm:$0xff]  }
  0x1d   :  { %1261 = vmatprep.subr.bf16.mxu1 %v1775_v29  ;;  %1238 = vmatprep.mubr.bf16.mxu0 %v2191_v47  ;;  %v1811_v57 = vld [vmem:[%s2677_s1 + $0x3a4] ss:$16 sps:$4 sm:$0xff]   ;;  %v1814_v59 = vld [vmem:[%s2677_s1 + $0x3a0] ss:$16 sps:$4 sm:$0xff]   ;;  %v1864_v29 = vld [vmem:[%s2677_s1 + $0xa8] ss:$16 sps:$4 sm:$0xff]  }
  0x1e   :  { %v1815_v60 = vld [vmem:[%s2677_s1 + $0x1c4] ss:$16 sps:$4 sm:$0xff]   ;;  %v1819_v62 = vld [vmem:[%s2677_s1 + $0x1c0] ss:$16 sps:$4 sm:$0xff]  }
  0x1f   :  { %1221 = vmatpush1.bf16.msra.mxu0 %v1777_v30  ;;  %v1817_v61 = vld [vmem:[%s2677_s1 + $0x3c4] ss:$16 sps:$4 sm:$0xff]   ;;  %v1820_v63 = vld [vmem:[%s2677_s1 + $0x3c0] ss:$16 sps:$4 sm:$0xff]  }
  0x20   :  { %1262 = vmatpush1.bf16.msra.mxu1 %v1778_v31  ;;  %1222 = vmatprep.subr.bf16.mxu0 %v1779_v32  ;;  %v1821_v0 = vld [vmem:[%s2677_s1 + $0x1e4] ss:$16 sps:$4 sm:$0xff]   ;;  %v1825_v2 = vld [vmem:[%s2677_s1 + $0x1e0] ss:$16 sps:$4 sm:$0xff]   ;;  %v1872_v31 = vld [vmem:[%s2677_s1 + $0xcc] ss:$16 sps:$4 sm:$0xff]  }
  0x21   :  { %1263 = vmatprep.subr.bf16.mxu1 %v1781_v33  ;;  %v1823_v1 = vld [vmem:[%s2677_s1 + $0x3e4] ss:$16 sps:$4 sm:$0xff]   ;;  %v1826_v3 = vld [vmem:[%s2677_s1 + $0x3e0] ss:$16 sps:$4 sm:$0xff]  }
  0x22   :  { %v1833_v4 = vld [vmem:[%s2677_s1 + $0x404] ss:$16 sps:$4 sm:$0xff]   ;;  %v1831_v8 = vld [vmem:[%s2677_s1 + $0x400] ss:$16 sps:$4 sm:$0xff]  }
  0x23   :  { %1223 = vmatpush1.bf16.msra.mxu0 %v1783_v34  ;;  %v1839_v10 = vld [vmem:[%s2677_s1 + $0x424] ss:$16 sps:$4 sm:$0xff]   ;;  %v1837_v12 = vld [vmem:[%s2677_s1 + $0x420] ss:$16 sps:$4 sm:$0xff]  }
  0x24   :  { %1264 = vmatpush1.bf16.msra.mxu1 %v1784_v35  ;;  %1224 = vmatprep.subr.bf16.mxu0 %v1785_v36  ;;  %v1845_v14 = vld [vmem:[%s2677_s1 + $0x444] ss:$16 sps:$4 sm:$0xff]   ;;  %v1843_v16 = vld [vmem:[%s2677_s1 + $0x440] ss:$16 sps:$4 sm:$0xff]   ;;  %v1870_v35 = vld [vmem:[%s2677_s1 + $0xc8] ss:$16 sps:$4 sm:$0xff]  }
  0x25   :  { %1265 = vmatprep.subr.bf16.mxu1 %v1787_v37  ;;  %v1851_v18 = vld [vmem:[%s2677_s1 + $0x464] ss:$16 sps:$4 sm:$0xff]   ;;  %v1849_v20 = vld [vmem:[%s2677_s1 + $0x460] ss:$16 sps:$4 sm:$0xff]   ;;  %v1878_v37 = vld [vmem:[%s2677_s1 + $0xec] ss:$16 sps:$4 sm:$0xff]  }
  0x26   :  { %v1857_v22 = vld [vmem:[%s2677_s1 + $0x484] ss:$16 sps:$4 sm:$0xff]   ;;  %v1855_v24 = vld [vmem:[%s2677_s1 + $0x480] ss:$16 sps:$4 sm:$0xff]  }
  0x27   :  { %1225 = vmatpush1.bf16.msra.mxu0 %v1789_v38  ;;  %v1863_v26 = vld [vmem:[%s2677_s1 + $0x4a4] ss:$16 sps:$4 sm:$0xff]   ;;  %v1861_v28 = vld [vmem:[%s2677_s1 + $0x4a0] ss:$16 sps:$4 sm:$0xff]  }
  0x28   :  { %1266 = vmatpush1.bf16.msra.mxu1 %v1790_v39  ;;  %1226 = vmatprep.subr.bf16.mxu0 %v1791_v40  ;;  %v1869_v30 = vld [vmem:[%s2677_s1 + $0x4c4] ss:$16 sps:$4 sm:$0xff]   ;;  %v1867_v33 = vld [vmem:[%s2677_s1 + $0x4c0] ss:$16 sps:$4 sm:$0xff]   ;;  %v1876_v39 = vld [vmem:[%s2677_s1 + $0xe8] ss:$16 sps:$4 sm:$0xff]  }
  0x29   :  { %1267 = vmatprep.subr.bf16.mxu1 %v1793_v41  ;;  %v2342_v32 = vld [vmem:[%s2678_s0 + $0x10] sm:$0xff]  ;;  %v1884_v41 = vld [vmem:[%s2677_s1 + $0x10c] ss:$16 sps:$4 sm:$0xff]  }
  0x2a   :  { %v2349_v34 = vcombine.high %v2342_v32, %v2342_v32  ;;  %v1875_v36 = vld [vmem:[%s2677_s1 + $0x4e4] ss:$16 sps:$4 sm:$0xff]   ;;  %v1873_v38 = vld [vmem:[%s2677_s1 + $0x4e0] ss:$16 sps:$4 sm:$0xff]  }
  0x2b   :  { %1227 = vmatpush1.bf16.msra.mxu0 %v1795_v42  ;;  %v1881_v40 = vld [vmem:[%s2677_s1 + $0x504] ss:$16 sps:$4 sm:$0xff]   ;;  %v1879_v42 = vld [vmem:[%s2677_s1 + $0x500] ss:$16 sps:$4 sm:$0xff]  }
  0x2c   :  { %1268 = vmatpush1.bf16.msra.mxu1 %v1796_v43  ;;  %1228 = vmatprep.subr.bf16.mxu0 %v1797_v44  ;;  %v1882_v43 = vld [vmem:[%s2677_s1 + $0x108] ss:$16 sps:$4 sm:$0xff]   ;;  %v1887_v44 = vld [vmem:[%s2677_s1 + $0x524] ss:$16 sps:$4 sm:$0xff]   ;;  %v1885_v46 = vld [vmem:[%s2677_s1 + $0x520] ss:$16 sps:$4 sm:$0xff]  }
  0x2d   :  { %1269 = vmatprep.subr.bf16.mxu1 %v1799_v45  ;;  %v1890_v45 = vld [vmem:[%s2677_s1 + $0x12c] ss:$16 sps:$4 sm:$0xff]   ;;  %v1893_v48 = vld [vmem:[%s2677_s1 + $0x544] ss:$16 sps:$4 sm:$0xff]  }
  0x2f   :  { %1229 = vmatpush1.bf16.msra.mxu0 %v1801_v49  ;;  %v1896_v49 = vld [vmem:[%s2677_s1 + $0x14c] ss:$16 sps:$4 sm:$0xff]  }
  0x30   :  { %1270 = vmatpush1.bf16.msra.mxu1 %v1802_v50  ;;  %1230 = vmatprep.subr.bf16.mxu0 %v1803_v52  ;;  %v1891_v50 = vld [vmem:[%s2677_s1 + $0x540] ss:$16 sps:$4 sm:$0xff]   ;;  %v1894_v52 = vld [vmem:[%s2677_s1 + $0x148] ss:$16 sps:$4 sm:$0xff]  }
  0x31   :  { %1271 = vmatprep.subr.bf16.mxu1 %v1805_v53  ;;  %v1899_v53 = vld [vmem:[%s2677_s1 + $0x564] ss:$16 sps:$4 sm:$0xff]  }
  0x33   :  { %1231 = vmatpush1.bf16.msra.mxu0 %v1807_v54  ;;  %v1902_v54 = vld [vmem:[%s2677_s1 + $0x16c] ss:$16 sps:$4 sm:$0xff]  }
  0x34   :  { %1272 = vmatpush1.bf16.msra.mxu1 %v1808_v55  ;;  %1232 = vmatprep.subr.bf16.mxu0 %v1809_v56  ;;  %v1897_v55 = vld [vmem:[%s2677_s1 + $0x560] ss:$16 sps:$4 sm:$0xff]   ;;  %v1900_v56 = vld [vmem:[%s2677_s1 + $0x168] ss:$16 sps:$4 sm:$0xff]  }
  0x35   :  { %1273 = vmatprep.subr.bf16.mxu1 %v1811_v57  ;;  %v1905_v57 = vld [vmem:[%s2677_s1 + $0x584] ss:$16 sps:$4 sm:$0xff]  }
  0x37   :  { %1233 = vmatpush1.bf16.msra.mxu0 %v1813_v58  ;;  %v1908_v58 = vld [vmem:[%s2677_s1 + $0x18c] ss:$16 sps:$4 sm:$0xff]  }
  0x38   :  { %1274 = vmatpush1.bf16.msra.mxu1 %v1814_v59  ;;  %1234 = vmatprep.subr.bf16.mxu0 %v1815_v60  ;;  %v1903_v59 = vld [vmem:[%s2677_s1 + $0x580] ss:$16 sps:$4 sm:$0xff]   ;;  %v1906_v60 = vld [vmem:[%s2677_s1 + $0x188] ss:$16 sps:$4 sm:$0xff]  }
  0x39   :  { %1275 = vmatprep.subr.bf16.mxu1 %v1817_v61  ;;  %v1911_v61 = vld [vmem:[%s2677_s1 + $0x5a4] ss:$16 sps:$4 sm:$0xff]  }
  0x3b   :  { %1235 = vmatpush1.bf16.msra.mxu0 %v1819_v62  ;;  %v1914_v62 = vld [vmem:[%s2677_s1 + $0x1ac] ss:$16 sps:$4 sm:$0xff]  }
  0x3c   :  { %1276 = vmatpush1.bf16.msra.mxu1 %v1820_v63  ;;  %1236 = vmatprep.subr.bf16.mxu0 %v1821_v0  ;;  %v1909_v63 = vld [vmem:[%s2677_s1 + $0x5a0] ss:$16 sps:$4 sm:$0xff]   ;;  %v1912_v0 = vld [vmem:[%s2677_s1 + $0x1a8] ss:$16 sps:$4 sm:$0xff]  }
  0x3d   :  { %1277 = vmatprep.subr.bf16.mxu1 %v1823_v1  ;;  %v1917_v1 = vld [vmem:[%s2677_s1 + $0x5c4] ss:$16 sps:$4 sm:$0xff]  }
  0x3f   :  { %1237 = vmatpush1.bf16.msra.mxu0 %v1825_v2  ;;  %v1920_v2 = vld [vmem:[%s2677_s1 + $0x1cc] ss:$16 sps:$4 sm:$0xff]  }
  0x40   :  { %1278 = vmatpush1.bf16.msra.mxu1 %v1826_v3  ;;  %1288 = vmatprep.subr.bf16.mxu0 %v1833_v4  ;;  %v1915_v3 = vld [vmem:[%s2677_s1 + $0x5c0] ss:$16 sps:$4 sm:$0xff]   ;;  %v1918_v4 = vld [vmem:[%s2677_s1 + $0x1c8] ss:$16 sps:$4 sm:$0xff]  }
  0x41   :  { %1329 = vmatprep.subr.bf16.mxu1 %v1836_v5  ;;  %v1923_v5 = vld [vmem:[%s2677_s1 + $0x5e4] ss:$16 sps:$4 sm:$0xff]  }
  0x42   :  { %1239 = vmatmul.mubr.bf16.vlgmr.msra.gmra.mrb[0].mxu0 %v2260_v6 }
  0x43   :  { %1280 = vmatmul.mubr.bf16.vlgmr.msra.gmra.mrb[0].mxu1 %v2262_v7  ;;  %1289 = vmatpush1.bf16.msra.mxu0 %v1831_v8  ;;  %v1926_v8 = vld [vmem:[%s2677_s1 + $0x1ec] ss:$16 sps:$4 sm:$0xff]  }
  0x44   :  { %1330 = vmatpush1.bf16.msra.mxu1 %v1834_v9  ;;  %1290 = vmatprep.subr.bf16.mxu0 %v1839_v10  ;;  %v1921_v9 = vld [vmem:[%s2677_s1 + $0x5e0] ss:$16 sps:$4 sm:$0xff]   ;;  %v1924_v10 = vld [vmem:[%s2677_s1 + $0x1e8] ss:$16 sps:$4 sm:$0xff]  }
  0x45   :  { %1331 = vmatprep.subr.bf16.mxu1 %v1842_v11  ;;  %1361 = vmatprep.mubr.bf16.mxu1 %v2191_v47  ;;  %v1888_v47 = vld [vmem:[%s2677_s1 + $0x128] ss:$16 sps:$4 sm:$0xff]   ;;  %v1931_v11 = vld [vmem:[%s2677_s1 + $0x20c] ss:$16 sps:$4 sm:$0xff]  }
  0x46   :  { %1320 = vmatprep.mubr.bf16.mxu0 %v2349_v34 }
  0x47   :  { %1291 = vmatpush1.bf16.msra.mxu0 %v1837_v12  ;;  %v1934_v12 = vld [vmem:[%s2677_s1 + $0x40c] ss:$16 sps:$4 sm:$0xff]  }
  0x48   :  { %1332 = vmatpush1.bf16.msra.mxu1 %v1840_v13  ;;  %1292 = vmatprep.subr.bf16.mxu0 %v1845_v14  ;;  %v2471_v13 = vcombine.low %v2342_v32, %v2342_v32  ;;  %v1929_v14 = vld [vmem:[%s2677_s1 + $0x208] ss:$16 sps:$4 sm:$0xff]  }
  0x49   :  { %1333 = vmatprep.subr.bf16.mxu1 %v1848_v15  ;;  %v1932_v15 = vld [vmem:[%s2677_s1 + $0x408] ss:$16 sps:$4 sm:$0xff]  }
  0x4a   :  { %v1959_v32 = vld [vmem:[%s2677_s1 + $0x2a8] ss:$16 sps:$4 sm:$0xff]  }
  0x4b   :  { %1293 = vmatpush1.bf16.msra.mxu0 %v1843_v16  ;;  %v1937_v16 = vld [vmem:[%s2677_s1 + $0x22c] ss:$16 sps:$4 sm:$0xff]  }
  0x4c   :  { %1334 = vmatpush1.bf16.msra.mxu1 %v1846_v17  ;;  %1294 = vmatprep.subr.bf16.mxu0 %v1851_v18  ;;  %v1940_v17 = vld [vmem:[%s2677_s1 + $0x42c] ss:$16 sps:$4 sm:$0xff]   ;;  %v1935_v18 = vld [vmem:[%s2677_s1 + $0x228] ss:$16 sps:$4 sm:$0xff]  }
  0x4d   :  { %1335 = vmatprep.subr.bf16.mxu1 %v1854_v19  ;;  %v1938_v19 = vld [vmem:[%s2677_s1 + $0x428] ss:$16 sps:$4 sm:$0xff]  }
  0x4f   :  { %1295 = vmatpush1.bf16.msra.mxu0 %v1849_v20  ;;  %v1943_v20 = vld [vmem:[%s2677_s1 + $0x24c] ss:$16 sps:$4 sm:$0xff]  }
  0x50   :  { %1336 = vmatpush1.bf16.msra.mxu1 %v1852_v21  ;;  %1296 = vmatprep.subr.bf16.mxu0 %v1857_v22  ;;  %v1941_v21 = vld [vmem:[%s2677_s1 + $0x248] ss:$16 sps:$4 sm:$0xff]  }
  0x51   :  { %1337 = vmatprep.subr.bf16.mxu1 %v1860_v23  ;;  %v1944_v22 = vld [vmem:[%s2677_s1 + $0x448] ss:$16 sps:$4 sm:$0xff]   ;;  %v1949_v23 = vld [vmem:[%s2677_s1 + $0x26c] ss:$16 sps:$4 sm:$0xff]  }
  0x53   :  { %1297 = vmatpush1.bf16.msra.mxu0 %v1855_v24  ;;  %v1947_v24 = vld [vmem:[%s2677_s1 + $0x268] ss:$16 sps:$4 sm:$0xff]  }
  0x54   :  { %1338 = vmatpush1.bf16.msra.mxu1 %v1858_v25  ;;  %1298 = vmatprep.subr.bf16.mxu0 %v1863_v26  ;;  %v1950_v25 = vld [vmem:[%s2677_s1 + $0x468] ss:$16 sps:$4 sm:$0xff]   ;;  %v1955_v26 = vld [vmem:[%s2677_s1 + $0x28c] ss:$16 sps:$4 sm:$0xff]  }
  0x55   :  { %1339 = vmatprep.subr.bf16.mxu1 %v1866_v27  ;;  %v1958_v27 = vld [vmem:[%s2677_s1 + $0x48c] ss:$16 sps:$4 sm:$0xff]  }
  0x57   :  { %1299 = vmatpush1.bf16.msra.mxu0 %v1861_v28  ;;  %v1953_v28 = vld [vmem:[%s2677_s1 + $0x288] ss:$16 sps:$4 sm:$0xff]  }
  0x58   :  { %1340 = vmatpush1.bf16.msra.mxu1 %v1864_v29  ;;  %1300 = vmatprep.subr.bf16.mxu0 %v1869_v30  ;;  %v1956_v29 = vld [vmem:[%s2677_s1 + $0x488] ss:$16 sps:$4 sm:$0xff]   ;;  %v1961_v30 = vld [vmem:[%s2677_s1 + $0x2ac] ss:$16 sps:$4 sm:$0xff]  }
  0x59   :  { %1341 = vmatprep.subr.bf16.mxu1 %v1872_v31  ;;  %v1964_v31 = vld [vmem:[%s2677_s1 + $0x4ac] ss:$16 sps:$4 sm:$0xff]  }
  0x5b   :  { %1301 = vmatpush1.bf16.msra.mxu0 %v1867_v33  ;;  %v1962_v33 = vld [vmem:[%s2677_s1 + $0x4a8] ss:$16 sps:$4 sm:$0xff]  }
  0x5c   :  { %1342 = vmatpush1.bf16.msra.mxu1 %v1870_v35  ;;  %1302 = vmatprep.subr.bf16.mxu0 %v1875_v36  ;;  %v1970_v35 = vld [vmem:[%s2677_s1 + $0x4cc] ss:$16 sps:$4 sm:$0xff]   ;;  %v1965_v36 = vld [vmem:[%s2677_s1 + $0x2c8] ss:$16 sps:$4 sm:$0xff]  }
  0x5d   :  { %1343 = vmatprep.subr.bf16.mxu1 %v1878_v37  ;;  %v1968_v37 = vld [vmem:[%s2677_s1 + $0x4c8] ss:$16 sps:$4 sm:$0xff]  }
  0x5f   :  { %1303 = vmatpush1.bf16.msra.mxu0 %v1873_v38  ;;  %v1973_v38 = vld [vmem:[%s2677_s1 + $0x2ec] ss:$16 sps:$4 sm:$0xff]  }
  0x60   :  { %1344 = vmatpush1.bf16.msra.mxu1 %v1876_v39  ;;  %1304 = vmatprep.subr.bf16.mxu0 %v1881_v40  ;;  %v1976_v39 = vld [vmem:[%s2677_s1 + $0x4ec] ss:$16 sps:$4 sm:$0xff]   ;;  %v1971_v40 = vld [vmem:[%s2677_s1 + $0x2e8] ss:$16 sps:$4 sm:$0xff]  }
  0x61   :  { %1345 = vmatprep.subr.bf16.mxu1 %v1884_v41  ;;  %v1974_v41 = vld [vmem:[%s2677_s1 + $0x4e8] ss:$16 sps:$4 sm:$0xff]  }
  0x63   :  { %1305 = vmatpush1.bf16.msra.mxu0 %v1879_v42  ;;  %v1979_v42 = vld [vmem:[%s2677_s1 + $0x30c] ss:$16 sps:$4 sm:$0xff]  }
  0x64   :  { %1346 = vmatpush1.bf16.msra.mxu1 %v1882_v43  ;;  %1306 = vmatprep.subr.bf16.mxu0 %v1887_v44  ;;  %v1982_v43 = vld [vmem:[%s2677_s1 + $0x50c] ss:$16 sps:$4 sm:$0xff]   ;;  %v1977_v44 = vld [vmem:[%s2677_s1 + $0x308] ss:$16 sps:$4 sm:$0xff]  }
  0x65   :  { %1347 = vmatprep.subr.bf16.mxu1 %v1890_v45  ;;  %v1980_v45 = vld [vmem:[%s2677_s1 + $0x508] ss:$16 sps:$4 sm:$0xff]  }
  0x67   :  { %1307 = vmatpush1.bf16.msra.mxu0 %v1885_v46  ;;  %v1985_v46 = vld [vmem:[%s2677_s1 + $0x32c] ss:$16 sps:$4 sm:$0xff]  }
  0x68   :  { %1348 = vmatpush1.bf16.msra.mxu1 %v1888_v47  ;;  %1308 = vmatprep.subr.bf16.mxu0 %v1893_v48  ;;  %v1988_v47 = vld [vmem:[%s2677_s1 + $0x52c] ss:$16 sps:$4 sm:$0xff]   ;;  %v1983_v48 = vld [vmem:[%s2677_s1 + $0x328] ss:$16 sps:$4 sm:$0xff]  }
  0x69   :  { %1349 = vmatprep.subr.bf16.mxu1 %v1896_v49  ;;  %v1986_v49 = vld [vmem:[%s2677_s1 + $0x528] ss:$16 sps:$4 sm:$0xff]  }
  0x6b   :  { %1309 = vmatpush1.bf16.msra.mxu0 %v1891_v50  ;;  %v1991_v50 = vld [vmem:[%s2677_s1 + $0x34c] ss:$16 sps:$4 sm:$0xff]  }
  0x6c   :  { %1350 = vmatpush1.bf16.msra.mxu1 %v1894_v52  ;;  %1310 = vmatprep.subr.bf16.mxu0 %v1899_v53  ;;  %v1994_v52 = vld [vmem:[%s2677_s1 + $0x54c] ss:$16 sps:$4 sm:$0xff]   ;;  %v1989_v53 = vld [vmem:[%s2677_s1 + $0x348] ss:$16 sps:$4 sm:$0xff]  }
  0x6d   :  { %1351 = vmatprep.subr.bf16.mxu1 %v1902_v54  ;;  %v1992_v54 = vld [vmem:[%s2677_s1 + $0x548] ss:$16 sps:$4 sm:$0xff]  }
  0x6f   :  { %1311 = vmatpush1.bf16.msra.mxu0 %v1897_v55  ;;  %v1997_v55 = vld [vmem:[%s2677_s1 + $0x36c] ss:$16 sps:$4 sm:$0xff]  }
  0x70   :  { %1352 = vmatpush1.bf16.msra.mxu1 %v1900_v56  ;;  %1312 = vmatprep.subr.bf16.mxu0 %v1905_v57  ;;  %v2000_v56 = vld [vmem:[%s2677_s1 + $0x56c] ss:$16 sps:$4 sm:$0xff]   ;;  %v1995_v57 = vld [vmem:[%s2677_s1 + $0x368] ss:$16 sps:$4 sm:$0xff]  }
  0x71   :  { %1353 = vmatprep.subr.bf16.mxu1 %v1908_v58  ;;  %v1998_v58 = vld [vmem:[%s2677_s1 + $0x568] ss:$16 sps:$4 sm:$0xff]  }
  0x73   :  { %1313 = vmatpush1.bf16.msra.mxu0 %v1903_v59  ;;  %v2003_v59 = vld [vmem:[%s2677_s1 + $0x38c] ss:$16 sps:$4 sm:$0xff]  }
  0x74   :  { %1354 = vmatpush1.bf16.msra.mxu1 %v1906_v60  ;;  %1314 = vmatprep.subr.bf16.mxu0 %v1911_v61  ;;  %v2006_v60 = vld [vmem:[%s2677_s1 + $0x58c] ss:$16 sps:$4 sm:$0xff]   ;;  %v2001_v61 = vld [vmem:[%s2677_s1 + $0x388] ss:$16 sps:$4 sm:$0xff]  }
  0x75   :  { %1355 = vmatprep.subr.bf16.mxu1 %v1914_v62  ;;  %v2004_v62 = vld [vmem:[%s2677_s1 + $0x588] ss:$16 sps:$4 sm:$0xff]  }
  0x77   :  { %1315 = vmatpush1.bf16.msra.mxu0 %v1909_v63  ;;  %v2009_v63 = vld [vmem:[%s2677_s1 + $0x3ac] ss:$16 sps:$4 sm:$0xff]  }
  0x78   :  { %1356 = vmatpush1.bf16.msra.mxu1 %v1912_v0  ;;  %1316 = vmatprep.subr.bf16.mxu0 %v1917_v1  ;;  %v2012_v0 = vld [vmem:[%s2677_s1 + $0x5ac] ss:$16 sps:$4 sm:$0xff]   ;;  %v2007_v1 = vld [vmem:[%s2677_s1 + $0x3a8] ss:$16 sps:$4 sm:$0xff]  }
  0x79   :  { %1357 = vmatprep.subr.bf16.mxu1 %v1920_v2  ;;  %v2010_v2 = vld [vmem:[%s2677_s1 + $0x5a8] ss:$16 sps:$4 sm:$0xff]  }
  0x7b   :  { %1317 = vmatpush1.bf16.msra.mxu0 %v1915_v3  ;;  %v2015_v3 = vld [vmem:[%s2677_s1 + $0x3cc] ss:$16 sps:$4 sm:$0xff]  }
  0x7c   :  { %1358 = vmatpush1.bf16.msra.mxu1 %v1918_v4  ;;  %1318 = vmatprep.subr.bf16.mxu0 %v1923_v5  ;;  %v2018_v4 = vld [vmem:[%s2677_s1 + $0x5cc] ss:$16 sps:$4 sm:$0xff]   ;;  %v2013_v5 = vld [vmem:[%s2677_s1 + $0x3c8] ss:$16 sps:$4 sm:$0xff]  }
  0x7d   :  { %1359 = vmatprep.subr.bf16.mxu1 %v1926_v8  ;;  %v2016_v8 = vld [vmem:[%s2677_s1 + $0x5c8] ss:$16 sps:$4 sm:$0xff]  }
  0x7f   :  { %1319 = vmatpush1.bf16.msra.mxu0 %v1921_v9  ;;  %v2021_v9 = vld [vmem:[%s2677_s1 + $0x3ec] ss:$16 sps:$4 sm:$0xff]  }
  0x80   :  { %1360 = vmatpush1.bf16.msra.mxu1 %v1924_v10  ;;  %1370 = vmatprep.subr.bf16.mxu0 %v1931_v11  ;;  %v2024_v10 = vld [vmem:[%s2677_s1 + $0x5ec] ss:$16 sps:$4 sm:$0xff]   ;;  %v2019_v11 = vld [vmem:[%s2677_s1 + $0x3e8] ss:$16 sps:$4 sm:$0xff]  }
  0x81   :  { %1411 = vmatprep.subr.bf16.mxu1 %v1934_v12  ;;  %v2022_v12 = vld [vmem:[%s2677_s1 + $0x5e8] ss:$16 sps:$4 sm:$0xff]  }
  0x82   :  { %1321 = vmatmul.mubr.bf16.vlgmr.msra.gmra.mrb[4].mxu0 %v2471_v13 }
  0x83   :  { %1362 = vmatmul.mubr.bf16.vlgmr.msra.gmra.mrb[4].mxu1 %v2260_v6  ;;  %1371 = vmatpush1.bf16.msra.mxu0 %v1929_v14  ;;  %v1946_v6 = vld [vmem:[%s2677_s1 + $0x44c] ss:$16 sps:$4 sm:$0xff]  }
  0x84   :  { %1412 = vmatpush1.bf16.msra.mxu1 %v1932_v15  ;;  %1372 = vmatprep.subr.bf16.mxu0 %v1937_v16 }
  0x85   :  { %1413 = vmatprep.subr.bf16.mxu1 %v1940_v17  ;;  %1402 = vmatprep.mubr.bf16.mxu0 %v2202_v51  ;;  %v1952_v51 = vld [vmem:[%s2677_s1 + $0x46c] ss:$16 sps:$4 sm:$0xff]  }
  0x86   :  { %1443 = vmatprep.mubr.bf16.mxu1 %v2349_v34  ;;  %v1967_v34 = vld [vmem:[%s2677_s1 + $0x2cc] ss:$16 sps:$4 sm:$0xff]  }
  0x87   :  { %1373 = vmatpush1.bf16.msra.mxu0 %v1935_v18 }
  0x88   :  { %1414 = vmatpush1.bf16.msra.mxu1 %v1938_v19  ;;  %1374 = vmatprep.subr.bf16.mxu0 %v1943_v20 }
  0x89   :  { %1415 = vmatprep.subr.bf16.mxu1 %v1946_v6 }
  0x8b   :  { %1375 = vmatpush1.bf16.msra.mxu0 %v1941_v21 }
  0x8c   :  { %1416 = vmatpush1.bf16.msra.mxu1 %v1944_v22  ;;  %1376 = vmatprep.subr.bf16.mxu0 %v1949_v23  ;;  %v1469_v23 = vlaneseq }
  0x8d   :  { %1417 = vmatprep.subr.bf16.mxu1 %v1952_v51 }
  0x8e   :  { %v1470_v51 = vshrl.u32 %v1469_v23, 7 }
  0x8f   :  { %1377 = vmatpush1.bf16.msra.mxu0 %v1947_v24 }
  0x90   :  { %1418 = vmatpush1.bf16.msra.mxu1 %v1950_v25  ;;  %1378 = vmatprep.subr.bf16.mxu0 %v1955_v26  ;;  %v1471_v24 = vsub.s32 0, %v1470_v51  ;;  %v1467_v25 = vld [vmem:[%s2679_s2] sm:$0xf] }
  0x91   :  { %1419 = vmatprep.subr.bf16.mxu1 %v1958_v27 }
  0x92   :  { %v1472_v26 = vrot.slane %v1467_v25, %v1471_v24 }
  0x93   :  { %1379 = vmatpush1.bf16.msra.mxu0 %v1953_v28 }
  0x94   :  { %1420 = vmatpush1.bf16.msra.mxu1 %v1956_v29  ;;  %1380 = vmatprep.subr.bf16.mxu0 %v1961_v30 }
  0x95   :  { %1421 = vmatprep.subr.bf16.mxu1 %v1964_v31 }
  0x97   :  { %1381 = vmatpush1.bf16.msra.mxu0 %v1959_v32  ;;  %v1498_v32 = vstv %s2680_s3 }
  0x98   :  { %1422 = vmatpush1.bf16.msra.mxu1 %v1962_v33  ;;  %1382 = vmatprep.subr.bf16.mxu0 %v1967_v34 }
  0x99   :  { %1423 = vmatprep.subr.bf16.mxu1 %v1970_v35 }
  0x9b   :  { %1383 = vmatpush1.bf16.msra.mxu0 %v1965_v36 }
  0x9c   :  { %1424 = vmatpush1.bf16.msra.mxu1 %v1968_v37  ;;  %1384 = vmatprep.subr.bf16.mxu0 %v1973_v38 }
  0x9d   :  { %1425 = vmatprep.subr.bf16.mxu1 %v1976_v39 }
  0x9f   :  { %1385 = vmatpush1.bf16.msra.mxu0 %v1971_v40 }
  0xa0   :  { %1426 = vmatpush1.bf16.msra.mxu1 %v1974_v41  ;;  %1386 = vmatprep.subr.bf16.mxu0 %v1979_v42 }
  0xa1   :  { %1427 = vmatprep.subr.bf16.mxu1 %v1982_v43 }
  0xa3   :  { %1387 = vmatpush1.bf16.msra.mxu0 %v1977_v44 }
  0xa4   :  { %1428 = vmatpush1.bf16.msra.mxu1 %v1980_v45  ;;  %1388 = vmatprep.subr.bf16.mxu0 %v1985_v46  ;;  %v1479_v45 = vsub.s32 2, %v1470_v51  ;;  %v1483_v46 = vsub.s32 3, %v1470_v51 }
  0xa5   :  { %1429 = vmatprep.subr.bf16.mxu1 %v1988_v47 }
  0xa7   :  { %1389 = vmatpush1.bf16.msra.mxu0 %v1983_v48 }
  0xa8   :  { %1430 = vmatpush1.bf16.msra.mxu1 %v1986_v49  ;;  %1390 = vmatprep.subr.bf16.mxu0 %v1991_v50  ;;  %v1480_v50 = vrot.slane %v1467_v25, %v1479_v45 }
  0xa9   :  { %1431 = vmatprep.subr.bf16.mxu1 %v1994_v52 }
  0xab   :  { %1391 = vmatpush1.bf16.msra.mxu0 %v1989_v53 }
  0xac   :  { %1432 = vmatpush1.bf16.msra.mxu1 %v1992_v54  ;;  %1392 = vmatprep.subr.bf16.mxu0 %v1997_v55  ;;  %v1484_v55 = vrot.slane %v1467_v25, %v1483_v46 }
  0xad   :  { %1433 = vmatprep.subr.bf16.mxu1 %v2000_v56 }
  0xaf   :  { %1393 = vmatpush1.bf16.msra.mxu0 %v1995_v57 }
  0xb0   :  { %1434 = vmatpush1.bf16.msra.mxu1 %v1998_v58  ;;  %1394 = vmatprep.subr.bf16.mxu0 %v2003_v59 }
  0xb1   :  { %1435 = vmatprep.subr.bf16.mxu1 %v2006_v60 }
  0xb3   :  { %1395 = vmatpush1.bf16.msra.mxu0 %v2001_v61 }
  0xb4   :  { %1436 = vmatpush1.bf16.msra.mxu1 %v2004_v62  ;;  %1396 = vmatprep.subr.bf16.mxu0 %v2009_v63 }
  0xb5   :  { %1437 = vmatprep.subr.bf16.mxu1 %v2012_v0 }
  0xb7   :  { %1397 = vmatpush1.bf16.msra.mxu0 %v2007_v1 }
  0xb8   :  { %1438 = vmatpush1.bf16.msra.mxu1 %v2010_v2  ;;  %1398 = vmatprep.subr.bf16.mxu0 %v2015_v3 }
  0xb9   :  { %1439 = vmatprep.subr.bf16.mxu1 %v2018_v4 }
  0xbb   :  { %1399 = vmatpush1.bf16.msra.mxu0 %v2013_v5 }
  0xbc   :  { %1440 = vmatpush1.bf16.msra.mxu1 %v2016_v8  ;;  %1400 = vmatprep.subr.bf16.mxu0 %v2021_v9 }
  0xbd   :  { %1441 = vmatprep.subr.bf16.mxu1 %v2024_v10 }
  0xbf   :  { %1401 = vmatpush1.bf16.msra.mxu0 %v2019_v11 }
  0xc0   :  { %1442 = vmatpush1.bf16.msra.mxu1 %v2022_v12 }
  0xc2   :  { %1403 = vmatmul.mubr.bf16.vlgmr.msra.gmra.mrb[8].mxu0 %v2262_v7  ;;  %v1475_v7 = vsub.s32 1, %v1470_v51 }
  0xc3   :  { %1444 = vmatmul.mubr.bf16.vlgmr.msra.gmra.mrb[8].mxu1 %v2471_v13 }
  0xc4   :  { %v1476_v28 = vrot.slane %v1467_v25, %v1475_v7 }
 0x115   :  { %v1240_v14 = vpop.f32.mrb[0].mxu0 }
 0x116   :  { %v1281_v15 = vpop.f32.mrb[0].mxu1  ;;  %v1242_v17 = vpop.f32.mrb[1].mxu0 }
 0x117   :  { %v1282_v16 = vadd.f32 %v1281_v15, %v1240_v14  ;;  %v1283_v18 = vpop.f32.mrb[1].mxu1  ;;  %v1244_v20 = vpop.f32.mrb[2].mxu0 }
 0x118   :  { %v1284_v19 = vadd.f32 %v1283_v18, %v1242_v17  ;;  %v1285_v6 = vpop.f32.mrb[2].mxu1  ;;  %v1245_v21 = vpop.f32.mrb[3].mxu0 }
 0x119   :  { %v1286_v22 = vpop.f32.mrb[3].mxu1 }
 0x155   :  { %v1322_v13 = vpop.f32.mrb[4].mxu0 }
 0x156   :  { %v1363_v27 = vpop.f32.mrb[4].mxu1  ;;  %v1323_v29 = vadd.f32 %v1322_v13, %v1282_v16  ;;  %v1324_v30 = vpop.f32.mrb[5].mxu0 }
 0x157   :  { %v1365_v31 = vpop.f32.mrb[5].mxu1  ;;  %v1325_v33 = vadd.f32 %v1324_v30, %v1284_v19  ;;  %v1326_v34 = vpop.f32.mrb[6].mxu0 }
 0x158   :  { %v1367_v35 = vpop.f32.mrb[6].mxu1  ;;  %v1489_v36 = vadd.f32 %v1472_v26, %v1323_v29  ;;  %v1327_v37 = vpop.f32.mrb[7].mxu0 }
 0x159   :  { %v1368_v38 = vpop.f32.mrb[7].mxu1  ;;  %v1490_v39 = vadd.f32 %v1476_v28, %v1325_v33 }
 0x15a   :  { %vm1494_vm0 = vcmp.gt.f32.partialorder %v1489_v36, 0.0  ;;  %v1499_v40 = vmul.f32 %v1498_v32, %v1489_v36 }
 0x15b   :  { %vm1495_vm1 = vcmp.gt.f32.partialorder %v1490_v39, 0.0  ;;  %v1500_v41 = vmul.f32 %v1498_v32, %v1490_v39 }
 0x15c   :  { %v1503_v42 = vsel %vm1494_vm0, %v1489_v36, %v1499_v40 }
 0x15d   :  { %v1504_v43 = vsel %vm1495_vm1, %v1490_v39, %v1500_v41 }
 0x15e   :  { %v1729_v44 = vpack.c.bf16 %v1504_v43, %v1503_v42 }
 0x160   :  { %1523 = vst [vmem:[%s2681_s4] sm:$0xff] %v1729_v44 }
 0x195   :  { %v1404_v47 = vpop.f32.mrb[8].mxu0 }
 0x196   :  { %v1445_v48 = vpop.f32.mrb[8].mxu1  ;;  %v1405_v49 = vadd.f32 %v1404_v47, %v1363_v27  ;;  %v1406_v52 = vpop.f32.mrb[9].mxu0 }
 0x197   :  { %v1447_v53 = vpop.f32.mrb[9].mxu1  ;;  %v1407_v54 = vadd.f32 %v1406_v52, %v1365_v31  ;;  %v1408_v56 = vpop.f32.mrb[10].mxu0 }
 0x198   :  { %v1449_v57 = vpop.f32.mrb[10].mxu1  ;;  %v1446_v58 = vadd.f32 %v1445_v48, %v1405_v49  ;;  %v1409_v59 = vpop.f32.mrb[11].mxu0 }
 0x199   :  { %v1450_v60 = vpop.f32.mrb[11].mxu1  ;;  %v1448_v61 = vadd.f32 %v1447_v53, %v1407_v54 }
 0x19a   :  { %v1491_v62 = vadd.f32 %v1480_v50, %v1446_v58 }
 0x19b   :  { %v1492_v63 = vadd.f32 %v1484_v55, %v1448_v61 }
 0x19c   :  { %vm1496_vm2 = vcmp.gt.f32.partialorder %v1491_v62, 0.0  ;;  %v1501_v0 = vmul.f32 %v1498_v32, %v1491_v62 }
 0x19d   :  { %vm1497_vm3 = vcmp.gt.f32.partialorder %v1492_v63, 0.0  ;;  %v1502_v1 = vmul.f32 %v1498_v32, %v1492_v63 }
 0x19e   :  { %v1505_v2 = vsel %vm1496_vm2, %v1491_v62, %v1501_v0 }
 0x19f   :  { %v1506_v3 = vsel %vm1497_vm3, %v1492_v63, %v1502_v1 }
 0x1a0   :  { %v1730_v4 = vpack.c.bf16 %v1506_v3, %v1505_v2 }
 0x1a2   :  { %1524 = vst [vmem:[%s2681_s4 + $0x8] sm:$0xff] %v1730_v4 }

// kernel: mlp_forward.18
= control target key start
LH: loop header
LB: loop body
LE: loop exit
PB: predicated region body
PF: predicated region fallthrough
CT: control target
= control target key end

     0   :  { %v583_v1 = vmov 0   ;;  %v421_v57 = vlaneseq  ;;  %s768_s1 = inlined_call_operand.vmem [shape: bf16[384,256], index: 1, kind: input, shape index: {}]   ;;  %s769_s0 = inlined_call_operand.vmem [shape: bf16[8,384], index: 0, kind: input, shape index: {}]   ;;  %s770_s2 = inlined_call_operand.vmem [shape: f32[1,256], index: 2, kind: input, shape index: {}]   ;;  %s771_s3 = inlined_call_operand.<no memory space> [shape: f32[1,1], index: 3, kind: input, shape index: {}]   ;;  %s772_s4 = inlined_call_operand.vmem [shape: bf16[8,256], index: 4, kind: output, shape index: {}]  }
   0x1   :  { %v508_v0 = vld [vmem:[%s768_s1 + $0x4] ss:$8 sps:$4 sm:$0xff]   ;;  %401 = vmatprep.mubr.bf16.mxu1 %v583_v1  ;;  %v510_v2 = vld [vmem:[%s768_s1] ss:$8 sps:$4 sm:$0xff]   ;;  %v511_v3 = vld [vmem:[%s768_s1 + $0x14] ss:$8 sps:$4 sm:$0xff]  }
   0x2   :  { %328 = vmatprep.subr.bf16.mxu0 %v508_v0  ;;  %v513_v4 = vld [vmem:[%s768_s1 + $0x10] ss:$8 sps:$4 sm:$0xff]   ;;  %v514_v5 = vld [vmem:[%s768_s1 + $0x24] ss:$8 sps:$4 sm:$0xff]   ;;  %v516_v6 = vld [vmem:[%s768_s1 + $0x20] ss:$8 sps:$4 sm:$0xff]  }
   0x3   :  { %329 = vmatpush1.bf16.msra.mxu0 %v510_v2  ;;  %v517_v7 = vld [vmem:[%s768_s1 + $0x34] ss:$8 sps:$4 sm:$0xff]   ;;  %v519_v8 = vld [vmem:[%s768_s1 + $0x30] ss:$8 sps:$4 sm:$0xff]   ;;  %v532_v9 = vld [vmem:[%s768_s1 + $0x104] ss:$8 sps:$4 sm:$0xff]  }
   0x4   :  { %330 = vmatprep.subr.bf16.mxu0 %v511_v3  ;;  %v534_v10 = vld [vmem:[%s768_s1 + $0x100] ss:$8 sps:$4 sm:$0xff]   ;;  %v520_v11 = vld [vmem:[%s768_s1 + $0x44] ss:$8 sps:$4 sm:$0xff]   ;;  %369 = vmatprep.subr.bf16.mxu1 %v532_v9  ;;  %v538_v12 = vld [vmem:[%s768_s1 + $0x114] ss:$8 sps:$4 sm:$0xff]   ;;  %v436_v3 = vstv %s771_s3 }
   0x5   :  { %370 = vmatpush1.bf16.msra.mxu1 %v534_v10  ;;  %v540_v13 = vld [vmem:[%s768_s1 + $0x110] ss:$8 sps:$4 sm:$0xff]   ;;  %v522_v14 = vld [vmem:[%s768_s1 + $0x40] ss:$8 sps:$4 sm:$0xff]   ;;  %v523_v15 = vld [vmem:[%s768_s1 + $0x54] ss:$8 sps:$4 sm:$0xff]  }
   0x6   :  { %371 = vmatprep.subr.bf16.mxu1 %v538_v12  ;;  %v544_v16 = vld [vmem:[%s768_s1 + $0x124] ss:$8 sps:$4 sm:$0xff]   ;;  %v546_v17 = vld [vmem:[%s768_s1 + $0x120] ss:$8 sps:$4 sm:$0xff]   ;;  %v525_v18 = vld [vmem:[%s768_s1 + $0x50] ss:$8 sps:$4 sm:$0xff]  }
   0x7   :  { %331 = vmatpush1.bf16.msra.mxu0 %v513_v4  ;;  %v550_v19 = vld [vmem:[%s768_s1 + $0x134] ss:$8 sps:$4 sm:$0xff]   ;;  %v526_v20 = vld [vmem:[%s768_s1 + $0x64] ss:$8 sps:$4 sm:$0xff]   ;;  %v552_v21 = vld [vmem:[%s768_s1 + $0x130] ss:$8 sps:$4 sm:$0xff]  }
   0x8   :  { %332 = vmatprep.subr.bf16.mxu0 %v514_v5  ;;  %v528_v22 = vld [vmem:[%s768_s1 + $0x60] ss:$8 sps:$4 sm:$0xff]   ;;  %v556_v23 = vld [vmem:[%s768_s1 + $0x144] ss:$8 sps:$4 sm:$0xff]   ;;  %v529_v24 = vld [vmem:[%s768_s1 + $0x74] ss:$8 sps:$4 sm:$0xff]  }
   0x9   :  { %372 = vmatpush1.bf16.msra.mxu1 %v540_v13  ;;  %v558_v25 = vld [vmem:[%s768_s1 + $0x140] ss:$8 sps:$4 sm:$0xff]   ;;  %v531_v26 = vld [vmem:[%s768_s1 + $0x70] ss:$8 sps:$4 sm:$0xff]   ;;  %v562_v27 = vld [vmem:[%s768_s1 + $0x154] ss:$8 sps:$4 sm:$0xff]  }
   0xa   :  { %373 = vmatprep.subr.bf16.mxu1 %v544_v16  ;;  %v535_v28 = vld [vmem:[%s768_s1 + $0x84] ss:$8 sps:$4 sm:$0xff]   ;;  %v564_v29 = vld [vmem:[%s768_s1 + $0x150] ss:$8 sps:$4 sm:$0xff]   ;;  %v537_v30 = vld [vmem:[%s768_s1 + $0x80] ss:$8 sps:$4 sm:$0xff]  }
   0xb   :  { %333 = vmatpush1.bf16.msra.mxu0 %v516_v6  ;;  %v568_v31 = vld [vmem:[%s768_s1 + $0x164] ss:$8 sps:$4 sm:$0xff]   ;;  %v541_v32 = vld [vmem:[%s768_s1 + $0x94] ss:$8 sps:$4 sm:$0xff]   ;;  %v570_v35 = vld [vmem:[%s768_s1 + $0x160] ss:$8 sps:$4 sm:$0xff]  }
   0xc   :  { %334 = vmatprep.subr.bf16.mxu0 %v517_v7  ;;  %v27_v33 = vld [vmem:[%s769_s0] sm:$0xff]  ;;  %v543_v36 = vld [vmem:[%s768_s1 + $0x90] ss:$8 sps:$4 sm:$0xff]   ;;  %v574_v37 = vld [vmem:[%s768_s1 + $0x174] ss:$8 sps:$4 sm:$0xff]   ;;  %v422_v58 = vshrl.u32 %v421_v57, 7 }
   0xd   :  { %374 = vmatpush1.bf16.msra.mxu1 %v546_v17  ;;  %v455_v34 = vcombine.high %v27_v33, %v27_v33  ;;  %v547_v38 = vld [vmem:[%s768_s1 + $0xa4] ss:$8 sps:$4 sm:$0xff]   ;;  %v576_v39 = vld [vmem:[%s768_s1 + $0x170] ss:$8 sps:$4 sm:$0xff]   ;;  %v549_v40 = vld [vmem:[%s768_s1 + $0xa0] ss:$8 sps:$4 sm:$0xff]   ;;  %v454_v52 = vcombine.low %v27_v33, %v27_v33 }
   0xe   :  { %375 = vmatprep.subr.bf16.mxu1 %v550_v19  ;;  %v553_v41 = vld [vmem:[%s768_s1 + $0xb4] ss:$8 sps:$4 sm:$0xff]   ;;  %v580_v42 = vld [vmem:[%s769_s0 + $0x8] ss:$0 sps:$4 sm:$0xff]   ;;  %v555_v43 = vld [vmem:[%s768_s1 + $0xb0] ss:$8 sps:$4 sm:$0xff]  }
   0xf   :  { %335 = vmatpush1.bf16.msra.mxu0 %v519_v8  ;;  %360 = vmatprep.mubr.bf16.mxu0 %v455_v34  ;;  %v559_v44 = vld [vmem:[%s768_s1 + $0xc4] ss:$8 sps:$4 sm:$0xff]   ;;  %v561_v45 = vld [vmem:[%s768_s1 + $0xc0] ss:$8 sps:$4 sm:$0xff]   ;;  %v565_v46 = vld [vmem:[%s768_s1 + $0xd4] ss:$8 sps:$4 sm:$0xff]  }
  0x10   :  { %336 = vmatprep.subr.bf16.mxu0 %v520_v11  ;;  %v567_v47 = vld [vmem:[%s768_s1 + $0xd0] ss:$8 sps:$4 sm:$0xff]   ;;  %v571_v48 = vld [vmem:[%s768_s1 + $0xe4] ss:$8 sps:$4 sm:$0xff]   ;;  %v573_v49 = vld [vmem:[%s768_s1 + $0xe0] ss:$8 sps:$4 sm:$0xff]  }
  0x11   :  { %376 = vmatpush1.bf16.msra.mxu1 %v552_v21  ;;  %v577_v50 = vld [vmem:[%s768_s1 + $0xf4] ss:$8 sps:$4 sm:$0xff]   ;;  %v579_v51 = vld [vmem:[%s768_s1 + $0xf0] ss:$8 sps:$4 sm:$0xff]   ;;  %v423_v59 = vsub.s32 0, %v422_v58  ;;  %v427_v61 = vsub.s32 1, %v422_v58 }
  0x12   :  { %377 = vmatprep.subr.bf16.mxu1 %v556_v23  ;;  %v419_v60 = vld [vmem:[%s770_s2] sm:$0x3] }
  0x13   :  { %337 = vmatpush1.bf16.msra.mxu0 %v522_v14  ;;  %v424_v62 = vrot.slane %v419_v60, %v423_v59  ;;  %v428_v0 = vrot.slane %v419_v60, %v427_v61 }
  0x14   :  { %338 = vmatprep.subr.bf16.mxu0 %v523_v15 }
  0x15   :  { %378 = vmatpush1.bf16.msra.mxu1 %v558_v25 }
  0x16   :  { %379 = vmatprep.subr.bf16.mxu1 %v562_v27 }
  0x17   :  { %339 = vmatpush1.bf16.msra.mxu0 %v525_v18 }
  0x18   :  { %340 = vmatprep.subr.bf16.mxu0 %v526_v20 }
  0x19   :  { %380 = vmatpush1.bf16.msra.mxu1 %v564_v29 }
  0x1a   :  { %381 = vmatprep.subr.bf16.mxu1 %v568_v31 }
  0x1b   :  { %341 = vmatpush1.bf16.msra.mxu0 %v528_v22 }
  0x1c   :  { %342 = vmatprep.subr.bf16.mxu0 %v529_v24 }
  0x1d   :  { %382 = vmatpush1.bf16.msra.mxu1 %v570_v35 }
  0x1e   :  { %383 = vmatprep.subr.bf16.mxu1 %v574_v37 }
  0x1f   :  { %343 = vmatpush1.bf16.msra.mxu0 %v531_v26 }
  0x20   :  { %344 = vmatprep.subr.bf16.mxu0 %v535_v28 }
  0x21   :  { %384 = vmatpush1.bf16.msra.mxu1 %v576_v39 }
  0x23   :  { %345 = vmatpush1.bf16.msra.mxu0 %v537_v30 }
  0x24   :  { %346 = vmatprep.subr.bf16.mxu0 %v541_v32  ;;  %402 = vmatmul.mubr.bf16.vlgmr.msra.gmra.mrb[0].mxu1 %v580_v42 }
  0x27   :  { %347 = vmatpush1.bf16.msra.mxu0 %v543_v36 }
  0x28   :  { %348 = vmatprep.subr.bf16.mxu0 %v547_v38 }
  0x2b   :  { %349 = vmatpush1.bf16.msra.mxu0 %v549_v40 }
  0x2c   :  { %350 = vmatprep.subr.bf16.mxu0 %v553_v41 }
  0x2f   :  { %351 = vmatpush1.bf16.msra.mxu0 %v555_v43 }
  0x30   :  { %352 = vmatprep.subr.bf16.mxu0 %v559_v44 }
  0x33   :  { %353 = vmatpush1.bf16.msra.mxu0 %v561_v45 }
  0x34   :  { %354 = vmatprep.subr.bf16.mxu0 %v565_v46 }
  0x37   :  { %355 = vmatpush1.bf16.msra.mxu0 %v567_v47 }
  0x38   :  { %356 = vmatprep.subr.bf16.mxu0 %v571_v48 }
  0x3b   :  { %357 = vmatpush1.bf16.msra.mxu0 %v573_v49 }
  0x3c   :  { %358 = vmatprep.subr.bf16.mxu0 %v577_v50 }
  0x3f   :  { %359 = vmatpush1.bf16.msra.mxu0 %v579_v51 }
  0x42   :  { %361 = vmatmul.mubr.bf16.vlgmr.msra.gmra.mrb[0].mxu0 %v454_v52 }
  0xf7   :  { %v403_v53 = vpop.f32.mrb[0].mxu1 }
  0xf8   :  { %v405_v54 = vpop.f32.mrb[1].mxu1 }
  0xf9   :  { %v407_v55 = vpop.f32.mrb[2].mxu1 }
  0xfa   :  { %v408_v56 = vpop.f32.mrb[3].mxu1 }
 0x115   :  { %v362_v63 = vpop.f32.mrb[0].mxu0 }
 0x116   :  { %v404_v1 = vadd.f32 %v403_v53, %v362_v63  ;;  %v364_v2 = vpop.f32.mrb[1].mxu0 }
 0x117   :  { %v406_v4 = vadd.f32 %v405_v54, %v364_v2  ;;  %v366_v5 = vpop.f32.mrb[2].mxu0 }
 0x118   :  { %v431_v6 = vadd.f32 %v424_v62, %v404_v1  ;;  %v367_v7 = vpop.f32.mrb[3].mxu0 }
 0x119   :  { %v432_v8 = vadd.f32 %v428_v0, %v406_v4 }
 0x11a   :  { %vm434_vm0 = vcmp.gt.f32.partialorder %v431_v6, 0.0  ;;  %v437_v9 = vmul.f32 %v436_v3, %v431_v6 }
 0x11b   :  { %vm435_vm1 = vcmp.gt.f32.partialorder %v432_v8, 0.0  ;;  %v438_v10 = vmul.f32 %v436_v3, %v432_v8 }
 0x11c   :  { %v439_v11 = vsel %vm434_vm0, %v431_v6, %v437_v9 }
 0x11d   :  { %v440_v12 = vsel %vm435_vm1, %v432_v8, %v438_v10 }
 0x11e   :  { %v506_v13 = vpack.c.bf16 %v440_v12, %v439_v11 }
 0x120   :  { %449 = vst [vmem:[%s772_s4] sm:$0xff] %v506_v13 }

// kernel: mlp_forward.19
= control target key start
LH: loop header
LB: loop body
LE: loop exit
PB: predicated region body
PF: predicated region fallthrough
CT: control target
= control target key end

     0   :  { %v278_v35 = vlaneseq  ;;  %s530_s1 = inlined_call_operand.vmem [shape: bf16[256,256], index: 1, kind: input, shape index: {}]   ;;  %s531_s0 = inlined_call_operand.vmem [shape: bf16[8,256], index: 0, kind: input, shape index: {}]   ;;  %s532_s2 = inlined_call_operand.vmem [shape: f32[1,256], index: 2, kind: input, shape index: {}]   ;;  %s533_s3 = inlined_call_operand.<no memory space> [shape: f32[1,1], index: 3, kind: input, shape index: {}]   ;;  %s534_s4 = inlined_call_operand.vmem [shape: bf16[8,256], index: 4, kind: output, shape index: {}]  }
   0x1   :  { %v347_v0 = vld [vmem:[%s530_s1 + $0x4] ss:$8 sps:$4 sm:$0xff]   ;;  %v349_v1 = vld [vmem:[%s530_s1] ss:$8 sps:$4 sm:$0xff]   ;;  %v350_v2 = vld [vmem:[%s530_s1 + $0x14] ss:$8 sps:$4 sm:$0xff]   ;;  %v293_v43 = vstv %s533_s3 }
   0x2   :  { %226 = vmatprep.subr.bf16.mxu0 %v347_v0  ;;  %v352_v3 = vld [vmem:[%s530_s1 + $0x10] ss:$8 sps:$4 sm:$0xff]   ;;  %v353_v4 = vld [vmem:[%s530_s1 + $0x24] ss:$8 sps:$4 sm:$0xff]   ;;  %v355_v5 = vld [vmem:[%s530_s1 + $0x20] ss:$8 sps:$4 sm:$0xff]  }
   0x3   :  { %227 = vmatpush1.bf16.msra.mxu0 %v349_v1  ;;  %v356_v6 = vld [vmem:[%s530_s1 + $0x34] ss:$8 sps:$4 sm:$0xff]   ;;  %v358_v7 = vld [vmem:[%s530_s1 + $0x30] ss:$8 sps:$4 sm:$0xff]   ;;  %v359_v8 = vld [vmem:[%s530_s1 + $0x44] ss:$8 sps:$4 sm:$0xff]  }
   0x4   :  { %228 = vmatprep.subr.bf16.mxu0 %v350_v2  ;;  %v361_v9 = vld [vmem:[%s530_s1 + $0x40] ss:$8 sps:$4 sm:$0xff]   ;;  %v362_v10 = vld [vmem:[%s530_s1 + $0x54] ss:$8 sps:$4 sm:$0xff]   ;;  %v364_v11 = vld [vmem:[%s530_s1 + $0x50] ss:$8 sps:$4 sm:$0xff]  }
   0x5   :  { %v365_v12 = vld [vmem:[%s530_s1 + $0x64] ss:$8 sps:$4 sm:$0xff]   ;;  %v367_v15 = vld [vmem:[%s530_s1 + $0x60] ss:$8 sps:$4 sm:$0xff]   ;;  %v368_v16 = vld [vmem:[%s530_s1 + $0x74] ss:$8 sps:$4 sm:$0xff]  }
   0x6   :  { %v26_v13 = vld [vmem:[%s531_s0] sm:$0xff]  ;;  %v370_v17 = vld [vmem:[%s530_s1 + $0x70] ss:$8 sps:$4 sm:$0xff]   ;;  %v374_v20 = vld [vmem:[%s530_s1 + $0x94] ss:$8 sps:$4 sm:$0xff]   ;;  %v279_v36 = vshrl.u32 %v278_v35, 7 }
   0x7   :  { %229 = vmatpush1.bf16.msra.mxu0 %v352_v3  ;;  %v312_v14 = vcombine.high %v26_v13, %v26_v13  ;;  %v371_v18 = vld [vmem:[%s530_s1 + $0x84] ss:$8 sps:$4 sm:$0xff]   ;;  %v373_v19 = vld [vmem:[%s530_s1 + $0x80] ss:$8 sps:$4 sm:$0xff]   ;;  %v376_v21 = vld [vmem:[%s530_s1 + $0x90] ss:$8 sps:$4 sm:$0xff]   ;;  %v311_v34 = vcombine.low %v26_v13, %v26_v13 }
   0x8   :  { %230 = vmatprep.subr.bf16.mxu0 %v353_v4  ;;  %v377_v22 = vld [vmem:[%s530_s1 + $0xa4] ss:$8 sps:$4 sm:$0xff]   ;;  %v379_v23 = vld [vmem:[%s530_s1 + $0xa0] ss:$8 sps:$4 sm:$0xff]   ;;  %v380_v24 = vld [vmem:[%s530_s1 + $0xb4] ss:$8 sps:$4 sm:$0xff]  }
   0x9   :  { %258 = vmatprep.mubr.bf16.mxu0 %v312_v14  ;;  %v382_v25 = vld [vmem:[%s530_s1 + $0xb0] ss:$8 sps:$4 sm:$0xff]   ;;  %v383_v26 = vld [vmem:[%s530_s1 + $0xc4] ss:$8 sps:$4 sm:$0xff]   ;;  %v385_v27 = vld [vmem:[%s530_s1 + $0xc0] ss:$8 sps:$4 sm:$0xff]  }
   0xa   :  { %v386_v28 = vld [vmem:[%s530_s1 + $0xd4] ss:$8 sps:$4 sm:$0xff]   ;;  %v388_v29 = vld [vmem:[%s530_s1 + $0xd0] ss:$8 sps:$4 sm:$0xff]   ;;  %v389_v30 = vld [vmem:[%s530_s1 + $0xe4] ss:$8 sps:$4 sm:$0xff]  }
   0xb   :  { %231 = vmatpush1.bf16.msra.mxu0 %v355_v5  ;;  %v391_v31 = vld [vmem:[%s530_s1 + $0xe0] ss:$8 sps:$4 sm:$0xff]   ;;  %v392_v32 = vld [vmem:[%s530_s1 + $0xf4] ss:$8 sps:$4 sm:$0xff]   ;;  %v394_v33 = vld [vmem:[%s530_s1 + $0xf0] ss:$8 sps:$4 sm:$0xff]  }
   0xc   :  { %232 = vmatprep.subr.bf16.mxu0 %v356_v6  ;;  %v280_v37 = vsub.s32 0, %v279_v36  ;;  %v276_v38 = vld [vmem:[%s532_s2] sm:$0x3]  ;;  %v284_v39 = vsub.s32 1, %v279_v36 }
   0xe   :  { %v281_v40 = vrot.slane %v276_v38, %v280_v37  ;;  %v285_v41 = vrot.slane %v276_v38, %v284_v39 }
   0xf   :  { %233 = vmatpush1.bf16.msra.mxu0 %v358_v7 }
  0x10   :  { %234 = vmatprep.subr.bf16.mxu0 %v359_v8 }
  0x13   :  { %235 = vmatpush1.bf16.msra.mxu0 %v361_v9 }
  0x14   :  { %236 = vmatprep.subr.bf16.mxu0 %v362_v10 }
  0x17   :  { %237 = vmatpush1.bf16.msra.mxu0 %v364_v11 }
  0x18   :  { %238 = vmatprep.subr.bf16.mxu0 %v365_v12 }
  0x1b   :  { %239 = vmatpush1.bf16.msra.mxu0 %v367_v15 }
  0x1c   :  { %240 = vmatprep.subr.bf16.mxu0 %v368_v16 }
  0x1f   :  { %241 = vmatpush1.bf16.msra.mxu0 %v370_v17 }
  0x20   :  { %242 = vmatprep.subr.bf16.mxu0 %v371_v18 }
  0x23   :  { %243 = vmatpush1.bf16.msra.mxu0 %v373_v19 }
  0x24   :  { %244 = vmatprep.subr.bf16.mxu0 %v374_v20 }
  0x27   :  { %245 = vmatpush1.bf16.msra.mxu0 %v376_v21 }
  0x28   :  { %246 = vmatprep.subr.bf16.mxu0 %v377_v22 }
  0x2b   :  { %247 = vmatpush1.bf16.msra.mxu0 %v379_v23 }
  0x2c   :  { %248 = vmatprep.subr.bf16.mxu0 %v380_v24 }
  0x2f   :  { %249 = vmatpush1.bf16.msra.mxu0 %v382_v25 }
  0x30   :  { %250 = vmatprep.subr.bf16.mxu0 %v383_v26 }
  0x33   :  { %251 = vmatpush1.bf16.msra.mxu0 %v385_v27 }
  0x34   :  { %252 = vmatprep.subr.bf16.mxu0 %v386_v28 }
  0x37   :  { %253 = vmatpush1.bf16.msra.mxu0 %v388_v29 }
  0x38   :  { %254 = vmatprep.subr.bf16.mxu0 %v389_v30 }
  0x3b   :  { %255 = vmatpush1.bf16.msra.mxu0 %v391_v31 }
  0x3c   :  { %256 = vmatprep.subr.bf16.mxu0 %v392_v32 }
  0x3f   :  { %257 = vmatpush1.bf16.msra.mxu0 %v394_v33 }
  0x42   :  { %259 = vmatmul.mubr.bf16.vlgmr.msra.gmra.mrb[0].mxu0 %v311_v34 }
 0x115   :  { %v260_v42 = vpop.f32.mrb[0].mxu0 }
 0x116   :  { %v288_v44 = vadd.f32 %v281_v40, %v260_v42  ;;  %v262_v45 = vpop.f32.mrb[1].mxu0 }
 0x117   :  { %v289_v46 = vadd.f32 %v285_v41, %v262_v45  ;;  %v264_v47 = vpop.f32.mrb[2].mxu0 }
 0x118   :  { %vm291_vm0 = vcmp.gt.f32.partialorder %v288_v44, 0.0  ;;  %v294_v48 = vmul.f32 %v293_v43, %v288_v44  ;;  %v265_v49 = vpop.f32.mrb[3].mxu0 }
 0x119   :  { %vm292_vm1 = vcmp.gt.f32.partialorder %v289_v46, 0.0  ;;  %v295_v50 = vmul.f32 %v293_v43, %v289_v46 }
 0x11a   :  { %v296_v51 = vsel %vm291_vm0, %v288_v44, %v294_v48 }
 0x11b   :  { %v297_v52 = vsel %vm292_vm1, %v289_v46, %v295_v50 }
 0x11c   :  { %v346_v53 = vpack.c.bf16 %v297_v52, %v296_v51 }
 0x11e   :  { %306 = vst [vmem:[%s534_s4] sm:$0xff] %v346_v53 }

// kernel: mlp_forward.21
= control target key start
LH: loop header
LB: loop body
LE: loop exit
PB: predicated region body
PF: predicated region fallthrough
CT: control target
= control target key end

     0   :  { %v203_v0 = vmov 0.0   ;;  %vm204_vm0 = vmmov 0   ;;  %s266_s1 = inlined_call_operand.vmem [shape: bf16[128,128], index: 1, kind: input, shape index: {}]   ;;  %s267_s0 = inlined_call_operand.vmem [shape: bf16[8,128], index: 0, kind: input, shape index: {}]   ;;  %s268_s2 = inlined_call_operand.vmem [shape: f32[1,128], index: 2, kind: input, shape index: {}]   ;;  %s269_s3 = inlined_call_operand.<no memory space> [shape: f32[1,1], index: 3, kind: input, shape index: {}]   ;;  %s270_s4 = inlined_call_operand.vmem [shape: bf16[8,128], index: 4, kind: output, shape index: {}]  }
   0x1   :  { %173 = vmatprep.subr.bf16.mxu0 %v203_v0  ;;  %v195_v1 = vld [vmem:[%s266_s1] sm:$0xff]   ;;  %189 = vmatprep.mubr.msk.bf16.mxu0 %vm204_vm0, %v203_v0  ;;  %v196_v2 = vld [vmem:[%s266_s1 + $0x8] sm:$0xff]   ;;  %v197_v3 = vld [vmem:[%s266_s1 + $0x10] sm:$0xff]   ;;  %v146_v12 = vstv %s269_s3 }
   0x2   :  { %174 = vmatpush3.bf16.msra.mxu0 %v195_v1  ;;  %v198_v4 = vld [vmem:[%s266_s1 + $0x18] sm:$0xff]   ;;  %v199_v5 = vld [vmem:[%s266_s1 + $0x20] sm:$0xff]   ;;  %v200_v6 = vld [vmem:[%s266_s1 + $0x28] sm:$0xff]  }
   0x3   :  { %175 = vmatprep.subr.bf16.mxu0 %v203_v0  ;;  %v201_v7 = vld [vmem:[%s266_s1 + $0x30] sm:$0xff]   ;;  %v202_v8 = vld [vmem:[%s266_s1 + $0x38] sm:$0xff]   ;;  %v25_v9 = vld [vmem:[%s267_s0] sm:$0xf] }
   0x4   :  { %v163_v10 = vld [vmem:[%s268_s2] ss:$0 sm:$0xff] }
   0x6   :  { %176 = vmatpush3.bf16.msra.mxu0 %v196_v2 }
   0x7   :  { %177 = vmatprep.subr.bf16.mxu0 %v203_v0 }
   0xa   :  { %178 = vmatpush3.bf16.msra.mxu0 %v197_v3 }
   0xb   :  { %179 = vmatprep.subr.bf16.mxu0 %v203_v0 }
   0xe   :  { %180 = vmatpush3.bf16.msra.mxu0 %v198_v4 }
   0xf   :  { %181 = vmatprep.subr.bf16.mxu0 %v203_v0 }
  0x12   :  { %182 = vmatpush3.bf16.msra.mxu0 %v199_v5 }
  0x13   :  { %183 = vmatprep.subr.bf16.mxu0 %v203_v0 }
  0x16   :  { %184 = vmatpush3.bf16.msra.mxu0 %v200_v6 }
  0x17   :  { %185 = vmatprep.subr.bf16.mxu0 %v203_v0 }
  0x1a   :  { %186 = vmatpush3.bf16.msra.mxu0 %v201_v7 }
  0x1b   :  { %187 = vmatprep.subr.bf16.mxu0 %v203_v0 }
  0x1e   :  { %188 = vmatpush3.bf16.msra.mxu0 %v202_v8 }
  0x21   :  { %190 = vmatmul.mubr.bf16.vlgmr.msra.gmra.mrb[0].mxu0 %v25_v9 }
  0xf4   :  { %v124_v11 = vpop.f32.mrb[0].mxu0 }
  0xf5   :  { %v143_v13 = vadd.f32 %v163_v10, %v124_v11  ;;  %v191_v14 = vpop.f32.mrb[1].mxu0 }
  0xf6   :  { %v127_v15 = vpop.f32.mrb[2].mxu0 }
  0xf7   :  { %vm145_vm1 = vcmp.gt.f32.partialorder %v143_v13, 0.0  ;;  %v147_v16 = vmul.f32 %v146_v12, %v143_v13  ;;  %v192_v17 = vpop.f32.mrb[3].mxu0 }
  0xf9   :  { %v148_v18 = vsel %vm145_vm1, %v143_v13, %v147_v16 }
  0xfa   :  { %v149_v19 = vpack.c.bf16 %v148_v18, %v148_v18 }
  0xfc   :  { %150 = vst [vmem:[%s270_s4] sm:$0xf] %v149_v19 }

// kernel: mlp_forward.20
= control target key start
LH: loop header
LB: loop body
LE: loop exit
PB: predicated region body
PF: predicated region fallthrough
CT: control target
= control target key end

     0   :  { %s370_s1 = inlined_call_operand.vmem [shape: bf16[256,128], index: 1, kind: input, shape index: {}]   ;;  %s371_s0 = inlined_call_operand.vmem [shape: bf16[8,256], index: 0, kind: input, shape index: {}]   ;;  %s372_s2 = inlined_call_operand.vmem [shape: f32[1,128], index: 2, kind: input, shape index: {}]   ;;  %s373_s3 = inlined_call_operand.<no memory space> [shape: f32[1,1], index: 3, kind: input, shape index: {}]   ;;  %s374_s4 = inlined_call_operand.vmem [shape: bf16[8,128], index: 4, kind: output, shape index: {}]  }
   0x1   :  { %v267_v0 = vld [vmem:[%s370_s1 + $0x40] sm:$0xff]   ;;  %v269_v2 = vld [vmem:[%s370_s1 + $0x48] sm:$0xff]   ;;  %v271_v4 = vld [vmem:[%s370_s1 + $0x50] sm:$0xff]   ;;  %v217_v24 = vstv %s373_s3 }
   0x2   :  { %v268_v1 = vld [vmem:[%s370_s1] sm:$0xff]   ;;  %245 = vmatprep.subr.bf16.mxu0 %v267_v0  ;;  %v270_v3 = vld [vmem:[%s370_s1 + $0x8] sm:$0xff]   ;;  %v272_v5 = vld [vmem:[%s370_s1 + $0x10] sm:$0xff]  }
   0x3   :  { %246 = vmatpush3.bf16.msra.mxu0 %v268_v1  ;;  %v273_v6 = vld [vmem:[%s370_s1 + $0x58] sm:$0xff]   ;;  %v275_v8 = vld [vmem:[%s370_s1 + $0x60] sm:$0xff]   ;;  %v277_v10 = vld [vmem:[%s370_s1 + $0x68] sm:$0xff]  }
   0x4   :  { %247 = vmatprep.subr.bf16.mxu0 %v269_v2  ;;  %v274_v7 = vld [vmem:[%s370_s1 + $0x18] sm:$0xff]   ;;  %v276_v9 = vld [vmem:[%s370_s1 + $0x20] sm:$0xff]   ;;  %v278_v13 = vld [vmem:[%s370_s1 + $0x28] sm:$0xff]  }
   0x5   :  { %v25_v11 = vld [vmem:[%s371_s0] sm:$0xff]  ;;  %v279_v14 = vld [vmem:[%s370_s1 + $0x70] sm:$0xff]   ;;  %v281_v16 = vld [vmem:[%s370_s1 + $0x78] sm:$0xff]  }
   0x6   :  { %v227_v12 = vcombine.high %v25_v11, %v25_v11  ;;  %v280_v15 = vld [vmem:[%s370_s1 + $0x30] sm:$0xff]   ;;  %v282_v17 = vld [vmem:[%s370_s1 + $0x38] sm:$0xff]   ;;  %v226_v18 = vcombine.low %v25_v11, %v25_v11  ;;  %v244_v21 = vld [vmem:[%s372_s2] ss:$0 sm:$0xff] }
   0x7   :  { %248 = vmatpush3.bf16.msra.mxu0 %v270_v3 }
   0x8   :  { %249 = vmatprep.subr.bf16.mxu0 %v271_v4  ;;  %193 = vmatprep.mubr.bf16.mxu0 %v227_v12 }
   0xb   :  { %250 = vmatpush3.bf16.msra.mxu0 %v272_v5 }
   0xc   :  { %251 = vmatprep.subr.bf16.mxu0 %v273_v6 }
   0xf   :  { %252 = vmatpush3.bf16.msra.mxu0 %v274_v7 }
  0x10   :  { %253 = vmatprep.subr.bf16.mxu0 %v275_v8 }
  0x13   :  { %254 = vmatpush3.bf16.msra.mxu0 %v276_v9 }
  0x14   :  { %255 = vmatprep.subr.bf16.mxu0 %v277_v10 }
  0x17   :  { %256 = vmatpush3.bf16.msra.mxu0 %v278_v13 }
  0x18   :  { %257 = vmatprep.subr.bf16.mxu0 %v279_v14 }
  0x1b   :  { %258 = vmatpush3.bf16.msra.mxu0 %v280_v15 }
  0x1c   :  { %259 = vmatprep.subr.bf16.mxu0 %v281_v16 }
  0x1f   :  { %260 = vmatpush3.bf16.msra.mxu0 %v282_v17 }
  0x22   :  { %194 = vmatmul.mubr.bf16.vlgmr.msra.gmra.mrb[0].mxu0 %v226_v18 }
  0xf5   :  { %v261_v19 = vpop.f32.mrb[0].mxu0 }
  0xf6   :  { %v262_v20 = vpop.f32.mrb[1].mxu0 }
  0xf7   :  { %v263_v22 = vadd.f32 %v262_v20, %v261_v19  ;;  %v264_v23 = vpop.f32.mrb[2].mxu0 }
  0xf8   :  { %v265_v25 = vpop.f32.mrb[3].mxu0 }
  0xf9   :  { %v214_v26 = vadd.f32 %v263_v22, %v244_v21 }
  0xfb   :  { %vm216_vm0 = vcmp.gt.f32.partialorder %v214_v26, 0.0  ;;  %v218_v27 = vmul.f32 %v217_v24, %v214_v26 }
  0xfd   :  { %v219_v28 = vsel %vm216_vm0, %v214_v26, %v218_v27 }
  0xfe   :  { %v220_v29 = vpack.c.bf16 %v219_v28, %v219_v28 }
 0x100   :  { %221 = vst [vmem:[%s374_s4] sm:$0xf] %v220_v29 }

// kernel: mlp_forward.23
= control target key start
LH: loop header
LB: loop body
LE: loop exit
PB: predicated region body
PF: predicated region fallthrough
CT: control target
= control target key end

     0   :  { %v202_v0 = vmov 0.0   ;;  %vm203_vm0 = vmmov 0   ;;  %s265_s1 = inlined_call_operand.vmem [shape: bf16[128,128], index: 1, kind: input, shape index: {}]   ;;  %s266_s0 = inlined_call_operand.vmem [shape: bf16[8,128], index: 0, kind: input, shape index: {}]   ;;  %s267_s2 = inlined_call_operand.vmem [shape: f32[1,128], index: 2, kind: input, shape index: {}]   ;;  %s268_s3 = inlined_call_operand.<no memory space> [shape: f32[1,1], index: 3, kind: input, shape index: {}]   ;;  %s269_s4 = inlined_call_operand.vmem [shape: f32[8,128], index: 4, kind: output, shape index: {}]  }
   0x1   :  { %172 = vmatprep.subr.bf16.mxu0 %v202_v0  ;;  %v194_v1 = vld [vmem:[%s265_s1] sm:$0xff]   ;;  %188 = vmatprep.mubr.msk.bf16.mxu0 %vm203_vm0, %v202_v0  ;;  %v195_v2 = vld [vmem:[%s265_s1 + $0x8] sm:$0xff]   ;;  %v196_v3 = vld [vmem:[%s265_s1 + $0x10] sm:$0xff]   ;;  %v146_v12 = vstv %s268_s3 }
   0x2   :  { %173 = vmatpush3.bf16.msra.mxu0 %v194_v1  ;;  %v197_v4 = vld [vmem:[%s265_s1 + $0x18] sm:$0xff]   ;;  %v198_v5 = vld [vmem:[%s265_s1 + $0x20] sm:$0xff]   ;;  %v199_v6 = vld [vmem:[%s265_s1 + $0x28] sm:$0xff]  }
   0x3   :  { %174 = vmatprep.subr.bf16.mxu0 %v202_v0  ;;  %v200_v7 = vld [vmem:[%s265_s1 + $0x30] sm:$0xff]   ;;  %v201_v8 = vld [vmem:[%s265_s1 + $0x38] sm:$0xff]   ;;  %v25_v9 = vld [vmem:[%s266_s0] sm:$0xf] }
   0x4   :  { %v162_v10 = vld [vmem:[%s267_s2] ss:$0 sm:$0xff] }
   0x6   :  { %175 = vmatpush3.bf16.msra.mxu0 %v195_v2 }
   0x7   :  { %176 = vmatprep.subr.bf16.mxu0 %v202_v0 }
   0xa   :  { %177 = vmatpush3.bf16.msra.mxu0 %v196_v3 }
   0xb   :  { %178 = vmatprep.subr.bf16.mxu0 %v202_v0 }
   0xe   :  { %179 = vmatpush3.bf16.msra.mxu0 %v197_v4 }
   0xf   :  { %180 = vmatprep.subr.bf16.mxu0 %v202_v0 }
  0x12   :  { %181 = vmatpush3.bf16.msra.mxu0 %v198_v5 }
  0x13   :  { %182 = vmatprep.subr.bf16.mxu0 %v202_v0 }
  0x16   :  { %183 = vmatpush3.bf16.msra.mxu0 %v199_v6 }
  0x17   :  { %184 = vmatprep.subr.bf16.mxu0 %v202_v0 }
  0x1a   :  { %185 = vmatpush3.bf16.msra.mxu0 %v200_v7 }
  0x1b   :  { %186 = vmatprep.subr.bf16.mxu0 %v202_v0 }
  0x1e   :  { %187 = vmatpush3.bf16.msra.mxu0 %v201_v8 }
  0x21   :  { %189 = vmatmul.mubr.bf16.vlgmr.msra.gmra.mrb[0].mxu0 %v25_v9 }
  0xf4   :  { %v124_v11 = vpop.f32.mrb[0].mxu0 }
  0xf5   :  { %v143_v13 = vadd.f32 %v162_v10, %v124_v11  ;;  %v190_v14 = vpop.f32.mrb[1].mxu0 }
  0xf6   :  { %v127_v15 = vpop.f32.mrb[2].mxu0 }
  0xf7   :  { %vm145_vm1 = vcmp.gt.f32.partialorder %v143_v13, 0.0  ;;  %v147_v16 = vmul.f32 %v146_v12, %v143_v13  ;;  %v191_v17 = vpop.f32.mrb[3].mxu0 }
  0xf9   :  { %v148_v18 = vsel %vm145_vm1, %v143_v13, %v147_v16 }
  0xfa   :  { %149 = vst [vmem:[%s269_s4] sm:$0xff] %v148_v18 }

</bundles_post_ra>
